<compile_context>
chip_gen: v7x
topology: tpu7x:2x2x1
jax: 0.10.0
libtpu: 0.0.40
codegen_flags: <defaults>
</compile_context>

<pallas_src>
import functools
import math

import jax
import jax.numpy as jnp
from jax.experimental import pallas as pl
from jax.experimental.pallas import tpu as pltpu


# --------------------------------------------------------------------------- #
# small helpers
# --------------------------------------------------------------------------- #
def round_up(x, m):
    return (x + m - 1) // m * m


def cdiv(a, b):
    return (a + b - 1) // b


# --------------------------------------------------------------------------- #
# fused matmul:  O = act(A*scale + shift) @ B  (+ addend)
# single full-extent K/N block, row-tiled over M, BN col-stats fused epilogue.
# --------------------------------------------------------------------------- #
def _mm_kernel(*refs, act, has_affine, has_addend, m_valid, tm):
    idx = 0
    a_ref = refs[idx]; idx += 1
    if has_affine:
        s_ref, t_ref = refs[idx], refs[idx + 1]; idx += 2
    if has_addend:
        c_ref = refs[idx]; idx += 1
    b_ref, o_ref, st_ref = refs[idx], refs[idx + 1], refs[idx + 2]

    a = a_ref[...]                                   # (TM, K) f32
    if has_affine:
        a = a * s_ref[...] + t_ref[...]              # consumer-fused BN affine
        if act == "relu":
            a = jnp.maximum(a, 0.0)
        if m_valid is not None:
            # padded rows would be relu(shift) != 0 -> mask so output/stats stay exact
            rows = (jax.lax.broadcasted_iota(jnp.int32, a.shape, 0)
                    + pl.program_id(0) * tm)
            a = jnp.where(rows < m_valid, a, 0.0)
    out = jnp.dot(a.astype(jnp.bfloat16), b_ref[...],
                  preferred_element_type=jnp.float32)
    if has_addend:
        out = out + c_ref[...]
    o_ref[...] = out
    # BN sufficient statistics (rows 0/1 of an (8,N) tile) -- direct row stores.
    st_ref[0:1, :] = jnp.sum(out, axis=0, keepdims=True)
    st_ref[1:2, :] = jnp.sum(out * out, axis=0, keepdims=True)


def matmul_fused(a, b, *, scale=None, shift=None, act="none", addend=None):
    """O = act(a*scale+shift) @ b (+ addend).  b is a bf16 weight built at init.
    Returns (O_f32, (col_sum, col_sumsq)) -- the stats used for train-mode BN
    come for free from the epilogue.  K and N are kept as single full-extent
    blocks (all K/N in this model are tiny), so no padding copies are emitted."""
    a = a.astype(jnp.float32)
    b = b.astype(jnp.bfloat16)
    M, K = a.shape
    K2, N = b.shape
    assert K == K2
    has_affine = scale is not None
    has_addend = addend is not None

    if M <= 256:
        tm = round_up(M, 8)
    else:
        tm = min(round_up(cdiv(M, 2), 8), 512)       # >=2 row tiles feeds both v7x TCs
    mp = round_up(M, tm)
    gm = mp // tm
    if mp != M:
        a = jnp.pad(a, ((0, mp - M), (0, 0)))
        if has_addend:
            addend = jnp.pad(addend.astype(jnp.float32), ((0, mp - M), (0, 0)))
    m_valid = M if (has_affine and mp != M) else None

    inputs = [a]
    in_specs = [pl.BlockSpec((tm, K), lambda i: (i, 0))]
    if has_affine:
        inputs += [scale.reshape(1, K).astype(jnp.float32),
                   shift.reshape(1, K).astype(jnp.float32)]
        in_specs += [pl.BlockSpec((1, K), lambda i: (0, 0)),
                     pl.BlockSpec((1, K), lambda i: (0, 0))]
    if has_addend:
        inputs.append(addend.astype(jnp.float32))
        in_specs.append(pl.BlockSpec((tm, N), lambda i: (i, 0)))
    inputs.append(b)
    in_specs.append(pl.BlockSpec((K, N), lambda i: (0, 0)))

    out, st = pl.pallas_call(
        functools.partial(_mm_kernel, act=act, has_affine=has_affine,
                          has_addend=has_addend, m_valid=m_valid, tm=tm),
        out_shape=(jax.ShapeDtypeStruct((mp, N), jnp.float32),
                   jax.ShapeDtypeStruct((gm * 8, N), jnp.float32)),
        grid=(gm,),
        in_specs=in_specs,
        out_specs=(pl.BlockSpec((tm, N), lambda i: (i, 0)),
                   pl.BlockSpec((8, N), lambda i: (i, 0))),
        compiler_params=pltpu.CompilerParams(dimension_semantics=("parallel",)),
    )(*inputs)

    if mp != M:
        out = out[:M]
    st3 = st.reshape(gm, 8, N)
    return out, (jnp.sum(st3[:, 0, :], axis=0), jnp.sum(st3[:, 1, :], axis=0))


# --------------------------------------------------------------------------- #
# 3x3 / stride-1 / pad-1 convolution.
# Host prep folds the producer's BN affine (padding then sees true zeros) and the
# three kx taps into the channel axis; in-kernel only three ROW-ALIGNED ky taps
# remain, contracted as wide-K bf16 dots accumulated into the o_ref VMEM block.
# --------------------------------------------------------------------------- #
def _conv3x3_kernel(x_ref, w_ref, o_ref, st_ref, *, W, L):
    # x_ref: (1, (H+2)*W, 3*Cin) bf16 ; w_ref: (3, 3*Cin, Cout) bf16
    o_ref[0] = jnp.dot(x_ref[0, 0:L, :], w_ref[0],
                       preferred_element_type=jnp.float32)
    o_ref[0] += jnp.dot(x_ref[0, W:W + L, :], w_ref[1],
                        preferred_element_type=jnp.float32)
    o_ref[0] += jnp.dot(x_ref[0, 2 * W:2 * W + L, :], w_ref[2],
                        preferred_element_type=jnp.float32)
    y = o_ref[0]
    st_ref[0, 0:1, :] = jnp.sum(y, axis=0, keepdims=True)
    st_ref[0, 1:2, :] = jnp.sum(y * y, axis=0, keepdims=True)


def conv3x3_fused(x_pre2d, scale, shift, act, w3_bf16, B, H, W):
    """Returns ((B*H*W, Cout) f32, (col_sum, col_sumsq)).  scale/shift/act is the
    producer BN affine, applied in the (XLA-fused) im2col prep.  Row slices inside
    the kernel are sublane-aligned when W % 8 == 0 (true for this model)."""
    Cin = x_pre2d.shape[-1]
    Cout = w3_bf16.shape[-1]
    x = x_pre2d.reshape(B, H, W, Cin)
    if scale is not None:
        x = x * scale + shift
        if act == "relu":
            x = jnp.maximum(x, 0.0)
    xp = jnp.pad(x, ((0, 0), (1, 1), (1, 1), (0, 0)))
    # fold kx in {0,1,2} into channels (3x, not 9x, im2col)
    x3 = jnp.concatenate([xp[:, :, kx:kx + W, :] for kx in range(3)], axis=-1)
    x3 = x3.reshape(B, (H + 2) * W, 3 * Cin).astype(jnp.bfloat16)
    L = H * W
    # TODO(synk): for large H*W row-tile the image with a 1-row halo DMA instead of
    # whole-image blocks (VMEM budget: 64 MiB on v7x, 16 MiB default scoped on v5e).
    out, st = pl.pallas_call(
        functools.partial(_conv3x3_kernel, W=W, L=L),
        out_shape=(jax.ShapeDtypeStruct((B, L, Cout), jnp.float32),
                   jax.ShapeDtypeStruct((B, 8, Cout), jnp.float32)),
        grid=(B,),
        in_specs=[pl.BlockSpec((1, (H + 2) * W, 3 * Cin), lambda b: (b, 0, 0)),
                  pl.BlockSpec((3, 3 * Cin, Cout), lambda b: (0, 0, 0))],
        out_specs=(pl.BlockSpec((1, L, Cout), lambda b: (b, 0, 0)),
                   pl.BlockSpec((1, 8, Cout), lambda b: (b, 0, 0))),
        compiler_params=pltpu.CompilerParams(dimension_semantics=("parallel",)),
    )(x3, w3_bf16)
    return (out.reshape(B * L, Cout),
            (jnp.sum(st[:, 0, :], axis=0), jnp.sum(st[:, 1, :], axis=0)))


# --------------------------------------------------------------------------- #
# lane-dense packed elementwise kernels (BN affine pre-FFT, residual add tail)
# --------------------------------------------------------------------------- #
def _affine_act_kernel(x_ref, s_ref, t_ref, o_ref, *, act):
    y = x_ref[...] * s_ref[...] + t_ref[...]
    o_ref[...] = jnp.maximum(y, 0.0) if act == "relu" else y


def _affine_add_act_kernel(x_ref, r_ref, s_ref, t_ref, o_ref, *, act):
    y = x_ref[...] * s_ref[...] + t_ref[...] + r_ref[...]
    o_ref[...] = jnp.maximum(y, 0.0) if act == "relu" else y


def _packable(c):
    return c <= 128 and 128 % c == 0


def _pack(x2d):
    m, c = x2d.shape
    flat = x2d.reshape(m * c)
    lp = round_up(m * c, 128)
    if lp != m * c:
        flat = jnp.pad(flat, (0, lp - m * c))
    return flat.reshape(lp // 128, 128)


def _tile_vec(v, c):
    return jnp.tile(v.astype(jnp.float32), 128 // c).reshape(1, 128)


def _launch_rows(kernel, row_arrays, bcast_arrays):
    r, cc = row_arrays[0].shape
    br = min(round_up(max(r, 1), 8), 1024)
    rp = round_up(r, br)
    row_arrays = [x if x.shape[0] == rp else jnp.pad(x, ((0, rp - x.shape[0]), (0, 0)))
                  for x in row_arrays]
    in_specs = ([pl.BlockSpec((br, cc), lambda i: (i, 0)) for _ in row_arrays]
                + [pl.BlockSpec((1, cc), lambda i: (0, 0)) for _ in bcast_arrays])
    y = pl.pallas_call(
        kernel,
        out_shape=jax.ShapeDtypeStruct((rp, cc), jnp.float32),
        grid=(rp // br,),
        in_specs=in_specs,
        out_specs=pl.BlockSpec((br, cc), lambda i: (i, 0)),
        compiler_params=pltpu.CompilerParams(dimension_semantics=("parallel",)),
    )(*row_arrays, *bcast_arrays)
    return y if rp == r else y[:r]


def affine_act(x2d, scale, shift, act="none"):
    m, c = x2d.shape
    x2d = x2d.astype(jnp.float32)
    if _packable(c):
        xs, sc, sh = [_pack(x2d)], _tile_vec(scale, c), _tile_vec(shift, c)
    else:  # TODO(synk): lane-sparse fallback when C does not divide 128
        xs = [x2d]
        sc, sh = scale.reshape(1, c).astype(jnp.float32), shift.reshape(1, c).astype(jnp.float32)
    y = _launch_rows(functools.partial(_affine_act_kernel, act=act), xs, (sc, sh))
    return y.reshape(-1)[: m * c].reshape(m, c)


def affine_add_act(x2d, r2d, scale, shift, act="relu"):
    m, c = x2d.shape
    x2d = x2d.astype(jnp.float32)
    r2d = r2d.astype(jnp.float32)
    if _packable(c):
        xs = [_pack(x2d), _pack(r2d)]
        sc, sh = _tile_vec(scale, c), _tile_vec(shift, c)
    else:
        xs = [x2d, r2d]
        sc, sh = scale.reshape(1, c).astype(jnp.float32), shift.reshape(1, c).astype(jnp.float32)
    y = _launch_rows(functools.partial(_affine_add_act_kernel, act=act), xs, (sc, sh))
    return y.reshape(-1)[: m * c].reshape(m, c)


# --------------------------------------------------------------------------- #
# BatchNorm scale/shift from fused sufficient statistics (train-mode batch stats)
# --------------------------------------------------------------------------- #
def bn_scale_shift(stats, m, bn, eps=1e-5):
    s, ss = stats
    mean = s / m
    # NOTE: E[x^2]-mean^2 in f32, clamped; a Welford pass would be needed for
    # bit-parity with torch on large-mean activations.
    var = jnp.maximum(ss / m - mean * mean, 0.0)
    scale = bn["gamma"] * jax.lax.rsqrt(var + eps)
    shift = bn["beta"] - mean * scale
    return scale, shift


# --------------------------------------------------------------------------- #
# FFC building blocks.  Activations travel as "lazy BN" tuples
#   (pre_bn_2d, scale, shift, act)    (scale=None -> identity)
# and the affine is applied inside the consuming kernel.
# --------------------------------------------------------------------------- #
def _concat_lazy(xl, xg):
    pre = jnp.concatenate([xl[0], xg[0]], axis=-1)
    if xl[1] is None and xg[1] is None:
        return pre, None, None, "none"
    cl, cg = xl[0].shape[-1], xg[0].shape[-1]

    def _sc(lz, c):
        if lz[1] is None:
            return jnp.ones((c,), jnp.float32), jnp.zeros((c,), jnp.float32)
        return lz[1], lz[2]

    sl, tl = _sc(xl, cl)
    sg, tg = _sc(xg, cg)
    act = xl[3] if xl[1] is not None else xg[3]       # both branches share the act
    return pre, jnp.concatenate([sl, sg]), jnp.concatenate([tl, tg]), act


def fourier_unit(p, x_nhwc):
    # TODO(synk): rfft2 / irfft2 stay in plain JAX -- there is no Pallas FFT primitive.
    B, H, W, C = x_nhwc.shape
    f = jnp.fft.rfft2(x_nhwc, axes=(1, 2), norm="ortho")
    Wf = f.shape[2]
    stacked = jnp.stack([jnp.real(f), jnp.imag(f)], axis=-1).reshape(B * H * Wf, 2 * C)
    y2, st = matmul_fused(stacked, p["w"])            # 1x1 conv, BN stats fused
    sc, sh = bn_scale_shift(st, B * H * Wf, p["bn"])
    y2 = affine_act(y2, sc, sh, act="relu")           # materialized: irfft2 needs values
    yr = y2.reshape(B, H, Wf, C, 2)
    comp = yr[..., 0] + 1j * yr[..., 1]
    return jnp.fft.irfft2(comp, s=(H, W), axes=(1, 2), norm="ortho")


def spectral_transform(p, xg_lazy, l2g, B, H, W):
    """Returns (l2g + g2g, BN_g stats); the l2g addend and the stats are fused
    into the final w2 matmul."""
    pre, sc, shf, act = xg_lazy
    half = p["w1"].shape[1]
    if sc is None:
        y_pre, st1 = matmul_fused(pre, p["w1"])
    else:
        y_pre, st1 = matmul_fused(pre, p["w1"], scale=sc, shift=shf, act=act)
    s1, t1 = bn_scale_shift(st1, B * H * W, p["bn1"])
    y2 = affine_act(y_pre, s1, t1, act="relu")        # materialized for the FFTs
    y = y2.reshape(B, H, W, half)
    fu = fourier_unit(p["fu"], y)
    if p["lfu"] is not None:
        hh, hw = H // 2, W // 2
        c4 = half // 4
        xs = y[..., :c4]
        xs = jnp.concatenate([xs[:, :hh], xs[:, hh:2 * hh]], axis=-1)
        xs = jnp.concatenate([xs[:, :, :hw], xs[:, :, hw:2 * hw]], axis=-1)
        xs = fourier_unit(p["lfu"], xs)
        xs = jnp.tile(xs, (1, 2, 2, 1))
        # (y + fu + xs) @ w2  ==  [y | fu | xs] @ [w2; w2; w2]  -> one MXU pass
        a = jnp.concatenate([y2, fu.reshape(B * H * W, half),
                             xs.reshape(B * H * W, half)], axis=-1)
        w2 = p["w2_stack3"]
    else:
        a = jnp.concatenate([y2, fu.reshape(B * H * W, half)], axis=-1)
        w2 = p["w2_stack2"]
    return matmul_fused(a, w2, addend=l2g)


def ffc_bn_act(p, xl_lazy, xg_lazy, B, H, W):
    M = B * H * W
    out_cl = p["out_cl"]
    pre, sc, sh, act = _concat_lazy(xl_lazy, xg_lazy)
    if p["k"] == 1:
        if sc is None:
            main, stats = matmul_fused(pre, p["w_main"])
        else:
            main, stats = matmul_fused(pre, p["w_main"], scale=sc, shift=sh, act=act)
    else:
        main, stats = conv3x3_fused(pre, sc, sh, act, p["w3"], B, H, W)
    s_sum, s_sq = stats
    # local branch: BN_l stats come straight from the producing kernel's epilogue
    sl, tl = bn_scale_shift((s_sum[:out_cl], s_sq[:out_cl]), M, p["bn_l"])
    yl_lazy = (main[:, :out_cl], sl, tl, p["act"])
    # global branch: l2g rides as a fused addend on the spectral w2 matmul
    l2g = main[:, out_cl:]
    sum_g, st_g = spectral_transform(p["g2g"], xg_lazy, l2g, B, H, W)
    sg, tg = bn_scale_shift(st_g, M, p["bn_g"])
    yg_lazy = (sum_g, sg, tg, p["act"])
    return yl_lazy, yg_lazy


def bottleneck_forward(params, x_l_nchw, x_g_nchw):
    """Bottleneck forward (stride=1, downsample=None, use_se=False). NCHW in/out."""
    x_l = jnp.transpose(x_l_nchw, (0, 2, 3, 1)).astype(jnp.float32)
    x_g = jnp.transpose(x_g_nchw, (0, 2, 3, 1)).astype(jnp.float32)
    B, H, W, cl = x_l.shape
    cg = x_g.shape[-1]
    id_l = x_l.reshape(B * H * W, cl)
    id_g = x_g.reshape(B * H * W, cg)
    xl = (id_l, None, None, "none")
    xg = (id_g, None, None, "none")
    xl, xg = ffc_bn_act(params["conv1"], xl, xg, B, H, W)
    xl, xg = ffc_bn_act(params["conv2"], xl, xg, B, H, W)
    xl, xg = ffc_bn_act(params["conv3"], xl, xg, B, H, W)
    # se_block = nn.Identity() (use_se=False); conv3's BN affine (act=none) is
    # fused into the residual add + ReLU kernels.
    out_l = affine_add_act(xl[0], id_l, xl[1], xl[2], act="relu")
    out_g = affine_add_act(xg[0], id_g, xg[1], xg[2], act="relu")
    out_l = out_l.reshape(B, H, W, -1)
    out_g = out_g.reshape(B, H, W, -1)
    return (jnp.transpose(out_l, (0, 3, 1, 2)),
            jnp.transpose(out_g, (0, 3, 1, 2)))


# --------------------------------------------------------------------------- #
# parameter init (deterministic, synthetic); conv weights stored once in bf16
# matmul layout (no per-forward padding / transposition).
# --------------------------------------------------------------------------- #
class Rng:
    def __init__(self, key):
        self.key = key

    def next(self):
        self.key, k = jax.random.split(self.key)
        return k


def conv_w(rng, cout, cin, kh, kw):
    std = math.sqrt(2.0 / (cout * kh * kw))   # kaiming_normal_, fan_out, relu
    return jax.random.normal(rng.next(), (cout, cin, kh, kw), jnp.float32) * std


def init_bn(c):
    return {"gamma": jnp.ones((c,), jnp.float32), "beta": jnp.zeros((c,), jnp.float32)}


def _w1x1_mat(w):                               # (cout,cin,1,1) -> (cin,cout) bf16
    return jnp.transpose(w[:, :, 0, 0], (1, 0)).astype(jnp.bfloat16)


def init_fourier(rng, c):
    return {"w": _w1x1_mat(conv_w(rng, 2 * c, 2 * c, 1, 1)), "bn": init_bn(2 * c)}


def init_spectral(rng, cin, cout, lfu):
    half = cout // 2
    w2 = _w1x1_mat(conv_w(rng, cout, half, 1, 1))
    return {"w1": _w1x1_mat(conv_w(rng, half, cin, 1, 1)), "bn1": init_bn(half),
            "fu": init_fourier(rng, half),
            "lfu": init_fourier(rng, half) if lfu else None,
            "w2_stack3": jnp.concatenate([w2, w2, w2], axis=0),
            "w2_stack2": jnp.concatenate([w2, w2], axis=0)}


def init_ffc_bn_act(rng, cin, cout, k, rgin, rgout, act, lfu):
    in_cg = int(cin * rgin)
    in_cl = cin - in_cg
    out_cg = int(cout * rgout)
    out_cl = cout - out_cg
    # TODO(synk): degenerate ratios (0 or 1) / stride>1 not wired up (unused by defaults).
    assert 0 < in_cg < cin and 0 < out_cg < cout
    wl2l = conv_w(rng, out_cl, in_cl, k, k)
    wl2g = conv_w(rng, out_cg, in_cl, k, k)
    wg2l = conv_w(rng, out_cl, in_cg, k, k)
    p = {"k": k, "out_cl": out_cl, "out_cg": out_cg, "act": act,
         "bn_l": init_bn(out_cl), "bn_g": init_bn(out_cg)}
    if k == 1:
        top = jnp.concatenate([_w1x1_mat(wl2l), _w1x1_mat(wl2g)], axis=1)
        bot = jnp.concatenate([_w1x1_mat(wg2l),
                               jnp.zeros((in_cg, out_cg), jnp.bfloat16)], axis=1)
        p["w_main"] = jnp.concatenate([top, bot], axis=0)   # (cin, out_cl+out_cg)
    else:
        def hwio(w):
            return jnp.transpose(w, (2, 3, 1, 0))            # (ky,kx,cin,cout)
        top = jnp.concatenate([hwio(wl2l), hwio(wl2g)], axis=3)
        bot = jnp.concatenate([hwio(wg2l),
                               jnp.zeros((3, 3, in_cg, out_cg), jnp.float32)], axis=3)
        w_hwio = jnp.concatenate([top, bot], axis=2)         # (3,3,cin_tot,cout_tot)
        # layout matches the kx-folded im2col: index (ky, kx*cin + c, cout)
        p["w3"] = w_hwio.reshape(3, 3 * (in_cl + in_cg),
                                 out_cl + out_cg).astype(jnp.bfloat16)
    p["g2g"] = init_spectral(rng, in_cg, out_cg, lfu)
    return p


def init_bottleneck(rng, inplanes, planes, ratio_gin=0.5, ratio_gout=0.5,
                    stride=1, lfu=True):
    assert stride == 1   # Bottleneck default; TODO(synk): strided conv2 path.
    width = planes                                  # base_width=64, groups=1
    expansion = 4
    return {
        "conv1": init_ffc_bn_act(rng, inplanes, width, 1, ratio_gin, ratio_gout, "relu", lfu),
        "conv2": init_ffc_bn_act(rng, width, width, 3, ratio_gout, ratio_gout, "relu", lfu),
        "conv3": init_ffc_bn_act(rng, width, planes * expansion, 1, ratio_gout, ratio_gout,
                                 "none", lfu),
    }


# --------------------------------------------------------------------------- #
if __name__ == "__main__":
    key = jax.random.PRNGKey(0)
    pkey, lkey, gkey = jax.random.split(key, 3)

    inplanes, planes, ratio = 64, 16, 0.5            # Bottleneck output channels = 64
    B, H, W = 2, 16, 16
    in_cg = int(inplanes * ratio)
    in_cl = inplanes - in_cg

    params = init_bottleneck(Rng(pkey), inplanes, planes, ratio, ratio, stride=1, lfu=True)
    x_l = jax.random.normal(lkey, (B, in_cl, H, W), jnp.float32)
    x_g = jax.random.normal(gkey, (B, in_cg, H, W), jnp.float32)

    fwd = jax.jit(lambda a, b: bottleneck_forward(params, a, b))
    out_l, out_g = jax.block_until_ready(fwd(x_l, x_g))

    out_ch = planes * 4
    out_cg = int(out_ch * ratio)
    assert out_l.shape == (B, out_ch - out_cg, H, W)
    assert out_g.shape == (B, out_cg, H, W)
    assert bool(jnp.all(jnp.isfinite(out_l))) and bool(jnp.all(jnp.isfinite(out_g)))
    print("KERNEL_OK")
</pallas_src>

<mosaic_0001>
module attributes {stable_mosaic.version = 11 : i64} {
  func.func @_mm_kernel(%arg0: i32, %arg1: memref<256x32xf32, #tpu.memory_space<vmem>>, %arg2: memref<32x4xbf16, #tpu.memory_space<vmem>>, %arg3: memref<256x4xf32, #tpu.memory_space<vmem>>, %arg4: memref<8x4xf32, #tpu.memory_space<vmem>>) attributes {dimension_semantics = [#tpu.dimension_semantics<parallel>], iteration_bounds = array<i64: 2>, scalar_prefetch = 0 : i64, scratch_operands = 0 : i64, tpu.core_type = #tpu.core_type<tc>, window_params = [{transform_indices = @transform_0, window_bounds = array<i64: 256, 32>}, {pipeline_mode = #tpu.pipeline_mode<synchronous>, transform_indices = @transform_1, window_bounds = array<i64: 32, 4>}, {transform_indices = @transform_2, window_bounds = array<i64: 256, 4>}, {transform_indices = @transform_3, window_bounds = array<i64: 8, 4>}]} {
    %c0 = arith.constant 0 : index
    %c0_0 = arith.constant 0 : index
    %0 = vector.load %arg1[%c0, %c0_0] : memref<256x32xf32, #tpu.memory_space<vmem>>, vector<256x32xf32>
    %1 = arith.truncf %0 : vector<256x32xf32> to vector<256x32xbf16>
    %c0_1 = arith.constant 0 : index
    %c0_2 = arith.constant 0 : index
    %2 = vector.load %arg2[%c0_1, %c0_2] : memref<32x4xbf16, #tpu.memory_space<vmem>>, vector<32x4xbf16>
    %cst = arith.constant dense<0.000000e+00> : vector<256x4xf32>
    %3 = tpu.matmul %1, %2, %cst {dimension_numbers = #tpu.dot_dimension_numbers<[1], [0], [0], [1], [0, 0, 1, 1], [], []>} : vector<256x32xbf16>, vector<32x4xbf16>, vector<256x4xf32> -> vector<256x4xf32>
    %c0_3 = arith.constant 0 : index
    %c0_4 = arith.constant 0 : index
    %4 = vector.load %arg3[%c0_3, %c0_4] : memref<256x4xf32, #tpu.memory_space<vmem>>, vector<256x4xf32>
    tpu.vector_store %arg3[%c0_3, %c0_4], %3 {strides = array<i32>} : memref<256x4xf32, #tpu.memory_space<vmem>>, vector<256x4xf32>,
    %cst_5 = arith.constant dense<0.000000e+00> : vector<4xf32>
    %5 = vector.multi_reduction <add>, %3, %cst_5 [0] : vector<256x4xf32> to vector<4xf32>
    %6 = vector.shape_cast %5 : vector<4xf32> to vector<1x4xf32>
    %c0_6 = arith.constant 0 : index
    %c0_7 = arith.constant 0 : index
    %7 = vector.load %arg4[%c0_6, %c0_7] : memref<8x4xf32, #tpu.memory_space<vmem>>, vector<1x4xf32>
    tpu.vector_store %arg4[%c0_6, %c0_7], %6 {strides = array<i32>} : memref<8x4xf32, #tpu.memory_space<vmem>>, vector<1x4xf32>,
    %8 = arith.mulf %3, %3 : vector<256x4xf32>
    %cst_8 = arith.constant dense<0.000000e+00> : vector<4xf32>
    %9 = vector.multi_reduction <add>, %8, %cst_8 [0] : vector<256x4xf32> to vector<4xf32>
    %10 = vector.shape_cast %9 : vector<4xf32> to vector<1x4xf32>
    %c1 = arith.constant 1 : index
    %c0_9 = arith.constant 0 : index
    %11 = vector.load %arg4[%c1, %c0_9] : memref<8x4xf32, #tpu.memory_space<vmem>>, vector<1x4xf32>
    tpu.vector_store %arg4[%c1, %c0_9], %10 {strides = array<i32>} : memref<8x4xf32, #tpu.memory_space<vmem>>, vector<1x4xf32>,
    return
  }
  func.func @transform_0(%arg0: i32) -> (i32, i32) {
    %c0_i32 = arith.constant 0 : i32
    %c0_i32_0 = arith.constant 0 : i32
    return %arg0, %c0_i32 : i32, i32
  }
  func.func @transform_1(%arg0: i32) -> (i32, i32) {
    %c0_i32 = arith.constant 0 : i32
    %c0_i32_0 = arith.constant 0 : i32
    %c0_i32_1 = arith.constant 0 : i32
    return %c0_i32, %c0_i32_0 : i32, i32
  }
  func.func @transform_2(%arg0: i32) -> (i32, i32) {
    %c0_i32 = arith.constant 0 : i32
    %c0_i32_0 = arith.constant 0 : i32
    return %arg0, %c0_i32 : i32, i32
  }
  func.func @transform_3(%arg0: i32) -> (i32, i32) {
    %c0_i32 = arith.constant 0 : i32
    %c0_i32_0 = arith.constant 0 : i32
    return %arg0, %c0_i32 : i32, i32
  }
}

module attributes {stable_mosaic.version = 11 : i64} {
  func.func @_affine_act_kernel(%arg0: i32, %arg1: memref<16x128xf32, #tpu.memory_space<vmem>>, %arg2: memref<1x128xf32, #tpu.memory_space<vmem>>, %arg3: memref<1x128xf32, #tpu.memory_space<vmem>>, %arg4: memref<16x128xf32, #tpu.memory_space<vmem>>) attributes {dimension_semantics = [#tpu.dimension_semantics<parallel>], iteration_bounds = array<i64: 1>, scalar_prefetch = 0 : i64, scratch_operands = 0 : i64, tpu.core_type = #tpu.core_type<tc>, window_params = [{transform_indices = @transform_0, window_bounds = array<i64: 16, 128>}, {pipeline_mode = #tpu.pipeline_mode<synchronous>, transform_indices = @transform_1, window_bounds = array<i64: 1, 128>}, {pipeline_mode = #tpu.pipeline_mode<synchronous>, transform_indices = @transform_2, window_bounds = array<i64: 1, 128>}, {transform_indices = @transform_3, window_bounds = array<i64: 16, 128>}]} {
    %c0 = arith.constant 0 : index
    %c0_0 = arith.constant 0 : index
    %0 = vector.load %arg1[%c0, %c0_0] : memref<16x128xf32, #tpu.memory_space<vmem>>, vector<16x128xf32>
    %c0_1 = arith.constant 0 : index
    %c0_2 = arith.constant 0 : index
    %1 = vector.load %arg2[%c0_1, %c0_2] : memref<1x128xf32, #tpu.memory_space<vmem>>, vector<1x128xf32>
    %2 = vector.broadcast %1 : vector<1x128xf32> to vector<16x128xf32>
    %3 = arith.mulf %0, %2 : vector<16x128xf32>
    %c0_3 = arith.constant 0 : index
    %c0_4 = arith.constant 0 : index
    %4 = vector.load %arg3[%c0_3, %c0_4] : memref<1x128xf32, #tpu.memory_space<vmem>>, vector<1x128xf32>
    %5 = vector.broadcast %4 : vector<1x128xf32> to vector<16x128xf32>
    %6 = arith.addf %3, %5 : vector<16x128xf32>
    %cst = arith.constant 0.000000e+00 : f32
    %7 = vector.broadcast %cst : f32 to vector<16x128xf32>
    %8 = arith.maximumf %6, %7 : vector<16x128xf32>
    %c0_5 = arith.constant 0 : index
    %c0_6 = arith.constant 0 : index
    %9 = vector.load %arg4[%c0_5, %c0_6] : memref<16x128xf32, #tpu.memory_space<vmem>>, vector<16x128xf32>
    tpu.vector_store %arg4[%c0_5, %c0_6], %8 {strides = array<i32>} : memref<16x128xf32, #tpu.memory_space<vmem>>, vector<16x128xf32>,
    return
  }
  func.func @transform_0(%arg0: i32) -> (i32, i32) {
    %c0_i32 = arith.constant 0 : i32
    %c0_i32_0 = arith.constant 0 : i32
    return %arg0, %c0_i32 : i32, i32
  }
  func.func @transform_1(%arg0: i32) -> (i32, i32) {
    %c0_i32 = arith.constant 0 : i32
    %c0_i32_0 = arith.constant 0 : i32
    %c0_i32_1 = arith.constant 0 : i32
    return %c0_i32, %c0_i32_0 : i32, i32
  }
  func.func @transform_2(%arg0: i32) -> (i32, i32) {
    %c0_i32 = arith.constant 0 : i32
    %c0_i32_0 = arith.constant 0 : i32
    %c0_i32_1 = arith.constant 0 : i32
    return %c0_i32, %c0_i32_0 : i32, i32
  }
  func.func @transform_3(%arg0: i32) -> (i32, i32) {
    %c0_i32 = arith.constant 0 : i32
    %c0_i32_0 = arith.constant 0 : i32
    return %arg0, %c0_i32 : i32, i32
  }
}

module attributes {stable_mosaic.version = 11 : i64} {
  func.func @_mm_kernel(%arg0: i32, %arg1: memref<80x8xf32, #tpu.memory_space<vmem>>, %arg2: memref<8x8xbf16, #tpu.memory_space<vmem>>, %arg3: memref<80x8xf32, #tpu.memory_space<vmem>>, %arg4: memref<8x8xf32, #tpu.memory_space<vmem>>) attributes {dimension_semantics = [#tpu.dimension_semantics<parallel>], iteration_bounds = array<i64: 1>, scalar_prefetch = 0 : i64, scratch_operands = 0 : i64, tpu.core_type = #tpu.core_type<tc>, window_params = [{transform_indices = @transform_0, window_bounds = array<i64: 80, 8>}, {pipeline_mode = #tpu.pipeline_mode<synchronous>, transform_indices = @transform_1, window_bounds = array<i64: 8, 8>}, {transform_indices = @transform_2, window_bounds = array<i64: 80, 8>}, {transform_indices = @transform_3, window_bounds = array<i64: 8, 8>}]} {
    %c0 = arith.constant 0 : index
    %c0_0 = arith.constant 0 : index
    %0 = vector.load %arg1[%c0, %c0_0] : memref<80x8xf32, #tpu.memory_space<vmem>>, vector<80x8xf32>
    %1 = arith.truncf %0 : vector<80x8xf32> to vector<80x8xbf16>
    %c0_1 = arith.constant 0 : index
    %c0_2 = arith.constant 0 : index
    %2 = vector.load %arg2[%c0_1, %c0_2] : memref<8x8xbf16, #tpu.memory_space<vmem>>, vector<8x8xbf16>
    %cst = arith.constant dense<0.000000e+00> : vector<80x8xf32>
    %3 = tpu.matmul %1, %2, %cst {dimension_numbers = #tpu.dot_dimension_numbers<[1], [0], [0], [1], [0, 0, 1, 1], [], []>} : vector<80x8xbf16>, vector<8x8xbf16>, vector<80x8xf32> -> vector<80x8xf32>
    %c0_3 = arith.constant 0 : index
    %c0_4 = arith.constant 0 : index
    %4 = vector.load %arg3[%c0_3, %c0_4] : memref<80x8xf32, #tpu.memory_space<vmem>>, vector<80x8xf32>
    tpu.vector_store %arg3[%c0_3, %c0_4], %3 {strides = array<i32>} : memref<80x8xf32, #tpu.memory_space<vmem>>, vector<80x8xf32>,
    %cst_5 = arith.constant dense<0.000000e+00> : vector<8xf32>
    %5 = vector.multi_reduction <add>, %3, %cst_5 [0] : vector<80x8xf32> to vector<8xf32>
    %6 = vector.shape_cast %5 : vector<8xf32> to vector<1x8xf32>
    %c0_6 = arith.constant 0 : index
    %c0_7 = arith.constant 0 : index
    %7 = vector.load %arg4[%c0_6, %c0_7] : memref<8x8xf32, #tpu.memory_space<vmem>>, vector<1x8xf32>
    tpu.vector_store %arg4[%c0_6, %c0_7], %6 {strides = array<i32>} : memref<8x8xf32, #tpu.memory_space<vmem>>, vector<1x8xf32>,
    %8 = arith.mulf %3, %3 : vector<80x8xf32>
    %cst_8 = arith.constant dense<0.000000e+00> : vector<8xf32>
    %9 = vector.multi_reduction <add>, %8, %cst_8 [0] : vector<80x8xf32> to vector<8xf32>
    %10 = vector.shape_cast %9 : vector<8xf32> to vector<1x8xf32>
    %c1 = arith.constant 1 : index
    %c0_9 = arith.constant 0 : index
    %11 = vector.load %arg4[%c1, %c0_9] : memref<8x8xf32, #tpu.memory_space<vmem>>, vector<1x8xf32>
    tpu.vector_store %arg4[%c1, %c0_9], %10 {strides = array<i32>} : memref<8x8xf32, #tpu.memory_space<vmem>>, vector<1x8xf32>,
    return
  }
  func.func @transform_0(%arg0: i32) -> (i32, i32) {
    %c0_i32 = arith.constant 0 : i32
    %c0_i32_0 = arith.constant 0 : i32
    return %arg0, %c0_i32 : i32, i32
  }
  func.func @transform_1(%arg0: i32) -> (i32, i32) {
    %c0_i32 = arith.constant 0 : i32
    %c0_i32_0 = arith.constant 0 : i32
    %c0_i32_1 = arith.constant 0 : i32
    return %c0_i32, %c0_i32_0 : i32, i32
  }
  func.func @transform_2(%arg0: i32) -> (i32, i32) {
    %c0_i32 = arith.constant 0 : i32
    %c0_i32_0 = arith.constant 0 : i32
    return %arg0, %c0_i32 : i32, i32
  }
  func.func @transform_3(%arg0: i32) -> (i32, i32) {
    %c0_i32 = arith.constant 0 : i32
    %c0_i32_0 = arith.constant 0 : i32
    return %arg0, %c0_i32 : i32, i32
  }
}

module attributes {stable_mosaic.version = 11 : i64} {
  func.func @_affine_act_kernel(%arg0: i32, %arg1: memref<8x128xf32, #tpu.memory_space<vmem>>, %arg2: memref<1x128xf32, #tpu.memory_space<vmem>>, %arg3: memref<1x128xf32, #tpu.memory_space<vmem>>, %arg4: memref<8x128xf32, #tpu.memory_space<vmem>>) attributes {dimension_semantics = [#tpu.dimension_semantics<parallel>], iteration_bounds = array<i64: 1>, scalar_prefetch = 0 : i64, scratch_operands = 0 : i64, tpu.core_type = #tpu.core_type<tc>, window_params = [{transform_indices = @transform_0, window_bounds = array<i64: 8, 128>}, {pipeline_mode = #tpu.pipeline_mode<synchronous>, transform_indices = @transform_1, window_bounds = array<i64: 1, 128>}, {pipeline_mode = #tpu.pipeline_mode<synchronous>, transform_indices = @transform_2, window_bounds = array<i64: 1, 128>}, {transform_indices = @transform_3, window_bounds = array<i64: 8, 128>}]} {
    %c0 = arith.constant 0 : index
    %c0_0 = arith.constant 0 : index
    %0 = vector.load %arg1[%c0, %c0_0] : memref<8x128xf32, #tpu.memory_space<vmem>>, vector<8x128xf32>
    %c0_1 = arith.constant 0 : index
    %c0_2 = arith.constant 0 : index
    %1 = vector.load %arg2[%c0_1, %c0_2] : memref<1x128xf32, #tpu.memory_space<vmem>>, vector<1x128xf32>
    %2 = vector.broadcast %1 : vector<1x128xf32> to vector<8x128xf32>
    %3 = arith.mulf %0, %2 : vector<8x128xf32>
    %c0_3 = arith.constant 0 : index
    %c0_4 = arith.constant 0 : index
    %4 = vector.load %arg3[%c0_3, %c0_4] : memref<1x128xf32, #tpu.memory_space<vmem>>, vector<1x128xf32>
    %5 = vector.broadcast %4 : vector<1x128xf32> to vector<8x128xf32>
    %6 = arith.addf %3, %5 : vector<8x128xf32>
    %cst = arith.constant 0.000000e+00 : f32
    %7 = vector.broadcast %cst : f32 to vector<8x128xf32>
    %8 = arith.maximumf %6, %7 : vector<8x128xf32>
    %c0_5 = arith.constant 0 : index
    %c0_6 = arith.constant 0 : index
    %9 = vector.load %arg4[%c0_5, %c0_6] : memref<8x128xf32, #tpu.memory_space<vmem>>, vector<8x128xf32>
    tpu.vector_store %arg4[%c0_5, %c0_6], %8 {strides = array<i32>} : memref<8x128xf32, #tpu.memory_space<vmem>>, vector<8x128xf32>,
    return
  }
  func.func @transform_0(%arg0: i32) -> (i32, i32) {
    %c0_i32 = arith.constant 0 : i32
    %c0_i32_0 = arith.constant 0 : i32
    return %arg0, %c0_i32 : i32, i32
  }
  func.func @transform_1(%arg0: i32) -> (i32, i32) {
    %c0_i32 = arith.constant 0 : i32
    %c0_i32_0 = arith.constant 0 : i32
    %c0_i32_1 = arith.constant 0 : i32
    return %c0_i32, %c0_i32_0 : i32, i32
  }
  func.func @transform_2(%arg0: i32) -> (i32, i32) {
    %c0_i32 = arith.constant 0 : i32
    %c0_i32_0 = arith.constant 0 : i32
    %c0_i32_1 = arith.constant 0 : i32
    return %c0_i32, %c0_i32_0 : i32, i32
  }
  func.func @transform_3(%arg0: i32) -> (i32, i32) {
    %c0_i32 = arith.constant 0 : i32
    %c0_i32_0 = arith.constant 0 : i32
    return %arg0, %c0_i32 : i32, i32
  }
}

module attributes {stable_mosaic.version = 11 : i64} {
  func.func @_affine_act_kernel(%arg0: i32, %arg1: memref<24x128xf32, #tpu.memory_space<vmem>>, %arg2: memref<1x128xf32, #tpu.memory_space<vmem>>, %arg3: memref<1x128xf32, #tpu.memory_space<vmem>>, %arg4: memref<24x128xf32, #tpu.memory_space<vmem>>) attributes {dimension_semantics = [#tpu.dimension_semantics<parallel>], iteration_bounds = array<i64: 1>, scalar_prefetch = 0 : i64, scratch_operands = 0 : i64, tpu.core_type = #tpu.core_type<tc>, window_params = [{transform_indices = @transform_0, window_bounds = array<i64: 24, 128>}, {pipeline_mode = #tpu.pipeline_mode<synchronous>, transform_indices = @transform_1, window_bounds = array<i64: 1, 128>}, {pipeline_mode = #tpu.pipeline_mode<synchronous>, transform_indices = @transform_2, window_bounds = array<i64: 1, 128>}, {transform_indices = @transform_3, window_bounds = array<i64: 24, 128>}]} {
    %c0 = arith.constant 0 : index
    %c0_0 = arith.constant 0 : index
    %0 = vector.load %arg1[%c0, %c0_0] : memref<24x128xf32, #tpu.memory_space<vmem>>, vector<24x128xf32>
    %c0_1 = arith.constant 0 : index
    %c0_2 = arith.constant 0 : index
    %1 = vector.load %arg2[%c0_1, %c0_2] : memref<1x128xf32, #tpu.memory_space<vmem>>, vector<1x128xf32>
    %2 = vector.broadcast %1 : vector<1x128xf32> to vector<24x128xf32>
    %3 = arith.mulf %0, %2 : vector<24x128xf32>
    %c0_3 = arith.constant 0 : index
    %c0_4 = arith.constant 0 : index
    %4 = vector.load %arg3[%c0_3, %c0_4] : memref<1x128xf32, #tpu.memory_space<vmem>>, vector<1x128xf32>
    %5 = vector.broadcast %4 : vector<1x128xf32> to vector<24x128xf32>
    %6 = arith.addf %3, %5 : vector<24x128xf32>
    %cst = arith.constant 0.000000e+00 : f32
    %7 = vector.broadcast %cst : f32 to vector<24x128xf32>
    %8 = arith.maximumf %6, %7 : vector<24x128xf32>
    %c0_5 = arith.constant 0 : index
    %c0_6 = arith.constant 0 : index
    %9 = vector.load %arg4[%c0_5, %c0_6] : memref<24x128xf32, #tpu.memory_space<vmem>>, vector<24x128xf32>
    tpu.vector_store %arg4[%c0_5, %c0_6], %8 {strides = array<i32>} : memref<24x128xf32, #tpu.memory_space<vmem>>, vector<24x128xf32>,
    return
  }
  func.func @transform_0(%arg0: i32) -> (i32, i32) {
    %c0_i32 = arith.constant 0 : i32
    %c0_i32_0 = arith.constant 0 : i32
    return %arg0, %c0_i32 : i32, i32
  }
  func.func @transform_1(%arg0: i32) -> (i32, i32) {
    %c0_i32 = arith.constant 0 : i32
    %c0_i32_0 = arith.constant 0 : i32
    %c0_i32_1 = arith.constant 0 : i32
    return %c0_i32, %c0_i32_0 : i32, i32
  }
  func.func @transform_2(%arg0: i32) -> (i32, i32) {
    %c0_i32 = arith.constant 0 : i32
    %c0_i32_0 = arith.constant 0 : i32
    %c0_i32_1 = arith.constant 0 : i32
    return %c0_i32, %c0_i32_0 : i32, i32
  }
  func.func @transform_3(%arg0: i32) -> (i32, i32) {
    %c0_i32 = arith.constant 0 : i32
    %c0_i32_0 = arith.constant 0 : i32
    return %arg0, %c0_i32 : i32, i32
  }
}

module attributes {stable_mosaic.version = 11 : i64} {
  func.func @_mm_kernel(%arg0: i32, %arg1: memref<144x8xf32, #tpu.memory_space<vmem>>, %arg2: memref<8x8xbf16, #tpu.memory_space<vmem>>, %arg3: memref<144x8xf32, #tpu.memory_space<vmem>>, %arg4: memref<8x8xf32, #tpu.memory_space<vmem>>) attributes {dimension_semantics = [#tpu.dimension_semantics<parallel>], iteration_bounds = array<i64: 2>, scalar_prefetch = 0 : i64, scratch_operands = 0 : i64, tpu.core_type = #tpu.core_type<tc>, window_params = [{transform_indices = @transform_0, window_bounds = array<i64: 144, 8>}, {pipeline_mode = #tpu.pipeline_mode<synchronous>, transform_indices = @transform_1, window_bounds = array<i64: 8, 8>}, {transform_indices = @transform_2, window_bounds = array<i64: 144, 8>}, {transform_indices = @transform_3, window_bounds = array<i64: 8, 8>}]} {
    %c0 = arith.constant 0 : index
    %c0_0 = arith.constant 0 : index
    %0 = vector.load %arg1[%c0, %c0_0] : memref<144x8xf32, #tpu.memory_space<vmem>>, vector<144x8xf32>
    %1 = arith.truncf %0 : vector<144x8xf32> to vector<144x8xbf16>
    %c0_1 = arith.constant 0 : index
    %c0_2 = arith.constant 0 : index
    %2 = vector.load %arg2[%c0_1, %c0_2] : memref<8x8xbf16, #tpu.memory_space<vmem>>, vector<8x8xbf16>
    %cst = arith.constant dense<0.000000e+00> : vector<144x8xf32>
    %3 = tpu.matmul %1, %2, %cst {dimension_numbers = #tpu.dot_dimension_numbers<[1], [0], [0], [1], [0, 0, 1, 1], [], []>} : vector<144x8xbf16>, vector<8x8xbf16>, vector<144x8xf32> -> vector<144x8xf32>
    %c0_3 = arith.constant 0 : index
    %c0_4 = arith.constant 0 : index
    %4 = vector.load %arg3[%c0_3, %c0_4] : memref<144x8xf32, #tpu.memory_space<vmem>>, vector<144x8xf32>
    tpu.vector_store %arg3[%c0_3, %c0_4], %3 {strides = array<i32>} : memref<144x8xf32, #tpu.memory_space<vmem>>, vector<144x8xf32>,
    %cst_5 = arith.constant dense<0.000000e+00> : vector<8xf32>
    %5 = vector.multi_reduction <add>, %3, %cst_5 [0] : vector<144x8xf32> to vector<8xf32>
    %6 = vector.shape_cast %5 : vector<8xf32> to vector<1x8xf32>
    %c0_6 = arith.constant 0 : index
    %c0_7 = arith.constant 0 : index
    %7 = vector.load %arg4[%c0_6, %c0_7] : memref<8x8xf32, #tpu.memory_space<vmem>>, vector<1x8xf32>
    tpu.vector_store %arg4[%c0_6, %c0_7], %6 {strides = array<i32>} : memref<8x8xf32, #tpu.memory_space<vmem>>, vector<1x8xf32>,
    %8 = arith.mulf %3, %3 : vector<144x8xf32>
    %cst_8 = arith.constant dense<0.000000e+00> : vector<8xf32>
    %9 = vector.multi_reduction <add>, %8, %cst_8 [0] : vector<144x8xf32> to vector<8xf32>
    %10 = vector.shape_cast %9 : vector<8xf32> to vector<1x8xf32>
    %c1 = arith.constant 1 : index
    %c0_9 = arith.constant 0 : index
    %11 = vector.load %arg4[%c1, %c0_9] : memref<8x8xf32, #tpu.memory_space<vmem>>, vector<1x8xf32>
    tpu.vector_store %arg4[%c1, %c0_9], %10 {strides = array<i32>} : memref<8x8xf32, #tpu.memory_space<vmem>>, vector<1x8xf32>,
    return
  }
  func.func @transform_0(%arg0: i32) -> (i32, i32) {
    %c0_i32 = arith.constant 0 : i32
    %c0_i32_0 = arith.constant 0 : i32
    return %arg0, %c0_i32 : i32, i32
  }
  func.func @transform_1(%arg0: i32) -> (i32, i32) {
    %c0_i32 = arith.constant 0 : i32
    %c0_i32_0 = arith.constant 0 : i32
    %c0_i32_1 = arith.constant 0 : i32
    return %c0_i32, %c0_i32_0 : i32, i32
  }
  func.func @transform_2(%arg0: i32) -> (i32, i32) {
    %c0_i32 = arith.constant 0 : i32
    %c0_i32_0 = arith.constant 0 : i32
    return %arg0, %c0_i32 : i32, i32
  }
  func.func @transform_3(%arg0: i32) -> (i32, i32) {
    %c0_i32 = arith.constant 0 : i32
    %c0_i32_0 = arith.constant 0 : i32
    return %arg0, %c0_i32 : i32, i32
  }
}

module attributes {stable_mosaic.version = 11 : i64} {
  func.func @_mm_kernel(%arg0: i32, %arg1: memref<256x8xf32, #tpu.memory_space<vmem>>, %arg2: memref<1x8xf32, #tpu.memory_space<vmem>>, %arg3: memref<1x8xf32, #tpu.memory_space<vmem>>, %arg4: memref<8x4xbf16, #tpu.memory_space<vmem>>, %arg5: memref<256x4xf32, #tpu.memory_space<vmem>>, %arg6: memref<8x4xf32, #tpu.memory_space<vmem>>) attributes {dimension_semantics = [#tpu.dimension_semantics<parallel>], iteration_bounds = array<i64: 2>, scalar_prefetch = 0 : i64, scratch_operands = 0 : i64, tpu.core_type = #tpu.core_type<tc>, window_params = [{transform_indices = @transform_0, window_bounds = array<i64: 256, 8>}, {pipeline_mode = #tpu.pipeline_mode<synchronous>, transform_indices = @transform_1, window_bounds = array<i64: 1, 8>}, {pipeline_mode = #tpu.pipeline_mode<synchronous>, transform_indices = @transform_2, window_bounds = array<i64: 1, 8>}, {pipeline_mode = #tpu.pipeline_mode<synchronous>, transform_indices = @transform_3, window_bounds = array<i64: 8, 4>}, {transform_indices = @transform_4, window_bounds = array<i64: 256, 4>}, {transform_indices = @transform_5, window_bounds = array<i64: 8, 4>}]} {
    %c0 = arith.constant 0 : index
    %c0_0 = arith.constant 0 : index
    %0 = vector.load %arg1[%c0, %c0_0] : memref<256x8xf32, #tpu.memory_space<vmem>>, vector<256x8xf32>
    %c0_1 = arith.constant 0 : index
    %c0_2 = arith.constant 0 : index
    %1 = vector.load %arg2[%c0_1, %c0_2] : memref<1x8xf32, #tpu.memory_space<vmem>>, vector<1x8xf32>
    %2 = vector.broadcast %1 : vector<1x8xf32> to vector<256x8xf32>
    %3 = arith.mulf %0, %2 : vector<256x8xf32>
    %c0_3 = arith.constant 0 : index
    %c0_4 = arith.constant 0 : index
    %4 = vector.load %arg3[%c0_3, %c0_4] : memref<1x8xf32, #tpu.memory_space<vmem>>, vector<1x8xf32>
    %5 = vector.broadcast %4 : vector<1x8xf32> to vector<256x8xf32>
    %6 = arith.addf %3, %5 : vector<256x8xf32>
    %cst = arith.constant 0.000000e+00 : f32
    %7 = vector.broadcast %cst : f32 to vector<256x8xf32>
    %8 = arith.maximumf %6, %7 : vector<256x8xf32>
    %9 = arith.truncf %8 : vector<256x8xf32> to vector<256x8xbf16>
    %c0_5 = arith.constant 0 : index
    %c0_6 = arith.constant 0 : index
    %10 = vector.load %arg4[%c0_5, %c0_6] : memref<8x4xbf16, #tpu.memory_space<vmem>>, vector<8x4xbf16>
    %cst_7 = arith.constant dense<0.000000e+00> : vector<256x4xf32>
    %11 = tpu.matmul %9, %10, %cst_7 {dimension_numbers = #tpu.dot_dimension_numbers<[1], [0], [0], [1], [0, 0, 1, 1], [], []>} : vector<256x8xbf16>, vector<8x4xbf16>, vector<256x4xf32> -> vector<256x4xf32>
    %c0_8 = arith.constant 0 : index
    %c0_9 = arith.constant 0 : index
    %12 = vector.load %arg5[%c0_8, %c0_9] : memref<256x4xf32, #tpu.memory_space<vmem>>, vector<256x4xf32>
    tpu.vector_store %arg5[%c0_8, %c0_9], %11 {strides = array<i32>} : memref<256x4xf32, #tpu.memory_space<vmem>>, vector<256x4xf32>,
    %cst_10 = arith.constant dense<0.000000e+00> : vector<4xf32>
    %13 = vector.multi_reduction <add>, %11, %cst_10 [0] : vector<256x4xf32> to vector<4xf32>
    %14 = vector.shape_cast %13 : vector<4xf32> to vector<1x4xf32>
    %c0_11 = arith.constant 0 : index
    %c0_12 = arith.constant 0 : index
    %15 = vector.load %arg6[%c0_11, %c0_12] : memref<8x4xf32, #tpu.memory_space<vmem>>, vector<1x4xf32>
    tpu.vector_store %arg6[%c0_11, %c0_12], %14 {strides = array<i32>} : memref<8x4xf32, #tpu.memory_space<vmem>>, vector<1x4xf32>,
    %16 = arith.mulf %11, %11 : vector<256x4xf32>
    %cst_13 = arith.constant dense<0.000000e+00> : vector<4xf32>
    %17 = vector.multi_reduction <add>, %16, %cst_13 [0] : vector<256x4xf32> to vector<4xf32>
    %18 = vector.shape_cast %17 : vector<4xf32> to vector<1x4xf32>
    %c1 = arith.constant 1 : index
    %c0_14 = arith.constant 0 : index
    %19 = vector.load %arg6[%c1, %c0_14] : memref<8x4xf32, #tpu.memory_space<vmem>>, vector<1x4xf32>
    tpu.vector_store %arg6[%c1, %c0_14], %18 {strides = array<i32>} : memref<8x4xf32, #tpu.memory_space<vmem>>, vector<1x4xf32>,
    return
  }
  func.func @transform_0(%arg0: i32) -> (i32, i32) {
    %c0_i32 = arith.constant 0 : i32
    %c0_i32_0 = arith.constant 0 : i32
    return %arg0, %c0_i32 : i32, i32
  }
  func.func @transform_1(%arg0: i32) -> (i32, i32) {
    %c0_i32 = arith.constant 0 : i32
    %c0_i32_0 = arith.constant 0 : i32
    %c0_i32_1 = arith.constant 0 : i32
    return %c0_i32, %c0_i32_0 : i32, i32
  }
  func.func @transform_2(%arg0: i32) -> (i32, i32) {
    %c0_i32 = arith.constant 0 : i32
    %c0_i32_0 = arith.constant 0 : i32
    %c0_i32_1 = arith.constant 0 : i32
    return %c0_i32, %c0_i32_0 : i32, i32
  }
  func.func @transform_3(%arg0: i32) -> (i32, i32) {
    %c0_i32 = arith.constant 0 : i32
    %c0_i32_0 = arith.constant 0 : i32
    %c0_i32_1 = arith.constant 0 : i32
    return %c0_i32, %c0_i32_0 : i32, i32
  }
  func.func @transform_4(%arg0: i32) -> (i32, i32) {
    %c0_i32 = arith.constant 0 : i32
    %c0_i32_0 = arith.constant 0 : i32
    return %arg0, %c0_i32 : i32, i32
  }
  func.func @transform_5(%arg0: i32) -> (i32, i32) {
    %c0_i32 = arith.constant 0 : i32
    %c0_i32_0 = arith.constant 0 : i32
    return %arg0, %c0_i32 : i32, i32
  }
}

module attributes {stable_mosaic.version = 11 : i64} {
  func.func @_mm_kernel(%arg0: i32, %arg1: memref<256x12xf32, #tpu.memory_space<vmem>>, %arg2: memref<256x8xf32, #tpu.memory_space<vmem>>, %arg3: memref<12x8xbf16, #tpu.memory_space<vmem>>, %arg4: memref<256x8xf32, #tpu.memory_space<vmem>>, %arg5: memref<8x8xf32, #tpu.memory_space<vmem>>) attributes {dimension_semantics = [#tpu.dimension_semantics<parallel>], iteration_bounds = array<i64: 2>, scalar_prefetch = 0 : i64, scratch_operands = 0 : i64, tpu.core_type = #tpu.core_type<tc>, window_params = [{transform_indices = @transform_0, window_bounds = array<i64: 256, 12>}, {transform_indices = @transform_1, window_bounds = array<i64: 256, 8>}, {pipeline_mode = #tpu.pipeline_mode<synchronous>, transform_indices = @transform_2, window_bounds = array<i64: 12, 8>}, {transform_indices = @transform_3, window_bounds = array<i64: 256, 8>}, {transform_indices = @transform_4, window_bounds = array<i64: 8, 8>}]} {
    %c0 = arith.constant 0 : index
    %c0_0 = arith.constant 0 : index
    %0 = vector.load %arg1[%c0, %c0_0] : memref<256x12xf32, #tpu.memory_space<vmem>>, vector<256x12xf32>
    %1 = arith.truncf %0 : vector<256x12xf32> to vector<256x12xbf16>
    %c0_1 = arith.constant 0 : index
    %c0_2 = arith.constant 0 : index
    %2 = vector.load %arg3[%c0_1, %c0_2] : memref<12x8xbf16, #tpu.memory_space<vmem>>, vector<12x8xbf16>
    %cst = arith.constant dense<0.000000e+00> : vector<256x8xf32>
    %3 = tpu.matmul %1, %2, %cst {dimension_numbers = #tpu.dot_dimension_numbers<[1], [0], [0], [1], [0, 0, 1, 1], [], []>} : vector<256x12xbf16>, vector<12x8xbf16>, vector<256x8xf32> -> vector<256x8xf32>
    %c0_3 = arith.constant 0 : index
    %c0_4 = arith.constant 0 : index
    %4 = vector.load %arg2[%c0_3, %c0_4] : memref<256x8xf32, #tpu.memory_space<vmem>>, vector<256x8xf32>
    %5 = arith.addf %3, %4 : vector<256x8xf32>
    %c0_5 = arith.constant 0 : index
    %c0_6 = arith.constant 0 : index
    %6 = vector.load %arg4[%c0_5, %c0_6] : memref<256x8xf32, #tpu.memory_space<vmem>>, vector<256x8xf32>
    tpu.vector_store %arg4[%c0_5, %c0_6], %5 {strides = array<i32>} : memref<256x8xf32, #tpu.memory_space<vmem>>, vector<256x8xf32>,
    %cst_7 = arith.constant dense<0.000000e+00> : vector<8xf32>
    %7 = vector.multi_reduction <add>, %5, %cst_7 [0] : vector<256x8xf32> to vector<8xf32>
    %8 = vector.shape_cast %7 : vector<8xf32> to vector<1x8xf32>
    %c0_8 = arith.constant 0 : index
    %c0_9 = arith.constant 0 : index
    %9 = vector.load %arg5[%c0_8, %c0_9] : memref<8x8xf32, #tpu.memory_space<vmem>>, vector<1x8xf32>
    tpu.vector_store %arg5[%c0_8, %c0_9], %8 {strides = array<i32>} : memref<8x8xf32, #tpu.memory_space<vmem>>, vector<1x8xf32>,
    %10 = arith.mulf %5, %5 : vector<256x8xf32>
    %cst_10 = arith.constant dense<0.000000e+00> : vector<8xf32>
    %11 = vector.multi_reduction <add>, %10, %cst_10 [0] : vector<256x8xf32> to vector<8xf32>
    %12 = vector.shape_cast %11 : vector<8xf32> to vector<1x8xf32>
    %c1 = arith.constant 1 : index
    %c0_11 = arith.constant 0 : index
    %13 = vector.load %arg5[%c1, %c0_11] : memref<8x8xf32, #tpu.memory_space<vmem>>, vector<1x8xf32>
    tpu.vector_store %arg5[%c1, %c0_11], %12 {strides = array<i32>} : memref<8x8xf32, #tpu.memory_space<vmem>>, vector<1x8xf32>,
    return
  }
  func.func @transform_0(%arg0: i32) -> (i32, i32) {
    %c0_i32 = arith.constant 0 : i32
    %c0_i32_0 = arith.constant 0 : i32
    return %arg0, %c0_i32 : i32, i32
  }
  func.func @transform_1(%arg0: i32) -> (i32, i32) {
    %c0_i32 = arith.constant 0 : i32
    %c0_i32_0 = arith.constant 0 : i32
    return %arg0, %c0_i32 : i32, i32
  }
  func.func @transform_2(%arg0: i32) -> (i32, i32) {
    %c0_i32 = arith.constant 0 : i32
    %c0_i32_0 = arith.constant 0 : i32
    %c0_i32_1 = arith.constant 0 : i32
    return %c0_i32, %c0_i32_0 : i32, i32
  }
  func.func @transform_3(%arg0: i32) -> (i32, i32) {
    %c0_i32 = arith.constant 0 : i32
    %c0_i32_0 = arith.constant 0 : i32
    return %arg0, %c0_i32 : i32, i32
  }
  func.func @transform_4(%arg0: i32) -> (i32, i32) {
    %c0_i32 = arith.constant 0 : i32
    %c0_i32_0 = arith.constant 0 : i32
    return %arg0, %c0_i32 : i32, i32
  }
}

module attributes {stable_mosaic.version = 11 : i64} {
  func.func @_mm_kernel(%arg0: i32, %arg1: memref<256x64xf32, #tpu.memory_space<vmem>>, %arg2: memref<64x16xbf16, #tpu.memory_space<vmem>>, %arg3: memref<256x16xf32, #tpu.memory_space<vmem>>, %arg4: memref<8x16xf32, #tpu.memory_space<vmem>>) attributes {dimension_semantics = [#tpu.dimension_semantics<parallel>], iteration_bounds = array<i64: 2>, scalar_prefetch = 0 : i64, scratch_operands = 0 : i64, tpu.core_type = #tpu.core_type<tc>, window_params = [{transform_indices = @transform_0, window_bounds = array<i64: 256, 64>}, {pipeline_mode = #tpu.pipeline_mode<synchronous>, transform_indices = @transform_1, window_bounds = array<i64: 64, 16>}, {transform_indices = @transform_2, window_bounds = array<i64: 256, 16>}, {transform_indices = @transform_3, window_bounds = array<i64: 8, 16>}]} {
    %c0 = arith.constant 0 : index
    %c0_0 = arith.constant 0 : index
    %0 = vector.load %arg1[%c0, %c0_0] : memref<256x64xf32, #tpu.memory_space<vmem>>, vector<256x64xf32>
    %1 = arith.truncf %0 : vector<256x64xf32> to vector<256x64xbf16>
    %c0_1 = arith.constant 0 : index
    %c0_2 = arith.constant 0 : index
    %2 = vector.load %arg2[%c0_1, %c0_2] : memref<64x16xbf16, #tpu.memory_space<vmem>>, vector<64x16xbf16>
    %cst = arith.constant dense<0.000000e+00> : vector<256x16xf32>
    %3 = tpu.matmul %1, %2, %cst {dimension_numbers = #tpu.dot_dimension_numbers<[1], [0], [0], [1], [0, 0, 1, 1], [], []>} : vector<256x64xbf16>, vector<64x16xbf16>, vector<256x16xf32> -> vector<256x16xf32>
    %c0_3 = arith.constant 0 : index
    %c0_4 = arith.constant 0 : index
    %4 = vector.load %arg3[%c0_3, %c0_4] : memref<256x16xf32, #tpu.memory_space<vmem>>, vector<256x16xf32>
    tpu.vector_store %arg3[%c0_3, %c0_4], %3 {strides = array<i32>} : memref<256x16xf32, #tpu.memory_space<vmem>>, vector<256x16xf32>,
    %cst_5 = arith.constant dense<0.000000e+00> : vector<16xf32>
    %5 = vector.multi_reduction <add>, %3, %cst_5 [0] : vector<256x16xf32> to vector<16xf32>
    %6 = vector.shape_cast %5 : vector<16xf32> to vector<1x16xf32>
    %c0_6 = arith.constant 0 : index
    %c0_7 = arith.constant 0 : index
    %7 = vector.load %arg4[%c0_6, %c0_7] : memref<8x16xf32, #tpu.memory_space<vmem>>, vector<1x16xf32>
    tpu.vector_store %arg4[%c0_6, %c0_7], %6 {strides = array<i32>} : memref<8x16xf32, #tpu.memory_space<vmem>>, vector<1x16xf32>,
    %8 = arith.mulf %3, %3 : vector<256x16xf32>
    %cst_8 = arith.constant dense<0.000000e+00> : vector<16xf32>
    %9 = vector.multi_reduction <add>, %8, %cst_8 [0] : vector<256x16xf32> to vector<16xf32>
    %10 = vector.shape_cast %9 : vector<16xf32> to vector<1x16xf32>
    %c1 = arith.constant 1 : index
    %c0_9 = arith.constant 0 : index
    %11 = vector.load %arg4[%c1, %c0_9] : memref<8x16xf32, #tpu.memory_space<vmem>>, vector<1x16xf32>
    tpu.vector_store %arg4[%c1, %c0_9], %10 {strides = array<i32>} : memref<8x16xf32, #tpu.memory_space<vmem>>, vector<1x16xf32>,
    return
  }
  func.func @transform_0(%arg0: i32) -> (i32, i32) {
    %c0_i32 = arith.constant 0 : i32
    %c0_i32_0 = arith.constant 0 : i32
    return %arg0, %c0_i32 : i32, i32
  }
  func.func @transform_1(%arg0: i32) -> (i32, i32) {
    %c0_i32 = arith.constant 0 : i32
    %c0_i32_0 = arith.constant 0 : i32
    %c0_i32_1 = arith.constant 0 : i32
    return %c0_i32, %c0_i32_0 : i32, i32
  }
  func.func @transform_2(%arg0: i32) -> (i32, i32) {
    %c0_i32 = arith.constant 0 : i32
    %c0_i32_0 = arith.constant 0 : i32
    return %arg0, %c0_i32 : i32, i32
  }
  func.func @transform_3(%arg0: i32) -> (i32, i32) {
    %c0_i32 = arith.constant 0 : i32
    %c0_i32_0 = arith.constant 0 : i32
    return %arg0, %c0_i32 : i32, i32
  }
}

module attributes {stable_mosaic.version = 11 : i64} {
  func.func @_mm_kernel(%arg0: i32, %arg1: memref<256x16xf32, #tpu.memory_space<vmem>>, %arg2: memref<1x16xf32, #tpu.memory_space<vmem>>, %arg3: memref<1x16xf32, #tpu.memory_space<vmem>>, %arg4: memref<16x64xbf16, #tpu.memory_space<vmem>>, %arg5: memref<256x64xf32, #tpu.memory_space<vmem>>, %arg6: memref<8x64xf32, #tpu.memory_space<vmem>>) attributes {dimension_semantics = [#tpu.dimension_semantics<parallel>], iteration_bounds = array<i64: 2>, scalar_prefetch = 0 : i64, scratch_operands = 0 : i64, tpu.core_type = #tpu.core_type<tc>, window_params = [{transform_indices = @transform_0, window_bounds = array<i64: 256, 16>}, {pipeline_mode = #tpu.pipeline_mode<synchronous>, transform_indices = @transform_1, window_bounds = array<i64: 1, 16>}, {pipeline_mode = #tpu.pipeline_mode<synchronous>, transform_indices = @transform_2, window_bounds = array<i64: 1, 16>}, {pipeline_mode = #tpu.pipeline_mode<synchronous>, transform_indices = @transform_3, window_bounds = array<i64: 16, 64>}, {transform_indices = @transform_4, window_bounds = array<i64: 256, 64>}, {transform_indices = @transform_5, window_bounds = array<i64: 8, 64>}]} {
    %c0 = arith.constant 0 : index
    %c0_0 = arith.constant 0 : index
    %0 = vector.load %arg1[%c0, %c0_0] : memref<256x16xf32, #tpu.memory_space<vmem>>, vector<256x16xf32>
    %c0_1 = arith.constant 0 : index
    %c0_2 = arith.constant 0 : index
    %1 = vector.load %arg2[%c0_1, %c0_2] : memref<1x16xf32, #tpu.memory_space<vmem>>, vector<1x16xf32>
    %2 = vector.broadcast %1 : vector<1x16xf32> to vector<256x16xf32>
    %3 = arith.mulf %0, %2 : vector<256x16xf32>
    %c0_3 = arith.constant 0 : index
    %c0_4 = arith.constant 0 : index
    %4 = vector.load %arg3[%c0_3, %c0_4] : memref<1x16xf32, #tpu.memory_space<vmem>>, vector<1x16xf32>
    %5 = vector.broadcast %4 : vector<1x16xf32> to vector<256x16xf32>
    %6 = arith.addf %3, %5 : vector<256x16xf32>
    %cst = arith.constant 0.000000e+00 : f32
    %7 = vector.broadcast %cst : f32 to vector<256x16xf32>
    %8 = arith.maximumf %6, %7 : vector<256x16xf32>
    %9 = arith.truncf %8 : vector<256x16xf32> to vector<256x16xbf16>
    %c0_5 = arith.constant 0 : index
    %c0_6 = arith.constant 0 : index
    %10 = vector.load %arg4[%c0_5, %c0_6] : memref<16x64xbf16, #tpu.memory_space<vmem>>, vector<16x64xbf16>
    %cst_7 = arith.constant dense<0.000000e+00> : vector<256x64xf32>
    %11 = tpu.matmul %9, %10, %cst_7 {dimension_numbers = #tpu.dot_dimension_numbers<[1], [0], [0], [1], [0, 0, 1, 1], [], []>} : vector<256x16xbf16>, vector<16x64xbf16>, vector<256x64xf32> -> vector<256x64xf32>
    %c0_8 = arith.constant 0 : index
    %c0_9 = arith.constant 0 : index
    %12 = vector.load %arg5[%c0_8, %c0_9] : memref<256x64xf32, #tpu.memory_space<vmem>>, vector<256x64xf32>
    tpu.vector_store %arg5[%c0_8, %c0_9], %11 {strides = array<i32>} : memref<256x64xf32, #tpu.memory_space<vmem>>, vector<256x64xf32>,
    %cst_10 = arith.constant dense<0.000000e+00> : vector<64xf32>
    %13 = vector.multi_reduction <add>, %11, %cst_10 [0] : vector<256x64xf32> to vector<64xf32>
    %14 = vector.shape_cast %13 : vector<64xf32> to vector<1x64xf32>
    %c0_11 = arith.constant 0 : index
    %c0_12 = arith.constant 0 : index
    %15 = vector.load %arg6[%c0_11, %c0_12] : memref<8x64xf32, #tpu.memory_space<vmem>>, vector<1x64xf32>
    tpu.vector_store %arg6[%c0_11, %c0_12], %14 {strides = array<i32>} : memref<8x64xf32, #tpu.memory_space<vmem>>, vector<1x64xf32>,
    %16 = arith.mulf %11, %11 : vector<256x64xf32>
    %cst_13 = arith.constant dense<0.000000e+00> : vector<64xf32>
    %17 = vector.multi_reduction <add>, %16, %cst_13 [0] : vector<256x64xf32> to vector<64xf32>
    %18 = vector.shape_cast %17 : vector<64xf32> to vector<1x64xf32>
    %c1 = arith.constant 1 : index
    %c0_14 = arith.constant 0 : index
    %19 = vector.load %arg6[%c1, %c0_14] : memref<8x64xf32, #tpu.memory_space<vmem>>, vector<1x64xf32>
    tpu.vector_store %arg6[%c1, %c0_14], %18 {strides = array<i32>} : memref<8x64xf32, #tpu.memory_space<vmem>>, vector<1x64xf32>,
    return
  }
  func.func @transform_0(%arg0: i32) -> (i32, i32) {
    %c0_i32 = arith.constant 0 : i32
    %c0_i32_0 = arith.constant 0 : i32
    return %arg0, %c0_i32 : i32, i32
  }
  func.func @transform_1(%arg0: i32) -> (i32, i32) {
    %c0_i32 = arith.constant 0 : i32
    %c0_i32_0 = arith.constant 0 : i32
    %c0_i32_1 = arith.constant 0 : i32
    return %c0_i32, %c0_i32_0 : i32, i32
  }
  func.func @transform_2(%arg0: i32) -> (i32, i32) {
    %c0_i32 = arith.constant 0 : i32
    %c0_i32_0 = arith.constant 0 : i32
    %c0_i32_1 = arith.constant 0 : i32
    return %c0_i32, %c0_i32_0 : i32, i32
  }
  func.func @transform_3(%arg0: i32) -> (i32, i32) {
    %c0_i32 = arith.constant 0 : i32
    %c0_i32_0 = arith.constant 0 : i32
    %c0_i32_1 = arith.constant 0 : i32
    return %c0_i32, %c0_i32_0 : i32, i32
  }
  func.func @transform_4(%arg0: i32) -> (i32, i32) {
    %c0_i32 = arith.constant 0 : i32
    %c0_i32_0 = arith.constant 0 : i32
    return %arg0, %c0_i32 : i32, i32
  }
  func.func @transform_5(%arg0: i32) -> (i32, i32) {
    %c0_i32 = arith.constant 0 : i32
    %c0_i32_0 = arith.constant 0 : i32
    return %arg0, %c0_i32 : i32, i32
  }
}

module attributes {stable_mosaic.version = 11 : i64} {
  func.func @_conv3x3_kernel(%arg0: i32, %arg1: memref<1x288x48xbf16, #tpu.memory_space<vmem>>, %arg2: memref<3x48x16xbf16, #tpu.memory_space<vmem>>, %arg3: memref<1x256x16xf32, #tpu.memory_space<vmem>>, %arg4: memref<1x8x16xf32, #tpu.memory_space<vmem>>) attributes {dimension_semantics = [#tpu.dimension_semantics<parallel>], iteration_bounds = array<i64: 2>, scalar_prefetch = 0 : i64, scratch_operands = 0 : i64, tpu.core_type = #tpu.core_type<tc>, window_params = [{transform_indices = @transform_0, window_bounds = array<i64: 1, 288, 48>}, {pipeline_mode = #tpu.pipeline_mode<synchronous>, transform_indices = @transform_1, window_bounds = array<i64: 3, 48, 16>}, {transform_indices = @transform_2, window_bounds = array<i64: 1, 256, 16>}, {transform_indices = @transform_3, window_bounds = array<i64: 1, 8, 16>}]} {
    %c0 = arith.constant 0 : index
    %c0_0 = arith.constant 0 : index
    %c0_1 = arith.constant 0 : index
    %0 = vector.load %arg1[%c0, %c0_0, %c0_1] : memref<1x288x48xbf16, #tpu.memory_space<vmem>>, vector<1x256x48xbf16>
    %1 = vector.shape_cast %0 : vector<1x256x48xbf16> to vector<256x48xbf16>
    %c0_2 = arith.constant 0 : index
    %c0_3 = arith.constant 0 : index
    %c0_4 = arith.constant 0 : index
    %2 = vector.load %arg2[%c0_2, %c0_3, %c0_4] : memref<3x48x16xbf16, #tpu.memory_space<vmem>>, vector<1x48x16xbf16>
    %3 = vector.shape_cast %2 : vector<1x48x16xbf16> to vector<48x16xbf16>
    %cst = arith.constant dense<0.000000e+00> : vector<256x16xf32>
    %4 = tpu.matmul %1, %3, %cst {dimension_numbers = #tpu.dot_dimension_numbers<[1], [0], [0], [1], [0, 0, 1, 1], [], []>} : vector<256x48xbf16>, vector<48x16xbf16>, vector<256x16xf32> -> vector<256x16xf32>
    %c0_5 = arith.constant 0 : index
    %c0_6 = arith.constant 0 : index
    %c0_7 = arith.constant 0 : index
    %5 = vector.load %arg3[%c0_5, %c0_6, %c0_7] : memref<1x256x16xf32, #tpu.memory_space<vmem>>, vector<1x256x16xf32>
    %6 = vector.shape_cast %5 : vector<1x256x16xf32> to vector<256x16xf32>
    %7 = vector.shape_cast %4 : vector<256x16xf32> to vector<1x256x16xf32>
    tpu.vector_store %arg3[%c0_5, %c0_6, %c0_7], %7 {strides = array<i32>} : memref<1x256x16xf32, #tpu.memory_space<vmem>>, vector<1x256x16xf32>,
    %c0_8 = arith.constant 0 : index
    %c0_9 = arith.constant 0 : index
    %c0_10 = arith.constant 0 : index
    %8 = vector.load %arg3[%c0_8, %c0_9, %c0_10] : memref<1x256x16xf32, #tpu.memory_space<vmem>>, vector<1x256x16xf32>
    %9 = vector.shape_cast %8 : vector<1x256x16xf32> to vector<256x16xf32>
    %c0_11 = arith.constant 0 : index
    %c16 = arith.constant 16 : index
    %c0_12 = arith.constant 0 : index
    %10 = vector.load %arg1[%c0_11, %c16, %c0_12] : memref<1x288x48xbf16, #tpu.memory_space<vmem>>, vector<1x256x48xbf16>
    %11 = vector.shape_cast %10 : vector<1x256x48xbf16> to vector<256x48xbf16>
    %c1 = arith.constant 1 : index
    %c0_13 = arith.constant 0 : index
    %c0_14 = arith.constant 0 : index
    %12 = vector.load %arg2[%c1, %c0_13, %c0_14] : memref<3x48x16xbf16, #tpu.memory_space<vmem>>, vector<1x48x16xbf16>
    %13 = vector.shape_cast %12 : vector<1x48x16xbf16> to vector<48x16xbf16>
    %cst_15 = arith.constant dense<0.000000e+00> : vector<256x16xf32>
    %14 = tpu.matmul %11, %13, %cst_15 {dimension_numbers = #tpu.dot_dimension_numbers<[1], [0], [0], [1], [0, 0, 1, 1], [], []>} : vector<256x48xbf16>, vector<48x16xbf16>, vector<256x16xf32> -> vector<256x16xf32>
    %15 = arith.addf %9, %14 : vector<256x16xf32>
    %c0_16 = arith.constant 0 : index
    %c0_17 = arith.constant 0 : index
    %c0_18 = arith.constant 0 : index
    %16 = vector.load %arg3[%c0_16, %c0_17, %c0_18] : memref<1x256x16xf32, #tpu.memory_space<vmem>>, vector<1x256x16xf32>
    %17 = vector.shape_cast %16 : vector<1x256x16xf32> to vector<256x16xf32>
    %18 = vector.shape_cast %15 : vector<256x16xf32> to vector<1x256x16xf32>
    tpu.vector_store %arg3[%c0_16, %c0_17, %c0_18], %18 {strides = array<i32>} : memref<1x256x16xf32, #tpu.memory_space<vmem>>, vector<1x256x16xf32>,
    %c0_19 = arith.constant 0 : index
    %c0_20 = arith.constant 0 : index
    %c0_21 = arith.constant 0 : index
    %19 = vector.load %arg3[%c0_19, %c0_20, %c0_21] : memref<1x256x16xf32, #tpu.memory_space<vmem>>, vector<1x256x16xf32>
    %20 = vector.shape_cast %19 : vector<1x256x16xf32> to vector<256x16xf32>
    %c0_22 = arith.constant 0 : index
    %c32 = arith.constant 32 : index
    %c0_23 = arith.constant 0 : index
    %21 = vector.load %arg1[%c0_22, %c32, %c0_23] : memref<1x288x48xbf16, #tpu.memory_space<vmem>>, vector<1x256x48xbf16>
    %22 = vector.shape_cast %21 : vector<1x256x48xbf16> to vector<256x48xbf16>
    %c2 = arith.constant 2 : index
    %c0_24 = arith.constant 0 : index
    %c0_25 = arith.constant 0 : index
    %23 = vector.load %arg2[%c2, %c0_24, %c0_25] : memref<3x48x16xbf16, #tpu.memory_space<vmem>>, vector<1x48x16xbf16>
    %24 = vector.shape_cast %23 : vector<1x48x16xbf16> to vector<48x16xbf16>
    %cst_26 = arith.constant dense<0.000000e+00> : vector<256x16xf32>
    %25 = tpu.matmul %22, %24, %cst_26 {dimension_numbers = #tpu.dot_dimension_numbers<[1], [0], [0], [1], [0, 0, 1, 1], [], []>} : vector<256x48xbf16>, vector<48x16xbf16>, vector<256x16xf32> -> vector<256x16xf32>
    %26 = arith.addf %20, %25 : vector<256x16xf32>
    %c0_27 = arith.constant 0 : index
    %c0_28 = arith.constant 0 : index
    %c0_29 = arith.constant 0 : index
    %27 = vector.load %arg3[%c0_27, %c0_28, %c0_29] : memref<1x256x16xf32, #tpu.memory_space<vmem>>, vector<1x256x16xf32>
    %28 = vector.shape_cast %27 : vector<1x256x16xf32> to vector<256x16xf32>
    %29 = vector.shape_cast %26 : vector<256x16xf32> to vector<1x256x16xf32>
    tpu.vector_store %arg3[%c0_27, %c0_28, %c0_29], %29 {strides = array<i32>} : memref<1x256x16xf32, #tpu.memory_space<vmem>>, vector<1x256x16xf32>,
    %c0_30 = arith.constant 0 : index
    %c0_31 = arith.constant 0 : index
    %c0_32 = arith.constant 0 : index
    %30 = vector.load %arg3[%c0_30, %c0_31, %c0_32] : memref<1x256x16xf32, #tpu.memory_space<vmem>>, vector<1x256x16xf32>
    %31 = vector.shape_cast %30 : vector<1x256x16xf32> to vector<256x16xf32>
    %cst_33 = arith.constant dense<0.000000e+00> : vector<16xf32>
    %32 = vector.multi_reduction <add>, %31, %cst_33 [0] : vector<256x16xf32> to vector<16xf32>
    %33 = vector.shape_cast %32 : vector<16xf32> to vector<1x16xf32>
    %c0_34 = arith.constant 0 : index
    %c0_35 = arith.constant 0 : index
    %c0_36 = arith.constant 0 : index
    %34 = vector.load %arg4[%c0_34, %c0_35, %c0_36] : memref<1x8x16xf32, #tpu.memory_space<vmem>>, vector<1x1x16xf32>
    %35 = vector.shape_cast %34 : vector<1x1x16xf32> to vector<1x16xf32>
    %36 = vector.shape_cast %33 : vector<1x16xf32> to vector<1x1x16xf32>
    tpu.vector_store %arg4[%c0_34, %c0_35, %c0_36], %36 {strides = array<i32>} : memref<1x8x16xf32, #tpu.memory_space<vmem>>, vector<1x1x16xf32>,
    %37 = arith.mulf %31, %31 : vector<256x16xf32>
    %cst_37 = arith.constant dense<0.000000e+00> : vector<16xf32>
    %38 = vector.multi_reduction <add>, %37, %cst_37 [0] : vector<256x16xf32> to vector<16xf32>
    %39 = vector.shape_cast %38 : vector<16xf32> to vector<1x16xf32>
    %c0_38 = arith.constant 0 : index
    %c1_39 = arith.constant 1 : index
    %c0_40 = arith.constant 0 : index
    %40 = vector.load %arg4[%c0_38, %c1_39, %c0_40] : memref<1x8x16xf32, #tpu.memory_space<vmem>>, vector<1x1x16xf32>
    %41 = vector.shape_cast %40 : vector<1x1x16xf32> to vector<1x16xf32>
    %42 = vector.shape_cast %39 : vector<1x16xf32> to vector<1x1x16xf32>
    tpu.vector_store %arg4[%c0_38, %c1_39, %c0_40], %42 {strides = array<i32>} : memref<1x8x16xf32, #tpu.memory_space<vmem>>, vector<1x1x16xf32>,
    return
  }
  func.func @transform_0(%arg0: i32) -> (i32, i32, i32) {
    %c0_i32 = arith.constant 0 : i32
    %c0_i32_0 = arith.constant 0 : i32
    %c0_i32_1 = arith.constant 0 : i32
    return %arg0, %c0_i32, %c0_i32_0 : i32, i32, i32
  }
  func.func @transform_1(%arg0: i32) -> (i32, i32, i32) {
    %c0_i32 = arith.constant 0 : i32
    %c0_i32_0 = arith.constant 0 : i32
    %c0_i32_1 = arith.constant 0 : i32
    %c0_i32_2 = arith.constant 0 : i32
    return %c0_i32, %c0_i32_0, %c0_i32_1 : i32, i32, i32
  }
  func.func @transform_2(%arg0: i32) -> (i32, i32, i32) {
    %c0_i32 = arith.constant 0 : i32
    %c0_i32_0 = arith.constant 0 : i32
    %c0_i32_1 = arith.constant 0 : i32
    return %arg0, %c0_i32, %c0_i32_0 : i32, i32, i32
  }
  func.func @transform_3(%arg0: i32) -> (i32, i32, i32) {
    %c0_i32 = arith.constant 0 : i32
    %c0_i32_0 = arith.constant 0 : i32
    %c0_i32_1 = arith.constant 0 : i32
    return %arg0, %c0_i32, %c0_i32_0 : i32, i32, i32
  }
}

module attributes {stable_mosaic.version = 11 : i64} {
  func.func @_mm_kernel(%arg0: i32, %arg1: memref<256x8xf32, #tpu.memory_space<vmem>>, %arg2: memref<1x8xf32, #tpu.memory_space<vmem>>, %arg3: memref<1x8xf32, #tpu.memory_space<vmem>>, %arg4: memref<8x16xbf16, #tpu.memory_space<vmem>>, %arg5: memref<256x16xf32, #tpu.memory_space<vmem>>, %arg6: memref<8x16xf32, #tpu.memory_space<vmem>>) attributes {dimension_semantics = [#tpu.dimension_semantics<parallel>], iteration_bounds = array<i64: 2>, scalar_prefetch = 0 : i64, scratch_operands = 0 : i64, tpu.core_type = #tpu.core_type<tc>, window_params = [{transform_indices = @transform_0, window_bounds = array<i64: 256, 8>}, {pipeline_mode = #tpu.pipeline_mode<synchronous>, transform_indices = @transform_1, window_bounds = array<i64: 1, 8>}, {pipeline_mode = #tpu.pipeline_mode<synchronous>, transform_indices = @transform_2, window_bounds = array<i64: 1, 8>}, {pipeline_mode = #tpu.pipeline_mode<synchronous>, transform_indices = @transform_3, window_bounds = array<i64: 8, 16>}, {transform_indices = @transform_4, window_bounds = array<i64: 256, 16>}, {transform_indices = @transform_5, window_bounds = array<i64: 8, 16>}]} {
    %c0 = arith.constant 0 : index
    %c0_0 = arith.constant 0 : index
    %0 = vector.load %arg1[%c0, %c0_0] : memref<256x8xf32, #tpu.memory_space<vmem>>, vector<256x8xf32>
    %c0_1 = arith.constant 0 : index
    %c0_2 = arith.constant 0 : index
    %1 = vector.load %arg2[%c0_1, %c0_2] : memref<1x8xf32, #tpu.memory_space<vmem>>, vector<1x8xf32>
    %2 = vector.broadcast %1 : vector<1x8xf32> to vector<256x8xf32>
    %3 = arith.mulf %0, %2 : vector<256x8xf32>
    %c0_3 = arith.constant 0 : index
    %c0_4 = arith.constant 0 : index
    %4 = vector.load %arg3[%c0_3, %c0_4] : memref<1x8xf32, #tpu.memory_space<vmem>>, vector<1x8xf32>
    %5 = vector.broadcast %4 : vector<1x8xf32> to vector<256x8xf32>
    %6 = arith.addf %3, %5 : vector<256x8xf32>
    %cst = arith.constant 0.000000e+00 : f32
    %7 = vector.broadcast %cst : f32 to vector<256x8xf32>
    %8 = arith.maximumf %6, %7 : vector<256x8xf32>
    %9 = arith.truncf %8 : vector<256x8xf32> to vector<256x8xbf16>
    %c0_5 = arith.constant 0 : index
    %c0_6 = arith.constant 0 : index
    %10 = vector.load %arg4[%c0_5, %c0_6] : memref<8x16xbf16, #tpu.memory_space<vmem>>, vector<8x16xbf16>
    %cst_7 = arith.constant dense<0.000000e+00> : vector<256x16xf32>
    %11 = tpu.matmul %9, %10, %cst_7 {dimension_numbers = #tpu.dot_dimension_numbers<[1], [0], [0], [1], [0, 0, 1, 1], [], []>} : vector<256x8xbf16>, vector<8x16xbf16>, vector<256x16xf32> -> vector<256x16xf32>
    %c0_8 = arith.constant 0 : index
    %c0_9 = arith.constant 0 : index
    %12 = vector.load %arg5[%c0_8, %c0_9] : memref<256x16xf32, #tpu.memory_space<vmem>>, vector<256x16xf32>
    tpu.vector_store %arg5[%c0_8, %c0_9], %11 {strides = array<i32>} : memref<256x16xf32, #tpu.memory_space<vmem>>, vector<256x16xf32>,
    %cst_10 = arith.constant dense<0.000000e+00> : vector<16xf32>
    %13 = vector.multi_reduction <add>, %11, %cst_10 [0] : vector<256x16xf32> to vector<16xf32>
    %14 = vector.shape_cast %13 : vector<16xf32> to vector<1x16xf32>
    %c0_11 = arith.constant 0 : index
    %c0_12 = arith.constant 0 : index
    %15 = vector.load %arg6[%c0_11, %c0_12] : memref<8x16xf32, #tpu.memory_space<vmem>>, vector<1x16xf32>
    tpu.vector_store %arg6[%c0_11, %c0_12], %14 {strides = array<i32>} : memref<8x16xf32, #tpu.memory_space<vmem>>, vector<1x16xf32>,
    %16 = arith.mulf %11, %11 : vector<256x16xf32>
    %cst_13 = arith.constant dense<0.000000e+00> : vector<16xf32>
    %17 = vector.multi_reduction <add>, %16, %cst_13 [0] : vector<256x16xf32> to vector<16xf32>
    %18 = vector.shape_cast %17 : vector<16xf32> to vector<1x16xf32>
    %c1 = arith.constant 1 : index
    %c0_14 = arith.constant 0 : index
    %19 = vector.load %arg6[%c1, %c0_14] : memref<8x16xf32, #tpu.memory_space<vmem>>, vector<1x16xf32>
    tpu.vector_store %arg6[%c1, %c0_14], %18 {strides = array<i32>} : memref<8x16xf32, #tpu.memory_space<vmem>>, vector<1x16xf32>,
    return
  }
  func.func @transform_0(%arg0: i32) -> (i32, i32) {
    %c0_i32 = arith.constant 0 : i32
    %c0_i32_0 = arith.constant 0 : i32
    return %arg0, %c0_i32 : i32, i32
  }
  func.func @transform_1(%arg0: i32) -> (i32, i32) {
    %c0_i32 = arith.constant 0 : i32
    %c0_i32_0 = arith.constant 0 : i32
    %c0_i32_1 = arith.constant 0 : i32
    return %c0_i32, %c0_i32_0 : i32, i32
  }
  func.func @transform_2(%arg0: i32) -> (i32, i32) {
    %c0_i32 = arith.constant 0 : i32
    %c0_i32_0 = arith.constant 0 : i32
    %c0_i32_1 = arith.constant 0 : i32
    return %c0_i32, %c0_i32_0 : i32, i32
  }
  func.func @transform_3(%arg0: i32) -> (i32, i32) {
    %c0_i32 = arith.constant 0 : i32
    %c0_i32_0 = arith.constant 0 : i32
    %c0_i32_1 = arith.constant 0 : i32
    return %c0_i32, %c0_i32_0 : i32, i32
  }
  func.func @transform_4(%arg0: i32) -> (i32, i32) {
    %c0_i32 = arith.constant 0 : i32
    %c0_i32_0 = arith.constant 0 : i32
    return %arg0, %c0_i32 : i32, i32
  }
  func.func @transform_5(%arg0: i32) -> (i32, i32) {
    %c0_i32 = arith.constant 0 : i32
    %c0_i32_0 = arith.constant 0 : i32
    return %arg0, %c0_i32 : i32, i32
  }
}

module attributes {stable_mosaic.version = 11 : i64} {
  func.func @_affine_add_act_kernel(%arg0: i32, %arg1: memref<128x128xf32, #tpu.memory_space<vmem>>, %arg2: memref<128x128xf32, #tpu.memory_space<vmem>>, %arg3: memref<1x128xf32, #tpu.memory_space<vmem>>, %arg4: memref<1x128xf32, #tpu.memory_space<vmem>>, %arg5: memref<128x128xf32, #tpu.memory_space<vmem>>) attributes {dimension_semantics = [#tpu.dimension_semantics<parallel>], iteration_bounds = array<i64: 1>, scalar_prefetch = 0 : i64, scratch_operands = 0 : i64, tpu.core_type = #tpu.core_type<tc>, window_params = [{transform_indices = @transform_0, window_bounds = array<i64: 128, 128>}, {transform_indices = @transform_1, window_bounds = array<i64: 128, 128>}, {pipeline_mode = #tpu.pipeline_mode<synchronous>, transform_indices = @transform_2, window_bounds = array<i64: 1, 128>}, {pipeline_mode = #tpu.pipeline_mode<synchronous>, transform_indices = @transform_3, window_bounds = array<i64: 1, 128>}, {transform_indices = @transform_4, window_bounds = array<i64: 128, 128>}]} {
    %c0 = arith.constant 0 : index
    %c0_0 = arith.constant 0 : index
    %0 = vector.load %arg1[%c0, %c0_0] : memref<128x128xf32, #tpu.memory_space<vmem>>, vector<128x128xf32>
    %c0_1 = arith.constant 0 : index
    %c0_2 = arith.constant 0 : index
    %1 = vector.load %arg3[%c0_1, %c0_2] : memref<1x128xf32, #tpu.memory_space<vmem>>, vector<1x128xf32>
    %2 = vector.broadcast %1 : vector<1x128xf32> to vector<128x128xf32>
    %3 = arith.mulf %0, %2 : vector<128x128xf32>
    %c0_3 = arith.constant 0 : index
    %c0_4 = arith.constant 0 : index
    %4 = vector.load %arg4[%c0_3, %c0_4] : memref<1x128xf32, #tpu.memory_space<vmem>>, vector<1x128xf32>
    %5 = vector.broadcast %4 : vector<1x128xf32> to vector<128x128xf32>
    %6 = arith.addf %3, %5 : vector<128x128xf32>
    %c0_5 = arith.constant 0 : index
    %c0_6 = arith.constant 0 : index
    %7 = vector.load %arg2[%c0_5, %c0_6] : memref<128x128xf32, #tpu.memory_space<vmem>>, vector<128x128xf32>
    %8 = arith.addf %6, %7 : vector<128x128xf32>
    %cst = arith.constant 0.000000e+00 : f32
    %9 = vector.broadcast %cst : f32 to vector<128x128xf32>
    %10 = arith.maximumf %8, %9 : vector<128x128xf32>
    %c0_7 = arith.constant 0 : index
    %c0_8 = arith.constant 0 : index
    %11 = vector.load %arg5[%c0_7, %c0_8] : memref<128x128xf32, #tpu.memory_space<vmem>>, vector<128x128xf32>
    tpu.vector_store %arg5[%c0_7, %c0_8], %10 {strides = array<i32>} : memref<128x128xf32, #tpu.memory_space<vmem>>, vector<128x128xf32>,
    return
  }
  func.func @transform_0(%arg0: i32) -> (i32, i32) {
    %c0_i32 = arith.constant 0 : i32
    %c0_i32_0 = arith.constant 0 : i32
    return %arg0, %c0_i32 : i32, i32
  }
  func.func @transform_1(%arg0: i32) -> (i32, i32) {
    %c0_i32 = arith.constant 0 : i32
    %c0_i32_0 = arith.constant 0 : i32
    return %arg0, %c0_i32 : i32, i32
  }
  func.func @transform_2(%arg0: i32) -> (i32, i32) {
    %c0_i32 = arith.constant 0 : i32
    %c0_i32_0 = arith.constant 0 : i32
    %c0_i32_1 = arith.constant 0 : i32
    return %c0_i32, %c0_i32_0 : i32, i32
  }
  func.func @transform_3(%arg0: i32) -> (i32, i32) {
    %c0_i32 = arith.constant 0 : i32
    %c0_i32_0 = arith.constant 0 : i32
    %c0_i32_1 = arith.constant 0 : i32
    return %c0_i32, %c0_i32_0 : i32, i32
  }
  func.func @transform_4(%arg0: i32) -> (i32, i32) {
    %c0_i32 = arith.constant 0 : i32
    %c0_i32_0 = arith.constant 0 : i32
    return %arg0, %c0_i32 : i32, i32
  }
}

module attributes {stable_mosaic.version = 11 : i64} {
  func.func @_affine_act_kernel(%arg0: i32, %arg1: memref<64x128xf32, #tpu.memory_space<vmem>>, %arg2: memref<1x128xf32, #tpu.memory_space<vmem>>, %arg3: memref<1x128xf32, #tpu.memory_space<vmem>>, %arg4: memref<64x128xf32, #tpu.memory_space<vmem>>) attributes {dimension_semantics = [#tpu.dimension_semantics<parallel>], iteration_bounds = array<i64: 1>, scalar_prefetch = 0 : i64, scratch_operands = 0 : i64, tpu.core_type = #tpu.core_type<tc>, window_params = [{transform_indices = @transform_0, window_bounds = array<i64: 64, 128>}, {pipeline_mode = #tpu.pipeline_mode<synchronous>, transform_indices = @transform_1, window_bounds = array<i64: 1, 128>}, {pipeline_mode = #tpu.pipeline_mode<synchronous>, transform_indices = @transform_2, window_bounds = array<i64: 1, 128>}, {transform_indices = @transform_3, window_bounds = array<i64: 64, 128>}]} {
    %c0 = arith.constant 0 : index
    %c0_0 = arith.constant 0 : index
    %0 = vector.load %arg1[%c0, %c0_0] : memref<64x128xf32, #tpu.memory_space<vmem>>, vector<64x128xf32>
    %c0_1 = arith.constant 0 : index
    %c0_2 = arith.constant 0 : index
    %1 = vector.load %arg2[%c0_1, %c0_2] : memref<1x128xf32, #tpu.memory_space<vmem>>, vector<1x128xf32>
    %2 = vector.broadcast %1 : vector<1x128xf32> to vector<64x128xf32>
    %3 = arith.mulf %0, %2 : vector<64x128xf32>
    %c0_3 = arith.constant 0 : index
    %c0_4 = arith.constant 0 : index
    %4 = vector.load %arg3[%c0_3, %c0_4] : memref<1x128xf32, #tpu.memory_space<vmem>>, vector<1x128xf32>
    %5 = vector.broadcast %4 : vector<1x128xf32> to vector<64x128xf32>
    %6 = arith.addf %3, %5 : vector<64x128xf32>
    %cst = arith.constant 0.000000e+00 : f32
    %7 = vector.broadcast %cst : f32 to vector<64x128xf32>
    %8 = arith.maximumf %6, %7 : vector<64x128xf32>
    %c0_5 = arith.constant 0 : index
    %c0_6 = arith.constant 0 : index
    %9 = vector.load %arg4[%c0_5, %c0_6] : memref<64x128xf32, #tpu.memory_space<vmem>>, vector<64x128xf32>
    tpu.vector_store %arg4[%c0_5, %c0_6], %8 {strides = array<i32>} : memref<64x128xf32, #tpu.memory_space<vmem>>, vector<64x128xf32>,
    return
  }
  func.func @transform_0(%arg0: i32) -> (i32, i32) {
    %c0_i32 = arith.constant 0 : i32
    %c0_i32_0 = arith.constant 0 : i32
    return %arg0, %c0_i32 : i32, i32
  }
  func.func @transform_1(%arg0: i32) -> (i32, i32) {
    %c0_i32 = arith.constant 0 : i32
    %c0_i32_0 = arith.constant 0 : i32
    %c0_i32_1 = arith.constant 0 : i32
    return %c0_i32, %c0_i32_0 : i32, i32
  }
  func.func @transform_2(%arg0: i32) -> (i32, i32) {
    %c0_i32 = arith.constant 0 : i32
    %c0_i32_0 = arith.constant 0 : i32
    %c0_i32_1 = arith.constant 0 : i32
    return %c0_i32, %c0_i32_0 : i32, i32
  }
  func.func @transform_3(%arg0: i32) -> (i32, i32) {
    %c0_i32 = arith.constant 0 : i32
    %c0_i32_0 = arith.constant 0 : i32
    return %arg0, %c0_i32 : i32, i32
  }
}

module attributes {stable_mosaic.version = 11 : i64} {
  func.func @_mm_kernel(%arg0: i32, %arg1: memref<80x32xf32, #tpu.memory_space<vmem>>, %arg2: memref<32x32xbf16, #tpu.memory_space<vmem>>, %arg3: memref<80x32xf32, #tpu.memory_space<vmem>>, %arg4: memref<8x32xf32, #tpu.memory_space<vmem>>) attributes {dimension_semantics = [#tpu.dimension_semantics<parallel>], iteration_bounds = array<i64: 1>, scalar_prefetch = 0 : i64, scratch_operands = 0 : i64, tpu.core_type = #tpu.core_type<tc>, window_params = [{transform_indices = @transform_0, window_bounds = array<i64: 80, 32>}, {pipeline_mode = #tpu.pipeline_mode<synchronous>, transform_indices = @transform_1, window_bounds = array<i64: 32, 32>}, {transform_indices = @transform_2, window_bounds = array<i64: 80, 32>}, {transform_indices = @transform_3, window_bounds = array<i64: 8, 32>}]} {
    %c0 = arith.constant 0 : index
    %c0_0 = arith.constant 0 : index
    %0 = vector.load %arg1[%c0, %c0_0] : memref<80x32xf32, #tpu.memory_space<vmem>>, vector<80x32xf32>
    %1 = arith.truncf %0 : vector<80x32xf32> to vector<80x32xbf16>
    %c0_1 = arith.constant 0 : index
    %c0_2 = arith.constant 0 : index
    %2 = vector.load %arg2[%c0_1, %c0_2] : memref<32x32xbf16, #tpu.memory_space<vmem>>, vector<32x32xbf16>
    %cst = arith.constant dense<0.000000e+00> : vector<80x32xf32>
    %3 = tpu.matmul %1, %2, %cst {dimension_numbers = #tpu.dot_dimension_numbers<[1], [0], [0], [1], [0, 0, 1, 1], [], []>} : vector<80x32xbf16>, vector<32x32xbf16>, vector<80x32xf32> -> vector<80x32xf32>
    %c0_3 = arith.constant 0 : index
    %c0_4 = arith.constant 0 : index
    %4 = vector.load %arg3[%c0_3, %c0_4] : memref<80x32xf32, #tpu.memory_space<vmem>>, vector<80x32xf32>
    tpu.vector_store %arg3[%c0_3, %c0_4], %3 {strides = array<i32>} : memref<80x32xf32, #tpu.memory_space<vmem>>, vector<80x32xf32>,
    %cst_5 = arith.constant dense<0.000000e+00> : vector<32xf32>
    %5 = vector.multi_reduction <add>, %3, %cst_5 [0] : vector<80x32xf32> to vector<32xf32>
    %6 = vector.shape_cast %5 : vector<32xf32> to vector<1x32xf32>
    %c0_6 = arith.constant 0 : index
    %c0_7 = arith.constant 0 : index
    %7 = vector.load %arg4[%c0_6, %c0_7] : memref<8x32xf32, #tpu.memory_space<vmem>>, vector<1x32xf32>
    tpu.vector_store %arg4[%c0_6, %c0_7], %6 {strides = array<i32>} : memref<8x32xf32, #tpu.memory_space<vmem>>, vector<1x32xf32>,
    %8 = arith.mulf %3, %3 : vector<80x32xf32>
    %cst_8 = arith.constant dense<0.000000e+00> : vector<32xf32>
    %9 = vector.multi_reduction <add>, %8, %cst_8 [0] : vector<80x32xf32> to vector<32xf32>
    %10 = vector.shape_cast %9 : vector<32xf32> to vector<1x32xf32>
    %c1 = arith.constant 1 : index
    %c0_9 = arith.constant 0 : index
    %11 = vector.load %arg4[%c1, %c0_9] : memref<8x32xf32, #tpu.memory_space<vmem>>, vector<1x32xf32>
    tpu.vector_store %arg4[%c1, %c0_9], %10 {strides = array<i32>} : memref<8x32xf32, #tpu.memory_space<vmem>>, vector<1x32xf32>,
    return
  }
  func.func @transform_0(%arg0: i32) -> (i32, i32) {
    %c0_i32 = arith.constant 0 : i32
    %c0_i32_0 = arith.constant 0 : i32
    return %arg0, %c0_i32 : i32, i32
  }
  func.func @transform_1(%arg0: i32) -> (i32, i32) {
    %c0_i32 = arith.constant 0 : i32
    %c0_i32_0 = arith.constant 0 : i32
    %c0_i32_1 = arith.constant 0 : i32
    return %c0_i32, %c0_i32_0 : i32, i32
  }
  func.func @transform_2(%arg0: i32) -> (i32, i32) {
    %c0_i32 = arith.constant 0 : i32
    %c0_i32_0 = arith.constant 0 : i32
    return %arg0, %c0_i32 : i32, i32
  }
  func.func @transform_3(%arg0: i32) -> (i32, i32) {
    %c0_i32 = arith.constant 0 : i32
    %c0_i32_0 = arith.constant 0 : i32
    return %arg0, %c0_i32 : i32, i32
  }
}

module attributes {stable_mosaic.version = 11 : i64} {
  func.func @_mm_kernel(%arg0: i32, %arg1: memref<144x32xf32, #tpu.memory_space<vmem>>, %arg2: memref<32x32xbf16, #tpu.memory_space<vmem>>, %arg3: memref<144x32xf32, #tpu.memory_space<vmem>>, %arg4: memref<8x32xf32, #tpu.memory_space<vmem>>) attributes {dimension_semantics = [#tpu.dimension_semantics<parallel>], iteration_bounds = array<i64: 2>, scalar_prefetch = 0 : i64, scratch_operands = 0 : i64, tpu.core_type = #tpu.core_type<tc>, window_params = [{transform_indices = @transform_0, window_bounds = array<i64: 144, 32>}, {pipeline_mode = #tpu.pipeline_mode<synchronous>, transform_indices = @transform_1, window_bounds = array<i64: 32, 32>}, {transform_indices = @transform_2, window_bounds = array<i64: 144, 32>}, {transform_indices = @transform_3, window_bounds = array<i64: 8, 32>}]} {
    %c0 = arith.constant 0 : index
    %c0_0 = arith.constant 0 : index
    %0 = vector.load %arg1[%c0, %c0_0] : memref<144x32xf32, #tpu.memory_space<vmem>>, vector<144x32xf32>
    %1 = arith.truncf %0 : vector<144x32xf32> to vector<144x32xbf16>
    %c0_1 = arith.constant 0 : index
    %c0_2 = arith.constant 0 : index
    %2 = vector.load %arg2[%c0_1, %c0_2] : memref<32x32xbf16, #tpu.memory_space<vmem>>, vector<32x32xbf16>
    %cst = arith.constant dense<0.000000e+00> : vector<144x32xf32>
    %3 = tpu.matmul %1, %2, %cst {dimension_numbers = #tpu.dot_dimension_numbers<[1], [0], [0], [1], [0, 0, 1, 1], [], []>} : vector<144x32xbf16>, vector<32x32xbf16>, vector<144x32xf32> -> vector<144x32xf32>
    %c0_3 = arith.constant 0 : index
    %c0_4 = arith.constant 0 : index
    %4 = vector.load %arg3[%c0_3, %c0_4] : memref<144x32xf32, #tpu.memory_space<vmem>>, vector<144x32xf32>
    tpu.vector_store %arg3[%c0_3, %c0_4], %3 {strides = array<i32>} : memref<144x32xf32, #tpu.memory_space<vmem>>, vector<144x32xf32>,
    %cst_5 = arith.constant dense<0.000000e+00> : vector<32xf32>
    %5 = vector.multi_reduction <add>, %3, %cst_5 [0] : vector<144x32xf32> to vector<32xf32>
    %6 = vector.shape_cast %5 : vector<32xf32> to vector<1x32xf32>
    %c0_6 = arith.constant 0 : index
    %c0_7 = arith.constant 0 : index
    %7 = vector.load %arg4[%c0_6, %c0_7] : memref<8x32xf32, #tpu.memory_space<vmem>>, vector<1x32xf32>
    tpu.vector_store %arg4[%c0_6, %c0_7], %6 {strides = array<i32>} : memref<8x32xf32, #tpu.memory_space<vmem>>, vector<1x32xf32>,
    %8 = arith.mulf %3, %3 : vector<144x32xf32>
    %cst_8 = arith.constant dense<0.000000e+00> : vector<32xf32>
    %9 = vector.multi_reduction <add>, %8, %cst_8 [0] : vector<144x32xf32> to vector<32xf32>
    %10 = vector.shape_cast %9 : vector<32xf32> to vector<1x32xf32>
    %c1 = arith.constant 1 : index
    %c0_9 = arith.constant 0 : index
    %11 = vector.load %arg4[%c1, %c0_9] : memref<8x32xf32, #tpu.memory_space<vmem>>, vector<1x32xf32>
    tpu.vector_store %arg4[%c1, %c0_9], %10 {strides = array<i32>} : memref<8x32xf32, #tpu.memory_space<vmem>>, vector<1x32xf32>,
    return
  }
  func.func @transform_0(%arg0: i32) -> (i32, i32) {
    %c0_i32 = arith.constant 0 : i32
    %c0_i32_0 = arith.constant 0 : i32
    return %arg0, %c0_i32 : i32, i32
  }
  func.func @transform_1(%arg0: i32) -> (i32, i32) {
    %c0_i32 = arith.constant 0 : i32
    %c0_i32_0 = arith.constant 0 : i32
    %c0_i32_1 = arith.constant 0 : i32
    return %c0_i32, %c0_i32_0 : i32, i32
  }
  func.func @transform_2(%arg0: i32) -> (i32, i32) {
    %c0_i32 = arith.constant 0 : i32
    %c0_i32_0 = arith.constant 0 : i32
    return %arg0, %c0_i32 : i32, i32
  }
  func.func @transform_3(%arg0: i32) -> (i32, i32) {
    %c0_i32 = arith.constant 0 : i32
    %c0_i32_0 = arith.constant 0 : i32
    return %arg0, %c0_i32 : i32, i32
  }
}

module attributes {stable_mosaic.version = 11 : i64} {
  func.func @_affine_act_kernel(%arg0: i32, %arg1: memref<72x128xf32, #tpu.memory_space<vmem>>, %arg2: memref<1x128xf32, #tpu.memory_space<vmem>>, %arg3: memref<1x128xf32, #tpu.memory_space<vmem>>, %arg4: memref<72x128xf32, #tpu.memory_space<vmem>>) attributes {dimension_semantics = [#tpu.dimension_semantics<parallel>], iteration_bounds = array<i64: 1>, scalar_prefetch = 0 : i64, scratch_operands = 0 : i64, tpu.core_type = #tpu.core_type<tc>, window_params = [{transform_indices = @transform_0, window_bounds = array<i64: 72, 128>}, {pipeline_mode = #tpu.pipeline_mode<synchronous>, transform_indices = @transform_1, window_bounds = array<i64: 1, 128>}, {pipeline_mode = #tpu.pipeline_mode<synchronous>, transform_indices = @transform_2, window_bounds = array<i64: 1, 128>}, {transform_indices = @transform_3, window_bounds = array<i64: 72, 128>}]} {
    %c0 = arith.constant 0 : index
    %c0_0 = arith.constant 0 : index
    %0 = vector.load %arg1[%c0, %c0_0] : memref<72x128xf32, #tpu.memory_space<vmem>>, vector<72x128xf32>
    %c0_1 = arith.constant 0 : index
    %c0_2 = arith.constant 0 : index
    %1 = vector.load %arg2[%c0_1, %c0_2] : memref<1x128xf32, #tpu.memory_space<vmem>>, vector<1x128xf32>
    %2 = vector.broadcast %1 : vector<1x128xf32> to vector<72x128xf32>
    %3 = arith.mulf %0, %2 : vector<72x128xf32>
    %c0_3 = arith.constant 0 : index
    %c0_4 = arith.constant 0 : index
    %4 = vector.load %arg3[%c0_3, %c0_4] : memref<1x128xf32, #tpu.memory_space<vmem>>, vector<1x128xf32>
    %5 = vector.broadcast %4 : vector<1x128xf32> to vector<72x128xf32>
    %6 = arith.addf %3, %5 : vector<72x128xf32>
    %cst = arith.constant 0.000000e+00 : f32
    %7 = vector.broadcast %cst : f32 to vector<72x128xf32>
    %8 = arith.maximumf %6, %7 : vector<72x128xf32>
    %c0_5 = arith.constant 0 : index
    %c0_6 = arith.constant 0 : index
    %9 = vector.load %arg4[%c0_5, %c0_6] : memref<72x128xf32, #tpu.memory_space<vmem>>, vector<72x128xf32>
    tpu.vector_store %arg4[%c0_5, %c0_6], %8 {strides = array<i32>} : memref<72x128xf32, #tpu.memory_space<vmem>>, vector<72x128xf32>,
    return
  }
  func.func @transform_0(%arg0: i32) -> (i32, i32) {
    %c0_i32 = arith.constant 0 : i32
    %c0_i32_0 = arith.constant 0 : i32
    return %arg0, %c0_i32 : i32, i32
  }
  func.func @transform_1(%arg0: i32) -> (i32, i32) {
    %c0_i32 = arith.constant 0 : i32
    %c0_i32_0 = arith.constant 0 : i32
    %c0_i32_1 = arith.constant 0 : i32
    return %c0_i32, %c0_i32_0 : i32, i32
  }
  func.func @transform_2(%arg0: i32) -> (i32, i32) {
    %c0_i32 = arith.constant 0 : i32
    %c0_i32_0 = arith.constant 0 : i32
    %c0_i32_1 = arith.constant 0 : i32
    return %c0_i32, %c0_i32_0 : i32, i32
  }
  func.func @transform_3(%arg0: i32) -> (i32, i32) {
    %c0_i32 = arith.constant 0 : i32
    %c0_i32_0 = arith.constant 0 : i32
    return %arg0, %c0_i32 : i32, i32
  }
}

module attributes {stable_mosaic.version = 11 : i64} {
  func.func @_mm_kernel(%arg0: i32, %arg1: memref<256x48xf32, #tpu.memory_space<vmem>>, %arg2: memref<256x32xf32, #tpu.memory_space<vmem>>, %arg3: memref<48x32xbf16, #tpu.memory_space<vmem>>, %arg4: memref<256x32xf32, #tpu.memory_space<vmem>>, %arg5: memref<8x32xf32, #tpu.memory_space<vmem>>) attributes {dimension_semantics = [#tpu.dimension_semantics<parallel>], iteration_bounds = array<i64: 2>, scalar_prefetch = 0 : i64, scratch_operands = 0 : i64, tpu.core_type = #tpu.core_type<tc>, window_params = [{transform_indices = @transform_0, window_bounds = array<i64: 256, 48>}, {transform_indices = @transform_1, window_bounds = array<i64: 256, 32>}, {pipeline_mode = #tpu.pipeline_mode<synchronous>, transform_indices = @transform_2, window_bounds = array<i64: 48, 32>}, {transform_indices = @transform_3, window_bounds = array<i64: 256, 32>}, {transform_indices = @transform_4, window_bounds = array<i64: 8, 32>}]} {
    %c0 = arith.constant 0 : index
    %c0_0 = arith.constant 0 : index
    %0 = vector.load %arg1[%c0, %c0_0] : memref<256x48xf32, #tpu.memory_space<vmem>>, vector<256x48xf32>
    %1 = arith.truncf %0 : vector<256x48xf32> to vector<256x48xbf16>
    %c0_1 = arith.constant 0 : index
    %c0_2 = arith.constant 0 : index
    %2 = vector.load %arg3[%c0_1, %c0_2] : memref<48x32xbf16, #tpu.memory_space<vmem>>, vector<48x32xbf16>
    %cst = arith.constant dense<0.000000e+00> : vector<256x32xf32>
    %3 = tpu.matmul %1, %2, %cst {dimension_numbers = #tpu.dot_dimension_numbers<[1], [0], [0], [1], [0, 0, 1, 1], [], []>} : vector<256x48xbf16>, vector<48x32xbf16>, vector<256x32xf32> -> vector<256x32xf32>
    %c0_3 = arith.constant 0 : index
    %c0_4 = arith.constant 0 : index
    %4 = vector.load %arg2[%c0_3, %c0_4] : memref<256x32xf32, #tpu.memory_space<vmem>>, vector<256x32xf32>
    %5 = arith.addf %3, %4 : vector<256x32xf32>
    %c0_5 = arith.constant 0 : index
    %c0_6 = arith.constant 0 : index
    %6 = vector.load %arg4[%c0_5, %c0_6] : memref<256x32xf32, #tpu.memory_space<vmem>>, vector<256x32xf32>
    tpu.vector_store %arg4[%c0_5, %c0_6], %5 {strides = array<i32>} : memref<256x32xf32, #tpu.memory_space<vmem>>, vector<256x32xf32>,
    %cst_7 = arith.constant dense<0.000000e+00> : vector<32xf32>
    %7 = vector.multi_reduction <add>, %5, %cst_7 [0] : vector<256x32xf32> to vector<32xf32>
    %8 = vector.shape_cast %7 : vector<32xf32> to vector<1x32xf32>
    %c0_8 = arith.constant 0 : index
    %c0_9 = arith.constant 0 : index
    %9 = vector.load %arg5[%c0_8, %c0_9] : memref<8x32xf32, #tpu.memory_space<vmem>>, vector<1x32xf32>
    tpu.vector_store %arg5[%c0_8, %c0_9], %8 {strides = array<i32>} : memref<8x32xf32, #tpu.memory_space<vmem>>, vector<1x32xf32>,
    %10 = arith.mulf %5, %5 : vector<256x32xf32>
    %cst_10 = arith.constant dense<0.000000e+00> : vector<32xf32>
    %11 = vector.multi_reduction <add>, %10, %cst_10 [0] : vector<256x32xf32> to vector<32xf32>
    %12 = vector.shape_cast %11 : vector<32xf32> to vector<1x32xf32>
    %c1 = arith.constant 1 : index
    %c0_11 = arith.constant 0 : index
    %13 = vector.load %arg5[%c1, %c0_11] : memref<8x32xf32, #tpu.memory_space<vmem>>, vector<1x32xf32>
    tpu.vector_store %arg5[%c1, %c0_11], %12 {strides = array<i32>} : memref<8x32xf32, #tpu.memory_space<vmem>>, vector<1x32xf32>,
    return
  }
  func.func @transform_0(%arg0: i32) -> (i32, i32) {
    %c0_i32 = arith.constant 0 : i32
    %c0_i32_0 = arith.constant 0 : i32
    return %arg0, %c0_i32 : i32, i32
  }
  func.func @transform_1(%arg0: i32) -> (i32, i32) {
    %c0_i32 = arith.constant 0 : i32
    %c0_i32_0 = arith.constant 0 : i32
    return %arg0, %c0_i32 : i32, i32
  }
  func.func @transform_2(%arg0: i32) -> (i32, i32) {
    %c0_i32 = arith.constant 0 : i32
    %c0_i32_0 = arith.constant 0 : i32
    %c0_i32_1 = arith.constant 0 : i32
    return %c0_i32, %c0_i32_0 : i32, i32
  }
  func.func @transform_3(%arg0: i32) -> (i32, i32) {
    %c0_i32 = arith.constant 0 : i32
    %c0_i32_0 = arith.constant 0 : i32
    return %arg0, %c0_i32 : i32, i32
  }
  func.func @transform_4(%arg0: i32) -> (i32, i32) {
    %c0_i32 = arith.constant 0 : i32
    %c0_i32_0 = arith.constant 0 : i32
    return %arg0, %c0_i32 : i32, i32
  }
}

</mosaic_0001>

<bundles_post_ra>
// kernel: tile.128
= control target key start
LH: loop header
LB: loop body
LE: loop exit
PB: predicated region body
PF: predicated region fallthrough
CT: control target
= control target key end

     0   :  { %s40_s0 = inlined_call_operand.vmem [shape: f32[4], index: 0, kind: input, shape index: {}]   ;;  %s41_s1 = inlined_call_operand.vmem [shape: f32[32,4], index: 1, kind: output, shape index: {}]  }
   0x1   :  { %v4_v0 = vld [vmem:[%s40_s0] ss:$0 sm:$0xff] }
   0x2   :  { %5 = vst [vmem:[%s41_s1] sm:$0xff] %v4_v0  ;;  %12 = vst [vmem:[%s41_s1 + $0x8] sm:$0xff] %v4_v0 }
   0x3   :  { %13 = vst [vmem:[%s41_s1 + $0x10] sm:$0xff] %v4_v0  ;;  %14 = vst [vmem:[%s41_s1 + $0x18] sm:$0xff] %v4_v0 }

// kernel: tile.129
= control target key start
LH: loop header
LB: loop body
LE: loop exit
PB: predicated region body
PF: predicated region fallthrough
CT: control target
= control target key end

     0   :  { %s259_s10 = smov 124   ;;  %s260_s11 = smov 116   ;;  %vm3_vm0 = vcmask 31744   ;;  %vm9_vm1 = vcmask 1048544   ;;  %vm15_vm2 = vcmask 1015744   ;;  %vm21_vm3 = vcmask 982944   ;;  %s399_s0 = inlined_call_operand.vmem [shape: f32[32,4], index: 0, kind: input, shape index: {}]   ;;  %s400_s1 = inlined_call_operand.vmem [shape: f32[1,128], index: 1, kind: output, shape index: {}]  }
   0x1   :  { %v197_v0 = vld [vmem:[%s399_s0 + $0x1f] sm:$0x1]   ;;  %v199_v1 = vld [vmem:[%s399_s0 + $0x1d] sm:$0x1]   ;;  %v198_v2 = vld [vmem:[%s399_s0 + $0x1e] sm:$0x1]  }
   0x2   :  { %7 = vrot.lane.b32.xlu0 %v197_v0, %s259_s10  ;;  %19 = vrot.lane.b32.xlu1 %v199_v1, %s260_s11  ;;  %v200_v3 = vld [vmem:[%s399_s0 + $0x1c] sm:$0x1]   ;;  %s261_s16 = smov 120   ;;  %s262_s17 = smov 112   ;;  %v201_v4 = vld [vmem:[%s399_s0 + $0x1b] sm:$0x1]  }
   0x3   :  { %v202_v5 = vld [vmem:[%s399_s0 + $0x1a] sm:$0x1]   ;;  %s263_s22 = smov 108   ;;  %s264_s23 = smov 104   ;;  %v203_v6 = vld [vmem:[%s399_s0 + $0x19] sm:$0x1]  }
   0x4   :  { %v204_v7 = vld [vmem:[%s399_s0 + $0x18] sm:$0x1]   ;;  %s265_s28 = smov 100   ;;  %s266_s29 = smov 96   ;;  %v205_v8 = vld [vmem:[%s399_s0 + $0x17] sm:$0x1]  }
   0x5   :  { %v206_v9 = vld [vmem:[%s399_s0 + $0x16] sm:$0x1]   ;;  %v2_v10 = vld [vmem:[%s399_s0] sm:$0x1]   ;;  %s267_s7 = smov 92   ;;  %s268_s8 = smov 88  }
   0x6   :  { %13 = vrot.lane.b32.xlu0 %v198_v2, %s261_s16  ;;  %25 = vrot.lane.b32.xlu1 %v200_v3, %s262_s17  ;;  %4 = vst.msk [vmem:[#allocation0] sm:$0x1] %vm3_vm0, %v2_v10   ;;  %v207_v11 = vld [vmem:[%s399_s0 + $0x15] sm:$0x1]   ;;  %v208_v12 = vld [vmem:[%s399_s0 + $0x14] sm:$0x1]  }
   0x7   :  { %s269_s13 = smov 84   ;;  %s270_s14 = smov 80   ;;  %v209_v13 = vld [vmem:[%s399_s0 + $0x13] sm:$0x1]   ;;  %v210_v14 = vld [vmem:[%s399_s0 + $0x12] sm:$0x1]  }
   0x8   :  { %s271_s19 = smov 76   ;;  %s272_s20 = smov 72   ;;  %v211_v15 = vld [vmem:[%s399_s0 + $0x11] sm:$0x1]   ;;  %v212_v16 = vld [vmem:[%s399_s0 + $0x10] sm:$0x1]  }
   0x9   :  { %s273_s25 = smov 68   ;;  %s274_s26 = smov 64   ;;  %v213_v17 = vld [vmem:[%s399_s0 + $0xf] sm:$0x1]   ;;  %v214_v18 = vld [vmem:[%s399_s0 + $0xe] sm:$0x1]  }
   0xa   :  { %31 = vrot.lane.b32.xlu0 %v201_v4, %s263_s22  ;;  %37 = vrot.lane.b32.xlu1 %v202_v5, %s264_s23  ;;  %s275_s2 = smov 60   ;;  %s276_s3 = smov 56   ;;  %v215_v19 = vld [vmem:[%s399_s0 + $0xd] sm:$0x1]   ;;  %v216_v20 = vld [vmem:[%s399_s0 + $0xc] sm:$0x1]  }
   0xb   :  { %s278_s9 = smov 48   ;;  %v217_v21 = vld [vmem:[%s399_s0 + $0xb] sm:$0x1]   ;;  %v218_v22 = vld [vmem:[%s399_s0 + $0xa] sm:$0x1]   ;;  %s280_s15 = smov 40  }
   0xc   :  { %v219_v23 = vld [vmem:[%s399_s0 + $0x9] sm:$0x1]   ;;  %v220_v24 = vld [vmem:[%s399_s0 + $0x8] sm:$0x1]   ;;  %s282_s21 = smov 32   ;;  %s284_s27 = smov 24  }
   0xd   :  { %v221_v25 = vld [vmem:[%s399_s0 + $0x7] sm:$0x1]   ;;  %v222_v26 = vld [vmem:[%s399_s0 + $0x6] sm:$0x1]   ;;  %v223_v27 = vld [vmem:[%s399_s0 + $0x5] sm:$0x1]  }
   0xe   :  { %43 = vrot.lane.b32.xlu0 %v203_v6, %s265_s28  ;;  %49 = vrot.lane.b32.xlu1 %v204_v7, %s266_s29  ;;  %v224_v28 = vld [vmem:[%s399_s0 + $0x4] sm:$0x1]   ;;  %s286_s4 = smov 16   ;;  %v225_v29 = vld [vmem:[%s399_s0 + $0x3] sm:$0x1]   ;;  %s288_s10 = smov 8  }
   0xf   :  { %v226_v30 = vld [vmem:[%s399_s0 + $0x2] sm:$0x1]   ;;  %v227_v31 = vld [vmem:[%s399_s0 + $0x1] sm:$0x1]   ;;  %s289_s0 = smov 4   ;;  %vm27_vm4 = vcmask 950144  }
  0x10   :  { %vm33_vm5 = vcmask 917344   ;;  %vm39_vm6 = vcmask 884544   ;;  %vm45_vm7 = vcmask 851744   ;;  %vm51_vm8 = vcmask 818944  }
  0x11   :  { %vm57_vm9 = vcmask 786144   ;;  %vm63_vm10 = vcmask 753344   ;;  %vm69_vm11 = vcmask 720544   ;;  %vm75_vm12 = vcmask 687744  }
  0x12   :  { %55 = vrot.lane.b32.xlu0 %v205_v8, %s267_s7  ;;  %61 = vrot.lane.b32.xlu1 %v206_v9, %s268_s8  ;;  %s277_s8 = smov 52   ;;  %vm81_vm13 = vcmask 654944   ;;  %vm87_vm14 = vcmask 622144   ;;  %vm93_vm15 = vcmask 589344   ;;  %vm99_vm0 = vcmask 556544  }
  0x16   :  { %67 = vrot.lane.b32.xlu0 %v207_v11, %s269_s13  ;;  %73 = vrot.lane.b32.xlu1 %v208_v12, %s270_s14  ;;  %s279_s14 = smov 44  }
  0x1a   :  { %79 = vrot.lane.b32.xlu0 %v209_v13, %s271_s19  ;;  %85 = vrot.lane.b32.xlu1 %v210_v14, %s272_s20  ;;  %s281_s20 = smov 36  }
  0x1e   :  { %91 = vrot.lane.b32.xlu0 %v211_v15, %s273_s25  ;;  %97 = vrot.lane.b32.xlu1 %v212_v16, %s274_s26  ;;  %s283_s26 = smov 28  }
  0x22   :  { %103 = vrot.lane.b32.xlu0 %v213_v17, %s275_s2  ;;  %109 = vrot.lane.b32.xlu1 %v214_v18, %s276_s3  ;;  %s285_s3 = smov 20  }
  0x26   :  { %115 = vrot.lane.b32.xlu0 %v215_v19, %s277_s8  ;;  %121 = vrot.lane.b32.xlu1 %v216_v20, %s278_s9  ;;  %s287_s9 = smov 12  }
  0x2a   :  { %127 = vrot.lane.b32.xlu0 %v217_v21, %s279_s14  ;;  %133 = vrot.lane.b32.xlu1 %v218_v22, %s280_s15 }
  0x2e   :  { %139 = vrot.lane.b32.xlu0 %v219_v23, %s281_s20  ;;  %145 = vrot.lane.b32.xlu1 %v220_v24, %s282_s21 }
  0x32   :  { %151 = vrot.lane.b32.xlu0 %v221_v25, %s283_s26  ;;  %157 = vrot.lane.b32.xlu1 %v222_v26, %s284_s27 }
  0x36   :  { %163 = vrot.lane.b32.xlu0 %v223_v27, %s285_s3  ;;  %169 = vrot.lane.b32.xlu1 %v224_v28, %s286_s4 }
  0x3a   :  { %175 = vrot.lane.b32.xlu0 %v225_v29, %s287_s9  ;;  %181 = vrot.lane.b32.xlu1 %v226_v30, %s288_s10 }
  0x3e   :  { %187 = vrot.lane.b32.xlu0 %v227_v31, %s289_s0 }
  0x74   :  { %v8_v32 = vpop.permute.xlu0 %7   ;;  %v20_v33 = vpop.permute.xlu1 %19  }
  0x75   :  { %10 = vst.msk [vmem:[#allocation0] sm:$0x1] %vm9_vm1, %v8_v32   ;;  %vm105_vm1 = vcmask 523744  }
  0x78   :  { %v14_v34 = vpop.permute.xlu0 %13   ;;  %v26_v35 = vpop.permute.xlu1 %25  }
  0x79   :  { %16 = vst.msk [vmem:[#allocation0] sm:$0x1] %vm15_vm2, %v14_v34   ;;  %vm111_vm2 = vcmask 490944  }
  0x7a   :  { %22 = vst.msk [vmem:[#allocation0] sm:$0x1] %vm21_vm3, %v20_v33   ;;  %vm117_vm3 = vcmask 458144  }
  0x7b   :  { %28 = vst.msk [vmem:[#allocation0] sm:$0x1] %vm27_vm4, %v26_v35   ;;  %vm123_vm4 = vcmask 425344  }
  0x7c   :  { %v32_v36 = vpop.permute.xlu0 %31   ;;  %v38_v37 = vpop.permute.xlu1 %37  }
  0x7d   :  { %34 = vst.msk [vmem:[#allocation0] sm:$0x1] %vm33_vm5, %v32_v36   ;;  %vm129_vm5 = vcmask 392544  }
  0x7e   :  { %40 = vst.msk [vmem:[#allocation0] sm:$0x1] %vm39_vm6, %v38_v37   ;;  %vm135_vm6 = vcmask 359744  }
  0x80   :  { %v44_v38 = vpop.permute.xlu0 %43   ;;  %v50_v39 = vpop.permute.xlu1 %49  }
  0x81   :  { %46 = vst.msk [vmem:[#allocation0] sm:$0x1] %vm45_vm7, %v44_v38   ;;  %vm141_vm7 = vcmask 326944  }
  0x82   :  { %52 = vst.msk [vmem:[#allocation0] sm:$0x1] %vm51_vm8, %v50_v39   ;;  %vm147_vm8 = vcmask 294144  }
  0x84   :  { %v56_v40 = vpop.permute.xlu0 %55   ;;  %v62_v41 = vpop.permute.xlu1 %61  }
  0x85   :  { %58 = vst.msk [vmem:[#allocation0] sm:$0x1] %vm57_vm9, %v56_v40   ;;  %vm153_vm9 = vcmask 261344  }
  0x86   :  { %64 = vst.msk [vmem:[#allocation0] sm:$0x1] %vm63_vm10, %v62_v41   ;;  %vm159_vm10 = vcmask 228544  }
  0x88   :  { %v68_v42 = vpop.permute.xlu0 %67   ;;  %v74_v43 = vpop.permute.xlu1 %73  }
  0x89   :  { %70 = vst.msk [vmem:[#allocation0] sm:$0x1] %vm69_vm11, %v68_v42   ;;  %vm165_vm11 = vcmask 195744  }
  0x8a   :  { %76 = vst.msk [vmem:[#allocation0] sm:$0x1] %vm75_vm12, %v74_v43   ;;  %vm171_vm12 = vcmask 162944  }
  0x8c   :  { %v80_v44 = vpop.permute.xlu0 %79   ;;  %v86_v45 = vpop.permute.xlu1 %85  }
  0x8d   :  { %82 = vst.msk [vmem:[#allocation0] sm:$0x1] %vm81_vm13, %v80_v44   ;;  %vm177_vm13 = vcmask 130144  }
  0x8e   :  { %88 = vst.msk [vmem:[#allocation0] sm:$0x1] %vm87_vm14, %v86_v45   ;;  %vm183_vm14 = vcmask 97344  }
  0x90   :  { %v92_v46 = vpop.permute.xlu0 %91   ;;  %v98_v47 = vpop.permute.xlu1 %97  }
  0x91   :  { %94 = vst.msk [vmem:[#allocation0] sm:$0x1] %vm93_vm15, %v92_v46   ;;  %vm189_vm15 = vcmask 64544  }
  0x92   :  { %100 = vst.msk [vmem:[#allocation0] sm:$0x1] %vm99_vm0, %v98_v47  }
  0x94   :  { %v104_v48 = vpop.permute.xlu0 %103   ;;  %v110_v49 = vpop.permute.xlu1 %109  }
  0x95   :  { %106 = vst.msk [vmem:[#allocation0] sm:$0x1] %vm105_vm1, %v104_v48  }
  0x96   :  { %112 = vst.msk [vmem:[#allocation0] sm:$0x1] %vm111_vm2, %v110_v49  }
  0x98   :  { %v116_v50 = vpop.permute.xlu0 %115   ;;  %v122_v51 = vpop.permute.xlu1 %121  }
  0x99   :  { %118 = vst.msk [vmem:[#allocation0] sm:$0x1] %vm117_vm3, %v116_v50  }
  0x9a   :  { %124 = vst.msk [vmem:[#allocation0] sm:$0x1] %vm123_vm4, %v122_v51  }
  0x9c   :  { %v128_v52 = vpop.permute.xlu0 %127   ;;  %v134_v53 = vpop.permute.xlu1 %133  }
  0x9d   :  { %130 = vst.msk [vmem:[#allocation0] sm:$0x1] %vm129_vm5, %v128_v52  }
  0x9e   :  { %136 = vst.msk [vmem:[#allocation0] sm:$0x1] %vm135_vm6, %v134_v53  }
  0xa0   :  { %v140_v54 = vpop.permute.xlu0 %139   ;;  %v146_v55 = vpop.permute.xlu1 %145  }
  0xa1   :  { %142 = vst.msk [vmem:[#allocation0] sm:$0x1] %vm141_vm7, %v140_v54  }
  0xa2   :  { %148 = vst.msk [vmem:[#allocation0] sm:$0x1] %vm147_vm8, %v146_v55  }
  0xa4   :  { %v152_v56 = vpop.permute.xlu0 %151   ;;  %v158_v57 = vpop.permute.xlu1 %157  }
  0xa5   :  { %154 = vst.msk [vmem:[#allocation0] sm:$0x1] %vm153_vm9, %v152_v56  }
  0xa6   :  { %160 = vst.msk [vmem:[#allocation0] sm:$0x1] %vm159_vm10, %v158_v57  }
  0xa8   :  { %v164_v58 = vpop.permute.xlu0 %163   ;;  %v170_v59 = vpop.permute.xlu1 %169  }
  0xa9   :  { %166 = vst.msk [vmem:[#allocation0] sm:$0x1] %vm165_vm11, %v164_v58  }
  0xaa   :  { %172 = vst.msk [vmem:[#allocation0] sm:$0x1] %vm171_vm12, %v170_v59  }
  0xac   :  { %v176_v60 = vpop.permute.xlu0 %175   ;;  %v182_v61 = vpop.permute.xlu1 %181  }
  0xad   :  { %178 = vst.msk [vmem:[#allocation0] sm:$0x1] %vm177_vm13, %v176_v60  }
  0xae   :  { %184 = vst.msk [vmem:[#allocation0] sm:$0x1] %vm183_vm14, %v182_v61  }
  0xb0   :  { %v188_v62 = vpop.permute.xlu0 %187  }
  0xb1   :  { %190 = vst.msk [vmem:[#allocation0] sm:$0x1] %vm189_vm15, %v188_v62  }
  0xb8   :  { %v194_v63 = vld [vmem:[#allocation0] sm:$0x1] }
  0xb9   :  { %196 = vst [vmem:[%s400_s1] sm:$0x1] %v194_v63 }

// kernel: _lambda_.27
= control target key start
LH: loop header
LB: loop body
LE: loop exit
PB: predicated region body
PF: predicated region fallthrough
CT: control target
= control target key end

     0   :  { %9 = vsyncpa [#allocation3], 0  ;;  %s1506_s0 = inlined_call_operand.hbm [shape: f32[512,32], index: 0, kind: input, shape index: {}]   ;;  %s1507_s1 = inlined_call_operand.hbm [shape: bf16[32,4], index: 1, kind: input, shape index: {}]   ;;  %s1508_s2 = inlined_call_operand.vmem [shape: f32[512,4], index: 2, kind: output, shape index: {0}]   ;;  %s1509_s3 = inlined_call_operand.vmem [shape: f32[16,4], index: 3, kind: output, shape index: {1}]  }
   0x1   :  { %11 = vsyncpa [#allocation3 + $0x1], 0 }
   0x2   :  { %12 = vsyncpa [#allocation5], 0  ;;  %s1081_s12 = smov 0   ;;  %s1083_s13 = smov 0  }
   0x3   :  { %s1085_s14 = smov 0   ;;  %s1087_s15 = smov 0  }
   0x4 LB: > { %s1100_s16 = sadd.s32 4294967295, %s1053_s15   ;;  %p38_p0 = scmp.ne.s32.totalorder %s1045_s13, %s1041_s12  ;;  %s1053_s15 = sphi %s1087_s15, %s1524_s15   ;;  %s1049_s14 = sphi %s1085_s14, %s1523_s14   ;;  %s1045_s13 = sphi %s1083_s13, %s1522_s13   ;;  %s1041_s12 = sphi %s1081_s12, %s1521_s12  }
   0x5   : > { %p1510_p1 = scmp.eq.s32.totalorder %s1100_s16, 0  ;;  %p810_p2 = scmp.ge.s32.totalorder %s1053_s15, 1 }
   0x6   : > { %p122_p3 = scmp.lt.s32.totalorder %s1053_s15, 3  ;;  %s1055_s19 = smov [#allocation4]  }
   0x7   : > { %p1108_p4 = por %p1510_p1, %p38_p0  ;;  %s134_s20 = sshll.u32 %s1055_s19, 4  ;;  %s135_s20 = int_to_ptr.vmem [resolvable:$true] %s134_s20 }
   0x8   : > { %p1112_p5 = pnand %p810_p2, %p122_p3  ;;  %s1125_s22 = sadd.s32 1, %s1053_s15  }
   0x9   : > { %s1513_s17 = scalar_select %p1108_p4, 1, 0 }
   0xa   : > { %s1514_s18 = scalar_select %p1112_p5, 1, 0 }
   0xb   : > { %p907_p6 = pneg %p1112_p5  ;;  %s25_s23 = sadd.s32 1, %s1049_s14 }
   0xc   : > { %s22_s24 = ssub.s32 %s1053_s15, %s1125_s22  ;;  %s957_s27 = scalar_lea.hbm %s1507_s1, 256 }
   0xd   : > { %p1120_p7 = pnand %p907_p6, %p1510_p1  ;;  %p958_p8 = scmp.ne.s32.totalorder %s1507_s1, %s957_s27 }
   0xe   : > { %p964_p12 = scmp.lt.u32.totalorder %s957_s27, %s1507_s1 }
   0xf   : > { %p959_p9 = pneg %p1120_p7 }
  0x11   : > { %p960_p10 = pnand %p959_p9, %p958_p8 }
  0x13   : > { %p961_p11 = pneg %p960_p10 }
  0x15   : > { %p966_p13 = pnand %p964_p12, %p961_p11 }
  0x17   : > { %969 = shalt.err (!%p966_p13)
}
  0x18   : > { %s970_s5 = scalar_lea.vmem %s135_s20, 256  ;;  %p978_p6 = scmp.lt.s32.totalorder %s135_s20, %s135_s20 }
  0x19   : > { %p971_p0 = scmp.ne.s32.totalorder %s135_s20, %s970_s5  ;;  %p979_p1 = scmp.lt.s32.totalorder %s970_s5, %s970_s5 }
  0x1b   : > { %p973_p2 = pnand %p971_p0, %p959_p9  ;;  %p980_p4 = por %p979_p1, %p978_p6 }
  0x1d   : > { %p974_p3 = pneg %p973_p2 }
  0x1f   : > { %p981_p5 = pnand %p980_p4, %p974_p3 }
  0x21   : > { %984 = shalt.err (!%p981_p5)
}
  0x22   : > { %s1056_s6 = smov 64   ;;  %s1057_s7 = smov 4  }
  0x23   : > { %910 = dma.hbm_to_vmem [thread:$0]  (!%p1120_p7), %s1507_s1, 256, %s135_s20, [#allocation5], %s1056_s6, %s1056_s6, %s1057_s7  }
  0x24   : > { %p23_p8 = scmp.eq.s32.totalorder %s22_s24, 0  ;;  %p32_p9 = scmp.ne.s32.totalorder %s1049_s14, %s1045_s13 }
  0x25   : > { %p33_p1 = scmp.eq.s32.totalorder %s1053_s15, 0  ;;  %p916_p4 = scmp.lt.s32.totalorder %s1053_s15, 2 }
  0x26   : > { %s1151_s10 = scalar_select %p23_p8, %s1049_s14, %s25_s23  }
  0x27   : > { %p34_p5 = por %p33_p1, %p32_p9  ;;  %s148_s11 = sand.u32 1, %s1049_s14  }
  0x28   : > { %s813_s12 = sshll.u32 %s148_s11, 8  ;;  %s842_s19 = sshll.u32 %s1053_s15, 12 }
  0x29   : > { %s1158_s27 = scalar_lea.hbm %s1506_s0, %s842_s19  ;;  %s152_s20 = scalar_lea.vmem [#allocation2], %s813_s12 }
  0x2a   : > { %s159_s21 = sshll.u32 %s152_s20, 4  ;;  %p1162_p7 = pnand %p916_p4, %p34_p5  ;;  %s1160_s21 = int_to_ptr.vmem [resolvable:$true] %s159_s21 }
  0x2b   : > { %s1166_s15 = scalar_lea.sflag [#allocation3], %s148_s11  ;;  %s985_s24 = scalar_lea.hbm %s1158_s27, 4096 }
  0x2c   : > { %p986_p10 = scmp.ne.s32.totalorder %s1158_s27, %s985_s24  ;;  %p987_p11 = pneg %p1162_p7 }
  0x2d   : > { %s990_s30 = scalar_lea.hbm %s1506_s0, 8192  ;;  %p991_p0 = scmp.lt.u32.totalorder %s1158_s27, %s1506_s0 }
  0x2e   : > { %p988_p12 = pnand %p987_p11, %p986_p10  ;;  %p992_p2 = scmp.lt.u32.totalorder %s990_s30, %s985_s24 }
  0x2f   : > { %p994_p6 = scmp.lt.u32.totalorder %s985_s24, %s1158_s27 }
  0x30   : > { %p989_p13 = pneg %p988_p12  ;;  %p993_p3 = por %p992_p2, %p991_p0 }
  0x32   : > { %p995_p8 = por %p994_p6, %p993_p3 }
  0x34   : > { %p996_p9 = pnand %p995_p8, %p989_p13 }
  0x36   : > { %999 = shalt.err (!%p996_p9)
}
  0x37   : > { %s1000_s6 = scalar_lea.vmem %s1160_s21, 4096  ;;  %s1058_s7 = smov [#allocation2]  }
  0x38   : > { %p1001_p1 = scmp.ne.s32.totalorder %s1160_s21, %s1000_s6  ;;  %s1005_s8 = sshll.u32 %s1058_s7, 4  ;;  %s1006_s8 = int_to_ptr.vmem [resolvable:$false] %s1005_s8 }
  0x39   : > { %s1007_s9 = scalar_lea.vmem %s1006_s8, 8192  ;;  %p1008_p10 = scmp.lt.s32.totalorder %s1160_s21, %s1006_s8 }
  0x3a   : > { %p1003_p4 = pnand %p1001_p1, %p987_p11  ;;  %p1009_p12 = scmp.lt.s32.totalorder %s1007_s9, %s1000_s6 }
  0x3c   : > { %p1004_p5 = pneg %p1003_p4  ;;  %p1010_p0 = por %p1009_p12, %p1008_p10 }
  0x3e   : > { %p1011_p2 = pnand %p1010_p0, %p1004_p5 }
  0x40   : > { %1014 = shalt.err (!%p1011_p2)
}
  0x41   : > { %s1059_s11 = smov 128   ;;  %s1060_s12 = smov 8  }
  0x42   : > { %914 = dma.hbm_to_vmem [thread:$0]  (!%p1162_p7), %s1158_s27, 4096, %s1160_s21, %s1166_s15, %s1059_s11, %s1059_s11, %s1060_s12  }
  0x43   : > { %p1517_p11 = scmp.ne.s32.totalorder %s1514_s18, 0 }
  0x44   : > { %s173_s19 = sand.u32 (!%p1517_p11), 1, %s1045_s13   ;;  %p1518_p13 = scmp.ne.s32.totalorder (!%p1517_p11), %s1513_s17, 0 }
  0x45   : > { %171 = sbr.rel (%p1517_p11) target bundleno = 382 (0x17e), region = 28  ;;  %s817_s25 = sshll.u32 (!%p1517_p11), %s173_s19, 8 }
  0x46   : > { %s174_s26 = scalar_lea.sflag (!%p1517_p11), [#allocation3], %s173_s19  ;;  %s1197_s20 = scalar_lea.vmem (!%p1517_p11), [#allocation2], %s817_s25 }
  0x4c   : > { %1032 = dma.done.wait (%p1518_p13), %s174_s26, 4096  }
  0x4d   : > { %1034 = vsyncadd (%p1518_p13), %s174_s26, 4294963200  ;;  %p1519_p3 = scmp.eq.s32.totalorder %s1100_s16, 0 }
  0x4f   : > { %1036 = dma.done.wait (%p1519_p3), [#allocation5], 256   ;;  %p1520_p7 = pmov %p1519_p3 }
  0x50   : > { %v955_v0 = vld [vmem:[#allocation4] sm:$0xff]   ;;  %v956_v1 = vld [vmem:[#allocation4 + $0x8] sm:$0xff]   ;;  %vm284_vm0 = vcmask 261120   ;;  %v222_v5 = vld [vmem:[%s1197_s20 + $0x10] sm:$0xff]  ;;  %s819_s17 = sshll.u32 %s1100_s16, 5  ;;  %vm494_vm1 = vcmask 31744  }
  0x51   : > { %1038 = vsyncadd (%p1520_p7), [#allocation5], 4294967040  ;;  %861 = vmatprep.subr.bf16.mxu0 %v955_v0  ;;  %v220_v2 = vld [vmem:[%s1197_s20] sm:$0xff]  ;;  %v221_v3 = vld [vmem:[%s1197_s20 + $0x8] sm:$0xff]  ;;  %897 = vmatprep.subr.bf16.mxu1 %v955_v0  ;;  %p210_p6 = scmp.lt.s32.totalorder %s819_s17, 63  ;;  %p215_p8 = scmp.lt.s32.totalorder %s1100_s16, 1 }
  0x52   : > { %862 = vmatpush3.bf16.msra.mxu0 %v955_v0  ;;  %v252_v4 = vpack.c.bf16 %v221_v3, %v220_v2  ;;  %v223_v6 = vld [vmem:[%s1197_s20 + $0x18] sm:$0xff]  ;;  %899 = vmatpush3.bf16.msra.mxu1 %v955_v0  ;;  %v224_v7 = vld [vmem:[%s1197_s20 + $0x20] sm:$0xff]  ;;  %v225_v8 = vld [vmem:[%s1197_s20 + $0x28] sm:$0xff]  ;;  %vm596_vm2 = vcmask 24576  }
  0x53   : > { %863 = vmatprep.subr.bf16.mxu0 %v956_v1  ;;  %898 = vmatprep.subr.bf16.mxu1 %v956_v1  ;;  %v253_v9 = vpack.c.bf16 %v223_v6, %v222_v5  ;;  %v254_v10 = vpack.c.bf16 %v225_v8, %v224_v7  ;;  %v236_v11 = vld [vmem:[%s1197_s20 + $0x80] sm:$0xff]  ;;  %v237_v12 = vld [vmem:[%s1197_s20 + $0x88] sm:$0xff]  ;;  %v238_v14 = vld [vmem:[%s1197_s20 + $0x90] sm:$0xff]  ;;  %s1526_s17 = smov (!%p210_p6, %s819_s17), 63  ;;  %s1528_s16 = smov (!%p215_p8, %s1100_s16), 1 }
  0x54   : > { %865 = vmatprep.mubr.msk.bf16.mxu0 %vm284_vm0, %v252_v4  ;;  %v260_v13 = vpack.c.bf16 %v237_v12, %v236_v11  ;;  %v239_v15 = vld [vmem:[%s1197_s20 + $0x98] sm:$0xff]  ;;  %v240_v16 = vld [vmem:[%s1197_s20 + $0xa0] sm:$0xff]  ;;  %v241_v18 = vld [vmem:[%s1197_s20 + $0xa8] sm:$0xff]  ;;  %s820_s18 = sshll.u32 %s1526_s17, 3  ;;  %s821_s15 = sshll.u32 %s1528_s16, 3 }
  0x55   : > { %v261_v17 = vpack.c.bf16 %v239_v15, %v238_v14  ;;  %v262_v19 = vpack.c.bf16 %v241_v18, %v240_v16  ;;  %v226_v20 = vld [vmem:[%s1197_s20 + $0x30] sm:$0xff]  ;;  %v227_v21 = vld [vmem:[%s1197_s20 + $0x38] sm:$0xff]  ;;  %v228_v22 = vld [vmem:[%s1197_s20 + $0x40] sm:$0xff]  ;;  %s1259_s23 = scalar_lea.vmem %s1508_s2, %s820_s18  ;;  %s218_s29 = scalar_lea.vmem %s1509_s3, %s821_s15 }
  0x56   : > { %864 = vmatpush3.bf16.msra.mxu0 %v956_v1  ;;  %900 = vmatpush3.bf16.msra.mxu1 %v956_v1  ;;  %v229_v23 = vld [vmem:[%s1197_s20 + $0x48] sm:$0xff]  ;;  %v242_v24 = vld [vmem:[%s1197_s20 + $0xb0] sm:$0xff]  ;;  %v243_v25 = vld [vmem:[%s1197_s20 + $0xb8] sm:$0xff]  ;;  %v255_v28 = vpack.c.bf16 %v227_v21, %v226_v20 }
  0x57   : > { %881 = vmatprep.mubr.msk.bf16.mxu1 %vm284_vm0, %v260_v13  ;;  %v244_v26 = vld [vmem:[%s1197_s20 + $0xc0] sm:$0xff]  ;;  %v245_v27 = vld [vmem:[%s1197_s20 + $0xc8] sm:$0xff]  ;;  %v256_v29 = vpack.c.bf16 %v229_v23, %v228_v22  ;;  %v263_v30 = vpack.c.bf16 %v243_v25, %v242_v24  ;;  %v230_v32 = vld [vmem:[%s1197_s20 + $0x50] sm:$0xff] }
  0x58   : > { %v264_v31 = vpack.c.bf16 %v245_v27, %v244_v26  ;;  %v231_v33 = vld [vmem:[%s1197_s20 + $0x58] sm:$0xff]  ;;  %v232_v34 = vld [vmem:[%s1197_s20 + $0x60] sm:$0xff]  ;;  %v233_v35 = vld [vmem:[%s1197_s20 + $0x68] sm:$0xff] }
  0x59   : > { %866 = vmatmul.mubr.msk.bf16.vlgmr.msra.gmra.mrb[0].mxu0 %vm284_vm0, %v253_v9  ;;  %882 = vmatmul.mubr.msk.bf16.vlgmr.msra.gmra.mrb[0].mxu1 %vm284_vm0, %v261_v17  ;;  %v246_v36 = vld [vmem:[%s1197_s20 + $0xd0] sm:$0xff]  ;;  %v247_v37 = vld [vmem:[%s1197_s20 + $0xd8] sm:$0xff]  ;;  %v248_v38 = vld [vmem:[%s1197_s20 + $0xe0] sm:$0xff]  ;;  %v257_v40 = vpack.c.bf16 %v231_v33, %v230_v32  ;;  %v258_v41 = vpack.c.bf16 %v233_v35, %v232_v34 }
  0x5a   : > { %869 = vmatprep.mubr.msk.bf16.mxu0 %vm284_vm0, %v254_v10  ;;  %885 = vmatprep.mubr.msk.bf16.mxu1 %vm284_vm0, %v262_v19  ;;  %v249_v39 = vld [vmem:[%s1197_s20 + $0xe8] sm:$0xff]  ;;  %v265_v42 = vpack.c.bf16 %v247_v37, %v246_v36  ;;  %v234_v44 = vld [vmem:[%s1197_s20 + $0x70] sm:$0xff]  ;;  %v235_v45 = vld [vmem:[%s1197_s20 + $0x78] sm:$0xff] }
  0x5b   : > { %v266_v43 = vpack.c.bf16 %v249_v39, %v248_v38  ;;  %v250_v46 = vld [vmem:[%s1197_s20 + $0xf0] sm:$0xff]  ;;  %v251_v47 = vld [vmem:[%s1197_s20 + $0xf8] sm:$0xff]  ;;  %v259_v48 = vpack.c.bf16 %v235_v45, %v234_v44 }
  0x5c   : > { %v267_v49 = vpack.c.bf16 %v251_v47, %v250_v46 }
  0x61   : > { %870 = vmatmul.mubr.msk.bf16.gmra.mrb[4].mxu0 %vm284_vm0, %v255_v28  ;;  %886 = vmatmul.mubr.msk.bf16.gmra.mrb[4].mxu1 %vm284_vm0, %v263_v30 }
  0x62   : > { %873 = vmatprep.mubr.msk.bf16.mxu0 %vm284_vm0, %v256_v29  ;;  %889 = vmatprep.mubr.msk.bf16.mxu1 %vm284_vm0, %v264_v31 }
  0x69   : > { %874 = vmatmul.mubr.msk.bf16.gmra.mrb[8].mxu0 %vm284_vm0, %v257_v40  ;;  %890 = vmatmul.mubr.msk.bf16.gmra.mrb[8].mxu1 %vm284_vm0, %v265_v42 }
  0x6a   : > { %877 = vmatprep.mubr.msk.bf16.mxu0 %vm284_vm0, %v258_v41  ;;  %893 = vmatprep.mubr.msk.bf16.mxu1 %vm284_vm0, %v266_v43 }
  0x71   : > { %878 = vmatmul.mubr.msk.bf16.gmra.mrb[12].mxu0 %vm284_vm0, %v259_v48  ;;  %894 = vmatmul.mubr.msk.bf16.gmra.mrb[12].mxu1 %vm284_vm0, %v267_v49 }
 0x12c   : > { %v867_v50 = vpop.f32.mrb[0].mxu0  ;;  %v1263_v52 = vpop.f32.mrb[0].mxu1 }
 0x12d   : > { %497 = vst.msk [vmem:[%s1259_s23 + $0x10] sm:$0xff] %vm494_vm1, %v867_v50  ;;  %v367_v51 = vpop.f32.mrb[1].mxu0  ;;  %513 = vst.msk [vmem:[%s1259_s23 + $0x90] sm:$0xff] %vm494_vm1, %v1263_v52  ;;  %v1270_v55 = vpop.f32.mrb[1].mxu1  ;;  %v600_v58 = vmul.f32 %v867_v50, %v867_v50  ;;  %v530_v0 = vsel %vm494_vm1, %v867_v50, 0.0 }
 0x12e   : > { %495 = vst.msk [vmem:[%s1259_s23] sm:$0xff] %vm494_vm1, %v367_v51  ;;  %v598_v53 = vmul.f32 %v367_v51, %v367_v51  ;;  %v868_v54 = vpop.f32.mrb[2].mxu0  ;;  %511 = vst.msk [vmem:[%s1259_s23 + $0x80] sm:$0xff] %vm494_vm1, %v1270_v55  ;;  %v1277_v57 = vpop.f32.mrb[2].mxu1  ;;  %v527_v59 = vsel %vm494_vm1, %v367_v51, 0.0 }
 0x12f   : > { %498 = vst.msk [vmem:[%s1259_s23 + $0x18] sm:$0xff] %vm494_vm1, %v868_v54  ;;  %v370_v56 = vpop.f32.mrb[3].mxu0  ;;  %514 = vst.msk [vmem:[%s1259_s23 + $0x98] sm:$0xff] %vm494_vm1, %v1277_v57  ;;  %v1286_v62 = vpop.f32.mrb[3].mxu1  ;;  %v601_v2 = vmul.f32 %v868_v54, %v868_v54  ;;  %v633_v6 = vsel %vm494_vm1, %v600_v58, 0.0  ;;  %v532_v7 = vsel %vm494_vm1, %v868_v54, 0.0 }
 0x130   : > { %496 = vst.msk [vmem:[%s1259_s23 + $0x8] sm:$0xff] %vm494_vm1, %v370_v56  ;;  %v528_v60 = vsel %vm494_vm1, %v370_v56, 0.0  ;;  %v599_v61 = vmul.f32 %v370_v56, %v370_v56  ;;  %512 = vst.msk [vmem:[%s1259_s23 + $0x88] sm:$0xff] %vm494_vm1, %v1286_v62  ;;  %v630_v1 = vsel %vm494_vm1, %v598_v53, 0.0 }
 0x131   : > { %v529_v63 = vadd.f32 %v528_v60, %v527_v59  ;;  %v635_v13 = vsel %vm494_vm1, %v601_v2, 0.0 }
 0x132   : > { %v631_v3 = vsel %vm494_vm1, %v599_v61, 0.0 }
 0x133   : > { %v531_v4 = vadd.f32 %v530_v0, %v529_v63  ;;  %v632_v5 = vadd.f32 %v631_v3, %v630_v1 }
 0x134   : > { %v871_v8 = vpop.f32.mrb[4].mxu0  ;;  %v1298_v12 = vpop.f32.mrb[4].mxu1 }
 0x135   : > { %v634_v9 = vadd.f32 %v633_v6, %v632_v5  ;;  %501 = vst.msk [vmem:[%s1259_s23 + $0x30] sm:$0xff] %vm494_vm1, %v871_v8  ;;  %v383_v10 = vpop.f32.mrb[5].mxu0  ;;  %v533_v11 = vadd.f32 %v532_v7, %v531_v4  ;;  %517 = vst.msk [vmem:[%s1259_s23 + $0xb0] sm:$0xff] %vm494_vm1, %v1298_v12  ;;  %v1307_v17 = vpop.f32.mrb[5].mxu1  ;;  %v604_v22 = vmul.f32 %v871_v8, %v871_v8  ;;  %v538_v29 = vsel %vm494_vm1, %v871_v8, 0.0 }
 0x136   : > { %499 = vst.msk [vmem:[%s1259_s23 + $0x20] sm:$0xff] %vm494_vm1, %v383_v10  ;;  %v534_v14 = vsel %vm494_vm1, %v383_v10, 0.0  ;;  %v602_v15 = vmul.f32 %v383_v10, %v383_v10  ;;  %v872_v16 = vpop.f32.mrb[6].mxu0  ;;  %515 = vst.msk [vmem:[%s1259_s23 + $0xa0] sm:$0xff] %vm494_vm1, %v1307_v17  ;;  %v1314_v21 = vpop.f32.mrb[6].mxu1 }
 0x137   : > { %v535_v18 = vadd.f32 %v534_v14, %v533_v11  ;;  %v636_v19 = vadd.f32 %v635_v13, %v634_v9  ;;  %502 = vst.msk [vmem:[%s1259_s23 + $0x38] sm:$0xff] %vm494_vm1, %v872_v16  ;;  %v386_v20 = vpop.f32.mrb[7].mxu0  ;;  %518 = vst.msk [vmem:[%s1259_s23 + $0xb8] sm:$0xff] %vm494_vm1, %v1314_v21  ;;  %v1323_v26 = vpop.f32.mrb[7].mxu1  ;;  %v605_v30 = vmul.f32 %v872_v16, %v872_v16  ;;  %v641_v34 = vsel %vm494_vm1, %v604_v22, 0.0 }
 0x138   : > { %v637_v23 = vsel %vm494_vm1, %v602_v15, 0.0  ;;  %500 = vst.msk [vmem:[%s1259_s23 + $0x28] sm:$0xff] %vm494_vm1, %v386_v20  ;;  %v536_v24 = vsel %vm494_vm1, %v386_v20, 0.0  ;;  %v603_v25 = vmul.f32 %v386_v20, %v386_v20  ;;  %516 = vst.msk [vmem:[%s1259_s23 + $0xa8] sm:$0xff] %vm494_vm1, %v1323_v26  ;;  %v540_v35 = vsel %vm494_vm1, %v872_v16, 0.0 }
 0x139   : > { %v638_v27 = vadd.f32 %v637_v23, %v636_v19  ;;  %v537_v28 = vadd.f32 %v536_v24, %v535_v18  ;;  %v643_v41 = vsel %vm494_vm1, %v605_v30, 0.0 }
 0x13a   : > { %v639_v31 = vsel %vm494_vm1, %v603_v25, 0.0 }
 0x13b   : > { %v539_v32 = vadd.f32 %v538_v29, %v537_v28  ;;  %v640_v33 = vadd.f32 %v639_v31, %v638_v27 }
 0x13c   : > { %v875_v36 = vpop.f32.mrb[8].mxu0  ;;  %v1334_v40 = vpop.f32.mrb[8].mxu1 }
 0x13d   : > { %v642_v37 = vadd.f32 %v641_v34, %v640_v33  ;;  %505 = vst.msk [vmem:[%s1259_s23 + $0x50] sm:$0xff] %vm494_vm1, %v875_v36  ;;  %v399_v38 = vpop.f32.mrb[9].mxu0  ;;  %v541_v39 = vadd.f32 %v540_v35, %v539_v32  ;;  %521 = vst.msk [vmem:[%s1259_s23 + $0xd0] sm:$0xff] %vm494_vm1, %v1334_v40  ;;  %v1343_v45 = vpop.f32.mrb[9].mxu1  ;;  %v608_v50 = vmul.f32 %v875_v36, %v875_v36  ;;  %v546_v60 = vsel %vm494_vm1, %v875_v36, 0.0 }
 0x13e   : > { %503 = vst.msk [vmem:[%s1259_s23 + $0x40] sm:$0xff] %vm494_vm1, %v399_v38  ;;  %v542_v42 = vsel %vm494_vm1, %v399_v38, 0.0  ;;  %v606_v43 = vmul.f32 %v399_v38, %v399_v38  ;;  %v876_v44 = vpop.f32.mrb[10].mxu0  ;;  %519 = vst.msk [vmem:[%s1259_s23 + $0xc0] sm:$0xff] %vm494_vm1, %v1343_v45  ;;  %v1350_v49 = vpop.f32.mrb[10].mxu1  ;;  %v614_v32 = vmul.f32 %v1270_v55, %v1270_v55 }
 0x13f   : > { %v543_v46 = vadd.f32 %v542_v42, %v541_v39  ;;  %v644_v47 = vadd.f32 %v643_v41, %v642_v37  ;;  %506 = vst.msk [vmem:[%s1259_s23 + $0x58] sm:$0xff] %vm494_vm1, %v876_v44  ;;  %v402_v48 = vpop.f32.mrb[11].mxu0  ;;  %522 = vst.msk [vmem:[%s1259_s23 + $0xd8] sm:$0xff] %vm494_vm1, %v1350_v49  ;;  %v1359_v56 = vpop.f32.mrb[11].mxu1  ;;  %v609_v61 = vmul.f32 %v876_v44, %v876_v44  ;;  %v649_v2 = vsel %vm494_vm1, %v608_v50, 0.0 }
 0x140   : > { %v645_v51 = vsel %vm494_vm1, %v606_v43, 0.0  ;;  %504 = vst.msk [vmem:[%s1259_s23 + $0x48] sm:$0xff] %vm494_vm1, %v402_v48  ;;  %v544_v53 = vsel %vm494_vm1, %v402_v48, 0.0  ;;  %v607_v54 = vmul.f32 %v402_v48, %v402_v48  ;;  %520 = vst.msk [vmem:[%s1259_s23 + $0xc8] sm:$0xff] %vm494_vm1, %v1359_v56  ;;  %v548_v3 = vsel %vm494_vm1, %v876_v44, 0.0 }
 0x141   : > { %v646_v58 = vadd.f32 %v645_v51, %v644_v47  ;;  %v545_v59 = vadd.f32 %v544_v53, %v543_v46  ;;  %v651_v9 = vsel %vm494_vm1, %v609_v61, 0.0  ;;  %v558_v37 = vsel %vm494_vm1, %v1270_v55, 0.0 }
 0x142   : > { %v647_v63 = vsel %vm494_vm1, %v607_v54, 0.0  ;;  %v661_v43 = vsel %vm494_vm1, %v614_v32, 0.0  ;;  %v615_v44 = vmul.f32 %v1286_v62, %v1286_v62  ;;  %v616_v55 = vmul.f32 %v1263_v52, %v1263_v52 }
 0x143   : > { %v547_v0 = vadd.f32 %v546_v60, %v545_v59  ;;  %v648_v1 = vadd.f32 %v647_v63, %v646_v58  ;;  %v560_v50 = vsel %vm494_vm1, %v1286_v62, 0.0  ;;  %v562_v54 = vsel %vm494_vm1, %v1263_v52, 0.0 }
 0x144   : > { %v879_v4 = vpop.f32.mrb[12].mxu0  ;;  %v1370_v8 = vpop.f32.mrb[12].mxu1  ;;  %v617_v58 = vmul.f32 %v1277_v57, %v1277_v57  ;;  %v663_v59 = vsel %vm494_vm1, %v615_v44, 0.0  ;;  %v618_v60 = vmul.f32 %v1307_v17, %v1307_v17  ;;  %v564_v62 = vsel %vm494_vm1, %v1277_v57, 0.0 }
 0x145   : > { %v650_v5 = vadd.f32 %v649_v2, %v648_v1  ;;  %509 = vst.msk [vmem:[%s1259_s23 + $0x70] sm:$0xff] %vm494_vm1, %v879_v4  ;;  %v415_v6 = vpop.f32.mrb[13].mxu0  ;;  %v549_v7 = vadd.f32 %v548_v3, %v547_v0  ;;  %525 = vst.msk [vmem:[%s1259_s23 + $0xf0] sm:$0xff] %vm494_vm1, %v1370_v8  ;;  %v1379_v14 = vpop.f32.mrb[13].mxu1  ;;  %v612_v20 = vmul.f32 %v879_v4, %v879_v4  ;;  %v554_v29 = vsel %vm494_vm1, %v879_v4, 0.0 }
 0x146   : > { %507 = vst.msk [vmem:[%s1259_s23 + $0x60] sm:$0xff] %vm494_vm1, %v415_v6  ;;  %v550_v10 = vsel %vm494_vm1, %v415_v6, 0.0  ;;  %v610_v11 = vmul.f32 %v415_v6, %v415_v6  ;;  %v880_v13 = vpop.f32.mrb[14].mxu0  ;;  %523 = vst.msk [vmem:[%s1259_s23 + $0xe0] sm:$0xff] %vm494_vm1, %v1379_v14  ;;  %v1386_v19 = vpop.f32.mrb[14].mxu1  ;;  %v665_v0 = vsel %vm494_vm1, %v616_v55, 0.0  ;;  %v624_v32 = vmul.f32 %v1334_v40, %v1334_v40 }
 0x147   : > { %v551_v15 = vadd.f32 %v550_v10, %v549_v7  ;;  %v652_v16 = vadd.f32 %v651_v9, %v650_v5  ;;  %510 = vst.msk [vmem:[%s1259_s23 + $0x78] sm:$0xff] %vm494_vm1, %v880_v13  ;;  %v418_v18 = vpop.f32.mrb[15].mxu0  ;;  %526 = vst.msk [vmem:[%s1259_s23 + $0xf8] sm:$0xff] %vm494_vm1, %v1386_v19  ;;  %v1395_v25 = vpop.f32.mrb[15].mxu1  ;;  %v613_v30 = vmul.f32 %v880_v13, %v880_v13  ;;  %v657_v35 = vsel %vm494_vm1, %v612_v20, 0.0 }
 0x148   : > { %v653_v22 = vsel %vm494_vm1, %v610_v11, 0.0  ;;  %508 = vst.msk [vmem:[%s1259_s23 + $0x68] sm:$0xff] %vm494_vm1, %v418_v18  ;;  %v552_v23 = vsel %vm494_vm1, %v418_v18, 0.0  ;;  %v611_v24 = vmul.f32 %v418_v18, %v418_v18  ;;  %524 = vst.msk [vmem:[%s1259_s23 + $0xe8] sm:$0xff] %vm494_vm1, %v1395_v25  ;;  %v556_v36 = vsel %vm494_vm1, %v880_v13, 0.0 }
 0x149   : > { %v654_v27 = vadd.f32 %v653_v22, %v652_v16  ;;  %v553_v28 = vadd.f32 %v552_v23, %v551_v15  ;;  %v629_v38 = vmul.f32 %v1386_v19, %v1386_v19  ;;  %v659_v42 = vsel %vm494_vm1, %v613_v30, 0.0 }
 0x14a   : > { %v655_v31 = vsel %vm494_vm1, %v611_v24, 0.0  ;;  %v566_v1 = vsel %vm494_vm1, %v1307_v17, 0.0  ;;  %v667_v3 = vsel %vm494_vm1, %v617_v58, 0.0  ;;  %v669_v4 = vsel %vm494_vm1, %v618_v60, 0.0 }
 0x14b   : > { %v555_v33 = vadd.f32 %v554_v29, %v553_v28  ;;  %v656_v34 = vadd.f32 %v655_v31, %v654_v27  ;;  %v1415_v46 = vsel %vm494_vm1, %v629_v38, 0.0  ;;  %v619_v5 = vmul.f32 %v1323_v26, %v1323_v26 }
 0x14c   : > { %v620_v9 = vmul.f32 %v1298_v12, %v1298_v12  ;;  %v568_v57 = vsel %vm494_vm1, %v1323_v26, 0.0  ;;  %v570_v17 = vsel %vm494_vm1, %v1298_v12, 0.0  ;;  %v621_v13 = vmul.f32 %v1314_v21, %v1314_v21 }
 0x14d   : > { %v658_v39 = vadd.f32 %v657_v35, %v656_v34  ;;  %v557_v41 = vadd.f32 %v556_v36, %v555_v33  ;;  %v671_v15 = vsel %vm494_vm1, %v619_v5, 0.0  ;;  %v622_v16 = vmul.f32 %v1343_v45, %v1343_v45 }
 0x14e   : > { %v673_v22 = vsel %vm494_vm1, %v620_v9, 0.0  ;;  %v572_v26 = vsel %vm494_vm1, %v1314_v21, 0.0  ;;  %v574_v23 = vsel %vm494_vm1, %v1343_v45, 0.0  ;;  %v675_v27 = vsel %vm494_vm1, %v621_v13, 0.0 }
 0x14f   : > { %v559_v47 = vadd.f32 %v558_v37, %v557_v41  ;;  %v660_v48 = vadd.f32 %v659_v42, %v658_v39  ;;  %v677_v28 = vsel %vm494_vm1, %v622_v16, 0.0  ;;  %v623_v29 = vmul.f32 %v1359_v56, %v1359_v56 }
 0x150   : > { %v576_v21 = vsel %vm494_vm1, %v1359_v56, 0.0  ;;  %v578_v45 = vsel %vm494_vm1, %v1334_v40, 0.0  ;;  %v625_v35 = vmul.f32 %v1350_v49, %v1350_v49  ;;  %v626_v37 = vmul.f32 %v1379_v14, %v1379_v14 }
 0x151   : > { %v662_v51 = vadd.f32 %v661_v43, %v660_v48  ;;  %v561_v53 = vadd.f32 %v560_v50, %v559_v47  ;;  %v679_v36 = vsel %vm494_vm1, %v623_v29, 0.0  ;;  %v681_v41 = vsel %vm494_vm1, %v624_v32, 0.0 }
 0x152   : > { %v580_v56 = vsel %vm494_vm1, %v1350_v49, 0.0  ;;  %v582_v42 = vsel %vm494_vm1, %v1379_v14, 0.0  ;;  %v683_v44 = vsel %vm494_vm1, %v625_v35, 0.0  ;;  %v685_v47 = vsel %vm494_vm1, %v626_v37, 0.0 }
 0x153   : > { %v563_v61 = vadd.f32 %v562_v54, %v561_v53  ;;  %v664_v63 = vadd.f32 %v663_v59, %v662_v51  ;;  %v627_v48 = vmul.f32 %v1395_v25, %v1395_v25  ;;  %v628_v51 = vmul.f32 %v1370_v8, %v1370_v8 }
 0x154   : > { %v584_v49 = vsel %vm494_vm1, %v1395_v25, 0.0  ;;  %v586_v54 = vsel %vm494_vm1, %v1370_v8, 0.0 }
 0x155   : > { %v666_v2 = vadd.f32 %v665_v0, %v664_v63  ;;  %v565_v52 = vadd.f32 %v564_v62, %v563_v61  ;;  %v687_v58 = vsel %vm494_vm1, %v627_v48, 0.0  ;;  %v689_v61 = vsel %vm494_vm1, %v628_v51, 0.0 }
 0x156   : > { %v588_v63 = vsel %vm494_vm1, %v1386_v19, 0.0 }
 0x157   : > { %v567_v6 = vadd.f32 %v566_v1, %v565_v52  ;;  %v668_v7 = vadd.f32 %v667_v3, %v666_v2 }
 0x159   : > { %v670_v10 = vadd.f32 %v669_v4, %v668_v7  ;;  %v569_v11 = vadd.f32 %v568_v57, %v567_v6 }
 0x15b   : > { %v571_v18 = vadd.f32 %v570_v17, %v569_v11  ;;  %v672_v20 = vadd.f32 %v671_v15, %v670_v10 }
 0x15d   : > { %v674_v24 = vadd.f32 %v673_v22, %v672_v20  ;;  %v573_v12 = vadd.f32 %v572_v26, %v571_v18 }
 0x15f   : > { %v575_v30 = vadd.f32 %v574_v23, %v573_v12  ;;  %v676_v31 = vadd.f32 %v675_v27, %v674_v24 }
 0x161   : > { %v678_v33 = vadd.f32 %v677_v28, %v676_v31  ;;  %v577_v34 = vadd.f32 %v576_v21, %v575_v30 }
 0x163   : > { %v579_v38 = vadd.f32 %v578_v45, %v577_v34  ;;  %v680_v39 = vadd.f32 %v679_v36, %v678_v33 }
 0x165   : > { %v682_v43 = vadd.f32 %v681_v41, %v680_v39  ;;  %v581_v40 = vadd.f32 %v580_v56, %v579_v38 }
 0x167   : > { %v583_v55 = vadd.f32 %v582_v42, %v581_v40  ;;  %v684_v50 = vadd.f32 %v683_v44, %v682_v43 }
 0x169   : > { %v686_v14 = vadd.f32 %v685_v47, %v684_v50  ;;  %v585_v53 = vadd.f32 %v584_v49, %v583_v55 }
 0x16b   : > { %v587_v59 = vadd.f32 %v586_v54, %v585_v53  ;;  %v688_v60 = vadd.f32 %v687_v58, %v686_v14 }
 0x16d   : > { %v589_v0 = vadd.f32 %v588_v63, %v587_v59  ;;  %v690_v62 = vadd.f32 %v689_v61, %v688_v60 }
 0x16f   : > { %v590_v1 = vrot.slane %v589_v0, 4  ;;  %v692_v25 = vadd.f32 %v1415_v46, %v690_v62 }
 0x171   : > { %v591_v2 = vadd.f32 %v590_v1, %v589_v0  ;;  %v693_v52 = vrot.slane %v692_v25, 4 }
 0x173   : > { %v592_v3 = vrot.slane %v591_v2, 2  ;;  %v694_v8 = vadd.f32 %v693_v52, %v692_v25 }
 0x175   : > { %v593_v4 = vadd.f32 %v592_v3, %v591_v2  ;;  %v695_v5 = vrot.slane %v694_v8, 2 }
 0x177   : > { %v594_v6 = vrot.slane %v593_v4, 1  ;;  %v696_v7 = vadd.f32 %v695_v5, %v694_v8 }
 0x179   : > { %v595_v19 = vadd.f32 %v594_v6, %v593_v4  ;;  %v697_v9 = vrot.slane %v696_v7, 1 }
 0x17b   : > { %597 = vst.msk [vmem:[%s218_s29] sm:$0x1] %vm596_vm2, %v595_v19  ;;  %v698_v57 = vadd.f32 %v697_v9, %v696_v7 }
 0x17d   : > { %699 = vst.msk [vmem:[%s218_s29 + $0x1] sm:$0x1] %vm596_vm2, %v698_v57 }
 0x17e PF: > { %p15_p9 = scmp.ge.s32.totalorder %s1125_s22, 4   ;;  %s1521_s12 = smov %s1045_s13 }
 0x17f   : > { %s1522_s13 = smov %s1049_s14  ;;  %s1523_s14 = smov %s1151_s10 }
 0x180   : > { %s1524_s15 = smov %s1125_s22  ;;  %17 = sbr.rel (!%p15_p9) target bundleno = 4 (0x4), region = 84 }
 0x187   :  { %736 = vsyncpa [#allocation3], 1 }
 0x188   :  { %738 = vsyncpa [#allocation3 + $0x1], 1 }
 0x189   :  { %739 = vsyncpa [#allocation5], 1 }

// kernel: _lambda_.28
= control target key start
LH: loop header
LB: loop body
LE: loop exit
PB: predicated region body
PF: predicated region fallthrough
CT: control target
= control target key end

     0   :  { %s82_s0 = inlined_call_operand.vmem [shape: f32[16,128], index: 0, kind: input, shape index: {}]   ;;  %s83_s1 = inlined_call_operand.vmem [shape: f32[1,128], index: 1, kind: input, shape index: {}]   ;;  %s84_s2 = inlined_call_operand.vmem [shape: f32[1,128], index: 2, kind: input, shape index: {}]   ;;  %s85_s3 = inlined_call_operand.vmem [shape: f32[16,128], index: 3, kind: output, shape index: {}]  }
   0x1   :  { %v14_v0 = vld [vmem:[%s82_s0] sm:$0xff]  ;;  %v15_v4 = vld [vmem:[%s82_s0 + $0x8] sm:$0xff] }
   0x2   :  { %v42_v1 = vld [vmem:[%s83_s1] ss:$0 sm:$0xff] }
   0x3   :  { %v43_v2 = vld [vmem:[%s84_s2] ss:$0 sm:$0xff]  ;;  %v23_v3 = vmul.f32 %v42_v1, %v14_v0  ;;  %v24_v5 = vmul.f32 %v42_v1, %v15_v4 }
   0x5   :  { %v32_v6 = vadd.f32 %v43_v2, %v23_v3  ;;  %v33_v7 = vadd.f32 %v43_v2, %v24_v5 }
   0x7   :  { %v34_v8 = vmax.f32 %v32_v6, 0.0  ;;  %v35_v9 = vmax.f32 %v33_v7, 0.0 }
   0x9   :  { %36 = vst [vmem:[%s85_s3] sm:$0xff] %v34_v8  ;;  %37 = vst [vmem:[%s85_s3 + $0x8] sm:$0xff] %v35_v9 }

// kernel: tile.148
= control target key start
LH: loop header
LB: loop body
LE: loop exit
PB: predicated region body
PF: predicated region fallthrough
CT: control target
= control target key end

     0   :  { %s28_s0 = inlined_call_operand.vmem [shape: f32[8], index: 0, kind: input, shape index: {}]   ;;  %s29_s1 = inlined_call_operand.vmem [shape: f32[16,8], index: 1, kind: output, shape index: {}]  }
   0x1   :  { %v4_v0 = vld [vmem:[%s28_s0] ss:$0 sm:$0xff] }
   0x2   :  { %5 = vst [vmem:[%s29_s1] sm:$0xff] %v4_v0  ;;  %8 = vst [vmem:[%s29_s1 + $0x8] sm:$0xff] %v4_v0 }

// kernel: tile.149
= control target key start
LH: loop header
LB: loop body
LE: loop exit
PB: predicated region body
PF: predicated region fallthrough
CT: control target
= control target key end

     0   :  { %s131_s10 = smov 120   ;;  %s132_s11 = smov 104   ;;  %vm3_vm0 = vcmask 64512   ;;  %vm9_vm1 = vcmask 1048512   ;;  %vm15_vm2 = vcmask 982912   ;;  %vm21_vm3 = vcmask 917312   ;;  %s207_s0 = inlined_call_operand.vmem [shape: f32[16,8], index: 0, kind: input, shape index: {}]   ;;  %s208_s1 = inlined_call_operand.vmem [shape: f32[1,128], index: 1, kind: output, shape index: {}]  }
   0x1   :  { %v101_v0 = vld [vmem:[%s207_s0 + $0xf] sm:$0x1]   ;;  %v103_v1 = vld [vmem:[%s207_s0 + $0xd] sm:$0x1]   ;;  %v102_v2 = vld [vmem:[%s207_s0 + $0xe] sm:$0x1]  }
   0x2   :  { %7 = vrot.lane.b32.xlu0 %v101_v0, %s131_s10  ;;  %19 = vrot.lane.b32.xlu1 %v103_v1, %s132_s11  ;;  %v104_v3 = vld [vmem:[%s207_s0 + $0xc] sm:$0x1]   ;;  %s133_s16 = smov 112   ;;  %s134_s17 = smov 96   ;;  %v105_v4 = vld [vmem:[%s207_s0 + $0xb] sm:$0x1]  }
   0x3   :  { %v106_v5 = vld [vmem:[%s207_s0 + $0xa] sm:$0x1]   ;;  %v2_v6 = vld [vmem:[%s207_s0] sm:$0x1]   ;;  %s135_s24 = smov 88   ;;  %s136_s25 = smov 80  }
   0x4   :  { %4 = vst.msk [vmem:[#allocation0] sm:$0x1] %vm3_vm0, %v2_v6   ;;  %v107_v7 = vld [vmem:[%s207_s0 + $0x9] sm:$0x1]   ;;  %v108_v8 = vld [vmem:[%s207_s0 + $0x8] sm:$0x1]  }
   0x5   :  { %s137_s30 = smov 72   ;;  %s138_s2 = smov 64   ;;  %v109_v9 = vld [vmem:[%s207_s0 + $0x7] sm:$0x1]   ;;  %v110_v10 = vld [vmem:[%s207_s0 + $0x6] sm:$0x1]  }
   0x6   :  { %13 = vrot.lane.b32.xlu0 %v102_v2, %s133_s16  ;;  %25 = vrot.lane.b32.xlu1 %v104_v3, %s134_s17  ;;  %s139_s7 = smov 56   ;;  %s140_s8 = smov 48   ;;  %v111_v11 = vld [vmem:[%s207_s0 + $0x5] sm:$0x1]   ;;  %v112_v12 = vld [vmem:[%s207_s0 + $0x4] sm:$0x1]  }
   0x7   :  { %s141_s13 = smov 40   ;;  %s142_s14 = smov 32   ;;  %v113_v13 = vld [vmem:[%s207_s0 + $0x3] sm:$0x1]   ;;  %v114_v14 = vld [vmem:[%s207_s0 + $0x2] sm:$0x1]  }
   0x8   :  { %s143_s19 = smov 24   ;;  %s144_s20 = smov 16   ;;  %v115_v15 = vld [vmem:[%s207_s0 + $0x1] sm:$0x1]   ;;  %vm27_vm4 = vcmask 851712   ;;  %vm33_vm5 = vcmask 786112  }
   0x9   :  { %s145_s0 = smov 8   ;;  %vm39_vm6 = vcmask 720512   ;;  %vm45_vm7 = vcmask 654912   ;;  %vm51_vm8 = vcmask 589312   ;;  %vm57_vm9 = vcmask 523712  }
   0xa   :  { %31 = vrot.lane.b32.xlu0 %v105_v4, %s135_s24  ;;  %37 = vrot.lane.b32.xlu1 %v106_v5, %s136_s25  ;;  %vm63_vm10 = vcmask 458112   ;;  %vm69_vm11 = vcmask 392512   ;;  %vm75_vm12 = vcmask 326912   ;;  %vm81_vm13 = vcmask 261312  }
   0xb   :  { %vm87_vm14 = vcmask 195712   ;;  %vm93_vm15 = vcmask 130112  }
   0xe   :  { %43 = vrot.lane.b32.xlu0 %v107_v7, %s137_s30  ;;  %49 = vrot.lane.b32.xlu1 %v108_v8, %s138_s2 }
  0x12   :  { %55 = vrot.lane.b32.xlu0 %v109_v9, %s139_s7  ;;  %61 = vrot.lane.b32.xlu1 %v110_v10, %s140_s8 }
  0x16   :  { %67 = vrot.lane.b32.xlu0 %v111_v11, %s141_s13  ;;  %73 = vrot.lane.b32.xlu1 %v112_v12, %s142_s14 }
  0x1a   :  { %79 = vrot.lane.b32.xlu0 %v113_v13, %s143_s19  ;;  %85 = vrot.lane.b32.xlu1 %v114_v14, %s144_s20 }
  0x1e   :  { %91 = vrot.lane.b32.xlu0 %v115_v15, %s145_s0 }
  0x74   :  { %v8_v16 = vpop.permute.xlu0 %7   ;;  %v20_v17 = vpop.permute.xlu1 %19  }
  0x75   :  { %10 = vst.msk [vmem:[#allocation0] sm:$0x1] %vm9_vm1, %v8_v16  }
  0x78   :  { %v14_v18 = vpop.permute.xlu0 %13   ;;  %v26_v19 = vpop.permute.xlu1 %25  }
  0x79   :  { %16 = vst.msk [vmem:[#allocation0] sm:$0x1] %vm15_vm2, %v14_v18  }
  0x7a   :  { %22 = vst.msk [vmem:[#allocation0] sm:$0x1] %vm21_vm3, %v20_v17  }
  0x7b   :  { %28 = vst.msk [vmem:[#allocation0] sm:$0x1] %vm27_vm4, %v26_v19  }
  0x7c   :  { %v32_v20 = vpop.permute.xlu0 %31   ;;  %v38_v21 = vpop.permute.xlu1 %37  }
  0x7d   :  { %34 = vst.msk [vmem:[#allocation0] sm:$0x1] %vm33_vm5, %v32_v20  }
  0x7e   :  { %40 = vst.msk [vmem:[#allocation0] sm:$0x1] %vm39_vm6, %v38_v21  }
  0x80   :  { %v44_v22 = vpop.permute.xlu0 %43   ;;  %v50_v23 = vpop.permute.xlu1 %49  }
  0x81   :  { %46 = vst.msk [vmem:[#allocation0] sm:$0x1] %vm45_vm7, %v44_v22  }
  0x82   :  { %52 = vst.msk [vmem:[#allocation0] sm:$0x1] %vm51_vm8, %v50_v23  }
  0x84   :  { %v56_v24 = vpop.permute.xlu0 %55   ;;  %v62_v25 = vpop.permute.xlu1 %61  }
  0x85   :  { %58 = vst.msk [vmem:[#allocation0] sm:$0x1] %vm57_vm9, %v56_v24  }
  0x86   :  { %64 = vst.msk [vmem:[#allocation0] sm:$0x1] %vm63_vm10, %v62_v25  }
  0x88   :  { %v68_v26 = vpop.permute.xlu0 %67   ;;  %v74_v27 = vpop.permute.xlu1 %73  }
  0x89   :  { %70 = vst.msk [vmem:[#allocation0] sm:$0x1] %vm69_vm11, %v68_v26  }
  0x8a   :  { %76 = vst.msk [vmem:[#allocation0] sm:$0x1] %vm75_vm12, %v74_v27  }
  0x8c   :  { %v80_v28 = vpop.permute.xlu0 %79   ;;  %v86_v29 = vpop.permute.xlu1 %85  }
  0x8d   :  { %82 = vst.msk [vmem:[#allocation0] sm:$0x1] %vm81_vm13, %v80_v28  }
  0x8e   :  { %88 = vst.msk [vmem:[#allocation0] sm:$0x1] %vm87_vm14, %v86_v29  }
  0x90   :  { %v92_v30 = vpop.permute.xlu0 %91  }
  0x91   :  { %94 = vst.msk [vmem:[#allocation0] sm:$0x1] %vm93_vm15, %v92_v30  }
  0x98   :  { %v98_v31 = vld [vmem:[#allocation0] sm:$0x1] }
  0x99   :  { %100 = vst [vmem:[%s208_s1] sm:$0x1] %v98_v31 }

// kernel: _lambda_.31
= control target key start
LH: loop header
LB: loop body
LE: loop exit
PB: predicated region body
PF: predicated region fallthrough
CT: control target
= control target key end

     0   :  { %vm46_vm0 = vcmask 1043456   ;;  %v241_v0 = vmov 0.0   ;;  %vm242_vm1 = vmmov 0   ;;  %vm30_vm2 = vcmask 64512   ;;  %s372_s1 = inlined_call_operand.vmem [shape: bf16[8,8], index: 1, kind: input, shape index: {}]   ;;  %s373_s0 = inlined_call_operand.vmem [shape: f32[80,8], index: 0, kind: input, shape index: {}]   ;;  %s374_s2 = inlined_call_operand.vmem [shape: f32[80,8], index: 2, kind: output, shape index: {0}]   ;;  %s375_s3 = inlined_call_operand.vmem [shape: f32[8,8], index: 3, kind: output, shape index: {1}]  }
   0x1   :  { %215 = vmatprep.subr.bf16.mxu0 %v241_v0  ;;  %v29_v1 = vld [vmem:[%s372_s1] sm:$0xf]  ;;  %217 = vmatprep.mubr.msk.bf16.mxu0 %vm242_vm1, %v241_v0  ;;  %v15_v3 = vld [vmem:[%s373_s0 + $0x8] sm:$0xff]  ;;  %v20_v6 = vld [vmem:[%s373_s0 + $0x30] sm:$0xff]  ;;  %vm158_vm3 = vcmask 57344  }
   0x2   :  { %v14_v2 = vld [vmem:[%s373_s0] sm:$0xff]  ;;  %v48_v4 = vsel %vm46_vm0, %v29_v1, 0  ;;  %237 = vmatprep.subr.bf16.mxu1 %v241_v0  ;;  %229 = vmatprep.mubr.msk.bf16.mxu1 %vm242_vm1, %v241_v0  ;;  %v21_v7 = vld [vmem:[%s373_s0 + $0x38] sm:$0xff]  ;;  %v16_v9 = vld [vmem:[%s373_s0 + $0x10] sm:$0xff] }
   0x3   :  { %v24_v5 = vpack.c.bf16 %v15_v3, %v14_v2  ;;  %216 = vmatpush3.bf16.msra.mxu0 %v48_v4  ;;  %238 = vmatpush3.bf16.msra.mxu1 %v48_v4  ;;  %v27_v8 = vpack.c.bf16 %v21_v7, %v20_v6  ;;  %v17_v10 = vld [vmem:[%s373_s0 + $0x18] sm:$0xff]  ;;  %v22_v11 = vld [vmem:[%s373_s0 + $0x40] sm:$0xff]  ;;  %v23_v12 = vld [vmem:[%s373_s0 + $0x48] sm:$0xff] }
   0x4   :  { %v25_v13 = vpack.c.bf16 %v17_v10, %v16_v9  ;;  %v28_v14 = vpack.c.bf16 %v23_v12, %v22_v11  ;;  %v18_v15 = vld [vmem:[%s373_s0 + $0x20] sm:$0xff]  ;;  %v19_v16 = vld [vmem:[%s373_s0 + $0x28] sm:$0xff] }
   0x5   :  { %v26_v17 = vpack.c.bf16 %v19_v16, %v18_v15 }
   0x6   :  { %218 = vmatmul.mubr.msk.bf16.vlgmr.msra.gmra.mrb[0].mxu0 %vm30_vm2, %v24_v5  ;;  %230 = vmatmul.mubr.msk.bf16.vlgmr.msra.gmra.mrb[0].mxu1 %vm30_vm2, %v27_v8 }
   0x7   :  { %221 = vmatprep.mubr.msk.bf16.mxu0 %vm242_vm1, %v241_v0  ;;  %233 = vmatprep.mubr.msk.bf16.mxu1 %vm242_vm1, %v241_v0 }
   0xe   :  { %222 = vmatmul.mubr.msk.bf16.gmra.mrb[4].mxu0 %vm30_vm2, %v25_v13  ;;  %234 = vmatmul.mubr.msk.bf16.gmra.mrb[4].mxu1 %vm30_vm2, %v28_v14 }
   0xf   :  { %225 = vmatprep.mubr.msk.bf16.mxu0 %vm242_vm1, %v241_v0 }
  0x16   :  { %226 = vmatmul.mubr.msk.bf16.gmra.mrb[8].mxu0 %vm30_vm2, %v26_v17 }
  0xd9   :  { %v84_v18 = vpop.f32.mrb[0].mxu0  ;;  %v108_v19 = vpop.f32.mrb[0].mxu1 }
  0xda   :  { %123 = vst.msk [vmem:[%s374_s2] sm:$0xff] %vm30_vm2, %v84_v18  ;;  %v160_v20 = vmul.f32 %v84_v18, %v84_v18  ;;  %v219_v21 = vpop.f32.mrb[1].mxu0  ;;  %129 = vst.msk [vmem:[%s374_s2 + $0x30] sm:$0xff] %vm30_vm2, %v108_v19  ;;  %v231_v22 = vpop.f32.mrb[1].mxu1  ;;  %v133_v25 = vsel %vm30_vm2, %v84_v18, 0.0  ;;  %v166_v58 = vmul.f32 %v108_v19, %v108_v19  ;;  %v144_v1 = vsel %vm30_vm2, %v108_v19, 0.0 }
  0xdb   :  { %v87_v23 = vpop.f32.mrb[2].mxu0  ;;  %v111_v24 = vpop.f32.mrb[2].mxu1 }
  0xdc   :  { %124 = vst.msk [vmem:[%s374_s2 + $0x8] sm:$0xff] %vm30_vm2, %v87_v23  ;;  %v134_v26 = vsel %vm30_vm2, %v87_v23, 0.0  ;;  %v161_v27 = vmul.f32 %v87_v23, %v87_v23  ;;  %v220_v28 = vpop.f32.mrb[3].mxu0  ;;  %130 = vst.msk [vmem:[%s374_s2 + $0x38] sm:$0xff] %vm30_vm2, %v111_v24  ;;  %v232_v29 = vpop.f32.mrb[3].mxu1  ;;  %v170_v31 = vsel %vm30_vm2, %v160_v20, 0.0  ;;  %v167_v2 = vmul.f32 %v111_v24, %v111_v24 }
  0xdd   :  { %v135_v30 = vadd.f32 %v134_v26, %v133_v25  ;;  %v181_v7 = vsel %vm30_vm2, %v166_v58, 0.0  ;;  %v146_v8 = vsel %vm30_vm2, %v111_v24, 0.0 }
  0xde   :  { %v171_v32 = vsel %vm30_vm2, %v161_v27, 0.0  ;;  %v183_v12 = vsel %vm30_vm2, %v167_v2, 0.0 }
  0xdf   :  { %v172_v33 = vadd.f32 %v171_v32, %v170_v31 }
  0xe1   :  { %v92_v34 = vpop.f32.mrb[4].mxu0  ;;  %v116_v35 = vpop.f32.mrb[4].mxu1 }
  0xe2   :  { %125 = vst.msk [vmem:[%s374_s2 + $0x10] sm:$0xff] %vm30_vm2, %v92_v34  ;;  %v136_v36 = vsel %vm30_vm2, %v92_v34, 0.0  ;;  %v162_v37 = vmul.f32 %v92_v34, %v92_v34  ;;  %v223_v38 = vpop.f32.mrb[5].mxu0  ;;  %131 = vst.msk [vmem:[%s374_s2 + $0x40] sm:$0xff] %vm30_vm2, %v116_v35  ;;  %v235_v39 = vpop.f32.mrb[5].mxu1  ;;  %v168_v4 = vmul.f32 %v116_v35, %v116_v35  ;;  %v148_v9 = vsel %vm30_vm2, %v116_v35, 0.0 }
  0xe3   :  { %v137_v40 = vadd.f32 %v136_v36, %v135_v30  ;;  %v95_v41 = vpop.f32.mrb[6].mxu0  ;;  %v119_v42 = vpop.f32.mrb[6].mxu1 }
  0xe4   :  { %v173_v43 = vsel %vm30_vm2, %v162_v37, 0.0  ;;  %126 = vst.msk [vmem:[%s374_s2 + $0x18] sm:$0xff] %vm30_vm2, %v95_v41  ;;  %v138_v44 = vsel %vm30_vm2, %v95_v41, 0.0  ;;  %v163_v45 = vmul.f32 %v95_v41, %v95_v41  ;;  %v224_v46 = vpop.f32.mrb[7].mxu0  ;;  %132 = vst.msk [vmem:[%s374_s2 + $0x48] sm:$0xff] %vm30_vm2, %v119_v42  ;;  %v236_v47 = vpop.f32.mrb[7].mxu1  ;;  %v169_v14 = vmul.f32 %v119_v42, %v119_v42 }
  0xe5   :  { %v174_v48 = vadd.f32 %v173_v43, %v172_v33  ;;  %v139_v49 = vadd.f32 %v138_v44, %v137_v40  ;;  %v185_v13 = vsel %vm30_vm2, %v168_v4, 0.0  ;;  %v150_v17 = vsel %vm30_vm2, %v119_v42, 0.0 }
  0xe6   :  { %v175_v50 = vsel %vm30_vm2, %v163_v45, 0.0  ;;  %v187_v20 = vsel %vm30_vm2, %v169_v14, 0.0 }
  0xe7   :  { %v176_v51 = vadd.f32 %v175_v50, %v174_v48 }
  0xe9   :  { %v100_v52 = vpop.f32.mrb[8].mxu0 }
  0xea   :  { %127 = vst.msk [vmem:[%s374_s2 + $0x20] sm:$0xff] %vm30_vm2, %v100_v52  ;;  %v140_v53 = vsel %vm30_vm2, %v100_v52, 0.0  ;;  %v164_v54 = vmul.f32 %v100_v52, %v100_v52  ;;  %v227_v55 = vpop.f32.mrb[9].mxu0 }
  0xeb   :  { %v141_v56 = vadd.f32 %v140_v53, %v139_v49  ;;  %v103_v57 = vpop.f32.mrb[10].mxu0 }
  0xec   :  { %v177_v59 = vsel %vm30_vm2, %v164_v54, 0.0  ;;  %128 = vst.msk [vmem:[%s374_s2 + $0x28] sm:$0xff] %vm30_vm2, %v103_v57  ;;  %v142_v60 = vsel %vm30_vm2, %v103_v57, 0.0  ;;  %v165_v61 = vmul.f32 %v103_v57, %v103_v57  ;;  %v228_v62 = vpop.f32.mrb[11].mxu0 }
  0xed   :  { %v178_v63 = vadd.f32 %v177_v59, %v176_v51  ;;  %v143_v0 = vadd.f32 %v142_v60, %v141_v56 }
  0xee   :  { %v179_v3 = vsel %vm30_vm2, %v165_v61, 0.0 }
  0xef   :  { %v145_v5 = vadd.f32 %v144_v1, %v143_v0  ;;  %v180_v6 = vadd.f32 %v179_v3, %v178_v63 }
  0xf1   :  { %v182_v10 = vadd.f32 %v181_v7, %v180_v6  ;;  %v147_v11 = vadd.f32 %v146_v8, %v145_v5 }
  0xf3   :  { %v149_v15 = vadd.f32 %v148_v9, %v147_v11  ;;  %v184_v16 = vadd.f32 %v183_v12, %v182_v10 }
  0xf5   :  { %v186_v18 = vadd.f32 %v185_v13, %v184_v16  ;;  %v151_v19 = vadd.f32 %v150_v17, %v149_v15 }
  0xf7   :  { %v152_v21 = vrot.slane %v151_v19, 4  ;;  %v188_v22 = vadd.f32 %v187_v20, %v186_v18 }
  0xf9   :  { %v153_v23 = vadd.f32 %v152_v21, %v151_v19  ;;  %v189_v24 = vrot.slane %v188_v22, 4 }
  0xfb   :  { %v154_v25 = vrot.slane %v153_v23, 2  ;;  %v190_v26 = vadd.f32 %v189_v24, %v188_v22 }
  0xfd   :  { %v155_v27 = vadd.f32 %v154_v25, %v153_v23  ;;  %v191_v28 = vrot.slane %v190_v26, 2 }
  0xff   :  { %v156_v29 = vrot.slane %v155_v27, 1  ;;  %v192_v30 = vadd.f32 %v191_v28, %v190_v26 }
 0x101   :  { %v157_v31 = vadd.f32 %v156_v29, %v155_v27  ;;  %v193_v32 = vrot.slane %v192_v30, 1 }
 0x103   :  { %159 = vst.msk [vmem:[%s375_s3] sm:$0x1] %vm158_vm3, %v157_v31  ;;  %v194_v33 = vadd.f32 %v193_v32, %v192_v30 }
 0x105   :  { %195 = vst.msk [vmem:[%s375_s3 + $0x1] sm:$0x1] %vm158_vm3, %v194_v33 }

// kernel: _lambda_.32
= control target key start
LH: loop header
LB: loop body
LE: loop exit
PB: predicated region body
PF: predicated region fallthrough
CT: control target
= control target key end

     0   :  { %s71_s0 = inlined_call_operand.vmem [shape: f32[8,128], index: 0, kind: input, shape index: {}]   ;;  %s72_s1 = inlined_call_operand.vmem [shape: f32[1,128], index: 1, kind: input, shape index: {}]   ;;  %s73_s2 = inlined_call_operand.vmem [shape: f32[1,128], index: 2, kind: input, shape index: {}]   ;;  %s74_s3 = inlined_call_operand.vmem [shape: f32[8,128], index: 3, kind: output, shape index: {}]  }
   0x1   :  { %v14_v0 = vld [vmem:[%s71_s0] sm:$0xff] }
   0x2   :  { %v37_v1 = vld [vmem:[%s72_s1] ss:$0 sm:$0xff] }
   0x3   :  { %v38_v2 = vld [vmem:[%s73_s2] ss:$0 sm:$0xff]  ;;  %v22_v3 = vmul.f32 %v37_v1, %v14_v0 }
   0x5   :  { %v30_v4 = vadd.f32 %v38_v2, %v22_v3 }
   0x7   :  { %v31_v5 = vmax.f32 %v30_v4, 0.0 }
   0x9   :  { %32 = vst [vmem:[%s74_s3] sm:$0xff] %v31_v5 }

// kernel: reverse.15
= control target key start
LH: loop header
LB: loop body
LE: loop exit
PB: predicated region body
PF: predicated region fallthrough
CT: control target
= control target key end

     0   :  { %v79_v8 = vld [vmem:[#allocation1 + $0x38] sm:$0xf]  ;;  %v89_v9 = vld [vmem:[#allocation1 + $0x30] sm:$0xf]  ;;  %v99_v10 = vld [vmem:[#allocation1 + $0x28] sm:$0xf]  ;;  %v156_v12 = vlaneseq  ;;  %s487_s0 = inlined_call_operand.vmem [shape: f32[2,4,8,3], index: 0, kind: input, shape index: {}]   ;;  %s488_s1 = inlined_call_operand.vmem [shape: f32[2,4,8,3], index: 1, kind: output, shape index: {}]  }
   0x1   :  { %v18_v0 = vld [vmem:[%s487_s0] sm:$0xf]  ;;  %v20_v1 = vld [vmem:[%s487_s0 + $0x4] sm:$0xf]  ;;  %v22_v2 = vld [vmem:[%s487_s0 + $0x8] sm:$0xf] }
   0x2   :  { %19 = vst [vmem:[#allocation1 + $0x4] sm:$0xf] %v18_v0  ;;  %21 = vst [vmem:[#allocation1 + $0xc] sm:$0xf] %v20_v1  ;;  %v24_v3 = vld [vmem:[%s487_s0 + $0xc] sm:$0xf] }
   0x3   :  { %23 = vst [vmem:[#allocation1 + $0x14] sm:$0xf] %v22_v2  ;;  %v26_v4 = vld [vmem:[%s487_s0 + $0x10] sm:$0xf]  ;;  %v28_v5 = vld [vmem:[%s487_s0 + $0x14] sm:$0xf] }
   0x4   :  { %25 = vst [vmem:[#allocation1 + $0x1c] sm:$0xf] %v24_v3  ;;  %27 = vst [vmem:[#allocation1 + $0x24] sm:$0xf] %v26_v4  ;;  %v30_v6 = vld [vmem:[%s487_s0 + $0x18] sm:$0xf] }
   0x5   :  { %29 = vst [vmem:[#allocation1 + $0x2c] sm:$0xf] %v28_v5  ;;  %v32_v7 = vld [vmem:[%s487_s0 + $0x1c] sm:$0xf]  ;;  %31 = vst [vmem:[#allocation1 + $0x34] sm:$0xf] %v30_v6 }
   0x6   :  { %33 = vst [vmem:[#allocation1 + $0x3c] sm:$0xf] %v32_v7  ;;  %81 = vst [vmem:[#allocation0 + $0x70] sm:$0xf] %v79_v8  ;;  %v109_v11 = vld [vmem:[#allocation1 + $0x20] sm:$0xf] }
   0x7   :  { %91 = vst [vmem:[#allocation0 + $0x60] sm:$0xf] %v89_v9  ;;  %101 = vst [vmem:[#allocation0 + $0x50] sm:$0xf] %v99_v10  ;;  %v119_v13 = vld [vmem:[#allocation1 + $0x18] sm:$0xf] }
   0x8   :  { %111 = vst [vmem:[#allocation0 + $0x40] sm:$0xf] %v109_v11  ;;  %v129_v14 = vld [vmem:[#allocation1 + $0x10] sm:$0xf]  ;;  %v139_v15 = vld [vmem:[#allocation1 + $0x8] sm:$0xf] }
   0x9   :  { %121 = vst [vmem:[#allocation0 + $0x30] sm:$0xf] %v119_v13  ;;  %131 = vst [vmem:[#allocation0 + $0x20] sm:$0xf] %v129_v14  ;;  %v146_v16 = vld [vmem:[#allocation1] sm:$0xf] }
   0xa   :  { %141 = vst [vmem:[#allocation0 + $0x10] sm:$0xf] %v139_v15  ;;  %147 = vst [vmem:[#allocation0] sm:$0xf] %v146_v16  ;;  %v456_v17 = vshrl.u32 %v156_v12, 7 }
   0xb   :  { %v124_v18 = vld [vmem:[#allocation1 + $0x14] sm:$0xf]  ;;  %v134_v19 = vld [vmem:[#allocation1 + $0xc] sm:$0xf]  ;;  %v143_v20 = vld [vmem:[#allocation1 + $0x4] sm:$0xf] }
   0xc   :  { %v94_v21 = vld [vmem:[#allocation1 + $0x2c] sm:$0xf]  ;;  %v104_v22 = vld [vmem:[#allocation1 + $0x24] sm:$0xf]  ;;  %v114_v23 = vld [vmem:[#allocation1 + $0x1c] sm:$0xf] }
   0xd   :  { %126 = vst [vmem:[#allocation0 + $0x28] sm:$0xf] %v124_v18  ;;  %136 = vst [vmem:[#allocation0 + $0x18] sm:$0xf] %v134_v19  ;;  %v74_v24 = vld [vmem:[#allocation1 + $0x3c] sm:$0xf] }
   0xe   :  { %145 = vst [vmem:[#allocation0 + $0x8] sm:$0xf] %v143_v20  ;;  %v84_v25 = vld [vmem:[#allocation1 + $0x34] sm:$0xf]  ;;  %96 = vst [vmem:[#allocation0 + $0x58] sm:$0xf] %v94_v21 }
   0xf   :  { %106 = vst [vmem:[#allocation0 + $0x48] sm:$0xf] %v104_v22  ;;  %116 = vst [vmem:[#allocation0 + $0x38] sm:$0xf] %v114_v23  ;;  %v247_v26 = vld [vmem:[#allocation0 + $0x77] ss:$-1 sm:$0xff] }
  0x10   :  { %76 = vst [vmem:[#allocation0 + $0x78] sm:$0xf] %v74_v24  ;;  %86 = vst [vmem:[#allocation0 + $0x68] sm:$0xf] %v84_v25  ;;  %v205_v27 = vld [vmem:[#allocation0 + $0x47] ss:$-1 sm:$0xff] }
  0x11   :  { %v219_v28 = vld [vmem:[#allocation0 + $0x57] ss:$-1 sm:$0xff]  ;;  %v233_v29 = vld [vmem:[#allocation0 + $0x67] ss:$-1 sm:$0xff]  ;;  %v206_v37 = vrot.slane %v205_v27, 5  ;;  %v248_v41 = vrot.slane %v247_v26, 5 }
  0x12   :  { %v163_v30 = vld [vmem:[#allocation0 + $0x17] ss:$-1 sm:$0xff]  ;;  %v177_v31 = vld [vmem:[#allocation0 + $0x27] ss:$-1 sm:$0xff]  ;;  %v220_v39 = vrot.slane %v219_v28, 5  ;;  %v234_v40 = vrot.slane %v233_v29, 5 }
  0x13   :  { %v191_v32 = vld [vmem:[#allocation0 + $0x37] ss:$-1 sm:$0xff]  ;;  %v149_v33 = vld [vmem:[#allocation0 + $0x7] ss:$-1 sm:$0xff]  ;;  %v164_v34 = vrot.slane %v163_v30, 5  ;;  %v178_v35 = vrot.slane %v177_v31, 5 }
  0x14   :  { %v192_v36 = vrot.slane %v191_v32, 5  ;;  %v150_v38 = vrot.slane %v149_v33, 5  ;;  %vm158_vm0 = vcmp.lt.s32.totalorder %v456_v17, 3  ;;  %207 = vst [vmem:[#allocation2 + $0x20] sm:$0xff] %v206_v37  ;;  %v168_v43 = vld [vmem:[#allocation0 + $0x1f] ss:$-1 sm:$0xff] }
  0x15   :  { %165 = vst [vmem:[#allocation2 + $0x8] sm:$0xff] %v164_v34  ;;  %179 = vst [vmem:[#allocation2 + $0x10] sm:$0xff] %v178_v35  ;;  %v154_v42 = vld [vmem:[#allocation0 + $0xf] ss:$-1 sm:$0xff]  ;;  %v169_v46 = vrot.slane %v168_v43, 5 }
  0x16   :  { %193 = vst [vmem:[#allocation2 + $0x18] sm:$0xff] %v192_v36  ;;  %151 = vst [vmem:[#allocation2] sm:$0xff] %v150_v38  ;;  %v182_v44 = vld [vmem:[#allocation0 + $0x2f] ss:$-1 sm:$0xff]  ;;  %v155_v45 = vrot.slane %v154_v42, 5 }
  0x17   :  { %221 = vst [vmem:[#allocation2 + $0x28] sm:$0xff] %v220_v39  ;;  %235 = vst [vmem:[#allocation2 + $0x30] sm:$0xff] %v234_v40  ;;  %v183_v47 = vrot.slane %v182_v44, 5  ;;  %v196_v48 = vld [vmem:[#allocation0 + $0x3f] ss:$-1 sm:$0xff] }
  0x18   :  { %249 = vst [vmem:[#allocation2 + $0x38] sm:$0xff] %v248_v41  ;;  %v197_v49 = vrot.slane %v196_v48, 5  ;;  %v210_v50 = vld [vmem:[#allocation0 + $0x4f] ss:$-1 sm:$0xff]  ;;  %v224_v51 = vld [vmem:[#allocation0 + $0x5f] ss:$-1 sm:$0xff] }
  0x19   :  { %159 = vst.msk [vmem:[#allocation2] sm:$0xff] %vm158_vm0, %v155_v45  ;;  %173 = vst.msk [vmem:[#allocation2 + $0x8] sm:$0xff] %vm158_vm0, %v169_v46  ;;  %v211_v52 = vrot.slane %v210_v50, 5  ;;  %v225_v53 = vrot.slane %v224_v51, 5  ;;  %v238_v54 = vld [vmem:[#allocation0 + $0x6f] ss:$-1 sm:$0xff] }
  0x1a   :  { %187 = vst.msk [vmem:[#allocation2 + $0x10] sm:$0xff] %vm158_vm0, %v183_v47  ;;  %v252_v55 = vld [vmem:[#allocation0 + $0x7f] ss:$-1 sm:$0xff]  ;;  %201 = vst.msk [vmem:[#allocation2 + $0x18] sm:$0xff] %vm158_vm0, %v197_v49  ;;  %v239_v56 = vrot.slane %v238_v54, 5 }
  0x1b   :  { %v253_v57 = vrot.slane %v252_v55, 5  ;;  %215 = vst.msk [vmem:[#allocation2 + $0x20] sm:$0xff] %vm158_vm0, %v211_v52  ;;  %229 = vst.msk [vmem:[#allocation2 + $0x28] sm:$0xff] %vm158_vm0, %v225_v53 }
  0x1c   :  { %243 = vst.msk [vmem:[#allocation2 + $0x30] sm:$0xff] %vm158_vm0, %v239_v56 }
  0x1d   :  { %257 = vst.msk [vmem:[#allocation2 + $0x38] sm:$0xff] %vm158_vm0, %v253_v57 }
  0x20   :  { %v261_v58 = vld [vmem:[#allocation2] sm:$0xf]  ;;  %v265_v59 = vld [vmem:[#allocation2 + $0x8] sm:$0xf] }
  0x21   :  { %v270_v60 = vld [vmem:[#allocation2 + $0x10] sm:$0xf]  ;;  %263 = vst [vmem:[#allocation3] sm:$0xf] %v261_v58  ;;  %268 = vst [vmem:[#allocation3 + $0x4] sm:$0xf] %v265_v59 }
  0x22   :  { %274 = vst [vmem:[#allocation3 + $0x8] sm:$0xf] %v270_v60  ;;  %v276_v61 = vld [vmem:[#allocation2 + $0x18] sm:$0xf]  ;;  %v282_v62 = vld [vmem:[#allocation2 + $0x20] sm:$0xf] }
  0x23   :  { %280 = vst [vmem:[#allocation3 + $0xc] sm:$0xf] %v276_v61  ;;  %v288_v63 = vld [vmem:[#allocation2 + $0x28] sm:$0xf]  ;;  %286 = vst [vmem:[#allocation3 + $0x10] sm:$0xf] %v282_v62 }
  0x24   :  { %292 = vst [vmem:[#allocation3 + $0x14] sm:$0xf] %v288_v63  ;;  %v294_v0 = vld [vmem:[#allocation2 + $0x30] sm:$0xf]  ;;  %v300_v1 = vld [vmem:[#allocation2 + $0x38] sm:$0xf] }
  0x25   :  { %298 = vst [vmem:[#allocation3 + $0x18] sm:$0xf] %v294_v0  ;;  %304 = vst [vmem:[#allocation3 + $0x1c] sm:$0xf] %v300_v1 }
  0x28   :  { %v320_v2 = vld [vmem:[#allocation3] sm:$0xff]  }
  0x29   :  { %321 = vst [vmem:[%s488_s1] sm:$0xff] %v320_v2  }
  0x2a   :  { %v324_v3 = vld [vmem:[#allocation3 + $0x8] sm:$0xff]  }
  0x2b   :  { %325 = vst [vmem:[%s488_s1 + $0x8] sm:$0xff] %v324_v3   ;;  %v328_v4 = vld [vmem:[#allocation3 + $0x10] sm:$0xff]  }
  0x2c   :  { %329 = vst [vmem:[%s488_s1 + $0x10] sm:$0xff] %v328_v4   ;;  %v332_v5 = vld [vmem:[#allocation3 + $0x18] sm:$0xff]  }
  0x2d   :  { %333 = vst [vmem:[%s488_s1 + $0x18] sm:$0xff] %v332_v5  }

// kernel: _lambda_.30
= control target key start
LH: loop header
LB: loop body
LE: loop exit
PB: predicated region body
PF: predicated region fallthrough
CT: control target
= control target key end

     0   :  { %s93_s0 = inlined_call_operand.vmem [shape: f32[24,128], index: 0, kind: input, shape index: {}]   ;;  %s94_s1 = inlined_call_operand.vmem [shape: f32[1,128], index: 1, kind: input, shape index: {}]   ;;  %s95_s2 = inlined_call_operand.vmem [shape: f32[1,128], index: 2, kind: input, shape index: {}]   ;;  %s96_s3 = inlined_call_operand.vmem [shape: f32[24,128], index: 3, kind: output, shape index: {}]  }
   0x1   :  { %v14_v0 = vld [vmem:[%s93_s0] sm:$0xff]  ;;  %v15_v4 = vld [vmem:[%s93_s0 + $0x8] sm:$0xff]  ;;  %v16_v5 = vld [vmem:[%s93_s0 + $0x10] sm:$0xff] }
   0x2   :  { %v47_v1 = vld [vmem:[%s94_s1] ss:$0 sm:$0xff] }
   0x3   :  { %v48_v2 = vld [vmem:[%s95_s2] ss:$0 sm:$0xff]  ;;  %v24_v3 = vmul.f32 %v47_v1, %v14_v0  ;;  %v25_v6 = vmul.f32 %v47_v1, %v15_v4  ;;  %v26_v7 = vmul.f32 %v47_v1, %v16_v5 }
   0x5   :  { %v34_v8 = vadd.f32 %v48_v2, %v24_v3  ;;  %v35_v9 = vadd.f32 %v48_v2, %v25_v6  ;;  %v36_v10 = vadd.f32 %v48_v2, %v26_v7 }
   0x7   :  { %v37_v11 = vmax.f32 %v34_v8, 0.0  ;;  %v38_v12 = vmax.f32 %v35_v9, 0.0  ;;  %v39_v13 = vmax.f32 %v36_v10, 0.0 }
   0x9   :  { %40 = vst [vmem:[%s96_s3] sm:$0xff] %v37_v11  ;;  %41 = vst [vmem:[%s96_s3 + $0x8] sm:$0xff] %v38_v12 }
   0xa   :  { %42 = vst [vmem:[%s96_s3 + $0x10] sm:$0xff] %v39_v13 }

// kernel: _lambda_.29
= control target key start
LH: loop header
LB: loop body
LE: loop exit
PB: predicated region body
PF: predicated region fallthrough
CT: control target
= control target key end

     0   :  { %s668_s12 = smov 0   ;;  %s851_s0 = inlined_call_operand.vmem [shape: f32[288,8], index: 0, kind: input, shape index: {}]   ;;  %s852_s1 = inlined_call_operand.vmem [shape: bf16[8,8], index: 1, kind: input, shape index: {}]   ;;  %s853_s2 = inlined_call_operand.vmem [shape: f32[288,8], index: 2, kind: output, shape index: {0}]   ;;  %s854_s3 = inlined_call_operand.vmem [shape: f32[16,8], index: 3, kind: output, shape index: {1}]  }
   0x1 LB: > { %s674_s13 = sadd.s32 4294967295, %s644_s12   ;;  %p563_p0 = scmp.ge.s32.totalorder %s644_s12, 1  ;;  %s644_s12 = sphi %s668_s12, %s14_s12  }
   0x2   : > { %p141_p1 = scmp.lt.s32.totalorder %s644_s12, 3 }
   0x4   : > { %p142_p2 = pnand %p563_p0, %p141_p1 }
   0x5   : > { %v213_v0 = vld [vmem:[%s852_s1] sm:$0xf] (!%p142_p2)  ;;  %vm242_vm0 = vcmask (!%p142_p2), 1043456   ;;  %s169_s16 = smul.u32 (!%p142_p2), 18, %s674_s13  ;;  %v646_v1 = vmov (!%p142_p2), 0.0   ;;  %vm647_vm1 = vmmov (!%p142_p2), 0  }
   0x6   : > { %145 = sbr.rel (%p142_p2) target bundleno = 299 (0x12b), region = 28  ;;  %588 = vmatprep.subr.bf16.mxu0 (!%p142_p2), %v646_v1  ;;  %v244_v2 = vsel (!%p142_p2), %vm242_vm0, %v213_v0, 0  ;;  %590 = vmatprep.mubr.msk.bf16.mxu0 (!%p142_p2), %vm647_vm1, %v646_v1  ;;  %vm214_vm2 = vcmask (!%p142_p2), 64512   ;;  %p181_p4 = scmp.lt.s32.totalorder (!%p142_p2), %s674_s13, 1  ;;  %vm410_vm3 = vcmask (!%p142_p2), 57344  }
   0x7   : > { %589 = vmatpush3.bf16.msra.mxu0 (!%p142_p2), %v244_v2  ;;  %p170_p3 = scmp.lt.s32.totalorder (!%p142_p2), %s169_s16, 35  ;;  %626 = vmatprep.subr.bf16.mxu1 (!%p142_p2), %v646_v1 }
   0x8   : > { %627 = vmatpush3.bf16.msra.mxu1 (!%p142_p2), %v244_v2  ;;  %610 = vmatprep.mubr.msk.bf16.mxu1 (!%p142_p2), %vm647_vm1, %v646_v1 }
   0xd   : > { %s856_s16 = smov (!%p170_p3, %s169_s16), 35  ;;  %s858_s13 = smov (!%p181_p4, %s674_s13), 1 }
   0xe   : > { %s564_s17 = sshll.u32 %s856_s16, 3  ;;  %s566_s24 = sshll.u32 %s858_s13, 3 }
   0xf   : > { %s692_s20 = scalar_lea.vmem %s851_s0, %s564_s17  ;;  %s733_s23 = scalar_lea.vmem %s853_s2, %s564_s17 }
  0x10   : > { %v186_v3 = vld [vmem:[%s692_s20] sm:$0xff]  ;;  %v187_v4 = vld [vmem:[%s692_s20 + $0x8] sm:$0xff]  ;;  %v196_v6 = vld [vmem:[%s692_s20 + $0x50] sm:$0xff]  ;;  %s184_s27 = scalar_lea.vmem %s854_s3, %s566_s24 }
  0x11   : > { %v204_v5 = vpack.c.bf16 %v187_v4, %v186_v3  ;;  %v197_v7 = vld [vmem:[%s692_s20 + $0x58] sm:$0xff]  ;;  %v188_v9 = vld [vmem:[%s692_s20 + $0x10] sm:$0xff]  ;;  %v198_v11 = vld [vmem:[%s692_s20 + $0x60] sm:$0xff] }
  0x12   : > { %v209_v8 = vpack.c.bf16 %v197_v7, %v196_v6  ;;  %v189_v10 = vld [vmem:[%s692_s20 + $0x18] sm:$0xff]  ;;  %v199_v12 = vld [vmem:[%s692_s20 + $0x68] sm:$0xff]  ;;  %v190_v15 = vld [vmem:[%s692_s20 + $0x20] sm:$0xff] }
  0x13   : > { %591 = vmatmul.mubr.msk.bf16.vlgmr.msra.gmra.mrb[0].mxu0 %vm214_vm2, %v204_v5  ;;  %v205_v13 = vpack.c.bf16 %v189_v10, %v188_v9  ;;  %v210_v14 = vpack.c.bf16 %v199_v12, %v198_v11  ;;  %v191_v16 = vld [vmem:[%s692_s20 + $0x28] sm:$0xff]  ;;  %v200_v17 = vld [vmem:[%s692_s20 + $0x70] sm:$0xff]  ;;  %v201_v18 = vld [vmem:[%s692_s20 + $0x78] sm:$0xff] }
  0x14   : > { %594 = vmatprep.mubr.msk.bf16.mxu0 %vm647_vm1, %v646_v1  ;;  %611 = vmatmul.mubr.msk.bf16.vlgmr.msra.gmra.mrb[0].mxu1 %vm214_vm2, %v209_v8  ;;  %v206_v19 = vpack.c.bf16 %v191_v16, %v190_v15  ;;  %v211_v20 = vpack.c.bf16 %v201_v18, %v200_v17  ;;  %v192_v21 = vld [vmem:[%s692_s20 + $0x30] sm:$0xff]  ;;  %v193_v22 = vld [vmem:[%s692_s20 + $0x38] sm:$0xff]  ;;  %v202_v23 = vld [vmem:[%s692_s20 + $0x80] sm:$0xff] }
  0x15   : > { %614 = vmatprep.mubr.msk.bf16.mxu1 %vm647_vm1, %v646_v1  ;;  %v203_v24 = vld [vmem:[%s692_s20 + $0x88] sm:$0xff]  ;;  %v207_v25 = vpack.c.bf16 %v193_v22, %v192_v21  ;;  %v194_v27 = vld [vmem:[%s692_s20 + $0x40] sm:$0xff] }
  0x16   : > { %v212_v26 = vpack.c.bf16 %v203_v24, %v202_v23  ;;  %v195_v28 = vld [vmem:[%s692_s20 + $0x48] sm:$0xff] }
  0x17   : > { %v208_v29 = vpack.c.bf16 %v195_v28, %v194_v27 }
  0x1b   : > { %595 = vmatmul.mubr.msk.bf16.gmra.mrb[4].mxu0 %vm214_vm2, %v205_v13 }
  0x1c   : > { %598 = vmatprep.mubr.msk.bf16.mxu0 %vm647_vm1, %v646_v1  ;;  %615 = vmatmul.mubr.msk.bf16.gmra.mrb[4].mxu1 %vm214_vm2, %v210_v14 }
  0x1d   : > { %618 = vmatprep.mubr.msk.bf16.mxu1 %vm647_vm1, %v646_v1 }
  0x23   : > { %599 = vmatmul.mubr.msk.bf16.gmra.mrb[8].mxu0 %vm214_vm2, %v206_v19 }
  0x24   : > { %602 = vmatprep.mubr.msk.bf16.mxu0 %vm647_vm1, %v646_v1  ;;  %619 = vmatmul.mubr.msk.bf16.gmra.mrb[8].mxu1 %vm214_vm2, %v211_v20 }
  0x25   : > { %622 = vmatprep.mubr.msk.bf16.mxu1 %vm647_vm1, %v646_v1 }
  0x2b   : > { %603 = vmatmul.mubr.msk.bf16.gmra.mrb[12].mxu0 %vm214_vm2, %v207_v25 }
  0x2c   : > { %606 = vmatprep.mubr.msk.bf16.mxu0 %vm647_vm1, %v646_v1  ;;  %623 = vmatmul.mubr.msk.bf16.gmra.mrb[12].mxu1 %vm214_vm2, %v212_v26 }
  0x33   : > { %607 = vmatmul.mubr.msk.bf16.gmra.mrb[16].mxu0 %vm214_vm2, %v208_v29 }
  0xe6   : > { %v280_v30 = vpop.f32.mrb[0].mxu0 }
  0xe7   : > { %351 = vst.msk [vmem:[%s733_s23] sm:$0xff] %vm214_vm2, %v280_v30  ;;  %v412_v31 = vmul.f32 %v280_v30, %v280_v30  ;;  %v592_v32 = vpop.f32.mrb[1].mxu0  ;;  %v737_v34 = vpop.f32.mrb[0].mxu1  ;;  %v369_v35 = vsel %vm214_vm2, %v280_v30, 0.0 }
  0xe8   : > { %v283_v33 = vpop.f32.mrb[2].mxu0  ;;  %361 = vst.msk [vmem:[%s733_s23 + $0x50] sm:$0xff] %vm214_vm2, %v737_v34  ;;  %v612_v39 = vpop.f32.mrb[1].mxu1 }
  0xe9   : > { %352 = vst.msk [vmem:[%s733_s23 + $0x8] sm:$0xff] %vm214_vm2, %v283_v33  ;;  %v370_v36 = vsel %vm214_vm2, %v283_v33, 0.0  ;;  %v413_v37 = vmul.f32 %v283_v33, %v283_v33  ;;  %v593_v38 = vpop.f32.mrb[3].mxu0  ;;  %v746_v41 = vpop.f32.mrb[2].mxu1  ;;  %v430_v42 = vsel %vm214_vm2, %v412_v31, 0.0 }
  0xea   : > { %v371_v40 = vadd.f32 %v370_v36, %v369_v35  ;;  %362 = vst.msk [vmem:[%s733_s23 + $0x58] sm:$0xff] %vm214_vm2, %v746_v41  ;;  %v613_v44 = vpop.f32.mrb[3].mxu1 }
  0xeb   : > { %v431_v43 = vsel %vm214_vm2, %v413_v37, 0.0  ;;  %v422_v44 = vmul.f32 %v737_v34, %v737_v34 }
  0xec   : > { %v432_v45 = vadd.f32 %v431_v43, %v430_v42 }
  0xee   : > { %v288_v46 = vpop.f32.mrb[4].mxu0 }
  0xef   : > { %353 = vst.msk [vmem:[%s733_s23 + $0x10] sm:$0xff] %vm214_vm2, %v288_v46  ;;  %v372_v47 = vsel %vm214_vm2, %v288_v46, 0.0  ;;  %v414_v48 = vmul.f32 %v288_v46, %v288_v46  ;;  %v596_v49 = vpop.f32.mrb[5].mxu0  ;;  %v756_v52 = vpop.f32.mrb[4].mxu1 }
  0xf0   : > { %v373_v50 = vadd.f32 %v372_v47, %v371_v40  ;;  %v291_v51 = vpop.f32.mrb[6].mxu0  ;;  %363 = vst.msk [vmem:[%s733_s23 + $0x60] sm:$0xff] %vm214_vm2, %v756_v52  ;;  %v616_v57 = vpop.f32.mrb[5].mxu1 }
  0xf1   : > { %v433_v53 = vsel %vm214_vm2, %v414_v48, 0.0  ;;  %354 = vst.msk [vmem:[%s733_s23 + $0x18] sm:$0xff] %vm214_vm2, %v291_v51  ;;  %v374_v54 = vsel %vm214_vm2, %v291_v51, 0.0  ;;  %v415_v55 = vmul.f32 %v291_v51, %v291_v51  ;;  %v597_v56 = vpop.f32.mrb[7].mxu0  ;;  %v765_v60 = vpop.f32.mrb[6].mxu1  ;;  %v388_v51 = vsel %vm214_vm2, %v737_v34, 0.0 }
  0xf2   : > { %v434_v58 = vadd.f32 %v433_v53, %v432_v45  ;;  %v375_v59 = vadd.f32 %v374_v54, %v373_v50  ;;  %364 = vst.msk [vmem:[%s733_s23 + $0x68] sm:$0xff] %vm214_vm2, %v765_v60  ;;  %v617_v62 = vpop.f32.mrb[7].mxu1  ;;  %v423_v53 = vmul.f32 %v746_v41, %v746_v41  ;;  %v449_v57 = vsel %vm214_vm2, %v422_v44, 0.0 }
  0xf3   : > { %v435_v61 = vsel %vm214_vm2, %v415_v55, 0.0  ;;  %v392_v34 = vsel %vm214_vm2, %v756_v52, 0.0 }
  0xf4   : > { %v436_v63 = vadd.f32 %v435_v61, %v434_v58  ;;  %v390_v58 = vsel %vm214_vm2, %v746_v41, 0.0  ;;  %v394_v41 = vsel %vm214_vm2, %v765_v60, 0.0 }
  0xf6   : > { %v296_v0 = vpop.f32.mrb[8].mxu0 }
  0xf7   : > { %355 = vst.msk [vmem:[%s733_s23 + $0x20] sm:$0xff] %vm214_vm2, %v296_v0  ;;  %v376_v1 = vsel %vm214_vm2, %v296_v0, 0.0  ;;  %v416_v2 = vmul.f32 %v296_v0, %v296_v0  ;;  %v600_v3 = vpop.f32.mrb[9].mxu0  ;;  %v774_v6 = vpop.f32.mrb[8].mxu1  ;;  %v425_v0 = vmul.f32 %v765_v60, %v765_v60 }
  0xf8   : > { %v377_v4 = vadd.f32 %v376_v1, %v375_v59  ;;  %v299_v5 = vpop.f32.mrb[10].mxu0  ;;  %365 = vst.msk [vmem:[%s733_s23 + $0x70] sm:$0xff] %vm214_vm2, %v774_v6  ;;  %v620_v11 = vpop.f32.mrb[9].mxu1  ;;  %v424_v59 = vmul.f32 %v756_v52, %v756_v52  ;;  %v396_v52 = vsel %vm214_vm2, %v774_v6, 0.0 }
  0xf9   : > { %v437_v7 = vsel %vm214_vm2, %v416_v2, 0.0  ;;  %356 = vst.msk [vmem:[%s733_s23 + $0x28] sm:$0xff] %vm214_vm2, %v299_v5  ;;  %v378_v8 = vsel %vm214_vm2, %v299_v5, 0.0  ;;  %v417_v9 = vmul.f32 %v299_v5, %v299_v5  ;;  %v601_v10 = vpop.f32.mrb[11].mxu0  ;;  %v783_v14 = vpop.f32.mrb[10].mxu1 }
  0xfa   : > { %v438_v12 = vadd.f32 %v437_v7, %v436_v63  ;;  %v379_v13 = vadd.f32 %v378_v8, %v377_v4  ;;  %366 = vst.msk [vmem:[%s733_s23 + $0x78] sm:$0xff] %vm214_vm2, %v783_v14  ;;  %v621_v16 = vpop.f32.mrb[11].mxu1  ;;  %v451_v63 = vsel %vm214_vm2, %v423_v53, 0.0  ;;  %v453_v3 = vsel %vm214_vm2, %v424_v59, 0.0 }
  0xfb   : > { %v439_v15 = vsel %vm214_vm2, %v417_v9, 0.0  ;;  %v426_v4 = vmul.f32 %v774_v6, %v774_v6  ;;  %v455_v8 = vsel %vm214_vm2, %v425_v0, 0.0  ;;  %v427_v9 = vmul.f32 %v783_v14, %v783_v14 }
  0xfc   : > { %v440_v17 = vadd.f32 %v439_v15, %v438_v12  ;;  %v398_v60 = vsel %vm214_vm2, %v783_v14, 0.0 }
  0xfe   : > { %v304_v18 = vpop.f32.mrb[12].mxu0 }
  0xff   : > { %357 = vst.msk [vmem:[%s733_s23 + $0x30] sm:$0xff] %vm214_vm2, %v304_v18  ;;  %v380_v19 = vsel %vm214_vm2, %v304_v18, 0.0  ;;  %v418_v20 = vmul.f32 %v304_v18, %v304_v18  ;;  %v604_v21 = vpop.f32.mrb[13].mxu0  ;;  %v344_v24 = vpop.f32.mrb[12].mxu1  ;;  %v459_v18 = vsel %vm214_vm2, %v427_v9, 0.0 }
 0x100   : > { %v381_v22 = vadd.f32 %v380_v19, %v379_v13  ;;  %v307_v23 = vpop.f32.mrb[14].mxu0  ;;  %367 = vst.msk [vmem:[%s733_s23 + $0x80] sm:$0xff] %vm214_vm2, %v344_v24  ;;  %v624_v29 = vpop.f32.mrb[13].mxu1  ;;  %v428_v10 = vmul.f32 %v344_v24, %v344_v24  ;;  %v457_v13 = vsel %vm214_vm2, %v426_v4, 0.0  ;;  %v400_v15 = vsel %vm214_vm2, %v344_v24, 0.0 }
 0x101   : > { %v441_v25 = vsel %vm214_vm2, %v418_v20, 0.0  ;;  %358 = vst.msk [vmem:[%s733_s23 + $0x38] sm:$0xff] %vm214_vm2, %v307_v23  ;;  %v382_v26 = vsel %vm214_vm2, %v307_v23, 0.0  ;;  %v419_v27 = vmul.f32 %v307_v23, %v307_v23  ;;  %v605_v28 = vpop.f32.mrb[15].mxu0  ;;  %v347_v32 = vpop.f32.mrb[14].mxu1 }
 0x102   : > { %v442_v30 = vadd.f32 %v441_v25, %v440_v17  ;;  %v383_v31 = vadd.f32 %v382_v26, %v381_v22  ;;  %368 = vst.msk [vmem:[%s733_s23 + $0x88] sm:$0xff] %vm214_vm2, %v347_v32  ;;  %v625_v35 = vpop.f32.mrb[15].mxu1  ;;  %v461_v6 = vsel %vm214_vm2, %v428_v10, 0.0  ;;  %v429_v19 = vmul.f32 %v347_v32, %v347_v32 }
 0x103   : > { %v443_v33 = vsel %vm214_vm2, %v419_v27, 0.0  ;;  %v402_v22 = vsel %vm214_vm2, %v347_v32, 0.0 }
 0x104   : > { %v444_v36 = vadd.f32 %v443_v33, %v442_v30  ;;  %v463_v26 = vsel %vm214_vm2, %v429_v19, 0.0 }
 0x106   : > { %v312_v37 = vpop.f32.mrb[16].mxu0 }
 0x107   : > { %359 = vst.msk [vmem:[%s733_s23 + $0x40] sm:$0xff] %vm214_vm2, %v312_v37  ;;  %v384_v38 = vsel %vm214_vm2, %v312_v37, 0.0  ;;  %v420_v39 = vmul.f32 %v312_v37, %v312_v37  ;;  %v608_v40 = vpop.f32.mrb[17].mxu0 }
 0x108   : > { %v385_v42 = vadd.f32 %v384_v38, %v383_v31  ;;  %v315_v43 = vpop.f32.mrb[18].mxu0 }
 0x109   : > { %v445_v45 = vsel %vm214_vm2, %v420_v39, 0.0  ;;  %360 = vst.msk [vmem:[%s733_s23 + $0x48] sm:$0xff] %vm214_vm2, %v315_v43  ;;  %v386_v46 = vsel %vm214_vm2, %v315_v43, 0.0  ;;  %v421_v47 = vmul.f32 %v315_v43, %v315_v43  ;;  %v609_v48 = vpop.f32.mrb[19].mxu0 }
 0x10a   : > { %v446_v49 = vadd.f32 %v445_v45, %v444_v36  ;;  %v387_v50 = vadd.f32 %v386_v46, %v385_v42 }
 0x10b   : > { %v447_v54 = vsel %vm214_vm2, %v421_v47, 0.0 }
 0x10c   : > { %v389_v55 = vadd.f32 %v388_v51, %v387_v50  ;;  %v448_v56 = vadd.f32 %v447_v54, %v446_v49 }
 0x10e   : > { %v391_v61 = vadd.f32 %v390_v58, %v389_v55  ;;  %v450_v62 = vadd.f32 %v449_v57, %v448_v56 }
 0x110   : > { %v452_v1 = vadd.f32 %v451_v63, %v450_v62  ;;  %v393_v2 = vadd.f32 %v392_v34, %v391_v61 }
 0x112   : > { %v395_v5 = vadd.f32 %v394_v41, %v393_v2  ;;  %v454_v7 = vadd.f32 %v453_v3, %v452_v1 }
 0x114   : > { %v397_v11 = vadd.f32 %v396_v52, %v395_v5  ;;  %v456_v12 = vadd.f32 %v455_v8, %v454_v7 }
 0x116   : > { %v458_v16 = vadd.f32 %v457_v13, %v456_v12  ;;  %v399_v17 = vadd.f32 %v398_v60, %v397_v11 }
 0x118   : > { %v460_v20 = vadd.f32 %v459_v18, %v458_v16  ;;  %v401_v21 = vadd.f32 %v400_v15, %v399_v17 }
 0x11a   : > { %v462_v23 = vadd.f32 %v461_v6, %v460_v20  ;;  %v403_v25 = vadd.f32 %v402_v22, %v401_v21 }
 0x11c   : > { %v404_v14 = vrot.slane %v403_v25, 4  ;;  %v464_v27 = vadd.f32 %v463_v26, %v462_v23 }
 0x11e   : > { %v405_v24 = vadd.f32 %v404_v14, %v403_v25  ;;  %v465_v28 = vrot.slane %v464_v27, 4 }
 0x120   : > { %v406_v29 = vrot.slane %v405_v24, 2  ;;  %v466_v30 = vadd.f32 %v465_v28, %v464_v27 }
 0x122   : > { %v407_v31 = vadd.f32 %v406_v29, %v405_v24  ;;  %v467_v33 = vrot.slane %v466_v30, 2 }
 0x124   : > { %v408_v35 = vrot.slane %v407_v31, 1  ;;  %v468_v36 = vadd.f32 %v467_v33, %v466_v30 }
 0x126   : > { %v409_v32 = vadd.f32 %v408_v35, %v407_v31  ;;  %v469_v37 = vrot.slane %v468_v36, 1 }
 0x128   : > { %411 = vst.msk [vmem:[%s184_s27] sm:$0x1] %vm410_vm3, %v409_v32  ;;  %v470_v38 = vadd.f32 %v469_v37, %v468_v36 }
 0x12a   : > { %471 = vst.msk [vmem:[%s184_s27 + $0x1] sm:$0x1] %vm410_vm3, %v470_v38 }
 0x12b PF: > { %s14_s12 = sadd.s32 1, %s644_s12  }
 0x12c   : > { %p11_p5 = scmp.ge.s32.totalorder %s14_s12, 4  }
 0x12e   :  { %13 = sbr.rel (!%p11_p5) target bundleno = 1 (0x1), region = 70 }

// kernel: reverse.13
= control target key start
LH: loop header
LB: loop body
LE: loop exit
PB: predicated region body
PF: predicated region fallthrough
CT: control target
= control target key end

     0   :  { %v71_v3 = vlaneseq  ;;  %v64_v9 = vld [vmem:[#allocation0 + $0x7] ss:$-1 sm:$0xff]  ;;  %v78_v12 = vld [vmem:[#allocation0 + $0x17] ss:$-1 sm:$0xff]  ;;  %s329_s0 = inlined_call_operand.vmem [shape: f32[2,4,16,7], index: 0, kind: input, shape index: {}]   ;;  %s330_s1 = inlined_call_operand.vmem [shape: f32[2,4,16,7], index: 1, kind: output, shape index: {}]  }
   0x1   :  { %v44_v0 = vld [vmem:[%s329_s0] sm:$0xff]  ;;  %v46_v1 = vld [vmem:[%s329_s0 + $0x8] sm:$0xff]  ;;  %v48_v2 = vld [vmem:[%s329_s0 + $0x10] sm:$0xff]  ;;  %v65_v10 = vrot.slane %v64_v9, 1  ;;  %v79_v14 = vrot.slane %v78_v12, 1 }
   0x2   :  { %45 = vst [vmem:[#allocation0 + $0x8] sm:$0xff] %v44_v0  ;;  %47 = vst [vmem:[#allocation0 + $0x18] sm:$0xff] %v46_v1  ;;  %v50_v4 = vld [vmem:[%s329_s0 + $0x18] sm:$0xff]  ;;  %v52_v5 = vld [vmem:[%s329_s0 + $0x20] sm:$0xff]  ;;  %v72_v11 = vshrl.u32 %v71_v3, 7 }
   0x3   :  { %49 = vst [vmem:[#allocation0 + $0x28] sm:$0xff] %v48_v2  ;;  %v54_v6 = vld [vmem:[%s329_s0 + $0x28] sm:$0xff]  ;;  %51 = vst [vmem:[#allocation0 + $0x38] sm:$0xff] %v50_v4  ;;  %v56_v7 = vld [vmem:[%s329_s0 + $0x30] sm:$0xff] }
   0x4   :  { %53 = vst [vmem:[#allocation0 + $0x48] sm:$0xff] %v52_v5  ;;  %55 = vst [vmem:[#allocation0 + $0x58] sm:$0xff] %v54_v6  ;;  %v58_v8 = vld [vmem:[%s329_s0 + $0x38] sm:$0xff]  ;;  %v92_v13 = vld [vmem:[#allocation0 + $0x27] ss:$-1 sm:$0xff]  ;;  %vm73_vm0 = vcmp.lt.s32.totalorder %v72_v11, 7 }
   0x5   :  { %57 = vst [vmem:[#allocation0 + $0x68] sm:$0xff] %v56_v7  ;;  %59 = vst [vmem:[#allocation0 + $0x78] sm:$0xff] %v58_v8  ;;  %v93_v15 = vrot.slane %v92_v13, 1  ;;  %v106_v16 = vld [vmem:[#allocation0 + $0x37] ss:$-1 sm:$0xff] }
   0x6   :  { %66 = vst [vmem:[#allocation1] sm:$0xff] %v65_v10  ;;  %v107_v17 = vrot.slane %v106_v16, 1  ;;  %v120_v18 = vld [vmem:[#allocation0 + $0x47] ss:$-1 sm:$0xff]  ;;  %v134_v19 = vld [vmem:[#allocation0 + $0x57] ss:$-1 sm:$0xff] }
   0x7   :  { %80 = vst [vmem:[#allocation1 + $0x8] sm:$0xff] %v79_v14  ;;  %94 = vst [vmem:[#allocation1 + $0x10] sm:$0xff] %v93_v15  ;;  %v121_v20 = vrot.slane %v120_v18, 1  ;;  %v135_v21 = vrot.slane %v134_v19, 1  ;;  %v148_v22 = vld [vmem:[#allocation0 + $0x67] ss:$-1 sm:$0xff] }
   0x8   :  { %v162_v23 = vld [vmem:[#allocation0 + $0x77] ss:$-1 sm:$0xff]  ;;  %108 = vst [vmem:[#allocation1 + $0x18] sm:$0xff] %v107_v17  ;;  %v149_v24 = vrot.slane %v148_v22, 1 }
   0x9   :  { %v163_v25 = vrot.slane %v162_v23, 1  ;;  %v69_v26 = vld [vmem:[#allocation0 + $0xf] ss:$-1 sm:$0xff]  ;;  %v83_v27 = vld [vmem:[#allocation0 + $0x1f] ss:$-1 sm:$0xff]  ;;  %122 = vst [vmem:[#allocation1 + $0x20] sm:$0xff] %v121_v20 }
   0xa   :  { %v97_v28 = vld [vmem:[#allocation0 + $0x2f] ss:$-1 sm:$0xff]  ;;  %136 = vst [vmem:[#allocation1 + $0x28] sm:$0xff] %v135_v21  ;;  %v70_v29 = vrot.slane %v69_v26, 1  ;;  %v84_v30 = vrot.slane %v83_v27, 1  ;;  %150 = vst [vmem:[#allocation1 + $0x30] sm:$0xff] %v149_v24 }
   0xb   :  { %v98_v31 = vrot.slane %v97_v28, 1  ;;  %v111_v32 = vld [vmem:[#allocation0 + $0x3f] ss:$-1 sm:$0xff]  ;;  %164 = vst [vmem:[#allocation1 + $0x38] sm:$0xff] %v163_v25  ;;  %v125_v34 = vld [vmem:[#allocation0 + $0x4f] ss:$-1 sm:$0xff] }
   0xc   :  { %v112_v33 = vrot.slane %v111_v32, 1  ;;  %v139_v35 = vld [vmem:[#allocation0 + $0x5f] ss:$-1 sm:$0xff]  ;;  %74 = vst.msk [vmem:[#allocation1] sm:$0xff] %vm73_vm0, %v70_v29  ;;  %88 = vst.msk [vmem:[#allocation1 + $0x8] sm:$0xff] %vm73_vm0, %v84_v30  ;;  %v126_v36 = vrot.slane %v125_v34, 1 }
   0xd   :  { %102 = vst.msk [vmem:[#allocation1 + $0x10] sm:$0xff] %vm73_vm0, %v98_v31  ;;  %v140_v37 = vrot.slane %v139_v35, 1  ;;  %v153_v38 = vld [vmem:[#allocation0 + $0x6f] ss:$-1 sm:$0xff]  ;;  %v167_v39 = vld [vmem:[#allocation0 + $0x7f] ss:$-1 sm:$0xff] }
   0xe   :  { %116 = vst.msk [vmem:[#allocation1 + $0x18] sm:$0xff] %vm73_vm0, %v112_v33  ;;  %v154_v40 = vrot.slane %v153_v38, 1  ;;  %v168_v41 = vrot.slane %v167_v39, 1  ;;  %130 = vst.msk [vmem:[#allocation1 + $0x20] sm:$0xff] %vm73_vm0, %v126_v36 }
   0xf   :  { %144 = vst.msk [vmem:[#allocation1 + $0x28] sm:$0xff] %vm73_vm0, %v140_v37 }
  0x10   :  { %158 = vst.msk [vmem:[#allocation1 + $0x30] sm:$0xff] %vm73_vm0, %v154_v40  ;;  %172 = vst.msk [vmem:[#allocation1 + $0x38] sm:$0xff] %vm73_vm0, %v168_v41 }
  0x13   :  { %v214_v42 = vld [vmem:[#allocation1] sm:$0xff]  ;;  %v216_v43 = vld [vmem:[#allocation1 + $0x8] sm:$0xff] }
  0x14   :  { %v218_v44 = vld [vmem:[#allocation1 + $0x10] sm:$0xff]  ;;  %215 = vst [vmem:[%s330_s1] sm:$0xff] %v214_v42  ;;  %217 = vst [vmem:[%s330_s1 + $0x8] sm:$0xff] %v216_v43 }
  0x15   :  { %219 = vst [vmem:[%s330_s1 + $0x10] sm:$0xff] %v218_v44  ;;  %v220_v45 = vld [vmem:[#allocation1 + $0x18] sm:$0xff]  ;;  %v222_v46 = vld [vmem:[#allocation1 + $0x20] sm:$0xff] }
  0x16   :  { %221 = vst [vmem:[%s330_s1 + $0x18] sm:$0xff] %v220_v45  ;;  %v224_v47 = vld [vmem:[#allocation1 + $0x28] sm:$0xff]  ;;  %223 = vst [vmem:[%s330_s1 + $0x20] sm:$0xff] %v222_v46 }
  0x17   :  { %225 = vst [vmem:[%s330_s1 + $0x28] sm:$0xff] %v224_v47  ;;  %v226_v48 = vld [vmem:[#allocation1 + $0x30] sm:$0xff]  ;;  %v228_v49 = vld [vmem:[#allocation1 + $0x38] sm:$0xff] }
  0x18   :  { %227 = vst [vmem:[%s330_s1 + $0x30] sm:$0xff] %v226_v48  ;;  %229 = vst [vmem:[%s330_s1 + $0x38] sm:$0xff] %v228_v49 }

// kernel: _lambda_.35
= control target key start
LH: loop header
LB: loop body
LE: loop exit
PB: predicated region body
PF: predicated region fallthrough
CT: control target
= control target key end

     0   :  { %s1037_s18 = smov 0   ;;  %s1401_s0 = inlined_call_operand.vmem [shape: f32[512,8], index: 0, kind: input, shape index: {}]   ;;  %s1402_s1 = inlined_call_operand.vmem [shape: f32[1,8], index: 1, kind: input, shape index: {}]   ;;  %s1403_s2 = inlined_call_operand.vmem [shape: f32[1,8], index: 2, kind: input, shape index: {}]   ;;  %s1404_s3 = inlined_call_operand.vmem [shape: bf16[8,4], index: 3, kind: input, shape index: {}]   ;;  %s1405_s4 = inlined_call_operand.vmem [shape: f32[512,4], index: 4, kind: output, shape index: {0}]   ;;  %s1406_s5 = inlined_call_operand.vmem [shape: f32[16,4], index: 5, kind: output, shape index: {1}]  }
   0x1 LB: > { %s1043_s19 = sadd.s32 4294967295, %s1005_s18   ;;  %p910_p0 = scmp.ge.s32.totalorder %s1005_s18, 1  ;;  %s1005_s18 = sphi %s1037_s18, %s16_s18  }
   0x2   : > { %p191_p1 = scmp.lt.s32.totalorder %s1005_s18, 3 }
   0x4   : > { %p192_p2 = pnand %p910_p0, %p191_p1 }
   0x5   : > { %v398_v0 = vld [vmem:[%s1404_s3] sm:$0xf] (!%p192_p2)  ;;  %vm448_vm0 = vcmask (!%p192_p2), 1043456   ;;  %s911_s22 = sshll.u32 (!%p192_p2), %s1043_s19, 5  ;;  %vm399_vm1 = vcmask (!%p192_p2), 64512   ;;  %vm613_vm2 = vcmask (!%p192_p2), 31744  }
   0x6   : > { %195 = sbr.rel (%p192_p2) target bundleno = 319 (0x13f), region = 36  ;;  %989 = vmatprep.subr.msk.bf16.mxu0 (!%p192_p2), %vm448_vm0, %v398_v0  ;;  %v450_v1 = vsel (!%p192_p2), %vm448_vm0, %v398_v0, 0  ;;  %p224_p3 = scmp.lt.s32.totalorder (!%p192_p2), %s911_s22, 63  ;;  %990 = vmatprep.subr.msk.bf16.mxu1 (!%p192_p2), %vm448_vm0, %v398_v0  ;;  %v1057_v2 = vld [vmem:[%s1402_s1] ss:$0 sm:$0xff] (!%p192_p2)  ;;  %vm715_vm3 = vcmask (!%p192_p2), 24576  }
   0x7   : > { %954 = vmatpush3.bf16.msra.mxu0 (!%p192_p2), %v450_v1  ;;  %988 = vmatpush3.bf16.msra.mxu1 (!%p192_p2), %v450_v1  ;;  %v1069_v3 = vld [vmem:[%s1403_s2] ss:$0 sm:$0xff] (!%p192_p2)  ;;  %p235_p4 = scmp.lt.s32.totalorder (!%p192_p2), %s1043_s19, 1 }
   0xd   : > { %s1408_s22 = smov (!%p224_p3, %s911_s22), 63  ;;  %s1410_s19 = smov (!%p235_p4, %s1043_s19), 1 }
   0xe   : > { %s912_s23 = sshll.u32 %s1408_s22, 3  ;;  %s915_s9 = sshll.u32 %s1410_s19, 3 }
   0xf   : > { %s1064_s28 = scalar_lea.vmem %s1401_s0, %s912_s23  ;;  %s1191_s8 = scalar_lea.vmem %s1405_s4, %s912_s23 }
  0x10   : > { %v240_v4 = vld [vmem:[%s1064_s28] sm:$0xff]  ;;  %v241_v5 = vld [vmem:[%s1064_s28 + $0x8] sm:$0xff]  ;;  %v242_v6 = vld [vmem:[%s1064_s28 + $0x10] sm:$0xff]  ;;  %s238_s12 = scalar_lea.vmem %s1406_s5, %s915_s9 }
  0x11   : > { %v279_v7 = vmul.f32 %v1057_v2, %v240_v4  ;;  %v280_v8 = vmul.f32 %v1057_v2, %v241_v5  ;;  %v243_v9 = vld [vmem:[%s1064_s28 + $0x18] sm:$0xff]  ;;  %v281_v10 = vmul.f32 %v1057_v2, %v242_v6  ;;  %v244_v11 = vld [vmem:[%s1064_s28 + $0x20] sm:$0xff]  ;;  %v245_v12 = vld [vmem:[%s1064_s28 + $0x28] sm:$0xff] }
  0x12   : > { %v282_v13 = vmul.f32 %v1057_v2, %v243_v9  ;;  %v283_v14 = vmul.f32 %v1057_v2, %v244_v11  ;;  %v284_v15 = vmul.f32 %v1057_v2, %v245_v12  ;;  %v246_v16 = vld [vmem:[%s1064_s28 + $0x30] sm:$0xff]  ;;  %v247_v17 = vld [vmem:[%s1064_s28 + $0x38] sm:$0xff]  ;;  %v248_v26 = vld [vmem:[%s1064_s28 + $0x40] sm:$0xff] }
  0x13   : > { %v318_v18 = vadd.f32 %v1069_v3, %v279_v7  ;;  %v319_v19 = vadd.f32 %v1069_v3, %v280_v8  ;;  %v320_v20 = vadd.f32 %v1069_v3, %v281_v10  ;;  %v285_v21 = vmul.f32 %v1057_v2, %v246_v16  ;;  %v249_v27 = vld [vmem:[%s1064_s28 + $0x48] sm:$0xff]  ;;  %v250_v32 = vld [vmem:[%s1064_s28 + $0x50] sm:$0xff]  ;;  %v251_v37 = vld [vmem:[%s1064_s28 + $0x58] sm:$0xff] }
  0x14   : > { %v321_v22 = vadd.f32 %v1069_v3, %v282_v13  ;;  %v322_v23 = vadd.f32 %v1069_v3, %v283_v14  ;;  %v323_v24 = vadd.f32 %v1069_v3, %v284_v15  ;;  %v286_v25 = vmul.f32 %v1057_v2, %v247_v17  ;;  %v252_v38 = vld [vmem:[%s1064_s28 + $0x60] sm:$0xff]  ;;  %v253_v43 = vld [vmem:[%s1064_s28 + $0x68] sm:$0xff]  ;;  %v254_v44 = vld [vmem:[%s1064_s28 + $0x70] sm:$0xff] }
  0x15   : > { %v350_v28 = vmax.f32 %v318_v18, 0.0  ;;  %v351_v29 = vmax.f32 %v319_v19, 0.0  ;;  %v352_v30 = vmax.f32 %v320_v20, 0.0  ;;  %v324_v31 = vadd.f32 %v1069_v3, %v285_v21  ;;  %v255_v53 = vld [vmem:[%s1064_s28 + $0x78] sm:$0xff]  ;;  %v256_v57 = vld [vmem:[%s1064_s28 + $0x80] sm:$0xff]  ;;  %v257_v62 = vld [vmem:[%s1064_s28 + $0x88] sm:$0xff] }
  0x16   : > { %v353_v33 = vmax.f32 %v321_v22, 0.0  ;;  %v354_v34 = vmax.f32 %v322_v23, 0.0  ;;  %v355_v35 = vmax.f32 %v323_v24, 0.0  ;;  %v325_v36 = vadd.f32 %v1069_v3, %v286_v25  ;;  %v258_v1 = vld [vmem:[%s1064_s28 + $0x90] sm:$0xff]  ;;  %v259_v4 = vld [vmem:[%s1064_s28 + $0x98] sm:$0xff]  ;;  %v260_v8 = vld [vmem:[%s1064_s28 + $0xa0] sm:$0xff] }
  0x17   : > { %v382_v39 = vpack.c.bf16 %v351_v29, %v350_v28  ;;  %v356_v40 = vmax.f32 %v324_v31, 0.0  ;;  %v287_v41 = vmul.f32 %v1057_v2, %v248_v26  ;;  %v288_v42 = vmul.f32 %v1057_v2, %v249_v27  ;;  %v261_v13 = vld [vmem:[%s1064_s28 + $0xa8] sm:$0xff]  ;;  %v262_v18 = vld [vmem:[%s1064_s28 + $0xb0] sm:$0xff]  ;;  %v263_v23 = vld [vmem:[%s1064_s28 + $0xb8] sm:$0xff] }
  0x18   : > { %v383_v45 = vpack.c.bf16 %v353_v33, %v352_v30  ;;  %v384_v46 = vpack.c.bf16 %v355_v35, %v354_v34  ;;  %v357_v47 = vmax.f32 %v325_v36, 0.0  ;;  %v289_v48 = vmul.f32 %v1057_v2, %v250_v32  ;;  %v264_v28 = vld [vmem:[%s1064_s28 + $0xc0] sm:$0xff]  ;;  %v265_v33 = vld [vmem:[%s1064_s28 + $0xc8] sm:$0xff] }
  0x19   : > { %955 = vmatprep.mubr.msk.bf16.mxu0 %vm399_vm1, %v382_v39  ;;  %v326_v49 = vadd.f32 %v1069_v3, %v287_v41  ;;  %v327_v50 = vadd.f32 %v1069_v3, %v288_v42  ;;  %v290_v51 = vmul.f32 %v1057_v2, %v251_v37  ;;  %v291_v52 = vmul.f32 %v1057_v2, %v252_v38  ;;  %v266_v38 = vld [vmem:[%s1064_s28 + $0xd0] sm:$0xff] }
  0x1a   : > { %956 = vmatmul.mubr.msk.bf16.vlgmr.msra.gmra.mrb[0].mxu0 %vm399_vm1, %v383_v45  ;;  %v328_v54 = vadd.f32 %v1069_v3, %v289_v48  ;;  %v292_v55 = vmul.f32 %v1057_v2, %v253_v43  ;;  %v293_v56 = vmul.f32 %v1057_v2, %v254_v44  ;;  %v294_v0 = vmul.f32 %v1057_v2, %v255_v53  ;;  %v267_v43 = vld [vmem:[%s1064_s28 + $0xd8] sm:$0xff]  ;;  %v268_v48 = vld [vmem:[%s1064_s28 + $0xe0] sm:$0xff] }
  0x1b   : > { %959 = vmatprep.mubr.msk.bf16.mxu0 %vm399_vm1, %v384_v46  ;;  %v358_v58 = vmax.f32 %v326_v49, 0.0  ;;  %v359_v59 = vmax.f32 %v327_v50, 0.0  ;;  %v329_v60 = vadd.f32 %v1069_v3, %v290_v51  ;;  %v330_v61 = vadd.f32 %v1069_v3, %v291_v52  ;;  %v269_v49 = vld [vmem:[%s1064_s28 + $0xe8] sm:$0xff] }
  0x1c   : > { %v331_v63 = vadd.f32 %v1069_v3, %v292_v55  ;;  %v385_v5 = vpack.c.bf16 %v357_v47, %v356_v40  ;;  %v360_v6 = vmax.f32 %v328_v54, 0.0  ;;  %v295_v7 = vmul.f32 %v1057_v2, %v256_v57 }
  0x1d   : > { %v386_v9 = vpack.c.bf16 %v359_v59, %v358_v58  ;;  %v361_v10 = vmax.f32 %v329_v60, 0.0  ;;  %v1127_v11 = vadd.f32 %v1069_v3, %v293_v56  ;;  %v296_v12 = vmul.f32 %v1057_v2, %v257_v62 }
  0x1e   : > { %v362_v14 = vmax.f32 %v330_v61, 0.0  ;;  %v334_v15 = vadd.f32 %v1069_v3, %v295_v7  ;;  %v297_v16 = vmul.f32 %v1057_v2, %v258_v1  ;;  %v298_v17 = vmul.f32 %v1057_v2, %v259_v4 }
  0x1f   : > { %v363_v19 = vmax.f32 %v331_v63, 0.0  ;;  %v333_v20 = vadd.f32 %v1069_v3, %v294_v0  ;;  %v335_v21 = vadd.f32 %v1069_v3, %v296_v12  ;;  %v299_v22 = vmul.f32 %v1057_v2, %v260_v8  ;;  %v270_v8 = vld [vmem:[%s1064_s28 + $0xf0] sm:$0xff] }
  0x20   : > { %v366_v24 = vmax.f32 %v334_v15, 0.0  ;;  %v336_v25 = vadd.f32 %v1069_v3, %v297_v16  ;;  %v337_v26 = vadd.f32 %v1069_v3, %v298_v17  ;;  %v300_v27 = vmul.f32 %v1057_v2, %v261_v13 }
  0x21   : > { %v387_v29 = vpack.c.bf16 %v361_v10, %v360_v6  ;;  %v367_v30 = vmax.f32 %v335_v21, 0.0  ;;  %v338_v31 = vadd.f32 %v1069_v3, %v299_v22  ;;  %v301_v32 = vmul.f32 %v1057_v2, %v262_v18 }
  0x22   : > { %960 = vmatmul.mubr.msk.bf16.gmra.mrb[4].mxu0 %vm399_vm1, %v385_v5  ;;  %v368_v34 = vmax.f32 %v336_v25, 0.0  ;;  %v369_v35 = vmax.f32 %v337_v26, 0.0  ;;  %v339_v36 = vadd.f32 %v1069_v3, %v300_v27  ;;  %v302_v37 = vmul.f32 %v1057_v2, %v263_v23 }
  0x23   : > { %963 = vmatprep.mubr.msk.bf16.mxu0 %vm399_vm1, %v386_v9  ;;  %v390_v39 = vpack.c.bf16 %v367_v30, %v366_v24  ;;  %v370_v40 = vmax.f32 %v338_v31, 0.0  ;;  %v340_v41 = vadd.f32 %v1069_v3, %v301_v32  ;;  %v303_v42 = vmul.f32 %v1057_v2, %v264_v28  ;;  %v271_v9 = vld [vmem:[%s1064_s28 + $0xf8] sm:$0xff] }
  0x24   : > { %v391_v44 = vpack.c.bf16 %v369_v35, %v368_v34  ;;  %v371_v45 = vmax.f32 %v339_v36, 0.0  ;;  %v341_v46 = vadd.f32 %v1069_v3, %v302_v37  ;;  %v304_v47 = vmul.f32 %v1057_v2, %v265_v33 }
  0x25   : > { %v388_v50 = vpack.c.bf16 %v363_v19, %v362_v14  ;;  %971 = vmatprep.mubr.msk.bf16.mxu1 %vm399_vm1, %v390_v39  ;;  %v372_v51 = vmax.f32 %v340_v41, 0.0  ;;  %v342_v52 = vadd.f32 %v1069_v3, %v303_v42  ;;  %v305_v53 = vmul.f32 %v1057_v2, %v266_v38 }
  0x26   : > { %972 = vmatmul.mubr.msk.bf16.vlgmr.msra.gmra.mrb[0].mxu1 %vm399_vm1, %v391_v44  ;;  %v392_v54 = vpack.c.bf16 %v371_v45, %v370_v40  ;;  %v373_v55 = vmax.f32 %v341_v46, 0.0  ;;  %v343_v56 = vadd.f32 %v1069_v3, %v304_v47  ;;  %v306_v57 = vmul.f32 %v1057_v2, %v267_v43 }
  0x27   : > { %v374_v58 = vmax.f32 %v342_v52, 0.0  ;;  %v307_v59 = vmul.f32 %v1057_v2, %v268_v48  ;;  %v308_v60 = vmul.f32 %v1057_v2, %v269_v49  ;;  %v364_v62 = vmax.f32 %v1127_v11, 0.0 }
  0x28   : > { %975 = vmatprep.mubr.msk.bf16.mxu1 %vm399_vm1, %v392_v54  ;;  %v375_v61 = vmax.f32 %v343_v56, 0.0  ;;  %v365_v63 = vmax.f32 %v333_v20, 0.0  ;;  %v393_v0 = vpack.c.bf16 %v373_v55, %v372_v51  ;;  %v344_v1 = vadd.f32 %v1069_v3, %v305_v53 }
  0x29   : > { %v345_v4 = vadd.f32 %v1069_v3, %v306_v57  ;;  %v346_v6 = vadd.f32 %v1069_v3, %v307_v59  ;;  %v347_v7 = vadd.f32 %v1069_v3, %v308_v60  ;;  %v309_v13 = vmul.f32 %v1057_v2, %v270_v8 }
  0x2a   : > { %964 = vmatmul.mubr.msk.bf16.gmra.mrb[8].mxu0 %vm399_vm1, %v387_v29  ;;  %v394_v5 = vpack.c.bf16 %v375_v61, %v374_v58  ;;  %v389_v10 = vpack.c.bf16 %v365_v63, %v364_v62  ;;  %v376_v12 = vmax.f32 %v344_v1, 0.0  ;;  %v310_v14 = vmul.f32 %v1057_v2, %v271_v9 }
  0x2b   : > { %967 = vmatprep.mubr.msk.bf16.mxu0 %vm399_vm1, %v388_v50  ;;  %v377_v11 = vmax.f32 %v345_v4, 0.0  ;;  %v378_v15 = vmax.f32 %v346_v6, 0.0  ;;  %v379_v16 = vmax.f32 %v347_v7, 0.0  ;;  %v348_v18 = vadd.f32 %v1069_v3, %v309_v13 }
  0x2c   : > { %v349_v19 = vadd.f32 %v1069_v3, %v310_v14 }
  0x2d   : > { %v395_v17 = vpack.c.bf16 %v377_v11, %v376_v12  ;;  %v396_v20 = vpack.c.bf16 %v379_v16, %v378_v15  ;;  %v380_v21 = vmax.f32 %v348_v18, 0.0 }
  0x2e   : > { %976 = vmatmul.mubr.msk.bf16.gmra.mrb[4].mxu1 %vm399_vm1, %v393_v0  ;;  %v381_v22 = vmax.f32 %v349_v19, 0.0 }
  0x2f   : > { %979 = vmatprep.mubr.msk.bf16.mxu1 %vm399_vm1, %v394_v5 }
  0x30   : > { %v397_v23 = vpack.c.bf16 %v381_v22, %v380_v21 }
  0x32   : > { %968 = vmatmul.mubr.msk.bf16.gmra.mrb[12].mxu0 %vm399_vm1, %v389_v10 }
  0x36   : > { %980 = vmatmul.mubr.msk.bf16.gmra.mrb[8].mxu1 %vm399_vm1, %v395_v17 }
  0x37   : > { %983 = vmatprep.mubr.msk.bf16.mxu1 %vm399_vm1, %v396_v20 }
  0x3e   : > { %984 = vmatmul.mubr.msk.bf16.gmra.mrb[12].mxu1 %vm399_vm1, %v397_v23 }
  0xed   : > { %v957_v2 = vpop.f32.mrb[0].mxu0 }
  0xee   : > { %616 = vst.msk [vmem:[%s1191_s8 + $0x10] sm:$0xff] %vm613_vm2, %v957_v2  ;;  %v486_v3 = vpop.f32.mrb[1].mxu0  ;;  %v719_v27 = vmul.f32 %v957_v2, %v957_v2  ;;  %v649_v32 = vsel %vm613_vm2, %v957_v2, 0.0 }
  0xef   : > { %614 = vst.msk [vmem:[%s1191_s8] sm:$0xff] %vm613_vm2, %v486_v3  ;;  %v717_v24 = vmul.f32 %v486_v3, %v486_v3  ;;  %v958_v25 = vpop.f32.mrb[2].mxu0  ;;  %v646_v28 = vsel %vm613_vm2, %v486_v3, 0.0 }
  0xf0   : > { %617 = vst.msk [vmem:[%s1191_s8 + $0x18] sm:$0xff] %vm613_vm2, %v958_v25  ;;  %v489_v26 = vpop.f32.mrb[3].mxu0  ;;  %v720_v34 = vmul.f32 %v958_v25, %v958_v25  ;;  %v752_v38 = vsel %vm613_vm2, %v719_v27, 0.0  ;;  %v651_v39 = vsel %vm613_vm2, %v958_v25, 0.0 }
  0xf1   : > { %615 = vst.msk [vmem:[%s1191_s8 + $0x8] sm:$0xff] %vm613_vm2, %v489_v26  ;;  %v647_v29 = vsel %vm613_vm2, %v489_v26, 0.0  ;;  %v718_v30 = vmul.f32 %v489_v26, %v489_v26  ;;  %v749_v33 = vsel %vm613_vm2, %v717_v24, 0.0 }
  0xf2   : > { %v648_v31 = vadd.f32 %v647_v29, %v646_v28  ;;  %v754_v44 = vsel %vm613_vm2, %v720_v34, 0.0 }
  0xf3   : > { %v750_v35 = vsel %vm613_vm2, %v718_v30, 0.0 }
  0xf4   : > { %v650_v36 = vadd.f32 %v649_v32, %v648_v31  ;;  %v751_v37 = vadd.f32 %v750_v35, %v749_v33 }
  0xf5   : > { %v961_v40 = vpop.f32.mrb[4].mxu0 }
  0xf6   : > { %v753_v41 = vadd.f32 %v752_v38, %v751_v37  ;;  %620 = vst.msk [vmem:[%s1191_s8 + $0x30] sm:$0xff] %vm613_vm2, %v961_v40  ;;  %v502_v42 = vpop.f32.mrb[5].mxu0  ;;  %v652_v43 = vadd.f32 %v651_v39, %v650_v36  ;;  %v723_v51 = vmul.f32 %v961_v40, %v961_v40  ;;  %v657_v58 = vsel %vm613_vm2, %v961_v40, 0.0 }
  0xf7   : > { %618 = vst.msk [vmem:[%s1191_s8 + $0x20] sm:$0xff] %vm613_vm2, %v502_v42  ;;  %v653_v45 = vsel %vm613_vm2, %v502_v42, 0.0  ;;  %v721_v46 = vmul.f32 %v502_v42, %v502_v42  ;;  %v962_v47 = vpop.f32.mrb[6].mxu0 }
  0xf8   : > { %v654_v48 = vadd.f32 %v653_v45, %v652_v43  ;;  %v755_v49 = vadd.f32 %v754_v44, %v753_v41  ;;  %621 = vst.msk [vmem:[%s1191_s8 + $0x38] sm:$0xff] %vm613_vm2, %v962_v47  ;;  %v505_v50 = vpop.f32.mrb[7].mxu0  ;;  %v724_v59 = vmul.f32 %v962_v47, %v962_v47  ;;  %v760_v1 = vsel %vm613_vm2, %v723_v51, 0.0 }
  0xf9   : > { %v756_v52 = vsel %vm613_vm2, %v721_v46, 0.0  ;;  %619 = vst.msk [vmem:[%s1191_s8 + $0x28] sm:$0xff] %vm613_vm2, %v505_v50  ;;  %v655_v53 = vsel %vm613_vm2, %v505_v50, 0.0  ;;  %v722_v54 = vmul.f32 %v505_v50, %v505_v50  ;;  %v1220_v57 = vpop.f32.mrb[0].mxu1  ;;  %v659_v4 = vsel %vm613_vm2, %v962_v47, 0.0 }
  0xfa   : > { %v757_v55 = vadd.f32 %v756_v52, %v755_v49  ;;  %v656_v56 = vadd.f32 %v655_v53, %v654_v48  ;;  %632 = vst.msk [vmem:[%s1191_s8 + $0x90] sm:$0xff] %vm613_vm2, %v1220_v57  ;;  %v1227_v61 = vpop.f32.mrb[1].mxu1  ;;  %v762_v10 = vsel %vm613_vm2, %v724_v59, 0.0 }
  0xfb   : > { %v758_v60 = vsel %vm613_vm2, %v722_v54, 0.0  ;;  %630 = vst.msk [vmem:[%s1191_s8 + $0x80] sm:$0xff] %vm613_vm2, %v1227_v61  ;;  %v1232_v0 = vpop.f32.mrb[2].mxu1  ;;  %v733_v53 = vmul.f32 %v1227_v61, %v1227_v61 }
  0xfc   : > { %v658_v62 = vadd.f32 %v657_v58, %v656_v56  ;;  %v759_v63 = vadd.f32 %v758_v60, %v757_v55  ;;  %633 = vst.msk [vmem:[%s1191_s8 + $0x98] sm:$0xff] %vm613_vm2, %v1232_v0  ;;  %v1239_v6 = vpop.f32.mrb[3].mxu1 }
  0xfd   : > { %v965_v5 = vpop.f32.mrb[8].mxu0  ;;  %631 = vst.msk [vmem:[%s1191_s8 + $0x88] sm:$0xff] %vm613_vm2, %v1239_v6 }
  0xfe   : > { %v761_v7 = vadd.f32 %v760_v1, %v759_v63  ;;  %624 = vst.msk [vmem:[%s1191_s8 + $0x50] sm:$0xff] %vm613_vm2, %v965_v5  ;;  %v518_v8 = vpop.f32.mrb[9].mxu0  ;;  %v660_v9 = vadd.f32 %v659_v4, %v658_v62  ;;  %v727_v17 = vmul.f32 %v965_v5, %v965_v5  ;;  %v665_v2 = vsel %vm613_vm2, %v965_v5, 0.0 }
  0xff   : > { %622 = vst.msk [vmem:[%s1191_s8 + $0x40] sm:$0xff] %vm613_vm2, %v518_v8  ;;  %v661_v12 = vsel %vm613_vm2, %v518_v8, 0.0  ;;  %v725_v11 = vmul.f32 %v518_v8, %v518_v8  ;;  %v966_v13 = vpop.f32.mrb[10].mxu0  ;;  %v677_v62 = vsel %vm613_vm2, %v1227_v61, 0.0  ;;  %v734_v8 = vmul.f32 %v1239_v6, %v1239_v6 }
 0x100   : > { %v662_v14 = vadd.f32 %v661_v12, %v660_v9  ;;  %v763_v15 = vadd.f32 %v762_v10, %v761_v7  ;;  %625 = vst.msk [vmem:[%s1191_s8 + $0x58] sm:$0xff] %vm613_vm2, %v966_v13  ;;  %v521_v16 = vpop.f32.mrb[11].mxu0  ;;  %v728_v3 = vmul.f32 %v966_v13, %v966_v13  ;;  %v768_v29 = vsel %vm613_vm2, %v727_v17, 0.0 }
 0x101   : > { %v764_v18 = vsel %vm613_vm2, %v725_v11, 0.0  ;;  %623 = vst.msk [vmem:[%s1191_s8 + $0x48] sm:$0xff] %vm613_vm2, %v521_v16  ;;  %v663_v19 = vsel %vm613_vm2, %v521_v16, 0.0  ;;  %v726_v20 = vmul.f32 %v521_v16, %v521_v16  ;;  %v1256_v23 = vpop.f32.mrb[4].mxu1  ;;  %v667_v30 = vsel %vm613_vm2, %v966_v13, 0.0 }
 0x102   : > { %v765_v21 = vadd.f32 %v764_v18, %v763_v15  ;;  %v664_v22 = vadd.f32 %v663_v19, %v662_v14  ;;  %636 = vst.msk [vmem:[%s1191_s8 + $0xb0] sm:$0xff] %vm613_vm2, %v1256_v23  ;;  %v1263_v25 = vpop.f32.mrb[5].mxu1  ;;  %v770_v36 = vsel %vm613_vm2, %v728_v3, 0.0  ;;  %v780_v7 = vsel %vm613_vm2, %v733_v53, 0.0 }
 0x103   : > { %v766_v24 = vsel %vm613_vm2, %v726_v20, 0.0  ;;  %634 = vst.msk [vmem:[%s1191_s8 + $0xa0] sm:$0xff] %vm613_vm2, %v1263_v25  ;;  %v1268_v28 = vpop.f32.mrb[6].mxu1  ;;  %v735_v61 = vmul.f32 %v1220_v57, %v1220_v57  ;;  %v679_v12 = vsel %vm613_vm2, %v1239_v6, 0.0  ;;  %v681_v15 = vsel %vm613_vm2, %v1220_v57, 0.0 }
 0x104   : > { %v666_v26 = vadd.f32 %v665_v2, %v664_v22  ;;  %v767_v27 = vadd.f32 %v766_v24, %v765_v21  ;;  %637 = vst.msk [vmem:[%s1191_s8 + $0xb8] sm:$0xff] %vm613_vm2, %v1268_v28  ;;  %v1275_v32 = vpop.f32.mrb[7].mxu1  ;;  %v736_v16 = vmul.f32 %v1232_v0, %v1232_v0  ;;  %v782_v17 = vsel %vm613_vm2, %v734_v8, 0.0 }
 0x105   : > { %v969_v31 = vpop.f32.mrb[12].mxu0  ;;  %635 = vst.msk [vmem:[%s1191_s8 + $0xa8] sm:$0xff] %vm613_vm2, %v1275_v32  ;;  %v737_v18 = vmul.f32 %v1263_v25, %v1263_v25  ;;  %v784_v57 = vsel %vm613_vm2, %v735_v61, 0.0  ;;  %v683_v22 = vsel %vm613_vm2, %v1232_v0, 0.0  ;;  %v685_v2 = vsel %vm613_vm2, %v1263_v25, 0.0 }
 0x106   : > { %v769_v33 = vadd.f32 %v768_v29, %v767_v27  ;;  %628 = vst.msk [vmem:[%s1191_s8 + $0x70] sm:$0xff] %vm613_vm2, %v969_v31  ;;  %v534_v34 = vpop.f32.mrb[13].mxu0  ;;  %v668_v35 = vadd.f32 %v667_v30, %v666_v26  ;;  %v731_v43 = vmul.f32 %v969_v31, %v969_v31  ;;  %v673_v50 = vsel %vm613_vm2, %v969_v31, 0.0 }
 0x107   : > { %626 = vst.msk [vmem:[%s1191_s8 + $0x60] sm:$0xff] %vm613_vm2, %v534_v34  ;;  %v669_v37 = vsel %vm613_vm2, %v534_v34, 0.0  ;;  %v729_v38 = vmul.f32 %v534_v34, %v534_v34  ;;  %v970_v39 = vpop.f32.mrb[14].mxu0  ;;  %v786_v29 = vsel %vm613_vm2, %v736_v16, 0.0  ;;  %v788_v30 = vsel %vm613_vm2, %v737_v18, 0.0 }
 0x108   : > { %v670_v40 = vadd.f32 %v669_v37, %v668_v35  ;;  %v771_v41 = vadd.f32 %v770_v36, %v769_v33  ;;  %629 = vst.msk [vmem:[%s1191_s8 + $0x78] sm:$0xff] %vm613_vm2, %v970_v39  ;;  %v537_v42 = vpop.f32.mrb[15].mxu0  ;;  %v732_v51 = vmul.f32 %v970_v39, %v970_v39  ;;  %v776_v59 = vsel %vm613_vm2, %v731_v43, 0.0 }
 0x109   : > { %v772_v44 = vsel %vm613_vm2, %v729_v38, 0.0  ;;  %627 = vst.msk [vmem:[%s1191_s8 + $0x68] sm:$0xff] %vm613_vm2, %v537_v42  ;;  %v671_v45 = vsel %vm613_vm2, %v537_v42, 0.0  ;;  %v730_v46 = vmul.f32 %v537_v42, %v537_v42  ;;  %v1292_v49 = vpop.f32.mrb[8].mxu1  ;;  %v675_v60 = vsel %vm613_vm2, %v970_v39, 0.0 }
 0x10a   : > { %v773_v47 = vadd.f32 %v772_v44, %v771_v41  ;;  %v672_v48 = vadd.f32 %v671_v45, %v670_v40  ;;  %640 = vst.msk [vmem:[%s1191_s8 + $0xd0] sm:$0xff] %vm613_vm2, %v1292_v49  ;;  %v582_v54 = vpop.f32.mrb[9].mxu1  ;;  %v778_v5 = vsel %vm613_vm2, %v732_v51, 0.0  ;;  %v738_v0 = vmul.f32 %v1275_v32, %v1275_v32 }
 0x10b   : > { %v774_v52 = vsel %vm613_vm2, %v730_v46, 0.0  ;;  %638 = vst.msk [vmem:[%s1191_s8 + $0xc0] sm:$0xff] %vm613_vm2, %v582_v54  ;;  %v1303_v58 = vpop.f32.mrb[10].mxu1  ;;  %v739_v34 = vmul.f32 %v1256_v23, %v1256_v23  ;;  %v687_v35 = vsel %vm613_vm2, %v1275_v32, 0.0  ;;  %v689_v38 = vsel %vm613_vm2, %v1256_v23, 0.0 }
 0x10c   : > { %v674_v55 = vadd.f32 %v673_v50, %v672_v48  ;;  %v775_v56 = vadd.f32 %v774_v52, %v773_v47  ;;  %641 = vst.msk [vmem:[%s1191_s8 + $0xd8] sm:$0xff] %vm613_vm2, %v1303_v58  ;;  %v585_v63 = vpop.f32.mrb[11].mxu1  ;;  %v740_v39 = vmul.f32 %v1268_v28, %v1268_v28  ;;  %v790_v40 = vsel %vm613_vm2, %v738_v0, 0.0 }
 0x10d   : > { %639 = vst.msk [vmem:[%s1191_s8 + $0xc8] sm:$0xff] %vm613_vm2, %v585_v63  ;;  %v741_v41 = vmul.f32 %v582_v54, %v582_v54  ;;  %v792_v44 = vsel %vm613_vm2, %v739_v34, 0.0  ;;  %v691_v45 = vsel %vm613_vm2, %v1268_v28, 0.0  ;;  %v693_v32 = vsel %vm613_vm2, %v582_v54, 0.0 }
 0x10e   : > { %v777_v1 = vadd.f32 %v776_v59, %v775_v56  ;;  %v676_v4 = vadd.f32 %v675_v60, %v674_v55  ;;  %v794_v48 = vsel %vm613_vm2, %v740_v39, 0.0  ;;  %v742_v50 = vmul.f32 %v585_v63, %v585_v63 }
 0x10f   : > { %v796_v23 = vsel %vm613_vm2, %v741_v41, 0.0  ;;  %v743_v53 = vmul.f32 %v1292_v49, %v1292_v49  ;;  %v695_v55 = vsel %vm613_vm2, %v585_v63, 0.0  ;;  %v697_v28 = vsel %vm613_vm2, %v1292_v49, 0.0 }
 0x110   : > { %v678_v9 = vadd.f32 %v677_v62, %v676_v4  ;;  %v779_v10 = vadd.f32 %v778_v5, %v777_v1  ;;  %v744_v54 = vmul.f32 %v1303_v58, %v1303_v58  ;;  %v798_v60 = vsel %vm613_vm2, %v742_v50, 0.0 }
 0x111   : > { %v1322_v14 = vpop.f32.mrb[12].mxu1  ;;  %v800_v5 = vsel %vm613_vm2, %v743_v53, 0.0 }
 0x112   : > { %v781_v11 = vadd.f32 %v780_v7, %v779_v10  ;;  %v680_v13 = vadd.f32 %v679_v12, %v678_v9  ;;  %644 = vst.msk [vmem:[%s1191_s8 + $0xf0] sm:$0xff] %vm613_vm2, %v1322_v14  ;;  %v598_v6 = vpop.f32.mrb[13].mxu1  ;;  %v699_v7 = vsel %vm613_vm2, %v1303_v58, 0.0  ;;  %v802_v49 = vsel %vm613_vm2, %v744_v54, 0.0 }
 0x113   : > { %642 = vst.msk [vmem:[%s1191_s8 + $0xe0] sm:$0xff] %vm613_vm2, %v598_v6  ;;  %v1336_v21 = vpop.f32.mrb[14].mxu1  ;;  %v745_v62 = vmul.f32 %v598_v6, %v598_v6  ;;  %v701_v63 = vsel %vm613_vm2, %v598_v6, 0.0 }
 0x114   : > { %v682_v19 = vadd.f32 %v681_v15, %v680_v13  ;;  %v783_v20 = vadd.f32 %v782_v17, %v781_v11  ;;  %645 = vst.msk [vmem:[%s1191_s8 + $0xf8] sm:$0xff] %vm613_vm2, %v1336_v21  ;;  %v748_v3 = vmul.f32 %v1336_v21, %v1336_v21  ;;  %v601_v24 = vpop.f32.mrb[15].mxu1  ;;  %v747_v13 = vmul.f32 %v1322_v14, %v1322_v14 }
 0x115   : > { %643 = vst.msk [vmem:[%s1191_s8 + $0xe8] sm:$0xff] %vm613_vm2, %v601_v24  ;;  %v804_v10 = vsel %vm613_vm2, %v745_v62, 0.0  ;;  %v746_v61 = vmul.f32 %v601_v24, %v601_v24  ;;  %v703_v15 = vsel %vm613_vm2, %v601_v24, 0.0  ;;  %v705_v17 = vsel %vm613_vm2, %v1322_v14, 0.0 }
 0x116   : > { %v785_v26 = vadd.f32 %v784_v57, %v783_v20  ;;  %v684_v27 = vadd.f32 %v683_v22, %v682_v19  ;;  %v810_v25 = vsel %vm613_vm2, %v748_v3, 0.0  ;;  %v808_v20 = vsel %vm613_vm2, %v747_v13, 0.0 }
 0x117   : > { %v806_v18 = vsel %vm613_vm2, %v746_v61, 0.0  ;;  %v707_v57 = vsel %vm613_vm2, %v1336_v21, 0.0 }
 0x118   : > { %v686_v31 = vadd.f32 %v685_v2, %v684_v27  ;;  %v787_v33 = vadd.f32 %v786_v29, %v785_v26 }
 0x11a   : > { %v789_v36 = vadd.f32 %v788_v30, %v787_v33  ;;  %v688_v37 = vadd.f32 %v687_v35, %v686_v31 }
 0x11c   : > { %v690_v42 = vadd.f32 %v689_v38, %v688_v37  ;;  %v791_v43 = vadd.f32 %v790_v40, %v789_v36 }
 0x11e   : > { %v793_v46 = vadd.f32 %v792_v44, %v791_v43  ;;  %v692_v47 = vadd.f32 %v691_v45, %v690_v42 }
 0x120   : > { %v694_v51 = vadd.f32 %v693_v32, %v692_v47  ;;  %v795_v52 = vadd.f32 %v794_v48, %v793_v46 }
 0x122   : > { %v797_v56 = vadd.f32 %v796_v23, %v795_v52  ;;  %v696_v59 = vadd.f32 %v695_v55, %v694_v51 }
 0x124   : > { %v698_v1 = vadd.f32 %v697_v28, %v696_v59  ;;  %v799_v4 = vadd.f32 %v798_v60, %v797_v56 }
 0x126   : > { %v801_v8 = vadd.f32 %v800_v5, %v799_v4  ;;  %v700_v9 = vadd.f32 %v699_v7, %v698_v1 }
 0x128   : > { %v702_v12 = vadd.f32 %v701_v63, %v700_v9  ;;  %v803_v11 = vadd.f32 %v802_v49, %v801_v8 }
 0x12a   : > { %v805_v16 = vadd.f32 %v804_v10, %v803_v11  ;;  %v704_v58 = vadd.f32 %v703_v15, %v702_v12 }
 0x12c   : > { %v706_v6 = vadd.f32 %v705_v17, %v704_v58  ;;  %v807_v19 = vadd.f32 %v806_v18, %v805_v16 }
 0x12e   : > { %v708_v22 = vadd.f32 %v707_v57, %v706_v6  ;;  %v809_v2 = vadd.f32 %v808_v20, %v807_v19 }
 0x130   : > { %v709_v3 = vrot.slane %v708_v22, 4  ;;  %v811_v26 = vadd.f32 %v810_v25, %v809_v2 }
 0x132   : > { %v710_v24 = vadd.f32 %v709_v3, %v708_v22  ;;  %v812_v27 = vrot.slane %v811_v26, 4 }
 0x134   : > { %v711_v29 = vrot.slane %v710_v24, 2  ;;  %v813_v30 = vadd.f32 %v812_v27, %v811_v26 }
 0x136   : > { %v712_v14 = vadd.f32 %v711_v29, %v710_v24  ;;  %v814_v0 = vrot.slane %v813_v30, 2 }
 0x138   : > { %v713_v31 = vrot.slane %v712_v14, 1  ;;  %v815_v33 = vadd.f32 %v814_v0, %v813_v30 }
 0x13a   : > { %v714_v21 = vadd.f32 %v713_v31, %v712_v14  ;;  %v816_v34 = vrot.slane %v815_v33, 1 }
 0x13c   : > { %716 = vst.msk [vmem:[%s238_s12] sm:$0x1] %vm715_vm3, %v714_v21  ;;  %v817_v35 = vadd.f32 %v816_v34, %v815_v33 }
 0x13e   : > { %818 = vst.msk [vmem:[%s238_s12 + $0x1] sm:$0x1] %vm715_vm3, %v817_v35 }
 0x13f PF: > { %s16_s18 = sadd.s32 1, %s1005_s18  }
 0x140   : > { %p13_p5 = scmp.ge.s32.totalorder %s16_s18, 4  }
 0x142   :  { %15 = sbr.rel (!%p13_p5) target bundleno = 1 (0x1), region = 78 }

// kernel: _lambda_.33
= control target key start
LH: loop header
LB: loop body
LE: loop exit
PB: predicated region body
PF: predicated region fallthrough
CT: control target
= control target key end

     0   :  { %s969_s15 = smov 0   ;;  %s1309_s0 = inlined_call_operand.vmem [shape: f32[512,12], index: 0, kind: input, shape index: {}]   ;;  %s1310_s1 = inlined_call_operand.vmem [shape: f32[512,8], index: 1, kind: input, shape index: {}]   ;;  %s1311_s2 = inlined_call_operand.vmem [shape: bf16[12,8], index: 2, kind: input, shape index: {}]   ;;  %s1312_s3 = inlined_call_operand.vmem [shape: f32[512,8], index: 3, kind: output, shape index: {0}]   ;;  %s1313_s4 = inlined_call_operand.vmem [shape: f32[16,8], index: 4, kind: output, shape index: {1}]  }
   0x1 LB: > { %s975_s16 = sadd.s32 4294967295, %s942_s15   ;;  %p845_p0 = scmp.ge.s32.totalorder %s942_s15, 1  ;;  %s942_s15 = sphi %s969_s15, %s15_s15  }
   0x2   : > { %p177_p1 = scmp.lt.s32.totalorder %s942_s15, 3 }
   0x4   : > { %p178_p2 = pnand %p845_p0, %p177_p1 }
   0x5   : > { %v935_v0 = vld [vmem:[%s1311_s2] sm:$0x3f] (!%p178_p2)   ;;  %vm371_vm0 = vcmask (!%p178_p2), 1045504   ;;  %s846_s19 = sshll.u32 (!%p178_p2), %s975_s16, 5  ;;  %vm322_vm1 = vcmask (!%p178_p2), 97280   ;;  %vm536_vm2 = vcmask (!%p178_p2), 64512  }
   0x6   : > { %181 = sbr.rel (%p178_p2) target bundleno = 315 (0x13b), region = 32  ;;  %925 = vmatprep.subr.msk.bf16.mxu0 (!%p178_p2), %vm371_vm0, %v935_v0  ;;  %v373_v1 = vsel (!%p178_p2), %vm371_vm0, %v935_v0, 0  ;;  %p213_p3 = scmp.lt.s32.totalorder (!%p178_p2), %s846_s19, 63  ;;  %926 = vmatprep.subr.msk.bf16.mxu1 (!%p178_p2), %vm371_vm0, %v935_v0  ;;  %vm638_vm3 = vcmask (!%p178_p2), 57344  }
   0x7   : > { %890 = vmatpush3.bf16.msra.mxu0 (!%p178_p2), %v373_v1  ;;  %924 = vmatpush3.bf16.msra.mxu1 (!%p178_p2), %v373_v1  ;;  %p230_p4 = scmp.lt.s32.totalorder (!%p178_p2), %s975_s16, 1 }
   0xd   : > { %s1315_s19 = smov (!%p213_p3, %s846_s19), 63  ;;  %s1317_s16 = smov (!%p230_p4, %s975_s16), 1 }
   0xe   : > { %s983_s20 = sshll.u32 %s1315_s19, 3  ;;  %s852_s30 = sshll.u32 %s1317_s16, 3 }
   0xf   : > { %s989_s23 = scalar_lea.vmem %s1309_s0, %s983_s20  ;;  %s1043_s26 = scalar_lea.vmem %s1310_s1, %s983_s20 }
  0x10   : > { %v235_v2 = vld [vmem:[%s989_s23] sm:$0xff]  ;;  %v236_v3 = vld [vmem:[%s989_s23 + $0x8] sm:$0xff]  ;;  %v237_v4 = vld [vmem:[%s989_s23 + $0x10] sm:$0xff]  ;;  %s1051_s29 = scalar_lea.vmem %s1312_s3, %s983_s20  ;;  %s233_s7 = scalar_lea.vmem %s1313_s4, %s852_s30 }
  0x11   : > { %v267_v5 = vpack.c.bf16 %v236_v3, %v235_v2  ;;  %v238_v6 = vld [vmem:[%s989_s23 + $0x18] sm:$0xff]  ;;  %v239_v7 = vld [vmem:[%s989_s23 + $0x20] sm:$0xff]  ;;  %v240_v8 = vld [vmem:[%s989_s23 + $0x28] sm:$0xff] }
  0x12   : > { %v268_v9 = vpack.c.bf16 %v238_v6, %v237_v4  ;;  %v269_v10 = vpack.c.bf16 %v240_v8, %v239_v7  ;;  %v241_v11 = vld [vmem:[%s989_s23 + $0x30] sm:$0xff]  ;;  %v242_v12 = vld [vmem:[%s989_s23 + $0x38] sm:$0xff]  ;;  %v243_v13 = vld [vmem:[%s989_s23 + $0x40] sm:$0xff] }
  0x13   : > { %891 = vmatprep.mubr.msk.bf16.mxu0 %vm322_vm1, %v267_v5  ;;  %v244_v14 = vld [vmem:[%s989_s23 + $0x48] sm:$0xff]  ;;  %v251_v15 = vld [vmem:[%s989_s23 + $0x80] sm:$0xff]  ;;  %v253_v18 = vld [vmem:[%s989_s23 + $0x90] sm:$0xff]  ;;  %v270_v23 = vpack.c.bf16 %v242_v12, %v241_v11 }
  0x14   : > { %892 = vmatmul.mubr.msk.bf16.vlgmr.msra.gmra.mrb[0].mxu0 %vm322_vm1, %v268_v9  ;;  %v252_v16 = vld [vmem:[%s989_s23 + $0x88] sm:$0xff]  ;;  %v254_v19 = vld [vmem:[%s989_s23 + $0x98] sm:$0xff]  ;;  %v255_v20 = vld [vmem:[%s989_s23 + $0xa0] sm:$0xff]  ;;  %v271_v25 = vpack.c.bf16 %v244_v14, %v243_v13 }
  0x15   : > { %895 = vmatprep.mubr.msk.bf16.mxu0 %vm322_vm1, %v269_v10  ;;  %v275_v17 = vpack.c.bf16 %v252_v16, %v251_v15  ;;  %v276_v21 = vpack.c.bf16 %v254_v19, %v253_v18  ;;  %v256_v22 = vld [vmem:[%s989_s23 + $0xa8] sm:$0xff]  ;;  %v257_v26 = vld [vmem:[%s989_s23 + $0xb0] sm:$0xff]  ;;  %v258_v27 = vld [vmem:[%s989_s23 + $0xb8] sm:$0xff] }
  0x16   : > { %v277_v24 = vpack.c.bf16 %v256_v22, %v255_v20  ;;  %v259_v28 = vld [vmem:[%s989_s23 + $0xc0] sm:$0xff]  ;;  %v260_v29 = vld [vmem:[%s989_s23 + $0xc8] sm:$0xff]  ;;  %v245_v30 = vld [vmem:[%s989_s23 + $0x50] sm:$0xff]  ;;  %v278_v32 = vpack.c.bf16 %v258_v27, %v257_v26 }
  0x17   : > { %907 = vmatprep.mubr.msk.bf16.mxu1 %vm322_vm1, %v275_v17  ;;  %v246_v31 = vld [vmem:[%s989_s23 + $0x58] sm:$0xff]  ;;  %v247_v33 = vld [vmem:[%s989_s23 + $0x60] sm:$0xff]  ;;  %v248_v34 = vld [vmem:[%s989_s23 + $0x68] sm:$0xff]  ;;  %v279_v35 = vpack.c.bf16 %v260_v29, %v259_v28 }
  0x18   : > { %908 = vmatmul.mubr.msk.bf16.vlgmr.msra.gmra.mrb[0].mxu1 %vm322_vm1, %v276_v21  ;;  %v272_v36 = vpack.c.bf16 %v246_v31, %v245_v30  ;;  %v273_v37 = vpack.c.bf16 %v248_v34, %v247_v33  ;;  %v261_v38 = vld [vmem:[%s989_s23 + $0xd0] sm:$0xff]  ;;  %v262_v39 = vld [vmem:[%s989_s23 + $0xd8] sm:$0xff]  ;;  %v263_v40 = vld [vmem:[%s989_s23 + $0xe0] sm:$0xff] }
  0x19   : > { %911 = vmatprep.mubr.msk.bf16.mxu1 %vm322_vm1, %v277_v24  ;;  %v264_v41 = vld [vmem:[%s989_s23 + $0xe8] sm:$0xff]  ;;  %v249_v42 = vld [vmem:[%s989_s23 + $0x70] sm:$0xff]  ;;  %v250_v43 = vld [vmem:[%s989_s23 + $0x78] sm:$0xff]  ;;  %v280_v44 = vpack.c.bf16 %v262_v39, %v261_v38 }
  0x1a   : > { %v281_v45 = vpack.c.bf16 %v264_v41, %v263_v40  ;;  %v274_v46 = vpack.c.bf16 %v250_v43, %v249_v42  ;;  %v265_v47 = vld [vmem:[%s989_s23 + $0xf0] sm:$0xff]  ;;  %v266_v48 = vld [vmem:[%s989_s23 + $0xf8] sm:$0xff]  ;;  %v285_v51 = vld [vmem:[%s1043_s26] sm:$0xff] }
  0x1b   : > { %v282_v49 = vpack.c.bf16 %v266_v48, %v265_v47  ;;  %v287_v50 = vld [vmem:[%s1043_s26 + $0x10] sm:$0xff]  ;;  %v288_v53 = vld [vmem:[%s1043_s26 + $0x18] sm:$0xff]  ;;  %v286_v56 = vld [vmem:[%s1043_s26 + $0x8] sm:$0xff] }
  0x1c   : > { %896 = vmatmul.mubr.msk.bf16.gmra.mrb[4].mxu0 %vm322_vm1, %v270_v23  ;;  %v303_v61 = vld [vmem:[%s1043_s26 + $0x90] sm:$0xff]  ;;  %v301_v0 = vld [vmem:[%s1043_s26 + $0x80] sm:$0xff]  ;;  %v304_v3 = vld [vmem:[%s1043_s26 + $0x98] sm:$0xff] }
  0x1d   : > { %899 = vmatprep.mubr.msk.bf16.mxu0 %vm322_vm1, %v271_v25  ;;  %v291_v7 = vld [vmem:[%s1043_s26 + $0x30] sm:$0xff]  ;;  %v289_v12 = vld [vmem:[%s1043_s26 + $0x20] sm:$0xff]  ;;  %v292_v25 = vld [vmem:[%s1043_s26 + $0x38] sm:$0xff] }
  0x1e   : > { %v290_v26 = vld [vmem:[%s1043_s26 + $0x28] sm:$0xff]  ;;  %v307_v42 = vld [vmem:[%s1043_s26 + $0xb0] sm:$0xff] }
  0x1f   : > { %v302_v41 = vld [vmem:[%s1043_s26 + $0x88] sm:$0xff]  ;;  %v295_v47 = vld [vmem:[%s1043_s26 + $0x50] sm:$0xff] }
  0x20   : > { %912 = vmatmul.mubr.msk.bf16.gmra.mrb[4].mxu1 %vm322_vm1, %v278_v32 }
  0x21   : > { %915 = vmatprep.mubr.msk.bf16.mxu1 %vm322_vm1, %v279_v35 }
  0x24   : > { %900 = vmatmul.mubr.msk.bf16.gmra.mrb[8].mxu0 %vm322_vm1, %v272_v36 }
  0x25   : > { %903 = vmatprep.mubr.msk.bf16.mxu0 %vm322_vm1, %v273_v37 }
  0x28   : > { %916 = vmatmul.mubr.msk.bf16.gmra.mrb[8].mxu1 %vm322_vm1, %v280_v44  ;;  %v305_v44 = vld [vmem:[%s1043_s26 + $0xa0] sm:$0xff] }
  0x29   : > { %919 = vmatprep.mubr.msk.bf16.mxu1 %vm322_vm1, %v281_v45 }
  0x2c   : > { %904 = vmatmul.mubr.msk.bf16.gmra.mrb[12].mxu0 %vm322_vm1, %v274_v46 }
  0x30   : > { %920 = vmatmul.mubr.msk.bf16.gmra.mrb[12].mxu1 %vm322_vm1, %v282_v49 }
  0xe7   : > { %v893_v52 = vpop.f32.mrb[0].mxu0 }
  0xe8   : > { %v418_v54 = vadd.f32 %v893_v52, %v287_v50  ;;  %v409_v55 = vpop.f32.mrb[1].mxu0 }
  0xe9   : > { %v410_v57 = vadd.f32 %v409_v55, %v285_v51  ;;  %v894_v58 = vpop.f32.mrb[2].mxu0 }
  0xea   : > { %539 = vst.msk [vmem:[%s1051_s29 + $0x10] sm:$0xff] %vm536_vm2, %v418_v54  ;;  %v421_v59 = vadd.f32 %v894_v58, %v288_v53  ;;  %v412_v60 = vpop.f32.mrb[3].mxu0  ;;  %v642_v1 = vmul.f32 %v418_v54, %v418_v54  ;;  %v572_v15 = vsel %vm536_vm2, %v418_v54, 0.0  ;;  %v293_v53 = vld [vmem:[%s1043_s26 + $0x40] sm:$0xff] }
  0xeb   : > { %537 = vst.msk [vmem:[%s1051_s29] sm:$0xff] %vm536_vm2, %v410_v57  ;;  %v640_v62 = vmul.f32 %v410_v57, %v410_v57  ;;  %v413_v63 = vadd.f32 %v412_v60, %v286_v56  ;;  %v909_v2 = vpop.f32.mrb[0].mxu1  ;;  %v569_v4 = vsel %vm536_vm2, %v410_v57, 0.0  ;;  %v296_v57 = vld [vmem:[%s1043_s26 + $0x58] sm:$0xff] }
  0xec   : > { %540 = vst.msk [vmem:[%s1051_s29 + $0x18] sm:$0xff] %vm536_vm2, %v421_v59  ;;  %v1069_v8 = vadd.f32 %v909_v2, %v303_v61  ;;  %v473_v9 = vpop.f32.mrb[1].mxu1  ;;  %v643_v10 = vmul.f32 %v421_v59, %v421_v59  ;;  %v675_v27 = vsel %vm536_vm2, %v642_v1, 0.0  ;;  %v574_v28 = vsel %vm536_vm2, %v421_v59, 0.0 }
  0xed   : > { %538 = vst.msk [vmem:[%s1051_s29 + $0x8] sm:$0xff] %vm536_vm2, %v413_v63  ;;  %v570_v5 = vsel %vm536_vm2, %v413_v63, 0.0  ;;  %v641_v6 = vmul.f32 %v413_v63, %v413_v63  ;;  %v1072_v13 = vadd.f32 %v473_v9, %v301_v0  ;;  %v910_v14 = vpop.f32.mrb[2].mxu1  ;;  %v672_v16 = vsel %vm536_vm2, %v640_v62, 0.0 }
  0xee   : > { %v571_v11 = vadd.f32 %v570_v5, %v569_v4  ;;  %555 = vst.msk [vmem:[%s1051_s29 + $0x90] sm:$0xff] %vm536_vm2, %v1069_v8  ;;  %v1080_v19 = vadd.f32 %v910_v14, %v304_v3  ;;  %v476_v20 = vpop.f32.mrb[3].mxu1  ;;  %v677_v31 = vsel %vm536_vm2, %v643_v10, 0.0  ;;  %v294_v3 = vld [vmem:[%s1043_s26 + $0x48] sm:$0xff] }
  0xef   : > { %v673_v17 = vsel %vm536_vm2, %v641_v6, 0.0  ;;  %v897_v18 = vpop.f32.mrb[4].mxu0  ;;  %553 = vst.msk [vmem:[%s1051_s29 + $0x80] sm:$0xff] %vm536_vm2, %v1072_v13  ;;  %v1111_v58 = vadd.f32 %v476_v20, %v302_v41 }
  0xf0   : > { %v573_v21 = vadd.f32 %v572_v15, %v571_v11  ;;  %v674_v22 = vadd.f32 %v673_v17, %v672_v16  ;;  %v434_v23 = vadd.f32 %v897_v18, %v291_v7  ;;  %v425_v24 = vpop.f32.mrb[5].mxu0  ;;  %556 = vst.msk [vmem:[%s1051_s29 + $0x98] sm:$0xff] %vm536_vm2, %v1080_v19 }
  0xf1   : > { %v426_v29 = vadd.f32 %v425_v24, %v289_v12  ;;  %v898_v30 = vpop.f32.mrb[6].mxu0  ;;  %554 = vst.msk [vmem:[%s1051_s29 + $0x88] sm:$0xff] %vm536_vm2, %v1111_v58 }
  0xf2   : > { %v676_v32 = vadd.f32 %v675_v27, %v674_v22  ;;  %543 = vst.msk [vmem:[%s1051_s29 + $0x30] sm:$0xff] %vm536_vm2, %v434_v23  ;;  %v575_v33 = vadd.f32 %v574_v28, %v573_v21  ;;  %v428_v34 = vpop.f32.mrb[7].mxu0  ;;  %v437_v37 = vadd.f32 %v898_v30, %v292_v25  ;;  %v646_v49 = vmul.f32 %v434_v23, %v434_v23  ;;  %v308_v27 = vld [vmem:[%s1043_s26 + $0xb8] sm:$0xff] }
  0xf3   : > { %541 = vst.msk [vmem:[%s1051_s29 + $0x20] sm:$0xff] %vm536_vm2, %v426_v29  ;;  %v576_v35 = vsel %vm536_vm2, %v426_v29, 0.0  ;;  %v644_v36 = vmul.f32 %v426_v29, %v426_v29  ;;  %v429_v38 = vadd.f32 %v428_v34, %v290_v26  ;;  %v913_v43 = vpop.f32.mrb[4].mxu1  ;;  %v580_v55 = vsel %vm536_vm2, %v434_v23, 0.0  ;;  %v299_v26 = vld [vmem:[%s1043_s26 + $0x70] sm:$0xff] }
  0xf4   : > { %v577_v39 = vadd.f32 %v576_v35, %v575_v33  ;;  %v678_v40 = vadd.f32 %v677_v31, %v676_v32  ;;  %544 = vst.msk [vmem:[%s1051_s29 + $0x38] sm:$0xff] %vm536_vm2, %v437_v37  ;;  %v489_v48 = vpop.f32.mrb[5].mxu1  ;;  %v1113_v59 = vadd.f32 %v913_v43, %v307_v42  ;;  %v647_v62 = vmul.f32 %v437_v37, %v437_v37  ;;  %v297_v31 = vld [vmem:[%s1043_s26 + $0x60] sm:$0xff]  ;;  %v306_v32 = vld [vmem:[%s1043_s26 + $0xa8] sm:$0xff] }
  0xf5   : > { %v679_v45 = vsel %vm536_vm2, %v644_v36, 0.0  ;;  %542 = vst.msk [vmem:[%s1051_s29 + $0x28] sm:$0xff] %vm536_vm2, %v429_v38  ;;  %v578_v46 = vsel %vm536_vm2, %v429_v38, 0.0  ;;  %v645_v52 = vmul.f32 %v429_v38, %v429_v38  ;;  %v914_v54 = vpop.f32.mrb[6].mxu1  ;;  %v1115_v60 = vadd.f32 %v489_v48, %v305_v44  ;;  %v300_v38 = vld [vmem:[%s1043_s26 + $0x78] sm:$0xff]  ;;  %v298_v44 = vld [vmem:[%s1043_s26 + $0x68] sm:$0xff] }
  0xf6   : > { %v680_v50 = vadd.f32 %v679_v45, %v678_v40  ;;  %v579_v51 = vadd.f32 %v578_v46, %v577_v39  ;;  %v492_v61 = vpop.f32.mrb[7].mxu1  ;;  %v582_v4 = vsel %vm536_vm2, %v437_v37, 0.0  ;;  %559 = vst.msk [vmem:[%s1051_s29 + $0xb0] sm:$0xff] %vm536_vm2, %v1113_v59  ;;  %v683_v9 = vsel %vm536_vm2, %v646_v49, 0.0 }
  0xf7   : > { %v901_v56 = vpop.f32.mrb[8].mxu0  ;;  %v681_v0 = vsel %vm536_vm2, %v645_v52, 0.0  ;;  %557 = vst.msk [vmem:[%s1051_s29 + $0xa0] sm:$0xff] %vm536_vm2, %v1115_v60  ;;  %v685_v18 = vsel %vm536_vm2, %v647_v62, 0.0  ;;  %v1152_v45 = vadd.f32 %v914_v54, %v308_v27 }
  0xf8   : > { %v581_v63 = vadd.f32 %v580_v55, %v579_v51  ;;  %v450_v1 = vadd.f32 %v901_v56, %v295_v47  ;;  %v441_v2 = vpop.f32.mrb[9].mxu0  ;;  %v682_v5 = vadd.f32 %v681_v0, %v680_v50  ;;  %v1155_v50 = vadd.f32 %v492_v61, %v306_v32 }
  0xf9   : > { %v442_v6 = vadd.f32 %v441_v2, %v293_v53  ;;  %v902_v7 = vpop.f32.mrb[10].mxu0  ;;  %560 = vst.msk [vmem:[%s1051_s29 + $0xb8] sm:$0xff] %vm536_vm2, %v1152_v45 }
  0xfa   : > { %547 = vst.msk [vmem:[%s1051_s29 + $0x50] sm:$0xff] %vm536_vm2, %v450_v1  ;;  %v583_v10 = vadd.f32 %v582_v4, %v581_v63  ;;  %v453_v11 = vadd.f32 %v902_v7, %v296_v57  ;;  %v444_v12 = vpop.f32.mrb[11].mxu0  ;;  %v684_v14 = vadd.f32 %v683_v9, %v682_v5  ;;  %v650_v29 = vmul.f32 %v450_v1, %v450_v1  ;;  %v311_v5 = vld [vmem:[%s1043_s26 + $0xd0] sm:$0xff] }
  0xfb   : > { %545 = vst.msk [vmem:[%s1051_s29 + $0x40] sm:$0xff] %vm536_vm2, %v442_v6  ;;  %v584_v15 = vsel %vm536_vm2, %v442_v6, 0.0  ;;  %v648_v16 = vmul.f32 %v442_v6, %v442_v6  ;;  %v445_v17 = vadd.f32 %v444_v12, %v294_v3  ;;  %v1138_v21 = vpop.f32.mrb[8].mxu1  ;;  %v588_v34 = vsel %vm536_vm2, %v450_v1, 0.0  ;;  %558 = vst.msk [vmem:[%s1051_s29 + $0xa8] sm:$0xff] %vm536_vm2, %v1155_v50  ;;  %v309_v6 = vld [vmem:[%s1043_s26 + $0xc0] sm:$0xff] }
  0xfc   : > { %v585_v20 = vadd.f32 %v584_v15, %v583_v10  ;;  %548 = vst.msk [vmem:[%s1051_s29 + $0x58] sm:$0xff] %vm536_vm2, %v453_v11  ;;  %v686_v22 = vadd.f32 %v685_v18, %v684_v14  ;;  %v505_v28 = vpop.f32.mrb[9].mxu1  ;;  %v651_v40 = vmul.f32 %v453_v11, %v453_v11  ;;  %v590_v46 = vsel %vm536_vm2, %v453_v11, 0.0  ;;  %v312_v12 = vld [vmem:[%s1043_s26 + $0xd8] sm:$0xff]  ;;  %v310_v14 = vld [vmem:[%s1043_s26 + $0xc8] sm:$0xff] }
  0xfd   : > { %v687_v23 = vsel %vm536_vm2, %v648_v16, 0.0  ;;  %546 = vst.msk [vmem:[%s1051_s29 + $0x48] sm:$0xff] %vm536_vm2, %v445_v17  ;;  %v586_v24 = vsel %vm536_vm2, %v445_v17, 0.0  ;;  %v649_v25 = vmul.f32 %v445_v17, %v445_v17  ;;  %v918_v33 = vpop.f32.mrb[10].mxu1  ;;  %v691_v51 = vsel %vm536_vm2, %v650_v29, 0.0 }
  0xfe   : > { %v587_v30 = vadd.f32 %v586_v24, %v585_v20  ;;  %v688_v35 = vadd.f32 %v687_v23, %v686_v22  ;;  %v508_v39 = vpop.f32.mrb[11].mxu1  ;;  %v693_v62 = vsel %vm536_vm2, %v651_v40, 0.0  ;;  %v600_v11 = vsel %vm536_vm2, %v1072_v13, 0.0 }
  0xff   : > { %v689_v36 = vsel %vm536_vm2, %v649_v25, 0.0  ;;  %v905_v37 = vpop.f32.mrb[12].mxu0  ;;  %v656_v20 = vmul.f32 %v1072_v13, %v1072_v13  ;;  %v1187_v25 = vadd.f32 %v1138_v21, %v311_v5  ;;  %v315_v21 = vld [vmem:[%s1043_s26 + $0xf0] sm:$0xff] }
 0x100   : > { %v589_v41 = vadd.f32 %v588_v34, %v587_v30  ;;  %v466_v42 = vadd.f32 %v905_v37, %v299_v26  ;;  %v457_v43 = vpop.f32.mrb[13].mxu0  ;;  %v690_v47 = vadd.f32 %v689_v36, %v688_v35  ;;  %v1189_v26 = vadd.f32 %v505_v28, %v309_v6  ;;  %v313_v28 = vld [vmem:[%s1043_s26 + $0xe0] sm:$0xff] }
 0x101   : > { %v458_v48 = vadd.f32 %v457_v43, %v297_v31  ;;  %v906_v49 = vpop.f32.mrb[14].mxu0  ;;  %v1192_v30 = vadd.f32 %v918_v33, %v312_v12  ;;  %v1194_v31 = vadd.f32 %v508_v39, %v310_v14  ;;  %563 = vst.msk [vmem:[%s1051_s29 + $0xd0] sm:$0xff] %vm536_vm2, %v1187_v25  ;;  %v316_v33 = vld [vmem:[%s1043_s26 + $0xf8] sm:$0xff]  ;;  %v703_v37 = vsel %vm536_vm2, %v656_v20, 0.0 }
 0x102   : > { %551 = vst.msk [vmem:[%s1051_s29 + $0x70] sm:$0xff] %vm536_vm2, %v466_v42  ;;  %v591_v52 = vadd.f32 %v590_v46, %v589_v41  ;;  %v469_v53 = vadd.f32 %v906_v49, %v300_v38  ;;  %v460_v55 = vpop.f32.mrb[15].mxu0  ;;  %v692_v54 = vadd.f32 %v691_v51, %v690_v47  ;;  %v654_v9 = vmul.f32 %v466_v42, %v466_v42 }
 0x103   : > { %549 = vst.msk [vmem:[%s1051_s29 + $0x60] sm:$0xff] %vm536_vm2, %v458_v48  ;;  %v592_v56 = vsel %vm536_vm2, %v458_v48, 0.0  ;;  %v652_v57 = vmul.f32 %v458_v48, %v458_v48  ;;  %v461_v61 = vadd.f32 %v460_v55, %v298_v44  ;;  %v921_v0 = vpop.f32.mrb[12].mxu1  ;;  %v596_v16 = vsel %vm536_vm2, %v466_v42, 0.0  ;;  %561 = vst.msk [vmem:[%s1051_s29 + $0xc0] sm:$0xff] %vm536_vm2, %v1189_v26  ;;  %v314_v48 = vld [vmem:[%s1043_s26 + $0xe8] sm:$0xff] }
 0x104   : > { %v593_v63 = vadd.f32 %v592_v56, %v591_v52  ;;  %552 = vst.msk [vmem:[%s1051_s29 + $0x78] sm:$0xff] %vm536_vm2, %v469_v53  ;;  %v694_v1 = vadd.f32 %v693_v62, %v692_v54  ;;  %v521_v7 = vpop.f32.mrb[13].mxu1  ;;  %v655_v23 = vmul.f32 %v469_v53, %v469_v53  ;;  %v598_v27 = vsel %vm536_vm2, %v469_v53, 0.0  ;;  %564 = vst.msk [vmem:[%s1051_s29 + $0xd8] sm:$0xff] %vm536_vm2, %v1192_v30 }
 0x105   : > { %v695_v2 = vsel %vm536_vm2, %v652_v57, 0.0  ;;  %550 = vst.msk [vmem:[%s1051_s29 + $0x68] sm:$0xff] %vm536_vm2, %v461_v61  ;;  %v594_v3 = vsel %vm536_vm2, %v461_v61, 0.0  ;;  %v653_v4 = vmul.f32 %v461_v61, %v461_v61  ;;  %v922_v15 = vpop.f32.mrb[14].mxu1  ;;  %v699_v13 = vsel %vm536_vm2, %v654_v9, 0.0  ;;  %562 = vst.msk [vmem:[%s1051_s29 + $0xc8] sm:$0xff] %vm536_vm2, %v1194_v31 }
 0x106   : > { %v595_v10 = vadd.f32 %v594_v3, %v593_v63  ;;  %v696_v17 = vadd.f32 %v695_v2, %v694_v1  ;;  %v524_v22 = vpop.f32.mrb[15].mxu1  ;;  %v701_v35 = vsel %vm536_vm2, %v655_v23, 0.0  ;;  %v657_v38 = vmul.f32 %v1111_v58, %v1111_v58 }
 0x107   : > { %v697_v18 = vsel %vm536_vm2, %v653_v4, 0.0  ;;  %v604_v39 = vsel %vm536_vm2, %v1069_v8, 0.0  ;;  %v602_v41 = vsel %vm536_vm2, %v1111_v58, 0.0  ;;  %v1220_v42 = vadd.f32 %v921_v0, %v315_v21 }
 0x108   : > { %v597_v24 = vadd.f32 %v596_v16, %v595_v10  ;;  %v698_v29 = vadd.f32 %v697_v18, %v696_v17  ;;  %v658_v43 = vmul.f32 %v1069_v8, %v1069_v8  ;;  %v522_v46 = vadd.f32 %v521_v7, %v313_v28 }
 0x109   : > { %v1224_v47 = vadd.f32 %v922_v15, %v316_v33  ;;  %v606_v51 = vsel %vm536_vm2, %v1080_v19, 0.0  ;;  %v659_v52 = vmul.f32 %v1080_v19, %v1080_v19  ;;  %567 = vst.msk [vmem:[%s1051_s29 + $0xf0] sm:$0xff] %vm536_vm2, %v1220_v42  ;;  %v670_v58 = vmul.f32 %v1220_v42, %v1220_v42 }
 0x10a   : > { %v599_v32 = vadd.f32 %v598_v27, %v597_v24  ;;  %v700_v34 = vadd.f32 %v699_v13, %v698_v29  ;;  %v705_v53 = vsel %vm536_vm2, %v657_v38, 0.0  ;;  %v608_v55 = vsel %vm536_vm2, %v1115_v60, 0.0  ;;  %565 = vst.msk [vmem:[%s1051_s29 + $0xe0] sm:$0xff] %vm536_vm2, %v522_v46 }
 0x10b   : > { %v660_v54 = vmul.f32 %v1115_v60, %v1115_v60  ;;  %568 = vst.msk [vmem:[%s1051_s29 + $0xf8] sm:$0xff] %vm536_vm2, %v1224_v47  ;;  %v1247_v56 = vsel %vm536_vm2, %v670_v58, 0.0  ;;  %v671_v57 = vmul.f32 %v1224_v47, %v1224_v47  ;;  %v525_v61 = vadd.f32 %v524_v22, %v314_v48 }
 0x10c   : > { %v601_v36 = vadd.f32 %v600_v11, %v599_v32  ;;  %v702_v40 = vadd.f32 %v701_v35, %v700_v34  ;;  %v707_v62 = vsel %vm536_vm2, %v658_v43, 0.0  ;;  %v709_v60 = vsel %vm536_vm2, %v659_v52, 0.0 }
 0x10d   : > { %v733_v1 = vsel %vm536_vm2, %v671_v57, 0.0  ;;  %566 = vst.msk [vmem:[%s1051_s29 + $0xe8] sm:$0xff] %vm536_vm2, %v525_v61  ;;  %v711_v3 = vsel %vm536_vm2, %v660_v54, 0.0  ;;  %v661_v4 = vmul.f32 %v1155_v50, %v1155_v50  ;;  %v610_v6 = vsel %vm536_vm2, %v1155_v50, 0.0 }
 0x10e   : > { %v603_v44 = vadd.f32 %v602_v41, %v601_v36  ;;  %v704_v49 = vadd.f32 %v703_v37, %v702_v40  ;;  %v662_v7 = vmul.f32 %v1113_v59, %v1113_v59  ;;  %v612_v10 = vsel %vm536_vm2, %v1113_v59, 0.0 }
 0x10f   : > { %v663_v12 = vmul.f32 %v1152_v45, %v1152_v45  ;;  %v713_v15 = vsel %vm536_vm2, %v661_v4, 0.0  ;;  %v664_v16 = vmul.f32 %v1189_v26, %v1189_v26  ;;  %v614_v50 = vsel %vm536_vm2, %v1152_v45, 0.0 }
 0x110   : > { %v605_v8 = vadd.f32 %v604_v39, %v603_v44  ;;  %v706_v19 = vadd.f32 %v705_v53, %v704_v49  ;;  %v616_v18 = vsel %vm536_vm2, %v1189_v26, 0.0  ;;  %v715_v20 = vsel %vm536_vm2, %v662_v7, 0.0 }
 0x111   : > { %v717_v23 = vsel %vm536_vm2, %v663_v12, 0.0  ;;  %v719_v27 = vsel %vm536_vm2, %v664_v16, 0.0  ;;  %v665_v29 = vmul.f32 %v1194_v31, %v1194_v31  ;;  %v618_v45 = vsel %vm536_vm2, %v1194_v31, 0.0 }
 0x112   : > { %v607_v63 = vadd.f32 %v606_v51, %v605_v8  ;;  %v708_v0 = vadd.f32 %v707_v62, %v706_v19  ;;  %v666_v32 = vmul.f32 %v1187_v25, %v1187_v25  ;;  %v620_v21 = vsel %vm536_vm2, %v1187_v25, 0.0 }
 0x113   : > { %v667_v28 = vmul.f32 %v1192_v30, %v1192_v30  ;;  %v721_v35 = vsel %vm536_vm2, %v665_v29, 0.0  ;;  %v668_v36 = vmul.f32 %v522_v46, %v522_v46  ;;  %v622_v37 = vsel %vm536_vm2, %v1192_v30, 0.0 }
 0x114   : > { %v609_v2 = vadd.f32 %v608_v55, %v607_v63  ;;  %v710_v5 = vadd.f32 %v709_v60, %v708_v0  ;;  %v624_v31 = vsel %vm536_vm2, %v522_v46, 0.0  ;;  %v723_v39 = vsel %vm536_vm2, %v666_v32, 0.0 }
 0x115   : > { %v725_v25 = vsel %vm536_vm2, %v667_v28, 0.0  ;;  %v727_v44 = vsel %vm536_vm2, %v668_v36, 0.0  ;;  %v669_v48 = vmul.f32 %v525_v61, %v525_v61  ;;  %v626_v51 = vsel %vm536_vm2, %v525_v61, 0.0 }
 0x116   : > { %v611_v9 = vadd.f32 %v610_v6, %v609_v2  ;;  %v712_v11 = vadd.f32 %v711_v3, %v710_v5  ;;  %v628_v30 = vsel %vm536_vm2, %v1220_v42, 0.0  ;;  %v630_v53 = vsel %vm536_vm2, %v1224_v47, 0.0 }
 0x117   : > { %v729_v8 = vsel %vm536_vm2, %v669_v48, 0.0 }
 0x118   : > { %v613_v14 = vadd.f32 %v612_v10, %v611_v9  ;;  %v714_v17 = vadd.f32 %v713_v15, %v712_v11 }
 0x11a   : > { %v615_v59 = vadd.f32 %v614_v50, %v613_v14  ;;  %v716_v22 = vadd.f32 %v715_v20, %v714_v17 }
 0x11c   : > { %v617_v24 = vadd.f32 %v616_v18, %v615_v59  ;;  %v718_v13 = vadd.f32 %v717_v23, %v716_v22 }
 0x11e   : > { %v619_v26 = vadd.f32 %v618_v45, %v617_v24  ;;  %v720_v34 = vadd.f32 %v719_v27, %v718_v13 }
 0x120   : > { %v621_v33 = vadd.f32 %v620_v21, %v619_v26  ;;  %v722_v38 = vadd.f32 %v721_v35, %v720_v34 }
 0x122   : > { %v623_v40 = vadd.f32 %v622_v37, %v621_v33  ;;  %v724_v41 = vadd.f32 %v723_v39, %v722_v38 }
 0x124   : > { %v625_v43 = vadd.f32 %v624_v31, %v623_v40  ;;  %v726_v49 = vadd.f32 %v725_v25, %v724_v41 }
 0x126   : > { %v627_v52 = vadd.f32 %v626_v51, %v625_v43  ;;  %v728_v46 = vadd.f32 %v727_v44, %v726_v49 }
 0x128   : > { %v629_v58 = vadd.f32 %v628_v30, %v627_v52  ;;  %v730_v55 = vadd.f32 %v729_v8, %v728_v46 }
 0x12a   : > { %v631_v54 = vadd.f32 %v630_v53, %v629_v58  ;;  %v732_v19 = vadd.f32 %v1247_v56, %v730_v55 }
 0x12c   : > { %v632_v57 = vrot.slane %v631_v54, 4  ;;  %v734_v62 = vadd.f32 %v733_v1, %v732_v19 }
 0x12e   : > { %v633_v61 = vadd.f32 %v632_v57, %v631_v54  ;;  %v735_v63 = vrot.slane %v734_v62, 4 }
 0x130   : > { %v634_v0 = vrot.slane %v633_v61, 2  ;;  %v736_v60 = vadd.f32 %v735_v63, %v734_v62 }
 0x132   : > { %v635_v42 = vadd.f32 %v634_v0, %v633_v61  ;;  %v737_v2 = vrot.slane %v736_v60, 2 }
 0x134   : > { %v636_v3 = vrot.slane %v635_v42, 1  ;;  %v738_v47 = vadd.f32 %v737_v2, %v736_v60 }
 0x136   : > { %v637_v4 = vadd.f32 %v636_v3, %v635_v42  ;;  %v739_v5 = vrot.slane %v738_v47, 1 }
 0x138   : > { %639 = vst.msk [vmem:[%s233_s7] sm:$0x1] %vm638_vm3, %v637_v4  ;;  %v740_v56 = vadd.f32 %v739_v5, %v738_v47 }
 0x13a   : > { %741 = vst.msk [vmem:[%s233_s7 + $0x1] sm:$0x1] %vm638_vm3, %v740_v56 }
 0x13b PF: > { %s15_s15 = sadd.s32 1, %s942_s15  }
 0x13c   : > { %p12_p5 = scmp.ge.s32.totalorder %s15_s15, 4  }
 0x13e   :  { %14 = sbr.rel (!%p12_p5) target bundleno = 1 (0x1), region = 77 }

// kernel: _lambda_.26
= control target key start
LH: loop header
LB: loop body
LE: loop exit
PB: predicated region body
PF: predicated region fallthrough
CT: control target
= control target key end

     0   :  { %s909_s12 = smov 0   ;;  %s1232_s0 = inlined_call_operand.vmem [shape: f32[512,64], index: 0, kind: input, shape index: {}]   ;;  %s1233_s1 = inlined_call_operand.vmem [shape: bf16[64,16], index: 1, kind: input, shape index: {}]   ;;  %s1234_s2 = inlined_call_operand.vmem [shape: f32[512,16], index: 2, kind: output, shape index: {0}]   ;;  %s1235_s3 = inlined_call_operand.vmem [shape: f32[16,16], index: 3, kind: output, shape index: {1}]  }
   0x1 LB: > { %s915_s13 = sadd.s32 4294967295, %s887_s12   ;;  %p773_p0 = scmp.ge.s32.totalorder %s887_s12, 1  ;;  %s887_s12 = sphi %s909_s12, %s14_s12  }
   0x2   : > { %p141_p1 = scmp.lt.s32.totalorder %s887_s12, 3 }
   0x4   : > { %p142_p2 = pnand %p773_p0, %p141_p1 }
   0x5   : > { %v877_v0 = vld [vmem:[%s1233_s1] sm:$0xff] (!%p142_p2)   ;;  %s774_s16 = sshll.u32 (!%p142_p2), %s915_s13, 5  ;;  %v878_v1 = vld [vmem:[%s1233_s1 + $0x8] sm:$0xff] (!%p142_p2)   ;;  %v879_v2 = vld [vmem:[%s1233_s1 + $0x10] sm:$0xff] (!%p142_p2)   ;;  %vm266_vm0 = vcmask (!%p142_p2), 523264   ;;  %vm476_vm1 = vcmask (!%p142_p2), 130048  }
   0x6   : > { %145 = sbr.rel (%p142_p2) target bundleno = 315 (0x13b), region = 28  ;;  %p170_p3 = scmp.lt.s32.totalorder (!%p142_p2), %s774_s16, 63  ;;  %821 = vmatprep.subr.bf16.mxu0 (!%p142_p2), %v877_v0  ;;  %861 = vmatprep.subr.bf16.mxu1 (!%p142_p2), %v877_v0  ;;  %v880_v5 = vld [vmem:[%s1233_s1 + $0x18] sm:$0xff] (!%p142_p2)   ;;  %vm578_vm2 = vcmask (!%p142_p2), 122880  }
   0x7   : > { %822 = vmatpush3.bf16.msra.mxu0 (!%p142_p2), %v877_v0  ;;  %865 = vmatpush3.bf16.msra.mxu1 (!%p142_p2), %v877_v0  ;;  %p181_p4 = scmp.lt.s32.totalorder (!%p142_p2), %s915_s13, 1 }
   0x8   : > { %823 = vmatprep.subr.bf16.mxu0 (!%p142_p2), %v878_v1  ;;  %862 = vmatprep.subr.bf16.mxu1 (!%p142_p2), %v878_v1 }
   0xb   : > { %824 = vmatpush3.bf16.msra.mxu0 (!%p142_p2), %v878_v1  ;;  %866 = vmatpush3.bf16.msra.mxu1 (!%p142_p2), %v878_v1 }
   0xc   : > { %825 = vmatprep.subr.bf16.mxu0 (!%p142_p2), %v879_v2  ;;  %863 = vmatprep.subr.bf16.mxu1 (!%p142_p2), %v879_v2 }
   0xd   : > { %s1237_s16 = smov (!%p170_p3, %s774_s16), 63  ;;  %s1239_s13 = smov (!%p181_p4, %s915_s13), 1 }
   0xe   : > { %s775_s21 = sshll.u32 %s1237_s16, 3  ;;  %s778_s30 = sshll.u32 %s1239_s13, 3 }
   0xf   : > { %s937_s24 = scalar_lea.vmem %s1232_s0, %s775_s21  ;;  %826 = vmatpush3.bf16.msra.mxu0 %v879_v2  ;;  %867 = vmatpush3.bf16.msra.mxu1 %v879_v2  ;;  %s995_s29 = scalar_lea.vmem %s1234_s2, %s775_s21 }
  0x10   : > { %v186_v3 = vld [vmem:[%s937_s24] sm:$0xff]  ;;  %v187_v4 = vld [vmem:[%s937_s24 + $0x8] sm:$0xff]  ;;  %v188_v7 = vld [vmem:[%s937_s24 + $0x10] sm:$0xff]  ;;  %827 = vmatprep.subr.bf16.mxu0 %v880_v5  ;;  %864 = vmatprep.subr.bf16.mxu1 %v880_v5  ;;  %s184_s6 = scalar_lea.vmem %s1235_s3, %s778_s30 }
  0x11   : > { %v218_v6 = vpack.c.bf16 %v187_v4, %v186_v3  ;;  %v189_v8 = vld [vmem:[%s937_s24 + $0x18] sm:$0xff]  ;;  %v190_v9 = vld [vmem:[%s937_s24 + $0x20] sm:$0xff]  ;;  %v191_v10 = vld [vmem:[%s937_s24 + $0x28] sm:$0xff] }
  0x12   : > { %v202_v11 = vld [vmem:[%s937_s24 + $0x80] sm:$0xff]  ;;  %v203_v12 = vld [vmem:[%s937_s24 + $0x88] sm:$0xff]  ;;  %v204_v14 = vld [vmem:[%s937_s24 + $0x90] sm:$0xff]  ;;  %v219_v17 = vpack.c.bf16 %v189_v8, %v188_v7  ;;  %v220_v20 = vpack.c.bf16 %v191_v10, %v190_v9 }
  0x13   : > { %829 = vmatprep.mubr.msk.bf16.mxu0 %vm266_vm0, %v218_v6  ;;  %v226_v13 = vpack.c.bf16 %v203_v12, %v202_v11  ;;  %v205_v15 = vld [vmem:[%s937_s24 + $0x98] sm:$0xff]  ;;  %v206_v16 = vld [vmem:[%s937_s24 + $0xa0] sm:$0xff]  ;;  %v207_v19 = vld [vmem:[%s937_s24 + $0xa8] sm:$0xff]  ;;  %828 = vmatpush3.bf16.msra.mxu0 %v880_v5 }
  0x14   : > { %v227_v18 = vpack.c.bf16 %v205_v15, %v204_v14  ;;  %868 = vmatpush3.bf16.msra.mxu1 %v880_v5  ;;  %v228_v21 = vpack.c.bf16 %v207_v19, %v206_v16  ;;  %v192_v22 = vld [vmem:[%s937_s24 + $0x30] sm:$0xff]  ;;  %v193_v23 = vld [vmem:[%s937_s24 + $0x38] sm:$0xff]  ;;  %v194_v24 = vld [vmem:[%s937_s24 + $0x40] sm:$0xff] }
  0x15   : > { %845 = vmatprep.mubr.msk.bf16.mxu1 %vm266_vm0, %v226_v13  ;;  %v208_v25 = vld [vmem:[%s937_s24 + $0xb0] sm:$0xff]  ;;  %v209_v26 = vld [vmem:[%s937_s24 + $0xb8] sm:$0xff]  ;;  %v195_v27 = vld [vmem:[%s937_s24 + $0x48] sm:$0xff]  ;;  %v221_v30 = vpack.c.bf16 %v193_v23, %v192_v22 }
  0x16   : > { %830 = vmatmul.mubr.msk.bf16.vlgmr.msra.gmra.mrb[0].mxu0 %vm266_vm0, %v219_v17  ;;  %v210_v28 = vld [vmem:[%s937_s24 + $0xc0] sm:$0xff]  ;;  %v211_v29 = vld [vmem:[%s937_s24 + $0xc8] sm:$0xff]  ;;  %v229_v31 = vpack.c.bf16 %v209_v26, %v208_v25  ;;  %v222_v32 = vpack.c.bf16 %v195_v27, %v194_v24  ;;  %v196_v34 = vld [vmem:[%s937_s24 + $0x50] sm:$0xff] }
  0x17   : > { %846 = vmatmul.mubr.msk.bf16.vlgmr.msra.gmra.mrb[0].mxu1 %vm266_vm0, %v227_v18  ;;  %833 = vmatprep.mubr.msk.bf16.mxu0 %vm266_vm0, %v220_v20  ;;  %v230_v33 = vpack.c.bf16 %v211_v29, %v210_v28  ;;  %v197_v35 = vld [vmem:[%s937_s24 + $0x58] sm:$0xff]  ;;  %v198_v36 = vld [vmem:[%s937_s24 + $0x60] sm:$0xff]  ;;  %v212_v37 = vld [vmem:[%s937_s24 + $0xd0] sm:$0xff] }
  0x18   : > { %849 = vmatprep.mubr.msk.bf16.mxu1 %vm266_vm0, %v228_v21  ;;  %v213_v38 = vld [vmem:[%s937_s24 + $0xd8] sm:$0xff]  ;;  %v199_v39 = vld [vmem:[%s937_s24 + $0x68] sm:$0xff]  ;;  %v214_v40 = vld [vmem:[%s937_s24 + $0xe0] sm:$0xff]  ;;  %v223_v42 = vpack.c.bf16 %v197_v35, %v196_v34 }
  0x19   : > { %v215_v41 = vld [vmem:[%s937_s24 + $0xe8] sm:$0xff]  ;;  %v231_v43 = vpack.c.bf16 %v213_v38, %v212_v37  ;;  %v224_v44 = vpack.c.bf16 %v199_v39, %v198_v36  ;;  %v200_v46 = vld [vmem:[%s937_s24 + $0x70] sm:$0xff]  ;;  %v201_v47 = vld [vmem:[%s937_s24 + $0x78] sm:$0xff] }
  0x1a   : > { %v232_v45 = vpack.c.bf16 %v215_v41, %v214_v40  ;;  %v216_v48 = vld [vmem:[%s937_s24 + $0xf0] sm:$0xff]  ;;  %v217_v49 = vld [vmem:[%s937_s24 + $0xf8] sm:$0xff]  ;;  %v225_v50 = vpack.c.bf16 %v201_v47, %v200_v46 }
  0x1b   : > { %v233_v51 = vpack.c.bf16 %v217_v49, %v216_v48 }
  0x1e   : > { %834 = vmatmul.mubr.msk.bf16.gmra.mrb[4].mxu0 %vm266_vm0, %v221_v30 }
  0x1f   : > { %850 = vmatmul.mubr.msk.bf16.gmra.mrb[4].mxu1 %vm266_vm0, %v229_v31  ;;  %837 = vmatprep.mubr.msk.bf16.mxu0 %vm266_vm0, %v222_v32 }
  0x20   : > { %853 = vmatprep.mubr.msk.bf16.mxu1 %vm266_vm0, %v230_v33 }
  0x26   : > { %838 = vmatmul.mubr.msk.bf16.gmra.mrb[8].mxu0 %vm266_vm0, %v223_v42 }
  0x27   : > { %854 = vmatmul.mubr.msk.bf16.gmra.mrb[8].mxu1 %vm266_vm0, %v231_v43  ;;  %841 = vmatprep.mubr.msk.bf16.mxu0 %vm266_vm0, %v224_v44 }
  0x28   : > { %857 = vmatprep.mubr.msk.bf16.mxu1 %vm266_vm0, %v232_v45 }
  0x2e   : > { %842 = vmatmul.mubr.msk.bf16.gmra.mrb[12].mxu0 %vm266_vm0, %v225_v50 }
  0x2f   : > { %858 = vmatmul.mubr.msk.bf16.gmra.mrb[12].mxu1 %vm266_vm0, %v233_v51 }
  0xe9   : > { %v831_v52 = vpop.f32.mrb[0].mxu0 }
  0xea   : > { %v997_v53 = vpop.f32.mrb[0].mxu1  ;;  %479 = vst.msk [vmem:[%s995_s29 + $0x10] sm:$0xff] %vm476_vm1, %v831_v52  ;;  %v349_v54 = vpop.f32.mrb[1].mxu0  ;;  %v582_v61 = vmul.f32 %v831_v52, %v831_v52  ;;  %v512_v2 = vsel %vm476_vm1, %v831_v52, 0.0 }
  0xeb   : > { %495 = vst.msk [vmem:[%s995_s29 + $0x90] sm:$0xff] %vm476_vm1, %v997_v53  ;;  %v1004_v55 = vpop.f32.mrb[1].mxu1  ;;  %477 = vst.msk [vmem:[%s995_s29] sm:$0xff] %vm476_vm1, %v349_v54  ;;  %v580_v56 = vmul.f32 %v349_v54, %v349_v54  ;;  %v832_v57 = vpop.f32.mrb[2].mxu0  ;;  %v509_v62 = vsel %vm476_vm1, %v349_v54, 0.0 }
  0xec   : > { %493 = vst.msk [vmem:[%s995_s29 + $0x80] sm:$0xff] %vm476_vm1, %v1004_v55  ;;  %v1011_v58 = vpop.f32.mrb[2].mxu1  ;;  %480 = vst.msk [vmem:[%s995_s29 + $0x18] sm:$0xff] %vm476_vm1, %v832_v57  ;;  %v352_v59 = vpop.f32.mrb[3].mxu0  ;;  %v583_v4 = vmul.f32 %v832_v57, %v832_v57  ;;  %v615_v8 = vsel %vm476_vm1, %v582_v61, 0.0  ;;  %v514_v9 = vsel %vm476_vm1, %v832_v57, 0.0 }
  0xed   : > { %496 = vst.msk [vmem:[%s995_s29 + $0x98] sm:$0xff] %vm476_vm1, %v1011_v58  ;;  %v1018_v60 = vpop.f32.mrb[3].mxu1  ;;  %478 = vst.msk [vmem:[%s995_s29 + $0x8] sm:$0xff] %vm476_vm1, %v352_v59  ;;  %v510_v63 = vsel %vm476_vm1, %v352_v59, 0.0  ;;  %v581_v0 = vmul.f32 %v352_v59, %v352_v59  ;;  %v612_v3 = vsel %vm476_vm1, %v580_v56, 0.0 }
  0xee   : > { %494 = vst.msk [vmem:[%s995_s29 + $0x88] sm:$0xff] %vm476_vm1, %v1018_v60  ;;  %v511_v1 = vadd.f32 %v510_v63, %v509_v62  ;;  %v617_v16 = vsel %vm476_vm1, %v583_v4, 0.0 }
  0xef   : > { %v613_v5 = vsel %vm476_vm1, %v581_v0, 0.0 }
  0xf0   : > { %v513_v6 = vadd.f32 %v512_v2, %v511_v1  ;;  %v614_v7 = vadd.f32 %v613_v5, %v612_v3 }
  0xf1   : > { %v835_v10 = vpop.f32.mrb[4].mxu0 }
  0xf2   : > { %v1032_v11 = vpop.f32.mrb[4].mxu1  ;;  %v616_v12 = vadd.f32 %v615_v8, %v614_v7  ;;  %483 = vst.msk [vmem:[%s995_s29 + $0x30] sm:$0xff] %vm476_vm1, %v835_v10  ;;  %v365_v13 = vpop.f32.mrb[5].mxu0  ;;  %v515_v14 = vadd.f32 %v514_v9, %v513_v6  ;;  %v586_v25 = vmul.f32 %v835_v10, %v835_v10  ;;  %v520_v31 = vsel %vm476_vm1, %v835_v10, 0.0 }
  0xf3   : > { %499 = vst.msk [vmem:[%s995_s29 + $0xb0] sm:$0xff] %vm476_vm1, %v1032_v11  ;;  %v1039_v15 = vpop.f32.mrb[5].mxu1  ;;  %481 = vst.msk [vmem:[%s995_s29 + $0x20] sm:$0xff] %vm476_vm1, %v365_v13  ;;  %v516_v17 = vsel %vm476_vm1, %v365_v13, 0.0  ;;  %v584_v18 = vmul.f32 %v365_v13, %v365_v13  ;;  %v836_v19 = vpop.f32.mrb[6].mxu0 }
  0xf4   : > { %497 = vst.msk [vmem:[%s995_s29 + $0xa0] sm:$0xff] %vm476_vm1, %v1039_v15  ;;  %v1048_v20 = vpop.f32.mrb[6].mxu1  ;;  %v517_v21 = vadd.f32 %v516_v17, %v515_v14  ;;  %v618_v22 = vadd.f32 %v617_v16, %v616_v12  ;;  %484 = vst.msk [vmem:[%s995_s29 + $0x38] sm:$0xff] %vm476_vm1, %v836_v19  ;;  %v368_v23 = vpop.f32.mrb[7].mxu0  ;;  %v587_v32 = vmul.f32 %v836_v19, %v836_v19  ;;  %v623_v36 = vsel %vm476_vm1, %v586_v25, 0.0 }
  0xf5   : > { %500 = vst.msk [vmem:[%s995_s29 + $0xb8] sm:$0xff] %vm476_vm1, %v1048_v20  ;;  %v1055_v24 = vpop.f32.mrb[7].mxu1  ;;  %v619_v26 = vsel %vm476_vm1, %v584_v18, 0.0  ;;  %482 = vst.msk [vmem:[%s995_s29 + $0x28] sm:$0xff] %vm476_vm1, %v368_v23  ;;  %v518_v27 = vsel %vm476_vm1, %v368_v23, 0.0  ;;  %v585_v28 = vmul.f32 %v368_v23, %v368_v23  ;;  %v522_v37 = vsel %vm476_vm1, %v836_v19, 0.0 }
  0xf6   : > { %498 = vst.msk [vmem:[%s995_s29 + $0xa8] sm:$0xff] %vm476_vm1, %v1055_v24  ;;  %v620_v29 = vadd.f32 %v619_v26, %v618_v22  ;;  %v519_v30 = vadd.f32 %v518_v27, %v517_v21  ;;  %v625_v44 = vsel %vm476_vm1, %v587_v32, 0.0 }
  0xf7   : > { %v621_v33 = vsel %vm476_vm1, %v585_v28, 0.0 }
  0xf8   : > { %v521_v34 = vadd.f32 %v520_v31, %v519_v30  ;;  %v622_v35 = vadd.f32 %v621_v33, %v620_v29 }
  0xf9   : > { %v839_v38 = vpop.f32.mrb[8].mxu0 }
  0xfa   : > { %v1068_v39 = vpop.f32.mrb[8].mxu1  ;;  %v624_v40 = vadd.f32 %v623_v36, %v622_v35  ;;  %487 = vst.msk [vmem:[%s995_s29 + $0x50] sm:$0xff] %vm476_vm1, %v839_v38  ;;  %v381_v41 = vpop.f32.mrb[9].mxu0  ;;  %v523_v42 = vadd.f32 %v522_v37, %v521_v34  ;;  %v590_v54 = vmul.f32 %v839_v38, %v839_v38  ;;  %v528_v63 = vsel %vm476_vm1, %v839_v38, 0.0 }
  0xfb   : > { %503 = vst.msk [vmem:[%s995_s29 + $0xd0] sm:$0xff] %vm476_vm1, %v1068_v39  ;;  %v1075_v43 = vpop.f32.mrb[9].mxu1  ;;  %485 = vst.msk [vmem:[%s995_s29 + $0x40] sm:$0xff] %vm476_vm1, %v381_v41  ;;  %v524_v45 = vsel %vm476_vm1, %v381_v41, 0.0  ;;  %v588_v46 = vmul.f32 %v381_v41, %v381_v41  ;;  %v840_v47 = vpop.f32.mrb[10].mxu0  ;;  %v596_v34 = vmul.f32 %v1004_v55, %v1004_v55 }
  0xfc   : > { %501 = vst.msk [vmem:[%s995_s29 + $0xc0] sm:$0xff] %vm476_vm1, %v1075_v43  ;;  %v1084_v48 = vpop.f32.mrb[10].mxu1  ;;  %v525_v49 = vadd.f32 %v524_v45, %v523_v42  ;;  %v626_v50 = vadd.f32 %v625_v44, %v624_v40  ;;  %488 = vst.msk [vmem:[%s995_s29 + $0x58] sm:$0xff] %vm476_vm1, %v840_v47  ;;  %v384_v51 = vpop.f32.mrb[11].mxu0  ;;  %v591_v0 = vmul.f32 %v840_v47, %v840_v47  ;;  %v631_v4 = vsel %vm476_vm1, %v590_v54, 0.0 }
  0xfd   : > { %504 = vst.msk [vmem:[%s995_s29 + $0xd8] sm:$0xff] %vm476_vm1, %v1084_v48  ;;  %v1091_v52 = vpop.f32.mrb[11].mxu1  ;;  %v627_v56 = vsel %vm476_vm1, %v588_v46, 0.0  ;;  %486 = vst.msk [vmem:[%s995_s29 + $0x48] sm:$0xff] %vm476_vm1, %v384_v51  ;;  %v526_v57 = vsel %vm476_vm1, %v384_v51, 0.0  ;;  %v589_v59 = vmul.f32 %v384_v51, %v384_v51  ;;  %v530_v5 = vsel %vm476_vm1, %v840_v47, 0.0 }
  0xfe   : > { %502 = vst.msk [vmem:[%s995_s29 + $0xc8] sm:$0xff] %vm476_vm1, %v1091_v52  ;;  %v628_v61 = vadd.f32 %v627_v56, %v626_v50  ;;  %v527_v62 = vadd.f32 %v526_v57, %v525_v49  ;;  %v633_v13 = vsel %vm476_vm1, %v591_v0, 0.0  ;;  %v540_v40 = vsel %vm476_vm1, %v1004_v55, 0.0 }
  0xff   : > { %v629_v1 = vsel %vm476_vm1, %v589_v59, 0.0  ;;  %v643_v46 = vsel %vm476_vm1, %v596_v34, 0.0  ;;  %v597_v47 = vmul.f32 %v1018_v60, %v1018_v60  ;;  %v598_v55 = vmul.f32 %v997_v53, %v997_v53 }
 0x100   : > { %v529_v2 = vadd.f32 %v528_v63, %v527_v62  ;;  %v630_v3 = vadd.f32 %v629_v1, %v628_v61  ;;  %v542_v54 = vsel %vm476_vm1, %v1018_v60, 0.0  ;;  %v544_v59 = vsel %vm476_vm1, %v997_v53, 0.0 }
 0x101   : > { %v843_v6 = vpop.f32.mrb[12].mxu0  ;;  %v599_v61 = vmul.f32 %v1011_v58, %v1011_v58  ;;  %v645_v62 = vsel %vm476_vm1, %v597_v47, 0.0  ;;  %v600_v63 = vmul.f32 %v1039_v15, %v1039_v15  ;;  %v546_v60 = vsel %vm476_vm1, %v1011_v58, 0.0 }
 0x102   : > { %v1104_v7 = vpop.f32.mrb[12].mxu1  ;;  %v632_v8 = vadd.f32 %v631_v4, %v630_v3  ;;  %491 = vst.msk [vmem:[%s995_s29 + $0x70] sm:$0xff] %vm476_vm1, %v843_v6  ;;  %v397_v9 = vpop.f32.mrb[13].mxu0  ;;  %v531_v10 = vadd.f32 %v530_v5, %v529_v2  ;;  %v594_v25 = vmul.f32 %v843_v6, %v843_v6  ;;  %v536_v31 = vsel %vm476_vm1, %v843_v6, 0.0 }
 0x103   : > { %507 = vst.msk [vmem:[%s995_s29 + $0xf0] sm:$0xff] %vm476_vm1, %v1104_v7  ;;  %v1111_v12 = vpop.f32.mrb[13].mxu1  ;;  %489 = vst.msk [vmem:[%s995_s29 + $0x60] sm:$0xff] %vm476_vm1, %v397_v9  ;;  %v532_v14 = vsel %vm476_vm1, %v397_v9, 0.0  ;;  %v592_v16 = vmul.f32 %v397_v9, %v397_v9  ;;  %v844_v17 = vpop.f32.mrb[14].mxu0  ;;  %v647_v2 = vsel %vm476_vm1, %v598_v55, 0.0  ;;  %v606_v34 = vmul.f32 %v1068_v39, %v1068_v39 }
 0x104   : > { %505 = vst.msk [vmem:[%s995_s29 + $0xe0] sm:$0xff] %vm476_vm1, %v1111_v12  ;;  %v1120_v18 = vpop.f32.mrb[14].mxu1  ;;  %v533_v19 = vadd.f32 %v532_v14, %v531_v10  ;;  %v634_v21 = vadd.f32 %v633_v13, %v632_v8  ;;  %492 = vst.msk [vmem:[%s995_s29 + $0x78] sm:$0xff] %vm476_vm1, %v844_v17  ;;  %v400_v22 = vpop.f32.mrb[15].mxu0  ;;  %v595_v32 = vmul.f32 %v844_v17, %v844_v17  ;;  %v639_v37 = vsel %vm476_vm1, %v594_v25, 0.0 }
 0x105   : > { %508 = vst.msk [vmem:[%s995_s29 + $0xf8] sm:$0xff] %vm476_vm1, %v1120_v18  ;;  %v1127_v23 = vpop.f32.mrb[15].mxu1  ;;  %v635_v26 = vsel %vm476_vm1, %v592_v16, 0.0  ;;  %490 = vst.msk [vmem:[%s995_s29 + $0x68] sm:$0xff] %vm476_vm1, %v400_v22  ;;  %v534_v27 = vsel %vm476_vm1, %v400_v22, 0.0  ;;  %v593_v28 = vmul.f32 %v400_v22, %v400_v22  ;;  %v538_v38 = vsel %vm476_vm1, %v844_v17, 0.0 }
 0x106   : > { %506 = vst.msk [vmem:[%s995_s29 + $0xe8] sm:$0xff] %vm476_vm1, %v1127_v23  ;;  %v636_v29 = vadd.f32 %v635_v26, %v634_v21  ;;  %v535_v30 = vadd.f32 %v534_v27, %v533_v19  ;;  %v611_v41 = vmul.f32 %v1120_v18, %v1120_v18  ;;  %v641_v45 = vsel %vm476_vm1, %v595_v32, 0.0 }
 0x107   : > { %v637_v33 = vsel %vm476_vm1, %v593_v28, 0.0  ;;  %v548_v3 = vsel %vm476_vm1, %v1039_v15, 0.0  ;;  %v649_v5 = vsel %vm476_vm1, %v599_v61, 0.0  ;;  %v651_v6 = vsel %vm476_vm1, %v600_v63, 0.0 }
 0x108   : > { %v537_v35 = vadd.f32 %v536_v31, %v535_v30  ;;  %v638_v36 = vadd.f32 %v637_v33, %v636_v29  ;;  %v1151_v49 = vsel %vm476_vm1, %v611_v41, 0.0  ;;  %v601_v8 = vmul.f32 %v1055_v24, %v1055_v24 }
 0x109   : > { %v602_v13 = vmul.f32 %v1032_v11, %v1032_v11  ;;  %v550_v58 = vsel %vm476_vm1, %v1055_v24, 0.0  ;;  %v552_v15 = vsel %vm476_vm1, %v1032_v11, 0.0  ;;  %v603_v17 = vmul.f32 %v1048_v20, %v1048_v20 }
 0x10a   : > { %v640_v42 = vadd.f32 %v639_v37, %v638_v36  ;;  %v539_v44 = vadd.f32 %v538_v38, %v537_v35  ;;  %v653_v19 = vsel %vm476_vm1, %v601_v8, 0.0  ;;  %v604_v21 = vmul.f32 %v1075_v43, %v1075_v43 }
 0x10b   : > { %v655_v26 = vsel %vm476_vm1, %v602_v13, 0.0  ;;  %v554_v24 = vsel %vm476_vm1, %v1048_v20, 0.0  ;;  %v556_v27 = vsel %vm476_vm1, %v1075_v43, 0.0  ;;  %v657_v29 = vsel %vm476_vm1, %v603_v17, 0.0 }
 0x10c   : > { %v541_v50 = vadd.f32 %v540_v40, %v539_v44  ;;  %v642_v51 = vadd.f32 %v641_v45, %v640_v42  ;;  %v659_v30 = vsel %vm476_vm1, %v604_v21, 0.0  ;;  %v605_v31 = vmul.f32 %v1091_v52, %v1091_v52 }
 0x10d   : > { %v558_v20 = vsel %vm476_vm1, %v1091_v52, 0.0  ;;  %v560_v43 = vsel %vm476_vm1, %v1068_v39, 0.0  ;;  %v607_v37 = vmul.f32 %v1084_v48, %v1084_v48  ;;  %v608_v40 = vmul.f32 %v1111_v12, %v1111_v12 }
 0x10e   : > { %v644_v56 = vadd.f32 %v643_v46, %v642_v51  ;;  %v543_v57 = vadd.f32 %v542_v54, %v541_v50  ;;  %v661_v38 = vsel %vm476_vm1, %v605_v31, 0.0  ;;  %v663_v44 = vsel %vm476_vm1, %v606_v34, 0.0 }
 0x10f   : > { %v562_v52 = vsel %vm476_vm1, %v1084_v48, 0.0  ;;  %v564_v45 = vsel %vm476_vm1, %v1111_v12, 0.0  ;;  %v665_v47 = vsel %vm476_vm1, %v607_v37, 0.0  ;;  %v667_v50 = vsel %vm476_vm1, %v608_v40, 0.0 }
 0x110   : > { %v545_v0 = vadd.f32 %v544_v59, %v543_v57  ;;  %v646_v1 = vadd.f32 %v645_v62, %v644_v56  ;;  %v609_v51 = vmul.f32 %v1127_v23, %v1127_v23  ;;  %v610_v56 = vmul.f32 %v1104_v7, %v1104_v7 }
 0x111   : > { %v566_v48 = vsel %vm476_vm1, %v1127_v23, 0.0  ;;  %v568_v59 = vsel %vm476_vm1, %v1104_v7, 0.0 }
 0x112   : > { %v648_v4 = vadd.f32 %v647_v2, %v646_v1  ;;  %v547_v53 = vadd.f32 %v546_v60, %v545_v0  ;;  %v669_v61 = vsel %vm476_vm1, %v609_v51, 0.0  ;;  %v671_v0 = vsel %vm476_vm1, %v610_v56, 0.0 }
 0x113   : > { %v570_v1 = vsel %vm476_vm1, %v1120_v18, 0.0 }
 0x114   : > { %v549_v9 = vadd.f32 %v548_v3, %v547_v53  ;;  %v650_v10 = vadd.f32 %v649_v5, %v648_v4 }
 0x116   : > { %v652_v14 = vadd.f32 %v651_v6, %v650_v10  ;;  %v551_v16 = vadd.f32 %v550_v58, %v549_v9 }
 0x118   : > { %v553_v22 = vadd.f32 %v552_v15, %v551_v16  ;;  %v654_v25 = vadd.f32 %v653_v19, %v652_v14 }
 0x11a   : > { %v656_v28 = vadd.f32 %v655_v26, %v654_v25  ;;  %v555_v11 = vadd.f32 %v554_v24, %v553_v22 }
 0x11c   : > { %v557_v32 = vadd.f32 %v556_v27, %v555_v11  ;;  %v658_v33 = vadd.f32 %v657_v29, %v656_v28 }
 0x11e   : > { %v660_v35 = vadd.f32 %v659_v30, %v658_v33  ;;  %v559_v36 = vadd.f32 %v558_v20, %v557_v32 }
 0x120   : > { %v561_v41 = vadd.f32 %v560_v43, %v559_v36  ;;  %v662_v42 = vadd.f32 %v661_v38, %v660_v35 }
 0x122   : > { %v664_v46 = vadd.f32 %v663_v44, %v662_v42  ;;  %v563_v39 = vadd.f32 %v562_v52, %v561_v41 }
 0x124   : > { %v565_v55 = vadd.f32 %v564_v45, %v563_v39  ;;  %v666_v54 = vadd.f32 %v665_v47, %v664_v46 }
 0x126   : > { %v668_v12 = vadd.f32 %v667_v50, %v666_v54  ;;  %v567_v57 = vadd.f32 %v566_v48, %v565_v55 }
 0x128   : > { %v569_v62 = vadd.f32 %v568_v59, %v567_v57  ;;  %v670_v63 = vadd.f32 %v669_v61, %v668_v12 }
 0x12a   : > { %v571_v2 = vadd.f32 %v570_v1, %v569_v62  ;;  %v672_v60 = vadd.f32 %v671_v0, %v670_v63 }
 0x12c   : > { %v572_v3 = vrot.slane %v571_v2, 4  ;;  %v674_v23 = vadd.f32 %v1151_v49, %v672_v60 }
 0x12e   : > { %v573_v4 = vadd.f32 %v572_v3, %v571_v2  ;;  %v675_v53 = vrot.slane %v674_v23, 4 }
 0x130   : > { %v574_v5 = vrot.slane %v573_v4, 2  ;;  %v676_v7 = vadd.f32 %v675_v53, %v674_v23 }
 0x132   : > { %v575_v6 = vadd.f32 %v574_v5, %v573_v4  ;;  %v677_v8 = vrot.slane %v676_v7, 2 }
 0x134   : > { %v576_v9 = vrot.slane %v575_v6, 1  ;;  %v678_v10 = vadd.f32 %v677_v8, %v676_v7 }
 0x136   : > { %v577_v18 = vadd.f32 %v576_v9, %v575_v6  ;;  %v679_v13 = vrot.slane %v678_v10, 1 }
 0x138   : > { %579 = vst.msk [vmem:[%s184_s6] sm:$0x1] %vm578_vm2, %v577_v18  ;;  %v680_v58 = vadd.f32 %v679_v13, %v678_v10 }
 0x13a   : > { %681 = vst.msk [vmem:[%s184_s6 + $0x1] sm:$0x1] %vm578_vm2, %v680_v58 }
 0x13b PF: > { %s14_s12 = sadd.s32 1, %s887_s12  }
 0x13c   : > { %p11_p5 = scmp.ge.s32.totalorder %s14_s12, 4  }
 0x13e   :  { %13 = sbr.rel (!%p11_p5) target bundleno = 1 (0x1), region = 70 }

// kernel: _lambda_.42
= control target key start
LH: loop header
LB: loop body
LE: loop exit
PB: predicated region body
PF: predicated region fallthrough
CT: control target
= control target key end

     0   :  { %s1040_s18 = smov 0   ;;  %s1404_s0 = inlined_call_operand.vmem [shape: f32[512,16], index: 0, kind: input, shape index: {}]   ;;  %s1405_s1 = inlined_call_operand.vmem [shape: f32[1,16], index: 1, kind: input, shape index: {}]   ;;  %s1406_s2 = inlined_call_operand.vmem [shape: f32[1,16], index: 2, kind: input, shape index: {}]   ;;  %s1407_s3 = inlined_call_operand.vmem [shape: bf16[16,64], index: 3, kind: input, shape index: {}]   ;;  %s1408_s4 = inlined_call_operand.vmem [shape: f32[512,64], index: 4, kind: output, shape index: {0}]   ;;  %s1409_s5 = inlined_call_operand.vmem [shape: f32[16,64], index: 5, kind: output, shape index: {1}]  }
   0x1 LB: > { %s1046_s19 = sadd.s32 4294967295, %s1008_s18   ;;  %p913_p0 = scmp.ge.s32.totalorder %s1008_s18, 1  ;;  %s1008_s18 = sphi %s1040_s18, %s16_s18  }
   0x2   : > { %p191_p1 = scmp.lt.s32.totalorder %s1008_s18, 3 }
   0x4   : > { %p192_p2 = pnand %p913_p0, %p191_p1 }
   0x5   : > { %v1001_v0 = vld [vmem:[%s1407_s3] sm:$0xff] (!%p192_p2)   ;;  %s914_s22 = sshll.u32 (!%p192_p2), %s1046_s19, 5  ;;  %vm406_vm0 = vcmask (!%p192_p2), 130048   ;;  %vm616_vm1 = vcmask (!%p192_p2), 523264   ;;  %p235_p4 = scmp.lt.s32.totalorder (!%p192_p2), %s1046_s19, 1  ;;  %vm718_vm2 = vcmask (!%p192_p2), 516096  }
   0x6   : > { %195 = sbr.rel (%p192_p2) target bundleno = 319 (0x13f), region = 36  ;;  %p224_p3 = scmp.lt.s32.totalorder (!%p192_p2), %s914_s22, 63  ;;  %957 = vmatprep.subr.bf16.mxu0 (!%p192_p2), %v1001_v0  ;;  %991 = vmatprep.subr.bf16.mxu1 (!%p192_p2), %v1001_v0  ;;  %v1060_v1 = vld [vmem:[%s1405_s1] ss:$0 sm:$0xff] (!%p192_p2) }
   0x7   : > { %958 = vmatpush3.bf16.msra.mxu0 (!%p192_p2), %v1001_v0  ;;  %992 = vmatpush3.bf16.msra.mxu1 (!%p192_p2), %v1001_v0  ;;  %v1072_v2 = vld [vmem:[%s1406_s2] ss:$0 sm:$0xff] (!%p192_p2) }
   0xd   : > { %s1411_s22 = smov (!%p224_p3, %s914_s22), 63  ;;  %s1413_s19 = smov (!%p235_p4, %s1046_s19), 1 }
   0xe   : > { %s915_s23 = sshll.u32 %s1411_s22, 3  ;;  %s918_s9 = sshll.u32 %s1413_s19, 3 }
   0xf   : > { %s1067_s28 = scalar_lea.vmem %s1404_s0, %s915_s23  ;;  %s1194_s8 = scalar_lea.vmem %s1408_s4, %s915_s23 }
  0x10   : > { %v240_v3 = vld [vmem:[%s1067_s28] sm:$0xff]  ;;  %v241_v4 = vld [vmem:[%s1067_s28 + $0x8] sm:$0xff]  ;;  %v242_v5 = vld [vmem:[%s1067_s28 + $0x10] sm:$0xff]  ;;  %s238_s12 = scalar_lea.vmem %s1409_s5, %s918_s9 }
  0x11   : > { %v279_v6 = vmul.f32 %v1060_v1, %v240_v3  ;;  %v280_v7 = vmul.f32 %v1060_v1, %v241_v4  ;;  %v243_v8 = vld [vmem:[%s1067_s28 + $0x18] sm:$0xff]  ;;  %v281_v9 = vmul.f32 %v1060_v1, %v242_v5  ;;  %v244_v10 = vld [vmem:[%s1067_s28 + $0x20] sm:$0xff]  ;;  %v245_v11 = vld [vmem:[%s1067_s28 + $0x28] sm:$0xff] }
  0x12   : > { %v282_v12 = vmul.f32 %v1060_v1, %v243_v8  ;;  %v283_v13 = vmul.f32 %v1060_v1, %v244_v10  ;;  %v284_v14 = vmul.f32 %v1060_v1, %v245_v11  ;;  %v246_v15 = vld [vmem:[%s1067_s28 + $0x30] sm:$0xff]  ;;  %v247_v16 = vld [vmem:[%s1067_s28 + $0x38] sm:$0xff]  ;;  %v248_v25 = vld [vmem:[%s1067_s28 + $0x40] sm:$0xff] }
  0x13   : > { %v318_v17 = vadd.f32 %v1072_v2, %v279_v6  ;;  %v319_v18 = vadd.f32 %v1072_v2, %v280_v7  ;;  %v320_v19 = vadd.f32 %v1072_v2, %v281_v9  ;;  %v285_v20 = vmul.f32 %v1060_v1, %v246_v15  ;;  %v249_v26 = vld [vmem:[%s1067_s28 + $0x48] sm:$0xff]  ;;  %v250_v31 = vld [vmem:[%s1067_s28 + $0x50] sm:$0xff]  ;;  %v251_v36 = vld [vmem:[%s1067_s28 + $0x58] sm:$0xff] }
  0x14   : > { %v321_v21 = vadd.f32 %v1072_v2, %v282_v12  ;;  %v322_v22 = vadd.f32 %v1072_v2, %v283_v13  ;;  %v323_v23 = vadd.f32 %v1072_v2, %v284_v14  ;;  %v286_v24 = vmul.f32 %v1060_v1, %v247_v16  ;;  %v252_v37 = vld [vmem:[%s1067_s28 + $0x60] sm:$0xff]  ;;  %v253_v42 = vld [vmem:[%s1067_s28 + $0x68] sm:$0xff]  ;;  %v254_v43 = vld [vmem:[%s1067_s28 + $0x70] sm:$0xff] }
  0x15   : > { %v350_v27 = vmax.f32 %v318_v17, 0.0  ;;  %v351_v28 = vmax.f32 %v319_v18, 0.0  ;;  %v352_v29 = vmax.f32 %v320_v19, 0.0  ;;  %v324_v30 = vadd.f32 %v1072_v2, %v285_v20  ;;  %v255_v52 = vld [vmem:[%s1067_s28 + $0x78] sm:$0xff]  ;;  %v256_v56 = vld [vmem:[%s1067_s28 + $0x80] sm:$0xff]  ;;  %v257_v61 = vld [vmem:[%s1067_s28 + $0x88] sm:$0xff] }
  0x16   : > { %v353_v32 = vmax.f32 %v321_v21, 0.0  ;;  %v354_v33 = vmax.f32 %v322_v22, 0.0  ;;  %v355_v34 = vmax.f32 %v323_v23, 0.0  ;;  %v325_v35 = vadd.f32 %v1072_v2, %v286_v24  ;;  %v258_v0 = vld [vmem:[%s1067_s28 + $0x90] sm:$0xff]  ;;  %v259_v3 = vld [vmem:[%s1067_s28 + $0x98] sm:$0xff]  ;;  %v260_v7 = vld [vmem:[%s1067_s28 + $0xa0] sm:$0xff] }
  0x17   : > { %v382_v38 = vpack.c.bf16 %v351_v28, %v350_v27  ;;  %v356_v39 = vmax.f32 %v324_v30, 0.0  ;;  %v287_v40 = vmul.f32 %v1060_v1, %v248_v25  ;;  %v288_v41 = vmul.f32 %v1060_v1, %v249_v26  ;;  %v261_v12 = vld [vmem:[%s1067_s28 + $0xa8] sm:$0xff]  ;;  %v262_v17 = vld [vmem:[%s1067_s28 + $0xb0] sm:$0xff]  ;;  %v263_v22 = vld [vmem:[%s1067_s28 + $0xb8] sm:$0xff] }
  0x18   : > { %v383_v44 = vpack.c.bf16 %v353_v32, %v352_v29  ;;  %v384_v45 = vpack.c.bf16 %v355_v34, %v354_v33  ;;  %v357_v46 = vmax.f32 %v325_v35, 0.0  ;;  %v289_v47 = vmul.f32 %v1060_v1, %v250_v31  ;;  %v264_v27 = vld [vmem:[%s1067_s28 + $0xc0] sm:$0xff]  ;;  %v265_v32 = vld [vmem:[%s1067_s28 + $0xc8] sm:$0xff] }
  0x19   : > { %959 = vmatprep.mubr.msk.bf16.mxu0 %vm406_vm0, %v382_v38  ;;  %v326_v48 = vadd.f32 %v1072_v2, %v287_v40  ;;  %v327_v49 = vadd.f32 %v1072_v2, %v288_v41  ;;  %v290_v50 = vmul.f32 %v1060_v1, %v251_v36  ;;  %v291_v51 = vmul.f32 %v1060_v1, %v252_v37  ;;  %v266_v37 = vld [vmem:[%s1067_s28 + $0xd0] sm:$0xff] }
  0x1a   : > { %960 = vmatmul.mubr.msk.bf16.vlgmr.msra.gmra.mrb[0].mxu0 %vm406_vm0, %v383_v44  ;;  %v328_v53 = vadd.f32 %v1072_v2, %v289_v47  ;;  %v292_v54 = vmul.f32 %v1060_v1, %v253_v42  ;;  %v293_v55 = vmul.f32 %v1060_v1, %v254_v43  ;;  %v294_v63 = vmul.f32 %v1060_v1, %v255_v52  ;;  %v267_v42 = vld [vmem:[%s1067_s28 + $0xd8] sm:$0xff]  ;;  %v268_v47 = vld [vmem:[%s1067_s28 + $0xe0] sm:$0xff] }
  0x1b   : > { %963 = vmatprep.mubr.msk.bf16.mxu0 %vm406_vm0, %v384_v45  ;;  %v358_v57 = vmax.f32 %v326_v48, 0.0  ;;  %v359_v58 = vmax.f32 %v327_v49, 0.0  ;;  %v329_v59 = vadd.f32 %v1072_v2, %v290_v50  ;;  %v330_v60 = vadd.f32 %v1072_v2, %v291_v51  ;;  %v269_v48 = vld [vmem:[%s1067_s28 + $0xe8] sm:$0xff] }
  0x1c   : > { %v331_v62 = vadd.f32 %v1072_v2, %v292_v54  ;;  %v385_v4 = vpack.c.bf16 %v357_v46, %v356_v39  ;;  %v360_v5 = vmax.f32 %v328_v53, 0.0  ;;  %v295_v6 = vmul.f32 %v1060_v1, %v256_v56 }
  0x1d   : > { %v386_v8 = vpack.c.bf16 %v359_v58, %v358_v57  ;;  %v361_v9 = vmax.f32 %v329_v59, 0.0  ;;  %v1130_v10 = vadd.f32 %v1072_v2, %v293_v55  ;;  %v296_v11 = vmul.f32 %v1060_v1, %v257_v61 }
  0x1e   : > { %v362_v13 = vmax.f32 %v330_v60, 0.0  ;;  %v334_v14 = vadd.f32 %v1072_v2, %v295_v6  ;;  %v297_v15 = vmul.f32 %v1060_v1, %v258_v0  ;;  %v298_v16 = vmul.f32 %v1060_v1, %v259_v3 }
  0x1f   : > { %v363_v18 = vmax.f32 %v331_v62, 0.0  ;;  %v333_v19 = vadd.f32 %v1072_v2, %v294_v63  ;;  %v335_v20 = vadd.f32 %v1072_v2, %v296_v11  ;;  %v299_v21 = vmul.f32 %v1060_v1, %v260_v7  ;;  %v270_v7 = vld [vmem:[%s1067_s28 + $0xf0] sm:$0xff] }
  0x20   : > { %v366_v23 = vmax.f32 %v334_v14, 0.0  ;;  %v336_v24 = vadd.f32 %v1072_v2, %v297_v15  ;;  %v337_v25 = vadd.f32 %v1072_v2, %v298_v16  ;;  %v300_v26 = vmul.f32 %v1060_v1, %v261_v12 }
  0x21   : > { %v387_v28 = vpack.c.bf16 %v361_v9, %v360_v5  ;;  %v367_v29 = vmax.f32 %v335_v20, 0.0  ;;  %v338_v30 = vadd.f32 %v1072_v2, %v299_v21  ;;  %v301_v31 = vmul.f32 %v1060_v1, %v262_v17 }
  0x22   : > { %964 = vmatmul.mubr.msk.bf16.gmra.mrb[4].mxu0 %vm406_vm0, %v385_v4  ;;  %v368_v33 = vmax.f32 %v336_v24, 0.0  ;;  %v369_v34 = vmax.f32 %v337_v25, 0.0  ;;  %v339_v35 = vadd.f32 %v1072_v2, %v300_v26  ;;  %v302_v36 = vmul.f32 %v1060_v1, %v263_v22 }
  0x23   : > { %967 = vmatprep.mubr.msk.bf16.mxu0 %vm406_vm0, %v386_v8  ;;  %v390_v38 = vpack.c.bf16 %v367_v29, %v366_v23  ;;  %v370_v39 = vmax.f32 %v338_v30, 0.0  ;;  %v340_v40 = vadd.f32 %v1072_v2, %v301_v31  ;;  %v303_v41 = vmul.f32 %v1060_v1, %v264_v27  ;;  %v271_v8 = vld [vmem:[%s1067_s28 + $0xf8] sm:$0xff] }
  0x24   : > { %v391_v43 = vpack.c.bf16 %v369_v34, %v368_v33  ;;  %v371_v44 = vmax.f32 %v339_v35, 0.0  ;;  %v341_v45 = vadd.f32 %v1072_v2, %v302_v36  ;;  %v304_v46 = vmul.f32 %v1060_v1, %v265_v32 }
  0x25   : > { %v388_v49 = vpack.c.bf16 %v363_v18, %v362_v13  ;;  %975 = vmatprep.mubr.msk.bf16.mxu1 %vm406_vm0, %v390_v38  ;;  %v372_v50 = vmax.f32 %v340_v40, 0.0  ;;  %v342_v51 = vadd.f32 %v1072_v2, %v303_v41  ;;  %v305_v52 = vmul.f32 %v1060_v1, %v266_v37 }
  0x26   : > { %976 = vmatmul.mubr.msk.bf16.vlgmr.msra.gmra.mrb[0].mxu1 %vm406_vm0, %v391_v43  ;;  %v392_v53 = vpack.c.bf16 %v371_v44, %v370_v39  ;;  %v373_v54 = vmax.f32 %v341_v45, 0.0  ;;  %v343_v55 = vadd.f32 %v1072_v2, %v304_v46  ;;  %v306_v56 = vmul.f32 %v1060_v1, %v267_v42 }
  0x27   : > { %v374_v57 = vmax.f32 %v342_v51, 0.0  ;;  %v307_v58 = vmul.f32 %v1060_v1, %v268_v47  ;;  %v308_v59 = vmul.f32 %v1060_v1, %v269_v48  ;;  %v364_v61 = vmax.f32 %v1130_v10, 0.0 }
  0x28   : > { %979 = vmatprep.mubr.msk.bf16.mxu1 %vm406_vm0, %v392_v53  ;;  %v375_v60 = vmax.f32 %v343_v55, 0.0  ;;  %v365_v62 = vmax.f32 %v333_v19, 0.0  ;;  %v393_v63 = vpack.c.bf16 %v373_v54, %v372_v50  ;;  %v344_v0 = vadd.f32 %v1072_v2, %v305_v52 }
  0x29   : > { %v345_v3 = vadd.f32 %v1072_v2, %v306_v56  ;;  %v346_v5 = vadd.f32 %v1072_v2, %v307_v58  ;;  %v347_v6 = vadd.f32 %v1072_v2, %v308_v59  ;;  %v309_v12 = vmul.f32 %v1060_v1, %v270_v7 }
  0x2a   : > { %968 = vmatmul.mubr.msk.bf16.gmra.mrb[8].mxu0 %vm406_vm0, %v387_v28  ;;  %v394_v4 = vpack.c.bf16 %v375_v60, %v374_v57  ;;  %v389_v9 = vpack.c.bf16 %v365_v62, %v364_v61  ;;  %v376_v11 = vmax.f32 %v344_v0, 0.0  ;;  %v310_v13 = vmul.f32 %v1060_v1, %v271_v8 }
  0x2b   : > { %971 = vmatprep.mubr.msk.bf16.mxu0 %vm406_vm0, %v388_v49  ;;  %v377_v10 = vmax.f32 %v345_v3, 0.0  ;;  %v378_v14 = vmax.f32 %v346_v5, 0.0  ;;  %v379_v15 = vmax.f32 %v347_v6, 0.0  ;;  %v348_v17 = vadd.f32 %v1072_v2, %v309_v12 }
  0x2c   : > { %v349_v18 = vadd.f32 %v1072_v2, %v310_v13 }
  0x2d   : > { %v395_v16 = vpack.c.bf16 %v377_v10, %v376_v11  ;;  %v396_v19 = vpack.c.bf16 %v379_v15, %v378_v14  ;;  %v380_v20 = vmax.f32 %v348_v17, 0.0 }
  0x2e   : > { %980 = vmatmul.mubr.msk.bf16.gmra.mrb[4].mxu1 %vm406_vm0, %v393_v63  ;;  %v381_v21 = vmax.f32 %v349_v18, 0.0 }
  0x2f   : > { %983 = vmatprep.mubr.msk.bf16.mxu1 %vm406_vm0, %v394_v4 }
  0x30   : > { %v397_v22 = vpack.c.bf16 %v381_v21, %v380_v20 }
  0x32   : > { %972 = vmatmul.mubr.msk.bf16.gmra.mrb[12].mxu0 %vm406_vm0, %v389_v9 }
  0x36   : > { %984 = vmatmul.mubr.msk.bf16.gmra.mrb[8].mxu1 %vm406_vm0, %v395_v16 }
  0x37   : > { %987 = vmatprep.mubr.msk.bf16.mxu1 %vm406_vm0, %v396_v19 }
  0x3e   : > { %988 = vmatmul.mubr.msk.bf16.gmra.mrb[12].mxu1 %vm406_vm0, %v397_v22 }
  0xed   : > { %v961_v1 = vpop.f32.mrb[0].mxu0 }
  0xee   : > { %619 = vst.msk [vmem:[%s1194_s8 + $0x10] sm:$0xff] %vm616_vm1, %v961_v1  ;;  %v489_v2 = vpop.f32.mrb[1].mxu0  ;;  %v722_v26 = vmul.f32 %v961_v1, %v961_v1  ;;  %v652_v31 = vsel %vm616_vm1, %v961_v1, 0.0 }
  0xef   : > { %617 = vst.msk [vmem:[%s1194_s8] sm:$0xff] %vm616_vm1, %v489_v2  ;;  %v720_v23 = vmul.f32 %v489_v2, %v489_v2  ;;  %v962_v24 = vpop.f32.mrb[2].mxu0  ;;  %v649_v27 = vsel %vm616_vm1, %v489_v2, 0.0 }
  0xf0   : > { %620 = vst.msk [vmem:[%s1194_s8 + $0x18] sm:$0xff] %vm616_vm1, %v962_v24  ;;  %v492_v25 = vpop.f32.mrb[3].mxu0  ;;  %v723_v33 = vmul.f32 %v962_v24, %v962_v24  ;;  %v755_v37 = vsel %vm616_vm1, %v722_v26, 0.0  ;;  %v654_v38 = vsel %vm616_vm1, %v962_v24, 0.0 }
  0xf1   : > { %618 = vst.msk [vmem:[%s1194_s8 + $0x8] sm:$0xff] %vm616_vm1, %v492_v25  ;;  %v650_v28 = vsel %vm616_vm1, %v492_v25, 0.0  ;;  %v721_v29 = vmul.f32 %v492_v25, %v492_v25  ;;  %v752_v32 = vsel %vm616_vm1, %v720_v23, 0.0 }
  0xf2   : > { %v651_v30 = vadd.f32 %v650_v28, %v649_v27  ;;  %v757_v43 = vsel %vm616_vm1, %v723_v33, 0.0 }
  0xf3   : > { %v753_v34 = vsel %vm616_vm1, %v721_v29, 0.0 }
  0xf4   : > { %v653_v35 = vadd.f32 %v652_v31, %v651_v30  ;;  %v754_v36 = vadd.f32 %v753_v34, %v752_v32 }
  0xf5   : > { %v965_v39 = vpop.f32.mrb[4].mxu0 }
  0xf6   : > { %v756_v40 = vadd.f32 %v755_v37, %v754_v36  ;;  %623 = vst.msk [vmem:[%s1194_s8 + $0x30] sm:$0xff] %vm616_vm1, %v965_v39  ;;  %v505_v41 = vpop.f32.mrb[5].mxu0  ;;  %v655_v42 = vadd.f32 %v654_v38, %v653_v35  ;;  %v726_v50 = vmul.f32 %v965_v39, %v965_v39  ;;  %v660_v57 = vsel %vm616_vm1, %v965_v39, 0.0 }
  0xf7   : > { %621 = vst.msk [vmem:[%s1194_s8 + $0x20] sm:$0xff] %vm616_vm1, %v505_v41  ;;  %v656_v44 = vsel %vm616_vm1, %v505_v41, 0.0  ;;  %v724_v45 = vmul.f32 %v505_v41, %v505_v41  ;;  %v966_v46 = vpop.f32.mrb[6].mxu0 }
  0xf8   : > { %v657_v47 = vadd.f32 %v656_v44, %v655_v42  ;;  %v758_v48 = vadd.f32 %v757_v43, %v756_v40  ;;  %624 = vst.msk [vmem:[%s1194_s8 + $0x38] sm:$0xff] %vm616_vm1, %v966_v46  ;;  %v508_v49 = vpop.f32.mrb[7].mxu0  ;;  %v727_v58 = vmul.f32 %v966_v46, %v966_v46  ;;  %v763_v0 = vsel %vm616_vm1, %v726_v50, 0.0 }
  0xf9   : > { %v759_v51 = vsel %vm616_vm1, %v724_v45, 0.0  ;;  %622 = vst.msk [vmem:[%s1194_s8 + $0x28] sm:$0xff] %vm616_vm1, %v508_v49  ;;  %v658_v52 = vsel %vm616_vm1, %v508_v49, 0.0  ;;  %v725_v53 = vmul.f32 %v508_v49, %v508_v49  ;;  %v1223_v56 = vpop.f32.mrb[0].mxu1  ;;  %v662_v3 = vsel %vm616_vm1, %v966_v46, 0.0 }
  0xfa   : > { %v760_v54 = vadd.f32 %v759_v51, %v758_v48  ;;  %v659_v55 = vadd.f32 %v658_v52, %v657_v47  ;;  %635 = vst.msk [vmem:[%s1194_s8 + $0x90] sm:$0xff] %vm616_vm1, %v1223_v56  ;;  %v1230_v60 = vpop.f32.mrb[1].mxu1  ;;  %v765_v9 = vsel %vm616_vm1, %v727_v58, 0.0 }
  0xfb   : > { %v761_v59 = vsel %vm616_vm1, %v725_v53, 0.0  ;;  %633 = vst.msk [vmem:[%s1194_s8 + $0x80] sm:$0xff] %vm616_vm1, %v1230_v60  ;;  %v1235_v63 = vpop.f32.mrb[2].mxu1  ;;  %v736_v52 = vmul.f32 %v1230_v60, %v1230_v60 }
  0xfc   : > { %v661_v61 = vadd.f32 %v660_v57, %v659_v55  ;;  %v762_v62 = vadd.f32 %v761_v59, %v760_v54  ;;  %636 = vst.msk [vmem:[%s1194_s8 + $0x98] sm:$0xff] %vm616_vm1, %v1235_v63  ;;  %v1242_v5 = vpop.f32.mrb[3].mxu1 }
  0xfd   : > { %v969_v4 = vpop.f32.mrb[8].mxu0  ;;  %634 = vst.msk [vmem:[%s1194_s8 + $0x88] sm:$0xff] %vm616_vm1, %v1242_v5 }
  0xfe   : > { %v764_v6 = vadd.f32 %v763_v0, %v762_v62  ;;  %627 = vst.msk [vmem:[%s1194_s8 + $0x50] sm:$0xff] %vm616_vm1, %v969_v4  ;;  %v521_v7 = vpop.f32.mrb[9].mxu0  ;;  %v663_v8 = vadd.f32 %v662_v3, %v661_v61  ;;  %v730_v16 = vmul.f32 %v969_v4, %v969_v4  ;;  %v668_v1 = vsel %vm616_vm1, %v969_v4, 0.0 }
  0xff   : > { %625 = vst.msk [vmem:[%s1194_s8 + $0x40] sm:$0xff] %vm616_vm1, %v521_v7  ;;  %v664_v11 = vsel %vm616_vm1, %v521_v7, 0.0  ;;  %v728_v10 = vmul.f32 %v521_v7, %v521_v7  ;;  %v970_v12 = vpop.f32.mrb[10].mxu0  ;;  %v680_v61 = vsel %vm616_vm1, %v1230_v60, 0.0  ;;  %v737_v7 = vmul.f32 %v1242_v5, %v1242_v5 }
 0x100   : > { %v665_v13 = vadd.f32 %v664_v11, %v663_v8  ;;  %v766_v14 = vadd.f32 %v765_v9, %v764_v6  ;;  %628 = vst.msk [vmem:[%s1194_s8 + $0x58] sm:$0xff] %vm616_vm1, %v970_v12  ;;  %v524_v15 = vpop.f32.mrb[11].mxu0  ;;  %v731_v2 = vmul.f32 %v970_v12, %v970_v12  ;;  %v771_v28 = vsel %vm616_vm1, %v730_v16, 0.0 }
 0x101   : > { %v767_v17 = vsel %vm616_vm1, %v728_v10, 0.0  ;;  %626 = vst.msk [vmem:[%s1194_s8 + $0x48] sm:$0xff] %vm616_vm1, %v524_v15  ;;  %v666_v18 = vsel %vm616_vm1, %v524_v15, 0.0  ;;  %v729_v19 = vmul.f32 %v524_v15, %v524_v15  ;;  %v1259_v22 = vpop.f32.mrb[4].mxu1  ;;  %v670_v29 = vsel %vm616_vm1, %v970_v12, 0.0 }
 0x102   : > { %v768_v20 = vadd.f32 %v767_v17, %v766_v14  ;;  %v667_v21 = vadd.f32 %v666_v18, %v665_v13  ;;  %639 = vst.msk [vmem:[%s1194_s8 + $0xb0] sm:$0xff] %vm616_vm1, %v1259_v22  ;;  %v1266_v24 = vpop.f32.mrb[5].mxu1  ;;  %v773_v35 = vsel %vm616_vm1, %v731_v2, 0.0  ;;  %v783_v6 = vsel %vm616_vm1, %v736_v52, 0.0 }
 0x103   : > { %v769_v23 = vsel %vm616_vm1, %v729_v19, 0.0  ;;  %637 = vst.msk [vmem:[%s1194_s8 + $0xa0] sm:$0xff] %vm616_vm1, %v1266_v24  ;;  %v1271_v27 = vpop.f32.mrb[6].mxu1  ;;  %v738_v60 = vmul.f32 %v1223_v56, %v1223_v56  ;;  %v682_v11 = vsel %vm616_vm1, %v1242_v5, 0.0  ;;  %v684_v14 = vsel %vm616_vm1, %v1223_v56, 0.0 }
 0x104   : > { %v669_v25 = vadd.f32 %v668_v1, %v667_v21  ;;  %v770_v26 = vadd.f32 %v769_v23, %v768_v20  ;;  %640 = vst.msk [vmem:[%s1194_s8 + $0xb8] sm:$0xff] %vm616_vm1, %v1271_v27  ;;  %v1278_v31 = vpop.f32.mrb[7].mxu1  ;;  %v739_v15 = vmul.f32 %v1235_v63, %v1235_v63  ;;  %v785_v16 = vsel %vm616_vm1, %v737_v7, 0.0 }
 0x105   : > { %v973_v30 = vpop.f32.mrb[12].mxu0  ;;  %638 = vst.msk [vmem:[%s1194_s8 + $0xa8] sm:$0xff] %vm616_vm1, %v1278_v31  ;;  %v740_v17 = vmul.f32 %v1266_v24, %v1266_v24  ;;  %v787_v56 = vsel %vm616_vm1, %v738_v60, 0.0  ;;  %v686_v21 = vsel %vm616_vm1, %v1235_v63, 0.0  ;;  %v688_v1 = vsel %vm616_vm1, %v1266_v24, 0.0 }
 0x106   : > { %v772_v32 = vadd.f32 %v771_v28, %v770_v26  ;;  %631 = vst.msk [vmem:[%s1194_s8 + $0x70] sm:$0xff] %vm616_vm1, %v973_v30  ;;  %v537_v33 = vpop.f32.mrb[13].mxu0  ;;  %v671_v34 = vadd.f32 %v670_v29, %v669_v25  ;;  %v734_v42 = vmul.f32 %v973_v30, %v973_v30  ;;  %v676_v49 = vsel %vm616_vm1, %v973_v30, 0.0 }
 0x107   : > { %629 = vst.msk [vmem:[%s1194_s8 + $0x60] sm:$0xff] %vm616_vm1, %v537_v33  ;;  %v672_v36 = vsel %vm616_vm1, %v537_v33, 0.0  ;;  %v732_v37 = vmul.f32 %v537_v33, %v537_v33  ;;  %v974_v38 = vpop.f32.mrb[14].mxu0  ;;  %v789_v28 = vsel %vm616_vm1, %v739_v15, 0.0  ;;  %v791_v29 = vsel %vm616_vm1, %v740_v17, 0.0 }
 0x108   : > { %v673_v39 = vadd.f32 %v672_v36, %v671_v34  ;;  %v774_v40 = vadd.f32 %v773_v35, %v772_v32  ;;  %632 = vst.msk [vmem:[%s1194_s8 + $0x78] sm:$0xff] %vm616_vm1, %v974_v38  ;;  %v540_v41 = vpop.f32.mrb[15].mxu0  ;;  %v735_v50 = vmul.f32 %v974_v38, %v974_v38  ;;  %v779_v58 = vsel %vm616_vm1, %v734_v42, 0.0 }
 0x109   : > { %v775_v43 = vsel %vm616_vm1, %v732_v37, 0.0  ;;  %630 = vst.msk [vmem:[%s1194_s8 + $0x68] sm:$0xff] %vm616_vm1, %v540_v41  ;;  %v674_v44 = vsel %vm616_vm1, %v540_v41, 0.0  ;;  %v733_v45 = vmul.f32 %v540_v41, %v540_v41  ;;  %v1295_v48 = vpop.f32.mrb[8].mxu1  ;;  %v678_v59 = vsel %vm616_vm1, %v974_v38, 0.0 }
 0x10a   : > { %v776_v46 = vadd.f32 %v775_v43, %v774_v40  ;;  %v675_v47 = vadd.f32 %v674_v44, %v673_v39  ;;  %643 = vst.msk [vmem:[%s1194_s8 + $0xd0] sm:$0xff] %vm616_vm1, %v1295_v48  ;;  %v585_v53 = vpop.f32.mrb[9].mxu1  ;;  %v781_v4 = vsel %vm616_vm1, %v735_v50, 0.0  ;;  %v741_v63 = vmul.f32 %v1278_v31, %v1278_v31 }
 0x10b   : > { %v777_v51 = vsel %vm616_vm1, %v733_v45, 0.0  ;;  %641 = vst.msk [vmem:[%s1194_s8 + $0xc0] sm:$0xff] %vm616_vm1, %v585_v53  ;;  %v1306_v57 = vpop.f32.mrb[10].mxu1  ;;  %v742_v33 = vmul.f32 %v1259_v22, %v1259_v22  ;;  %v690_v34 = vsel %vm616_vm1, %v1278_v31, 0.0  ;;  %v692_v37 = vsel %vm616_vm1, %v1259_v22, 0.0 }
 0x10c   : > { %v677_v54 = vadd.f32 %v676_v49, %v675_v47  ;;  %v778_v55 = vadd.f32 %v777_v51, %v776_v46  ;;  %644 = vst.msk [vmem:[%s1194_s8 + $0xd8] sm:$0xff] %vm616_vm1, %v1306_v57  ;;  %v588_v62 = vpop.f32.mrb[11].mxu1  ;;  %v743_v38 = vmul.f32 %v1271_v27, %v1271_v27  ;;  %v793_v39 = vsel %vm616_vm1, %v741_v63, 0.0 }
 0x10d   : > { %642 = vst.msk [vmem:[%s1194_s8 + $0xc8] sm:$0xff] %vm616_vm1, %v588_v62  ;;  %v744_v40 = vmul.f32 %v585_v53, %v585_v53  ;;  %v795_v43 = vsel %vm616_vm1, %v742_v33, 0.0  ;;  %v694_v44 = vsel %vm616_vm1, %v1271_v27, 0.0  ;;  %v696_v31 = vsel %vm616_vm1, %v585_v53, 0.0 }
 0x10e   : > { %v780_v0 = vadd.f32 %v779_v58, %v778_v55  ;;  %v679_v3 = vadd.f32 %v678_v59, %v677_v54  ;;  %v797_v47 = vsel %vm616_vm1, %v743_v38, 0.0  ;;  %v745_v49 = vmul.f32 %v588_v62, %v588_v62 }
 0x10f   : > { %v799_v22 = vsel %vm616_vm1, %v744_v40, 0.0  ;;  %v746_v52 = vmul.f32 %v1295_v48, %v1295_v48  ;;  %v698_v54 = vsel %vm616_vm1, %v588_v62, 0.0  ;;  %v700_v27 = vsel %vm616_vm1, %v1295_v48, 0.0 }
 0x110   : > { %v681_v8 = vadd.f32 %v680_v61, %v679_v3  ;;  %v782_v9 = vadd.f32 %v781_v4, %v780_v0  ;;  %v747_v53 = vmul.f32 %v1306_v57, %v1306_v57  ;;  %v801_v59 = vsel %vm616_vm1, %v745_v49, 0.0 }
 0x111   : > { %v1325_v13 = vpop.f32.mrb[12].mxu1  ;;  %v803_v4 = vsel %vm616_vm1, %v746_v52, 0.0 }
 0x112   : > { %v784_v10 = vadd.f32 %v783_v6, %v782_v9  ;;  %v683_v12 = vadd.f32 %v682_v11, %v681_v8  ;;  %647 = vst.msk [vmem:[%s1194_s8 + $0xf0] sm:$0xff] %vm616_vm1, %v1325_v13  ;;  %v601_v5 = vpop.f32.mrb[13].mxu1  ;;  %v702_v6 = vsel %vm616_vm1, %v1306_v57, 0.0  ;;  %v805_v48 = vsel %vm616_vm1, %v747_v53, 0.0 }
 0x113   : > { %645 = vst.msk [vmem:[%s1194_s8 + $0xe0] sm:$0xff] %vm616_vm1, %v601_v5  ;;  %v1339_v20 = vpop.f32.mrb[14].mxu1  ;;  %v748_v61 = vmul.f32 %v601_v5, %v601_v5  ;;  %v704_v62 = vsel %vm616_vm1, %v601_v5, 0.0 }
 0x114   : > { %v685_v18 = vadd.f32 %v684_v14, %v683_v12  ;;  %v786_v19 = vadd.f32 %v785_v16, %v784_v10  ;;  %648 = vst.msk [vmem:[%s1194_s8 + $0xf8] sm:$0xff] %vm616_vm1, %v1339_v20  ;;  %v751_v2 = vmul.f32 %v1339_v20, %v1339_v20  ;;  %v604_v23 = vpop.f32.mrb[15].mxu1  ;;  %v750_v12 = vmul.f32 %v1325_v13, %v1325_v13 }
 0x115   : > { %646 = vst.msk [vmem:[%s1194_s8 + $0xe8] sm:$0xff] %vm616_vm1, %v604_v23  ;;  %v807_v9 = vsel %vm616_vm1, %v748_v61, 0.0  ;;  %v749_v60 = vmul.f32 %v604_v23, %v604_v23  ;;  %v706_v14 = vsel %vm616_vm1, %v604_v23, 0.0  ;;  %v708_v16 = vsel %vm616_vm1, %v1325_v13, 0.0 }
 0x116   : > { %v788_v25 = vadd.f32 %v787_v56, %v786_v19  ;;  %v687_v26 = vadd.f32 %v686_v21, %v685_v18  ;;  %v813_v24 = vsel %vm616_vm1, %v751_v2, 0.0  ;;  %v811_v19 = vsel %vm616_vm1, %v750_v12, 0.0 }
 0x117   : > { %v809_v17 = vsel %vm616_vm1, %v749_v60, 0.0  ;;  %v710_v56 = vsel %vm616_vm1, %v1339_v20, 0.0 }
 0x118   : > { %v689_v30 = vadd.f32 %v688_v1, %v687_v26  ;;  %v790_v32 = vadd.f32 %v789_v28, %v788_v25 }
 0x11a   : > { %v792_v35 = vadd.f32 %v791_v29, %v790_v32  ;;  %v691_v36 = vadd.f32 %v690_v34, %v689_v30 }
 0x11c   : > { %v693_v41 = vadd.f32 %v692_v37, %v691_v36  ;;  %v794_v42 = vadd.f32 %v793_v39, %v792_v35 }
 0x11e   : > { %v796_v45 = vadd.f32 %v795_v43, %v794_v42  ;;  %v695_v46 = vadd.f32 %v694_v44, %v693_v41 }
 0x120   : > { %v697_v50 = vadd.f32 %v696_v31, %v695_v46  ;;  %v798_v51 = vadd.f32 %v797_v47, %v796_v45 }
 0x122   : > { %v800_v55 = vadd.f32 %v799_v22, %v798_v51  ;;  %v699_v58 = vadd.f32 %v698_v54, %v697_v50 }
 0x124   : > { %v701_v0 = vadd.f32 %v700_v27, %v699_v58  ;;  %v802_v3 = vadd.f32 %v801_v59, %v800_v55 }
 0x126   : > { %v804_v7 = vadd.f32 %v803_v4, %v802_v3  ;;  %v703_v8 = vadd.f32 %v702_v6, %v701_v0 }
 0x128   : > { %v705_v11 = vadd.f32 %v704_v62, %v703_v8  ;;  %v806_v10 = vadd.f32 %v805_v48, %v804_v7 }
 0x12a   : > { %v808_v15 = vadd.f32 %v807_v9, %v806_v10  ;;  %v707_v57 = vadd.f32 %v706_v14, %v705_v11 }
 0x12c   : > { %v709_v5 = vadd.f32 %v708_v16, %v707_v57  ;;  %v810_v18 = vadd.f32 %v809_v17, %v808_v15 }
 0x12e   : > { %v711_v21 = vadd.f32 %v710_v56, %v709_v5  ;;  %v812_v1 = vadd.f32 %v811_v19, %v810_v18 }
 0x130   : > { %v712_v2 = vrot.slane %v711_v21, 4  ;;  %v814_v25 = vadd.f32 %v813_v24, %v812_v1 }
 0x132   : > { %v713_v23 = vadd.f32 %v712_v2, %v711_v21  ;;  %v815_v26 = vrot.slane %v814_v25, 4 }
 0x134   : > { %v714_v28 = vrot.slane %v713_v23, 2  ;;  %v816_v29 = vadd.f32 %v815_v26, %v814_v25 }
 0x136   : > { %v715_v13 = vadd.f32 %v714_v28, %v713_v23  ;;  %v817_v63 = vrot.slane %v816_v29, 2 }
 0x138   : > { %v716_v30 = vrot.slane %v715_v13, 1  ;;  %v818_v32 = vadd.f32 %v817_v63, %v816_v29 }
 0x13a   : > { %v717_v20 = vadd.f32 %v716_v30, %v715_v13  ;;  %v819_v33 = vrot.slane %v818_v32, 1 }
 0x13c   : > { %719 = vst.msk [vmem:[%s238_s12] sm:$0x1] %vm718_vm2, %v717_v20  ;;  %v820_v34 = vadd.f32 %v819_v33, %v818_v32 }
 0x13e   : > { %821 = vst.msk [vmem:[%s238_s12 + $0x1] sm:$0x1] %vm718_vm2, %v820_v34 }
 0x13f PF: > { %s16_s18 = sadd.s32 1, %s1008_s18  }
 0x140   : > { %p13_p5 = scmp.ge.s32.totalorder %s16_s18, 4  }
 0x142   :  { %15 = sbr.rel (!%p13_p5) target bundleno = 1 (0x1), region = 78 }

// kernel: tile.233
= control target key start
LH: loop header
LB: loop body
LE: loop exit
PB: predicated region body
PF: predicated region fallthrough
CT: control target
= control target key end

     0   :  { %s22_s0 = inlined_call_operand.vmem [shape: f32[32], index: 0, kind: input, shape index: {}]   ;;  %s23_s1 = inlined_call_operand.vmem [shape: f32[4,32], index: 1, kind: output, shape index: {}]  }
   0x1   :  { %v4_v0 = vld [vmem:[%s22_s0] ss:$0 sm:$0xff] }
   0x2   :  { %5 = vst [vmem:[%s23_s1] sm:$0xf] %v4_v0 }

// kernel: tile.234
= control target key start
LH: loop header
LB: loop body
LE: loop exit
PB: predicated region body
PF: predicated region fallthrough
CT: control target
= control target key end

     0   :  { %vm7_vm0 = vcmask 261120   ;;  %s37_s8 = smov 32   ;;  %s38_s9 = smov 64   ;;  %vm13_vm1 = vcmask 1048320   ;;  %vm19_vm2 = vcmask 785920   ;;  %vm25_vm3 = vcmask 523520   ;;  %s55_s0 = inlined_call_operand.vmem [shape: f32[4,32], index: 0, kind: input, shape index: {}]   ;;  %s56_s1 = inlined_call_operand.vmem [shape: f32[1,128], index: 1, kind: output, shape index: {}]  }
   0x1   :  { %v4_v0 = vld [vmem:[%s55_s0] sm:$0xf]  ;;  %s36_s0 = smov 96  }
   0x2   :  { %5 = vst [vmem:[#allocation1] sm:$0xf] %v4_v0 }
   0x9   :  { %v10_v1 = vld [vmem:[#allocation1 + $0x3] sm:$0x1]   ;;  %v22_v2 = vld [vmem:[#allocation1 + $0x1] sm:$0x1]   ;;  %v6_v3 = vld [vmem:[#allocation1] sm:$0x1]  }
   0xa   :  { %11 = vrot.lane.b32.xlu0 %v10_v1, %s36_s0  ;;  %23 = vrot.lane.b32.xlu1 %v22_v2, %s37_s8  ;;  %v16_v4 = vld [vmem:[#allocation1 + $0x2] sm:$0x1]   ;;  %8 = vst.msk [vmem:[#allocation0] sm:$0x1] %vm7_vm0, %v6_v3  }
   0xe   :  { %17 = vrot.lane.b32.xlu0 %v16_v4, %s38_s9 }
  0x7c   :  { %v12_v5 = vpop.permute.xlu0 %11   ;;  %v24_v6 = vpop.permute.xlu1 %23  }
  0x7d   :  { %14 = vst.msk [vmem:[#allocation0] sm:$0x1] %vm13_vm1, %v12_v5  }
  0x80   :  { %v18_v7 = vpop.permute.xlu0 %17  }
  0x81   :  { %20 = vst.msk [vmem:[#allocation0] sm:$0x1] %vm19_vm2, %v18_v7  }
  0x82   :  { %26 = vst.msk [vmem:[#allocation0] sm:$0x1] %vm25_vm3, %v24_v6  }
  0x89   :  { %v30_v8 = vld [vmem:[#allocation0] sm:$0x1] }
  0x8a   :  { %32 = vst [vmem:[%s56_s1] sm:$0x1] %v30_v8 }

// kernel: tile.198
= control target key start
LH: loop header
LB: loop body
LE: loop exit
PB: predicated region body
PF: predicated region fallthrough
CT: control target
= control target key end

     0   :  { %s22_s0 = inlined_call_operand.vmem [shape: f32[16], index: 0, kind: input, shape index: {}]   ;;  %s23_s1 = inlined_call_operand.vmem [shape: f32[8,16], index: 1, kind: output, shape index: {}]  }
   0x1   :  { %v4_v0 = vld [vmem:[%s22_s0] ss:$0 sm:$0xff] }
   0x2   :  { %5 = vst [vmem:[%s23_s1] sm:$0xff] %v4_v0 }

// kernel: tile.199
= control target key start
LH: loop header
LB: loop body
LE: loop exit
PB: predicated region body
PF: predicated region fallthrough
CT: control target
= control target key end

     0   :  { %s67_s10 = smov 112   ;;  %s68_s11 = smov 80   ;;  %vm3_vm0 = vcmask 130048   ;;  %vm9_vm1 = vcmask 1048448   ;;  %vm15_vm2 = vcmask 917248   ;;  %vm21_vm3 = vcmask 786048   ;;  %s111_s0 = inlined_call_operand.vmem [shape: f32[8,16], index: 0, kind: input, shape index: {}]   ;;  %s112_s1 = inlined_call_operand.vmem [shape: f32[1,128], index: 1, kind: output, shape index: {}]  }
   0x1   :  { %v53_v0 = vld [vmem:[%s111_s0 + $0x7] sm:$0x1]   ;;  %v55_v1 = vld [vmem:[%s111_s0 + $0x5] sm:$0x1]   ;;  %v54_v2 = vld [vmem:[%s111_s0 + $0x6] sm:$0x1]  }
   0x2   :  { %7 = vrot.lane.b32.xlu0 %v53_v0, %s67_s10  ;;  %19 = vrot.lane.b32.xlu1 %v55_v1, %s68_s11  ;;  %v56_v3 = vld [vmem:[%s111_s0 + $0x4] sm:$0x1]   ;;  %v2_v4 = vld [vmem:[%s111_s0] sm:$0x1]   ;;  %s69_s18 = smov 96   ;;  %s70_s19 = smov 64  }
   0x3   :  { %4 = vst.msk [vmem:[#allocation0] sm:$0x1] %vm3_vm0, %v2_v4   ;;  %v57_v5 = vld [vmem:[%s111_s0 + $0x3] sm:$0x1]   ;;  %v58_v6 = vld [vmem:[%s111_s0 + $0x2] sm:$0x1]  }
   0x4   :  { %s71_s24 = smov 48   ;;  %s72_s25 = smov 32   ;;  %v59_v7 = vld [vmem:[%s111_s0 + $0x1] sm:$0x1]   ;;  %vm27_vm4 = vcmask 654848   ;;  %vm33_vm5 = vcmask 523648  }
   0x5   :  { %s73_s0 = smov 16   ;;  %vm39_vm6 = vcmask 392448   ;;  %vm45_vm7 = vcmask 261248  }
   0x6   :  { %13 = vrot.lane.b32.xlu0 %v54_v2, %s69_s18  ;;  %25 = vrot.lane.b32.xlu1 %v56_v3, %s70_s19 }
   0xa   :  { %31 = vrot.lane.b32.xlu0 %v57_v5, %s71_s24  ;;  %37 = vrot.lane.b32.xlu1 %v58_v6, %s72_s25 }
   0xe   :  { %43 = vrot.lane.b32.xlu0 %v59_v7, %s73_s0 }
  0x74   :  { %v8_v8 = vpop.permute.xlu0 %7   ;;  %v20_v9 = vpop.permute.xlu1 %19  }
  0x75   :  { %10 = vst.msk [vmem:[#allocation0] sm:$0x1] %vm9_vm1, %v8_v8  }
  0x78   :  { %v14_v10 = vpop.permute.xlu0 %13   ;;  %v26_v11 = vpop.permute.xlu1 %25  }
  0x79   :  { %16 = vst.msk [vmem:[#allocation0] sm:$0x1] %vm15_vm2, %v14_v10  }
  0x7a   :  { %22 = vst.msk [vmem:[#allocation0] sm:$0x1] %vm21_vm3, %v20_v9  }
  0x7b   :  { %28 = vst.msk [vmem:[#allocation0] sm:$0x1] %vm27_vm4, %v26_v11  }
  0x7c   :  { %v32_v12 = vpop.permute.xlu0 %31   ;;  %v38_v13 = vpop.permute.xlu1 %37  }
  0x7d   :  { %34 = vst.msk [vmem:[#allocation0] sm:$0x1] %vm33_vm5, %v32_v12  }
  0x7e   :  { %40 = vst.msk [vmem:[#allocation0] sm:$0x1] %vm39_vm6, %v38_v13  }
  0x80   :  { %v44_v14 = vpop.permute.xlu0 %43  }
  0x81   :  { %46 = vst.msk [vmem:[#allocation0] sm:$0x1] %vm45_vm7, %v44_v14  }
  0x88   :  { %v50_v15 = vld [vmem:[#allocation0] sm:$0x1] }
  0x89   :  { %52 = vst [vmem:[%s112_s1] sm:$0x1] %v50_v15 }

// kernel: _lambda_.34
= control target key start
LH: loop header
LB: loop body
LE: loop exit
PB: predicated region body
PF: predicated region fallthrough
CT: control target
= control target key end

     0   :  { %s2137_s12 = smov 0   ;;  %s2701_s0 = inlined_call_operand.vmem [shape: bf16[2,288,48], index: 0, kind: input, shape index: {}]   ;;  %s2702_s1 = inlined_call_operand.vmem [shape: bf16[3,48,16], index: 1, kind: input, shape index: {}]   ;;  %s2703_s2 = inlined_call_operand.vmem [shape: f32[2,256,16], index: 2, kind: output, shape index: {0}]   ;;  %s2704_s3 = inlined_call_operand.vmem [shape: f32[2,8,16], index: 3, kind: output, shape index: {1}]  }
   0x1 LB: > { %s1737_s13 = sadd.s32 4294967295, %s2115_s12   ;;  %p1741_p0 = scmp.ge.s32.totalorder %s2115_s12, 1  ;;  %s2115_s12 = sphi %s2137_s12, %s14_s12  }
   0x2   : > { %p140_p1 = scmp.lt.s32.totalorder %s2115_s12, 3 }
   0x4   : > { %p141_p2 = pnand %p1741_p0, %p140_p1 }
   0x5   : > { %v2052_v0 = vld [vmem:[%s2702_s1] sm:$0xff] (!%p141_p2)   ;;  %p168_p3 = scmp.lt.s32.totalorder (!%p141_p2), %s1737_s13, 1  ;;  %v2053_v1 = vld [vmem:[%s2702_s1 + $0x8] sm:$0xff] (!%p141_p2)   ;;  %v2054_v2 = vld [vmem:[%s2702_s1 + $0x10] sm:$0xff] (!%p141_p2)   ;;  %vm319_vm0 = vcmask (!%p141_p2), 392192   ;;  %vm529_vm1 = vcmask (!%p141_p2), 130048  }
   0x6   : > { %144 = sbr.rel (%p141_p2) target bundleno = 364 (0x16c), region = 28  ;;  %2037 = vmatprep.subr.bf16.mxu1 (!%p141_p2), %v2052_v0  ;;  %1923 = vmatprep.subr.bf16.mxu0 (!%p141_p2), %v2052_v0  ;;  %v2057_v3 = vld [vmem:[%s2702_s1 + $0x18] sm:$0xff] (!%p141_p2)   ;;  %v2062_v5 = vld [vmem:[%s2702_s1 + $0x30] sm:$0xff] (!%p141_p2)   ;;  %v2063_v10 = vld [vmem:[%s2702_s1 + $0x20] sm:$0xff] (!%p141_p2)   ;;  %vm1547_vm2 = vcmask (!%p141_p2), 122880  }
   0x7   : > { %2040 = vmatpush3.bf16.msra.mxu1 (!%p141_p2), %v2052_v0  ;;  %1924 = vmatpush3.bf16.msra.mxu0 (!%p141_p2), %v2052_v0  ;;  %v2068_v15 = vld [vmem:[%s2702_s1 + $0x38] sm:$0xff] (!%p141_p2)   ;;  %v2069_v16 = vld [vmem:[%s2702_s1 + $0x28] sm:$0xff] (!%p141_p2)   ;;  %v2078_v22 = vld [vmem:[%s2702_s1 + $0x40] sm:$0xff] (!%p141_p2)  }
   0x8   : > { %2038 = vmatprep.subr.bf16.mxu1 (!%p141_p2), %v2053_v1  ;;  %1925 = vmatprep.subr.bf16.mxu0 (!%p141_p2), %v2053_v1 }
   0xb   : > { %2041 = vmatpush3.bf16.msra.mxu1 (!%p141_p2), %v2053_v1  ;;  %1926 = vmatpush3.bf16.msra.mxu0 (!%p141_p2), %v2053_v1 }
   0xc   : > { %2039 = vmatprep.subr.bf16.mxu1 (!%p141_p2), %v2054_v2  ;;  %1927 = vmatprep.subr.bf16.mxu0 (!%p141_p2), %v2054_v2 }
   0xd   : > { %s2706_s13 = smov (!%p168_p3, %s1737_s13), 1 }
   0xe   : > { %s2043_s20 = smul.u32 144, %s2706_s13  ;;  %s1865_s9 = sshll.u32 %s2706_s13, 8 }
   0xf   : > { %2042 = vmatpush3.bf16.msra.mxu1 %v2054_v2  ;;  %1928 = vmatpush3.bf16.msra.mxu0 %v2054_v2  ;;  %s2280_s14 = scalar_lea.vmem %s2703_s2, %s1865_s9  ;;  %s1745_s15 = sshll.u32 %s2706_s13, 3 }
  0x10   : > { %s2160_s23 = scalar_lea.vmem %s2701_s0, %s2043_s20  ;;  %1961 = vmatprep.subr.bf16.mxu1 %v2057_v3  ;;  %1999 = vmatprep.subr.bf16.mxu0 %v2062_v5  ;;  %s181_s18 = scalar_lea.vmem %s2704_s3, %s1745_s15 }
  0x11   : > { %v2055_v4 = vld [vmem:[%s2160_s23 + $0x40] sm:$0xff]   ;;  %v2056_v6 = vld [vmem:[%s2160_s23 + $0x48] sm:$0xff]   ;;  %v2059_v8 = vld [vmem:[%s2160_s23 + $0x50] sm:$0xff]  }
  0x12   : > { %1945 = vmatprep.mubr.msk.bf16.mxu1 %vm319_vm0, %v2055_v4  ;;  %v2058_v7 = vld [vmem:[%s2160_s23] sm:$0xff]   ;;  %v2060_v9 = vld [vmem:[%s2160_s23 + $0x8] sm:$0xff]   ;;  %v2064_v11 = vld [vmem:[%s2160_s23 + $0x10] sm:$0xff]  }
  0x13   : > { %1929 = vmatprep.mubr.msk.bf16.mxu0 %vm319_vm0, %v2058_v7  ;;  %1946 = vmatmul.mubr.msk.bf16.vlgmr.msra.gmra.mrb[0].mxu1 %vm319_vm0, %v2056_v6  ;;  %v2061_v12 = vld [vmem:[%s2160_s23 + $0x58] sm:$0xff]   ;;  %v2065_v14 = vld [vmem:[%s2160_s23 + $0x60] sm:$0xff]   ;;  %v2067_v18 = vld [vmem:[%s2160_s23 + $0x68] sm:$0xff]  }
  0x14   : > { %1930 = vmatmul.mubr.msk.bf16.vlgmr.msra.gmra.mrb[0].mxu0 %vm319_vm0, %v2060_v9  ;;  %1962 = vmatpush3.bf16.msra.mxu1 %v2057_v3  ;;  %v2066_v13 = vld [vmem:[%s2160_s23 + $0x18] sm:$0xff]   ;;  %v2070_v17 = vld [vmem:[%s2160_s23 + $0x20] sm:$0xff]   ;;  %v2071_v19 = vld [vmem:[%s2160_s23 + $0x70] sm:$0xff]  }
  0x15   : > { %1949 = vmatprep.mubr.msk.bf16.mxu1 %vm319_vm0, %v2059_v8  ;;  %1963 = vmatprep.subr.bf16.mxu1 %v2063_v10  ;;  %v2072_v20 = vld [vmem:[%s2160_s23 + $0x28] sm:$0xff]   ;;  %v2074_v21 = vld [vmem:[%s2160_s23 + $0x30] sm:$0xff]   ;;  %v2073_v23 = vld [vmem:[%s2160_s23 + $0x78] sm:$0xff]  }
  0x16   : > { %2000 = vmatpush3.bf16.msra.mxu0 %v2062_v5  ;;  %1933 = vmatprep.mubr.msk.bf16.mxu0 %vm319_vm0, %v2064_v11  ;;  %v2075_v24 = vld [vmem:[%s2160_s23 + $0x8] sm:$0xff]   ;;  %v2076_v25 = vld [vmem:[%s2160_s23 + $0x38] sm:$0xff]   ;;  %v2080_v26 = vld [vmem:[%s2160_s23 + $0x10] sm:$0xff]  }
  0x17   : > { %2001 = vmatprep.subr.bf16.mxu0 %v2068_v15  ;;  %v2077_v27 = vld [vmem:[%s2160_s23 + $0x10] sm:$0xff]   ;;  %v2079_v28 = vld [vmem:[%s2160_s23 + $0x18] sm:$0xff]   ;;  %v2084_v30 = vld [vmem:[%s2160_s23 + $0x20] sm:$0xff]  }
  0x18   : > { %1964 = vmatpush3.bf16.msra.mxu1 %v2063_v10  ;;  %v2082_v29 = vld [vmem:[%s2160_s23 + $0x18] sm:$0xff]   ;;  %v2081_v31 = vld [vmem:[%s2160_s23 + $0x20] sm:$0xff]   ;;  %v2083_v32 = vld [vmem:[%s2160_s23 + $0x28] sm:$0xff]  }
  0x19   : > { %1965 = vmatprep.subr.bf16.mxu1 %v2069_v16  ;;  %v2086_v33 = vld [vmem:[%s2160_s23 + $0x28] sm:$0xff]   ;;  %v2088_v34 = vld [vmem:[%s2160_s23 + $0x30] sm:$0xff]   ;;  %v2090_v36 = vld [vmem:[%s2160_s23 + $0x38] sm:$0xff]  }
  0x1a   : > { %2002 = vmatpush3.bf16.msra.mxu0 %v2068_v15  ;;  %v2085_v35 = vld [vmem:[%s2160_s23 + $0x30] sm:$0xff]   ;;  %v2087_v37 = vld [vmem:[%s2160_s23 + $0x38] sm:$0xff]   ;;  %v2092_v38 = vld [vmem:[%s2160_s23 + $0x40] sm:$0xff]  }
  0x1b   : > { %1950 = vmatmul.mubr.msk.bf16.gmra.mrb[4].mxu1 %vm319_vm0, %v2061_v12  ;;  %2003 = vmatprep.subr.bf16.mxu0 %v2078_v22  ;;  %v2089_v39 = vld [vmem:[%s2160_s23 + $0x40] sm:$0xff]   ;;  %v2094_v40 = vld [vmem:[%s2160_s23 + $0x48] sm:$0xff]   ;;  %v2096_v42 = vld [vmem:[%s2160_s23 + $0x50] sm:$0xff]  }
  0x1c   : > { %1934 = vmatmul.mubr.msk.bf16.gmra.mrb[4].mxu0 %vm319_vm0, %v2066_v13  ;;  %1953 = vmatprep.mubr.msk.bf16.mxu1 %vm319_vm0, %v2065_v14  ;;  %v2091_v41 = vld [vmem:[%s2160_s23 + $0x48] sm:$0xff]   ;;  %v2093_v43 = vld [vmem:[%s2160_s23 + $0x50] sm:$0xff]   ;;  %v2098_v44 = vld [vmem:[%s2160_s23 + $0x58] sm:$0xff]  }
  0x1d   : > { %1937 = vmatprep.mubr.msk.bf16.mxu0 %vm319_vm0, %v2070_v17  ;;  %1966 = vmatpush3.bf16.msra.mxu1 %v2069_v16  ;;  %v2095_v45 = vld [vmem:[%s2160_s23 + $0x58] sm:$0xff]   ;;  %v2100_v46 = vld [vmem:[%s2160_s23 + $0x60] sm:$0xff]   ;;  %v2102_v48 = vld [vmem:[%s2160_s23 + $0x68] sm:$0xff]  }
  0x1e   : > { %2004 = vmatpush3.bf16.msra.mxu0 %v2078_v22  ;;  %v2097_v47 = vld [vmem:[%s2160_s23 + $0x60] sm:$0xff]   ;;  %v2099_v49 = vld [vmem:[%s2160_s23 + $0x68] sm:$0xff]   ;;  %v2104_v50 = vld [vmem:[%s2160_s23 + $0x70] sm:$0xff]  }
  0x1f   : > { %v2101_v51 = vld [vmem:[%s2160_s23 + $0x70] sm:$0xff]   ;;  %v2106_v52 = vld [vmem:[%s2160_s23 + $0x78] sm:$0xff]   ;;  %v2107_v54 = vld [vmem:[%s2160_s23 + $0x80] sm:$0xff]  }
  0x20   : > { %v2103_v53 = vld [vmem:[%s2160_s23 + $0x78] sm:$0xff]   ;;  %v2105_v55 = vld [vmem:[%s2160_s23 + $0x80] sm:$0xff]   ;;  %v2108_v56 = vld [vmem:[%s2160_s23 + $0x88] sm:$0xff]  }
  0x23   : > { %1954 = vmatmul.mubr.msk.bf16.gmra.mrb[8].mxu1 %vm319_vm0, %v2067_v18 }
  0x24   : > { %1938 = vmatmul.mubr.msk.bf16.gmra.mrb[8].mxu0 %vm319_vm0, %v2072_v20  ;;  %1957 = vmatprep.mubr.msk.bf16.mxu1 %vm319_vm0, %v2071_v19 }
  0x25   : > { %1941 = vmatprep.mubr.msk.bf16.mxu0 %vm319_vm0, %v2074_v21 }
  0x2b   : > { %1958 = vmatmul.mubr.msk.bf16.gmra.mrb[12].mxu1 %vm319_vm0, %v2073_v23 }
  0x2c   : > { %1942 = vmatmul.mubr.msk.bf16.gmra.mrb[12].mxu0 %vm319_vm0, %v2076_v25  ;;  %1967 = vmatprep.mubr.msk.bf16.mxu1 %vm319_vm0, %v2075_v24 }
  0x2d   : > { %2005 = vmatprep.mubr.msk.bf16.mxu0 %vm319_vm0, %v2080_v26 }
  0x33   : > { %1968 = vmatmul.mubr.msk.bf16.vlgmr.msra.gmra.mrb[16].mxu1 %vm319_vm0, %v2077_v27 }
  0x34   : > { %2006 = vmatmul.mubr.msk.bf16.vlgmr.msra.gmra.mrb[16].mxu0 %vm319_vm0, %v2082_v29  ;;  %1971 = vmatprep.mubr.msk.bf16.mxu1 %vm319_vm0, %v2079_v28 }
  0x35   : > { %2009 = vmatprep.mubr.msk.bf16.mxu0 %vm319_vm0, %v2084_v30 }
  0x3b   : > { %1972 = vmatmul.mubr.msk.bf16.gmra.mrb[20].mxu1 %vm319_vm0, %v2081_v31 }
  0x3c   : > { %2010 = vmatmul.mubr.msk.bf16.gmra.mrb[20].mxu0 %vm319_vm0, %v2086_v33  ;;  %1975 = vmatprep.mubr.msk.bf16.mxu1 %vm319_vm0, %v2083_v32 }
  0x3d   : > { %2013 = vmatprep.mubr.msk.bf16.mxu0 %vm319_vm0, %v2088_v34 }
  0x43   : > { %1976 = vmatmul.mubr.msk.bf16.gmra.mrb[24].mxu1 %vm319_vm0, %v2085_v35 }
  0x44   : > { %2014 = vmatmul.mubr.msk.bf16.gmra.mrb[24].mxu0 %vm319_vm0, %v2090_v36  ;;  %1979 = vmatprep.mubr.msk.bf16.mxu1 %vm319_vm0, %v2087_v37 }
  0x45   : > { %2017 = vmatprep.mubr.msk.bf16.mxu0 %vm319_vm0, %v2092_v38 }
  0x4b   : > { %1980 = vmatmul.mubr.msk.bf16.gmra.mrb[28].mxu1 %vm319_vm0, %v2089_v39 }
  0x4c   : > { %2018 = vmatmul.mubr.msk.bf16.gmra.mrb[28].mxu0 %vm319_vm0, %v2094_v40  ;;  %1983 = vmatprep.mubr.msk.bf16.mxu1 %vm319_vm0, %v2091_v41 }
  0x4d   : > { %2021 = vmatprep.mubr.msk.bf16.mxu0 %vm319_vm0, %v2096_v42 }
  0x53   : > { %1984 = vmatmul.mubr.msk.bf16.gmra.mrb[32].mxu1 %vm319_vm0, %v2093_v43 }
  0x54   : > { %2022 = vmatmul.mubr.msk.bf16.gmra.mrb[32].mxu0 %vm319_vm0, %v2098_v44  ;;  %1987 = vmatprep.mubr.msk.bf16.mxu1 %vm319_vm0, %v2095_v45 }
  0x55   : > { %2025 = vmatprep.mubr.msk.bf16.mxu0 %vm319_vm0, %v2100_v46 }
  0x5b   : > { %1988 = vmatmul.mubr.msk.bf16.gmra.mrb[36].mxu1 %vm319_vm0, %v2097_v47 }
  0x5c   : > { %2026 = vmatmul.mubr.msk.bf16.gmra.mrb[36].mxu0 %vm319_vm0, %v2102_v48  ;;  %1991 = vmatprep.mubr.msk.bf16.mxu1 %vm319_vm0, %v2099_v49 }
  0x5d   : > { %2029 = vmatprep.mubr.msk.bf16.mxu0 %vm319_vm0, %v2104_v50 }
  0x63   : > { %1992 = vmatmul.mubr.msk.bf16.gmra.mrb[40].mxu1 %vm319_vm0, %v2101_v51 }
  0x64   : > { %2030 = vmatmul.mubr.msk.bf16.gmra.mrb[40].mxu0 %vm319_vm0, %v2106_v52  ;;  %1995 = vmatprep.mubr.msk.bf16.mxu1 %vm319_vm0, %v2103_v53 }
  0x65   : > { %2033 = vmatprep.mubr.msk.bf16.mxu0 %vm319_vm0, %v2107_v54 }
  0x6b   : > { %1996 = vmatmul.mubr.msk.bf16.gmra.mrb[44].mxu1 %vm319_vm0, %v2105_v55 }
  0x6c   : > { %2034 = vmatmul.mubr.msk.bf16.gmra.mrb[44].mxu0 %vm319_vm0, %v2108_v56 }
  0xe6   : > { %v1947_v57 = vpop.f32.mrb[0].mxu1 }
  0xe7   : > { %v1931_v58 = vpop.f32.mrb[0].mxu0  ;;  %548 = vst.msk [vmem:[%s2280_s14 + $0x90] sm:$0xff] %vm529_vm1, %v1947_v57  ;;  %v466_v59 = vpop.f32.mrb[1].mxu1 }
  0xe8   : > { %532 = vst.msk [vmem:[%s2280_s14 + $0x10] sm:$0xff] %vm529_vm1, %v1931_v58  ;;  %v402_v60 = vpop.f32.mrb[1].mxu0  ;;  %546 = vst.msk [vmem:[%s2280_s14 + $0x80] sm:$0xff] %vm529_vm1, %v466_v59  ;;  %v1948_v61 = vpop.f32.mrb[2].mxu1 }
  0xe9   : > { %530 = vst.msk [vmem:[%s2280_s14] sm:$0xff] %vm529_vm1, %v402_v60  ;;  %v1932_v62 = vpop.f32.mrb[2].mxu0  ;;  %549 = vst.msk [vmem:[%s2280_s14 + $0x98] sm:$0xff] %vm529_vm1, %v1948_v61  ;;  %v469_v63 = vpop.f32.mrb[3].mxu1 }
  0xea   : > { %533 = vst.msk [vmem:[%s2280_s14 + $0x18] sm:$0xff] %vm529_vm1, %v1932_v62  ;;  %v405_v0 = vpop.f32.mrb[3].mxu0  ;;  %547 = vst.msk [vmem:[%s2280_s14 + $0x88] sm:$0xff] %vm529_vm1, %v469_v63 }
  0xeb   : > { %531 = vst.msk [vmem:[%s2280_s14 + $0x8] sm:$0xff] %vm529_vm1, %v405_v0 }
  0xee   : > { %v1951_v1 = vpop.f32.mrb[4].mxu1 }
  0xef   : > { %v1935_v2 = vpop.f32.mrb[4].mxu0  ;;  %552 = vst.msk [vmem:[%s2280_s14 + $0xb0] sm:$0xff] %vm529_vm1, %v1951_v1  ;;  %v482_v3 = vpop.f32.mrb[5].mxu1  ;;  %v564_v25 = vld [vmem:[%s2280_s14 + $0x10] sm:$0xff] }
  0xf0   : > { %536 = vst.msk [vmem:[%s2280_s14 + $0x30] sm:$0xff] %vm529_vm1, %v1935_v2  ;;  %v418_v4 = vpop.f32.mrb[5].mxu0  ;;  %550 = vst.msk [vmem:[%s2280_s14 + $0xa0] sm:$0xff] %vm529_vm1, %v482_v3  ;;  %v1952_v5 = vpop.f32.mrb[6].mxu1  ;;  %v562_v29 = vld [vmem:[%s2280_s14] sm:$0xff] }
  0xf1   : > { %534 = vst.msk [vmem:[%s2280_s14 + $0x20] sm:$0xff] %vm529_vm1, %v418_v4  ;;  %v1936_v6 = vpop.f32.mrb[6].mxu0  ;;  %553 = vst.msk [vmem:[%s2280_s14 + $0xb8] sm:$0xff] %vm529_vm1, %v1952_v5  ;;  %v485_v7 = vpop.f32.mrb[7].mxu1  ;;  %v565_v33 = vld [vmem:[%s2280_s14 + $0x18] sm:$0xff] }
  0xf2   : > { %537 = vst.msk [vmem:[%s2280_s14 + $0x38] sm:$0xff] %vm529_vm1, %v1936_v6  ;;  %v421_v8 = vpop.f32.mrb[7].mxu0  ;;  %551 = vst.msk [vmem:[%s2280_s14 + $0xa8] sm:$0xff] %vm529_vm1, %v485_v7  ;;  %v563_v37 = vld [vmem:[%s2280_s14 + $0x8] sm:$0xff] }
  0xf3   : > { %535 = vst.msk [vmem:[%s2280_s14 + $0x28] sm:$0xff] %vm529_vm1, %v421_v8 }
  0xf6   : > { %v1955_v9 = vpop.f32.mrb[8].mxu1 }
  0xf7   : > { %v1939_v10 = vpop.f32.mrb[8].mxu0  ;;  %556 = vst.msk [vmem:[%s2280_s14 + $0xd0] sm:$0xff] %vm529_vm1, %v1955_v9  ;;  %v498_v11 = vpop.f32.mrb[9].mxu1  ;;  %v568_v41 = vld [vmem:[%s2280_s14 + $0x30] sm:$0xff] }
  0xf8   : > { %540 = vst.msk [vmem:[%s2280_s14 + $0x50] sm:$0xff] %vm529_vm1, %v1939_v10  ;;  %v434_v12 = vpop.f32.mrb[9].mxu0  ;;  %554 = vst.msk [vmem:[%s2280_s14 + $0xc0] sm:$0xff] %vm529_vm1, %v498_v11  ;;  %v1956_v13 = vpop.f32.mrb[10].mxu1  ;;  %v566_v45 = vld [vmem:[%s2280_s14 + $0x20] sm:$0xff] }
  0xf9   : > { %538 = vst.msk [vmem:[%s2280_s14 + $0x40] sm:$0xff] %vm529_vm1, %v434_v12  ;;  %v1940_v14 = vpop.f32.mrb[10].mxu0  ;;  %557 = vst.msk [vmem:[%s2280_s14 + $0xd8] sm:$0xff] %vm529_vm1, %v1956_v13  ;;  %v501_v15 = vpop.f32.mrb[11].mxu1  ;;  %v569_v50 = vld [vmem:[%s2280_s14 + $0x38] sm:$0xff] }
  0xfa   : > { %541 = vst.msk [vmem:[%s2280_s14 + $0x58] sm:$0xff] %vm529_vm1, %v1940_v14  ;;  %v437_v16 = vpop.f32.mrb[11].mxu0  ;;  %555 = vst.msk [vmem:[%s2280_s14 + $0xc8] sm:$0xff] %vm529_vm1, %v501_v15  ;;  %v567_v56 = vld [vmem:[%s2280_s14 + $0x28] sm:$0xff] }
  0xfb   : > { %539 = vst.msk [vmem:[%s2280_s14 + $0x48] sm:$0xff] %vm529_vm1, %v437_v16 }
  0xfe   : > { %v1959_v17 = vpop.f32.mrb[12].mxu1 }
  0xff   : > { %v1943_v18 = vpop.f32.mrb[12].mxu0  ;;  %560 = vst.msk [vmem:[%s2280_s14 + $0xf0] sm:$0xff] %vm529_vm1, %v1959_v17  ;;  %v514_v19 = vpop.f32.mrb[13].mxu1  ;;  %v572_v1 = vld [vmem:[%s2280_s14 + $0x50] sm:$0xff] }
 0x100   : > { %544 = vst.msk [vmem:[%s2280_s14 + $0x70] sm:$0xff] %vm529_vm1, %v1943_v18  ;;  %v450_v20 = vpop.f32.mrb[13].mxu0  ;;  %558 = vst.msk [vmem:[%s2280_s14 + $0xe0] sm:$0xff] %vm529_vm1, %v514_v19  ;;  %v1960_v21 = vpop.f32.mrb[14].mxu1  ;;  %v570_v5 = vld [vmem:[%s2280_s14 + $0x40] sm:$0xff] }
 0x101   : > { %542 = vst.msk [vmem:[%s2280_s14 + $0x60] sm:$0xff] %vm529_vm1, %v450_v20  ;;  %v1944_v22 = vpop.f32.mrb[14].mxu0  ;;  %561 = vst.msk [vmem:[%s2280_s14 + $0xf8] sm:$0xff] %vm529_vm1, %v1960_v21  ;;  %v517_v23 = vpop.f32.mrb[15].mxu1  ;;  %v573_v10 = vld [vmem:[%s2280_s14 + $0x58] sm:$0xff] }
 0x102   : > { %545 = vst.msk [vmem:[%s2280_s14 + $0x78] sm:$0xff] %vm529_vm1, %v1944_v22  ;;  %v453_v24 = vpop.f32.mrb[15].mxu0  ;;  %559 = vst.msk [vmem:[%s2280_s14 + $0xe8] sm:$0xff] %vm529_vm1, %v517_v23  ;;  %v571_v16 = vld [vmem:[%s2280_s14 + $0x48] sm:$0xff] }
 0x103   : > { %543 = vst.msk [vmem:[%s2280_s14 + $0x68] sm:$0xff] %vm529_vm1, %v453_v24 }
 0x106   : > { %v1969_v26 = vpop.f32.mrb[16].mxu1 }
 0x107   : > { %v2007_v27 = vpop.f32.mrb[16].mxu0  ;;  %v942_v28 = vadd.f32 %v1969_v26, %v564_v25  ;;  %v813_v30 = vpop.f32.mrb[17].mxu1 }
 0x108   : > { %v1255_v31 = vpop.f32.mrb[17].mxu0  ;;  %v940_v32 = vadd.f32 %v813_v30, %v562_v29  ;;  %v1970_v34 = vpop.f32.mrb[18].mxu1 }
 0x109   : > { %v2008_v35 = vpop.f32.mrb[18].mxu0  ;;  %974 = vst.msk [vmem:[%s2280_s14 + $0x10] sm:$0xff] %vm529_vm1, %v942_v28  ;;  %v943_v36 = vadd.f32 %v1970_v34, %v565_v33  ;;  %v816_v38 = vpop.f32.mrb[19].mxu1  ;;  %v576_v34 = vld [vmem:[%s2280_s14 + $0x70] sm:$0xff] }
 0x10a   : > { %v1258_v39 = vpop.f32.mrb[19].mxu0  ;;  %972 = vst.msk [vmem:[%s2280_s14] sm:$0xff] %vm529_vm1, %v940_v32  ;;  %v941_v40 = vadd.f32 %v816_v38, %v563_v37 }
 0x10b   : > { %975 = vst.msk [vmem:[%s2280_s14 + $0x18] sm:$0xff] %vm529_vm1, %v943_v36 }
 0x10c   : > { %973 = vst.msk [vmem:[%s2280_s14 + $0x8] sm:$0xff] %vm529_vm1, %v941_v40  ;;  %v574_v40 = vld [vmem:[%s2280_s14 + $0x60] sm:$0xff] }
 0x10e   : > { %v1973_v42 = vpop.f32.mrb[20].mxu1 }
 0x10f   : > { %v2011_v43 = vpop.f32.mrb[20].mxu0  ;;  %v946_v44 = vadd.f32 %v1973_v42, %v568_v41  ;;  %v829_v46 = vpop.f32.mrb[21].mxu1  ;;  %v577_v42 = vld [vmem:[%s2280_s14 + $0x78] sm:$0xff] }
 0x110   : > { %v1271_v47 = vpop.f32.mrb[21].mxu0  ;;  %v1006_v48 = vld [vmem:[%s2280_s14 + $0x10] sm:$0xff]  ;;  %v944_v49 = vadd.f32 %v829_v46, %v566_v45  ;;  %v1974_v51 = vpop.f32.mrb[22].mxu1 }
 0x111   : > { %v2012_v52 = vpop.f32.mrb[22].mxu0  ;;  %978 = vst.msk [vmem:[%s2280_s14 + $0x30] sm:$0xff] %vm529_vm1, %v946_v44  ;;  %v1384_v53 = vadd.f32 %v2007_v27, %v1006_v48  ;;  %v1004_v54 = vld [vmem:[%s2280_s14] sm:$0xff]  ;;  %v947_v55 = vadd.f32 %v1974_v51, %v569_v50  ;;  %v832_v57 = vpop.f32.mrb[23].mxu1 }
 0x112   : > { %v1274_v58 = vpop.f32.mrb[23].mxu0  ;;  %976 = vst.msk [vmem:[%s2280_s14 + $0x20] sm:$0xff] %vm529_vm1, %v944_v49  ;;  %v1382_v59 = vadd.f32 %v1255_v31, %v1004_v54  ;;  %v1007_v60 = vld [vmem:[%s2280_s14 + $0x18] sm:$0xff]  ;;  %v945_v61 = vadd.f32 %v832_v57, %v567_v56  ;;  %v575_v56 = vld [vmem:[%s2280_s14 + $0x68] sm:$0xff] }
 0x113   : > { %1416 = vst.msk [vmem:[%s2280_s14 + $0x10] sm:$0xff] %vm529_vm1, %v1384_v53  ;;  %979 = vst.msk [vmem:[%s2280_s14 + $0x38] sm:$0xff] %vm529_vm1, %v947_v55  ;;  %v1385_v62 = vadd.f32 %v2008_v35, %v1007_v60  ;;  %v1005_v63 = vld [vmem:[%s2280_s14 + $0x8] sm:$0xff] }
 0x114   : > { %1414 = vst.msk [vmem:[%s2280_s14] sm:$0xff] %vm529_vm1, %v1382_v59  ;;  %977 = vst.msk [vmem:[%s2280_s14 + $0x28] sm:$0xff] %vm529_vm1, %v945_v61  ;;  %v1383_v0 = vadd.f32 %v1258_v39, %v1005_v63 }
 0x115   : > { %1417 = vst.msk [vmem:[%s2280_s14 + $0x18] sm:$0xff] %vm529_vm1, %v1385_v62 }
 0x116   : > { %1415 = vst.msk [vmem:[%s2280_s14 + $0x8] sm:$0xff] %vm529_vm1, %v1383_v0  ;;  %v1977_v2 = vpop.f32.mrb[24].mxu1 }
 0x117   : > { %v2015_v3 = vpop.f32.mrb[24].mxu0  ;;  %v950_v4 = vadd.f32 %v1977_v2, %v572_v1  ;;  %v845_v6 = vpop.f32.mrb[25].mxu1 }
 0x118   : > { %v2384_v7 = vpop.f32.mrb[25].mxu0  ;;  %v1010_v8 = vld [vmem:[%s2280_s14 + $0x30] sm:$0xff]  ;;  %v948_v9 = vadd.f32 %v845_v6, %v570_v5  ;;  %v1978_v11 = vpop.f32.mrb[26].mxu1 }
 0x119   : > { %v2388_v12 = vpop.f32.mrb[26].mxu0  ;;  %982 = vst.msk [vmem:[%s2280_s14 + $0x50] sm:$0xff] %vm529_vm1, %v950_v4  ;;  %v1388_v13 = vadd.f32 %v2011_v43, %v1010_v8  ;;  %v1008_v14 = vld [vmem:[%s2280_s14 + $0x20] sm:$0xff]  ;;  %v951_v15 = vadd.f32 %v1978_v11, %v573_v10  ;;  %v848_v17 = vpop.f32.mrb[27].mxu1 }
 0x11a   : > { %v2394_v18 = vpop.f32.mrb[27].mxu0  ;;  %980 = vst.msk [vmem:[%s2280_s14 + $0x40] sm:$0xff] %vm529_vm1, %v948_v9  ;;  %v1386_v19 = vadd.f32 %v1271_v47, %v1008_v14  ;;  %v1011_v20 = vld [vmem:[%s2280_s14 + $0x38] sm:$0xff]  ;;  %v949_v21 = vadd.f32 %v848_v17, %v571_v16  ;;  %v1448_v22 = vld [vmem:[%s2280_s14 + $0x10] sm:$0xff] }
 0x11b   : > { %v1446_v23 = vld [vmem:[%s2280_s14] sm:$0xff]  ;;  %1420 = vst.msk [vmem:[%s2280_s14 + $0x30] sm:$0xff] %vm529_vm1, %v1388_v13  ;;  %983 = vst.msk [vmem:[%s2280_s14 + $0x58] sm:$0xff] %vm529_vm1, %v951_v15  ;;  %v1389_v24 = vadd.f32 %v2012_v52, %v1011_v20  ;;  %v1009_v25 = vld [vmem:[%s2280_s14 + $0x28] sm:$0xff]  ;;  %v1551_v30 = vmul.f32 %v1448_v22, %v1448_v22  ;;  %v1481_v44 = vsel %vm529_vm1, %v1448_v22, 0.0 }
 0x11c   : > { %v1549_v26 = vmul.f32 %v1446_v23, %v1446_v23  ;;  %v1449_v27 = vld [vmem:[%s2280_s14 + $0x18] sm:$0xff]  ;;  %1418 = vst.msk [vmem:[%s2280_s14 + $0x20] sm:$0xff] %vm529_vm1, %v1386_v19  ;;  %981 = vst.msk [vmem:[%s2280_s14 + $0x48] sm:$0xff] %vm529_vm1, %v949_v21  ;;  %v1387_v28 = vadd.f32 %v1274_v58, %v1009_v25  ;;  %v1478_v31 = vsel %vm529_vm1, %v1446_v23, 0.0  ;;  %v578_v25 = vld [vmem:[%s2280_s14 + $0x80] sm:$0xff] }
 0x11d   : > { %v1447_v29 = vld [vmem:[%s2280_s14 + $0x8] sm:$0xff]  ;;  %1421 = vst.msk [vmem:[%s2280_s14 + $0x38] sm:$0xff] %vm529_vm1, %v1389_v24  ;;  %v1552_v37 = vmul.f32 %v1449_v27, %v1449_v27  ;;  %v1584_v59 = vsel %vm529_vm1, %v1551_v30, 0.0  ;;  %v1483_v60 = vsel %vm529_vm1, %v1449_v27, 0.0 }
 0x11e   : > { %v1479_v32 = vsel %vm529_vm1, %v1447_v29, 0.0  ;;  %v1550_v33 = vmul.f32 %v1447_v29, %v1447_v29  ;;  %1419 = vst.msk [vmem:[%s2280_s14 + $0x28] sm:$0xff] %vm529_vm1, %v1387_v28  ;;  %v1981_v35 = vpop.f32.mrb[28].mxu1  ;;  %v1581_v45 = vsel %vm529_vm1, %v1549_v26, 0.0 }
 0x11f   : > { %v2419_v36 = vpop.f32.mrb[28].mxu0  ;;  %v1480_v38 = vadd.f32 %v1479_v32, %v1478_v31  ;;  %v954_v39 = vadd.f32 %v1981_v35, %v576_v34  ;;  %v861_v41 = vpop.f32.mrb[29].mxu1  ;;  %v1586_v0 = vsel %vm529_vm1, %v1552_v37, 0.0  ;;  %v581_v32 = vld [vmem:[%s2280_s14 + $0x98] sm:$0xff] }
 0x120   : > { %v2423_v43 = vpop.f32.mrb[29].mxu0  ;;  %v1582_v46 = vsel %vm529_vm1, %v1550_v33, 0.0  ;;  %v1014_v47 = vld [vmem:[%s2280_s14 + $0x50] sm:$0xff]  ;;  %v952_v48 = vadd.f32 %v861_v41, %v574_v40  ;;  %v1982_v49 = vpop.f32.mrb[30].mxu1  ;;  %v579_v41 = vld [vmem:[%s2280_s14 + $0x88] sm:$0xff] }
 0x121   : > { %v2429_v50 = vpop.f32.mrb[30].mxu0  ;;  %v1482_v51 = vadd.f32 %v1481_v44, %v1480_v38  ;;  %v1583_v52 = vadd.f32 %v1582_v46, %v1581_v45  ;;  %986 = vst.msk [vmem:[%s2280_s14 + $0x70] sm:$0xff] %vm529_vm1, %v954_v39  ;;  %v1392_v53 = vadd.f32 %v2015_v3, %v1014_v47  ;;  %v1012_v54 = vld [vmem:[%s2280_s14 + $0x40] sm:$0xff]  ;;  %v955_v55 = vadd.f32 %v1982_v49, %v577_v42  ;;  %v864_v57 = vpop.f32.mrb[31].mxu1 }
 0x122   : > { %v2435_v58 = vpop.f32.mrb[31].mxu0  ;;  %984 = vst.msk [vmem:[%s2280_s14 + $0x60] sm:$0xff] %vm529_vm1, %v952_v48  ;;  %v1390_v61 = vadd.f32 %v2384_v7, %v1012_v54  ;;  %v1015_v62 = vld [vmem:[%s2280_s14 + $0x58] sm:$0xff]  ;;  %v953_v63 = vadd.f32 %v864_v57, %v575_v56  ;;  %v1452_v2 = vld [vmem:[%s2280_s14 + $0x30] sm:$0xff] }
 0x123   : > { %v1585_v1 = vadd.f32 %v1584_v59, %v1583_v52  ;;  %v1450_v3 = vld [vmem:[%s2280_s14 + $0x20] sm:$0xff]  ;;  %v1484_v4 = vadd.f32 %v1483_v60, %v1482_v51  ;;  %1424 = vst.msk [vmem:[%s2280_s14 + $0x50] sm:$0xff] %vm529_vm1, %v1392_v53  ;;  %987 = vst.msk [vmem:[%s2280_s14 + $0x78] sm:$0xff] %vm529_vm1, %v955_v55  ;;  %v1013_v5 = vld [vmem:[%s2280_s14 + $0x48] sm:$0xff]  ;;  %v1393_v9 = vadd.f32 %v2388_v12, %v1015_v62  ;;  %v1489_v28 = vsel %vm529_vm1, %v1452_v2, 0.0 }
 0x124   : > { %v1485_v6 = vsel %vm529_vm1, %v1450_v3, 0.0  ;;  %v1553_v7 = vmul.f32 %v1450_v3, %v1450_v3  ;;  %v1453_v8 = vld [vmem:[%s2280_s14 + $0x38] sm:$0xff]  ;;  %1422 = vst.msk [vmem:[%s2280_s14 + $0x40] sm:$0xff] %vm529_vm1, %v1390_v61  ;;  %985 = vst.msk [vmem:[%s2280_s14 + $0x68] sm:$0xff] %vm529_vm1, %v953_v63  ;;  %v1391_v10 = vadd.f32 %v2394_v18, %v1013_v5  ;;  %v1555_v15 = vmul.f32 %v1452_v2, %v1452_v2  ;;  %v580_v12 = vld [vmem:[%s2280_s14 + $0x90] sm:$0xff] }
 0x125   : > { %v1486_v11 = vadd.f32 %v1485_v6, %v1484_v4  ;;  %v1587_v13 = vadd.f32 %v1586_v0, %v1585_v1  ;;  %v1451_v14 = vld [vmem:[%s2280_s14 + $0x28] sm:$0xff]  ;;  %1425 = vst.msk [vmem:[%s2280_s14 + $0x58] sm:$0xff] %vm529_vm1, %v1393_v9  ;;  %v1556_v22 = vmul.f32 %v1453_v8, %v1453_v8  ;;  %v1491_v46 = vsel %vm529_vm1, %v1453_v8, 0.0  ;;  %v582_v8 = vld [vmem:[%s2280_s14 + $0xa0] sm:$0xff] }
 0x126   : > { %v1588_v16 = vsel %vm529_vm1, %v1553_v7, 0.0  ;;  %v1487_v17 = vsel %vm529_vm1, %v1451_v14, 0.0  ;;  %v1554_v19 = vmul.f32 %v1451_v14, %v1451_v14  ;;  %1423 = vst.msk [vmem:[%s2280_s14 + $0x48] sm:$0xff] %vm529_vm1, %v1391_v10  ;;  %v1985_v20 = vpop.f32.mrb[32].mxu1  ;;  %v1592_v45 = vsel %vm529_vm1, %v1555_v15, 0.0 }
 0x127   : > { %v2467_v21 = vpop.f32.mrb[32].mxu0  ;;  %v1589_v18 = vadd.f32 %v1588_v16, %v1587_v13  ;;  %v1488_v23 = vadd.f32 %v1487_v17, %v1486_v11  ;;  %v958_v24 = vadd.f32 %v1985_v20, %v580_v12  ;;  %v877_v26 = vpop.f32.mrb[33].mxu1  ;;  %v1594_v49 = vsel %vm529_vm1, %v1556_v22, 0.0  ;;  %v585_v16 = vld [vmem:[%s2280_s14 + $0xb8] sm:$0xff] }
 0x128   : > { %v2470_v27 = vpop.f32.mrb[33].mxu0  ;;  %v1590_v29 = vsel %vm529_vm1, %v1554_v19, 0.0  ;;  %v1018_v30 = vld [vmem:[%s2280_s14 + $0x70] sm:$0xff]  ;;  %v956_v31 = vadd.f32 %v877_v26, %v578_v25  ;;  %v1986_v33 = vpop.f32.mrb[34].mxu1 }
 0x129   : > { %v2476_v34 = vpop.f32.mrb[34].mxu0  ;;  %v1490_v35 = vadd.f32 %v1489_v28, %v1488_v23  ;;  %v1591_v37 = vadd.f32 %v1590_v29, %v1589_v18  ;;  %990 = vst.msk [vmem:[%s2280_s14 + $0x90] sm:$0xff] %vm529_vm1, %v958_v24  ;;  %v1396_v38 = vadd.f32 %v2419_v36, %v1018_v30  ;;  %v1016_v39 = vld [vmem:[%s2280_s14 + $0x60] sm:$0xff]  ;;  %v959_v40 = vadd.f32 %v1986_v33, %v581_v32  ;;  %v880_v42 = vpop.f32.mrb[35].mxu1  ;;  %v583_v24 = vld [vmem:[%s2280_s14 + $0xa8] sm:$0xff] }
 0x12a   : > { %v2483_v44 = vpop.f32.mrb[35].mxu0  ;;  %988 = vst.msk [vmem:[%s2280_s14 + $0x80] sm:$0xff] %vm529_vm1, %v956_v31  ;;  %v1394_v47 = vadd.f32 %v2423_v43, %v1016_v39  ;;  %v1019_v36 = vld [vmem:[%s2280_s14 + $0x78] sm:$0xff]  ;;  %v957_v48 = vadd.f32 %v880_v42, %v579_v41  ;;  %v1456_v52 = vld [vmem:[%s2280_s14 + $0x50] sm:$0xff] }
 0x12b   : > { %v1593_v51 = vadd.f32 %v1592_v45, %v1591_v37  ;;  %v1454_v53 = vld [vmem:[%s2280_s14 + $0x40] sm:$0xff]  ;;  %v1492_v54 = vadd.f32 %v1491_v46, %v1490_v35  ;;  %1428 = vst.msk [vmem:[%s2280_s14 + $0x70] sm:$0xff] %vm529_vm1, %v1396_v38  ;;  %991 = vst.msk [vmem:[%s2280_s14 + $0x98] sm:$0xff] %vm529_vm1, %v959_v40  ;;  %v1017_v55 = vld [vmem:[%s2280_s14 + $0x68] sm:$0xff]  ;;  %v1397_v57 = vadd.f32 %v2429_v50, %v1019_v36  ;;  %v1497_v11 = vsel %vm529_vm1, %v1456_v52, 0.0 }
 0x12c   : > { %v1493_v43 = vsel %vm529_vm1, %v1454_v53, 0.0  ;;  %v1557_v56 = vmul.f32 %v1454_v53, %v1454_v53  ;;  %1426 = vst.msk [vmem:[%s2280_s14 + $0x60] sm:$0xff] %vm529_vm1, %v1394_v47  ;;  %989 = vst.msk [vmem:[%s2280_s14 + $0x88] sm:$0xff] %vm529_vm1, %v957_v48  ;;  %v1395_v59 = vadd.f32 %v2435_v58, %v1017_v55  ;;  %v1457_v62 = vld [vmem:[%s2280_s14 + $0x58] sm:$0xff]  ;;  %v1559_v0 = vmul.f32 %v1456_v52, %v1456_v52  ;;  %v584_v50 = vld [vmem:[%s2280_s14 + $0xb0] sm:$0xff] }
 0x12d   : > { %v1494_v60 = vadd.f32 %v1493_v43, %v1492_v54  ;;  %v1595_v61 = vadd.f32 %v1594_v49, %v1593_v51  ;;  %v1455_v63 = vld [vmem:[%s2280_s14 + $0x48] sm:$0xff]  ;;  %1429 = vst.msk [vmem:[%s2280_s14 + $0x78] sm:$0xff] %vm529_vm1, %v1397_v57  ;;  %v1560_v13 = vmul.f32 %v1457_v62, %v1457_v62  ;;  %v1499_v28 = vsel %vm529_vm1, %v1457_v62, 0.0  ;;  %v588_v49 = vld [vmem:[%s2280_s14 + $0xd0] sm:$0xff]  ;;  %v586_v43 = vld [vmem:[%s2280_s14 + $0xc0] sm:$0xff] }
 0x12e   : > { %v1596_v1 = vsel %vm529_vm1, %v1557_v56, 0.0  ;;  %v1495_v2 = vsel %vm529_vm1, %v1455_v63, 0.0  ;;  %1427 = vst.msk [vmem:[%s2280_s14 + $0x68] sm:$0xff] %vm529_vm1, %v1395_v59  ;;  %v1989_v3 = vpop.f32.mrb[36].mxu1  ;;  %v1558_v6 = vmul.f32 %v1455_v63, %v1455_v63  ;;  %v1600_v32 = vsel %vm529_vm1, %v1559_v0, 0.0  ;;  %v589_v0 = vld [vmem:[%s2280_s14 + $0xd8] sm:$0xff] }
 0x12f   : > { %v2515_v4 = vpop.f32.mrb[36].mxu0  ;;  %v1597_v58 = vadd.f32 %v1596_v1, %v1595_v61  ;;  %v1496_v5 = vadd.f32 %v1495_v2, %v1494_v60  ;;  %v962_v7 = vadd.f32 %v1989_v3, %v584_v50  ;;  %v893_v9 = vpop.f32.mrb[37].mxu1  ;;  %v1602_v45 = vsel %vm529_vm1, %v1560_v13, 0.0 }
 0x130   : > { %v2518_v10 = vpop.f32.mrb[37].mxu0  ;;  %v1022_v14 = vld [vmem:[%s2280_s14 + $0x90] sm:$0xff]  ;;  %v960_v15 = vadd.f32 %v893_v9, %v582_v8  ;;  %v1990_v17 = vpop.f32.mrb[38].mxu1  ;;  %v1598_v20 = vsel %vm529_vm1, %v1558_v6, 0.0 }
 0x131   : > { %v2523_v19 = vpop.f32.mrb[38].mxu0  ;;  %v1498_v12 = vadd.f32 %v1497_v11, %v1496_v5  ;;  %994 = vst.msk [vmem:[%s2280_s14 + $0xb0] sm:$0xff] %vm529_vm1, %v962_v7  ;;  %v1400_v18 = vadd.f32 %v2467_v21, %v1022_v14  ;;  %v1020_v22 = vld [vmem:[%s2280_s14 + $0x80] sm:$0xff]  ;;  %v963_v23 = vadd.f32 %v1990_v17, %v585_v16  ;;  %v896_v25 = vpop.f32.mrb[39].mxu1  ;;  %v1599_v29 = vadd.f32 %v1598_v20, %v1597_v58  ;;  %v587_v7 = vld [vmem:[%s2280_s14 + $0xc8] sm:$0xff] }
 0x132   : > { %v2531_v26 = vpop.f32.mrb[39].mxu0  ;;  %992 = vst.msk [vmem:[%s2280_s14 + $0xa0] sm:$0xff] %vm529_vm1, %v960_v15  ;;  %v1398_v30 = vadd.f32 %v2470_v27, %v1020_v22  ;;  %v1023_v31 = vld [vmem:[%s2280_s14 + $0x98] sm:$0xff]  ;;  %v961_v21 = vadd.f32 %v896_v25, %v583_v24  ;;  %v1460_v27 = vld [vmem:[%s2280_s14 + $0x70] sm:$0xff] }
 0x133   : > { %v1458_v33 = vld [vmem:[%s2280_s14 + $0x60] sm:$0xff]  ;;  %v1500_v35 = vadd.f32 %v1499_v28, %v1498_v12  ;;  %1432 = vst.msk [vmem:[%s2280_s14 + $0x90] sm:$0xff] %vm529_vm1, %v1400_v18  ;;  %995 = vst.msk [vmem:[%s2280_s14 + $0xb8] sm:$0xff] %vm529_vm1, %v963_v23  ;;  %v1401_v37 = vadd.f32 %v2476_v34, %v1023_v31  ;;  %v1021_v38 = vld [vmem:[%s2280_s14 + $0x88] sm:$0xff]  ;;  %v1601_v39 = vadd.f32 %v1600_v32, %v1599_v29  ;;  %v1505_v59 = vsel %vm529_vm1, %v1460_v27, 0.0 }
 0x134   : > { %v1501_v40 = vsel %vm529_vm1, %v1458_v33, 0.0  ;;  %v1561_v41 = vmul.f32 %v1458_v33, %v1458_v33  ;;  %1430 = vst.msk [vmem:[%s2280_s14 + $0x80] sm:$0xff] %vm529_vm1, %v1398_v30  ;;  %993 = vst.msk [vmem:[%s2280_s14 + $0xa8] sm:$0xff] %vm529_vm1, %v961_v21  ;;  %v1399_v42 = vadd.f32 %v2483_v44, %v1021_v38  ;;  %v1461_v48 = vld [vmem:[%s2280_s14 + $0x78] sm:$0xff]  ;;  %v1563_v44 = vmul.f32 %v1460_v27, %v1460_v27 }
 0x135   : > { %v1502_v46 = vadd.f32 %v1501_v40, %v1500_v35  ;;  %v1459_v47 = vld [vmem:[%s2280_s14 + $0x68] sm:$0xff]  ;;  %1433 = vst.msk [vmem:[%s2280_s14 + $0x98] sm:$0xff] %vm529_vm1, %v1401_v37  ;;  %v1603_v34 = vadd.f32 %v1602_v45, %v1601_v39  ;;  %v1564_v50 = vmul.f32 %v1461_v48, %v1461_v48  ;;  %v1507_v17 = vsel %vm529_vm1, %v1461_v48, 0.0  ;;  %v592_v35 = vld [vmem:[%s2280_s14 + $0xf0] sm:$0xff]  ;;  %v593_v48 = vld [vmem:[%s2280_s14 + $0xf8] sm:$0xff] }
 0x136   : > { %v1604_v36 = vsel %vm529_vm1, %v1561_v41, 0.0  ;;  %1431 = vst.msk [vmem:[%s2280_s14 + $0x88] sm:$0xff] %vm529_vm1, %v1399_v42  ;;  %v1993_v51 = vpop.f32.mrb[40].mxu1  ;;  %v1503_v53 = vsel %vm529_vm1, %v1459_v47, 0.0  ;;  %v1562_v54 = vmul.f32 %v1459_v47, %v1459_v47 }
 0x137   : > { %v2562_v52 = vpop.f32.mrb[40].mxu0  ;;  %v966_v55 = vadd.f32 %v1993_v51, %v588_v49  ;;  %v909_v56 = vpop.f32.mrb[41].mxu1  ;;  %v1605_v60 = vadd.f32 %v1604_v36, %v1603_v34  ;;  %v1504_v61 = vadd.f32 %v1503_v53, %v1502_v46  ;;  %v1610_v28 = vsel %vm529_vm1, %v1564_v50, 0.0 }
 0x138   : > { %v2566_v57 = vpop.f32.mrb[41].mxu0  ;;  %v1026_v62 = vld [vmem:[%s2280_s14 + $0xb0] sm:$0xff]  ;;  %v964_v63 = vadd.f32 %v909_v56, %v586_v43  ;;  %v1994_v1 = vpop.f32.mrb[42].mxu1  ;;  %v1606_v3 = vsel %vm529_vm1, %v1562_v54, 0.0  ;;  %v591_v56 = vld [vmem:[%s2280_s14 + $0xe8] sm:$0xff] }
 0x139   : > { %v2571_v2 = vpop.f32.mrb[42].mxu0  ;;  %998 = vst.msk [vmem:[%s2280_s14 + $0xd0] sm:$0xff] %vm529_vm1, %v966_v55  ;;  %v1404_v58 = vadd.f32 %v2515_v4, %v1026_v62  ;;  %v1024_v5 = vld [vmem:[%s2280_s14 + $0xa0] sm:$0xff]  ;;  %v967_v6 = vadd.f32 %v1994_v1, %v589_v0  ;;  %v912_v8 = vpop.f32.mrb[43].mxu1  ;;  %v1506_v11 = vadd.f32 %v1505_v59, %v1504_v61  ;;  %v1607_v13 = vadd.f32 %v1606_v3, %v1605_v60 }
 0x13a   : > { %v2579_v9 = vpop.f32.mrb[43].mxu0  ;;  %996 = vst.msk [vmem:[%s2280_s14 + $0xc0] sm:$0xff] %vm529_vm1, %v964_v63  ;;  %v1402_v14 = vadd.f32 %v2518_v10, %v1024_v5  ;;  %v1027_v15 = vld [vmem:[%s2280_s14 + $0xb8] sm:$0xff]  ;;  %v965_v16 = vadd.f32 %v912_v8, %v587_v7  ;;  %v1608_v4 = vsel %vm529_vm1, %v1563_v44, 0.0  ;;  %v1464_v10 = vld [vmem:[%s2280_s14 + $0x90] sm:$0xff] }
 0x13b   : > { %v1462_v12 = vld [vmem:[%s2280_s14 + $0x80] sm:$0xff]  ;;  %1436 = vst.msk [vmem:[%s2280_s14 + $0xb0] sm:$0xff] %vm529_vm1, %v1404_v58  ;;  %999 = vst.msk [vmem:[%s2280_s14 + $0xd8] sm:$0xff] %vm529_vm1, %v967_v6  ;;  %v1405_v20 = vadd.f32 %v2523_v19, %v1027_v15  ;;  %v1025_v18 = vld [vmem:[%s2280_s14 + $0xa8] sm:$0xff]  ;;  %v1609_v22 = vadd.f32 %v1608_v4, %v1607_v13  ;;  %v1508_v23 = vadd.f32 %v1507_v17, %v1506_v11  ;;  %v1513_v45 = vsel %vm529_vm1, %v1464_v10, 0.0 }
 0x13c   : > { %v1509_v24 = vsel %vm529_vm1, %v1462_v12, 0.0  ;;  %v1565_v25 = vmul.f32 %v1462_v12, %v1462_v12  ;;  %1434 = vst.msk [vmem:[%s2280_s14 + $0xa0] sm:$0xff] %vm529_vm1, %v1402_v14  ;;  %997 = vst.msk [vmem:[%s2280_s14 + $0xc8] sm:$0xff] %vm529_vm1, %v965_v16  ;;  %v1403_v19 = vadd.f32 %v2531_v26, %v1025_v18  ;;  %v1465_v32 = vld [vmem:[%s2280_s14 + $0x98] sm:$0xff]  ;;  %v1567_v39 = vmul.f32 %v1464_v10, %v1464_v10  ;;  %v590_v26 = vld [vmem:[%s2280_s14 + $0xe0] sm:$0xff] }
 0x13d   : > { %v1463_v29 = vld [vmem:[%s2280_s14 + $0x88] sm:$0xff]  ;;  %1437 = vst.msk [vmem:[%s2280_s14 + $0xb8] sm:$0xff] %vm529_vm1, %v1405_v20  ;;  %v1510_v30 = vadd.f32 %v1509_v24, %v1508_v23  ;;  %v1611_v31 = vadd.f32 %v1610_v28, %v1609_v22  ;;  %v1568_v44 = vmul.f32 %v1465_v32, %v1465_v32  ;;  %v1515_v50 = vsel %vm529_vm1, %v1465_v32, 0.0 }
 0x13e   : > { %v1612_v21 = vsel %vm529_vm1, %v1565_v25, 0.0  ;;  %v1511_v33 = vsel %vm529_vm1, %v1463_v29, 0.0  ;;  %v1997_v37 = vpop.f32.mrb[44].mxu1  ;;  %v1566_v27 = vmul.f32 %v1463_v29, %v1463_v29  ;;  %1435 = vst.msk [vmem:[%s2280_s14 + $0xa8] sm:$0xff] %vm529_vm1, %v1403_v19 }
 0x13f   : > { %v2609_v38 = vpop.f32.mrb[44].mxu0  ;;  %v970_v40 = vadd.f32 %v1997_v37, %v592_v35  ;;  %v925_v41 = vpop.f32.mrb[45].mxu1  ;;  %v1613_v46 = vadd.f32 %v1612_v21, %v1611_v31  ;;  %v1512_v47 = vadd.f32 %v1511_v33, %v1510_v30  ;;  %v1618_v13 = vsel %vm529_vm1, %v1568_v44, 0.0 }
 0x140   : > { %v1367_v42 = vpop.f32.mrb[45].mxu0  ;;  %v1030_v34 = vld [vmem:[%s2280_s14 + $0xd0] sm:$0xff]  ;;  %v968_v36 = vadd.f32 %v925_v41, %v590_v26  ;;  %v1998_v49 = vpop.f32.mrb[46].mxu1  ;;  %v1614_v53 = vsel %vm529_vm1, %v1566_v27, 0.0 }
 0x141   : > { %v2036_v51 = vpop.f32.mrb[46].mxu0  ;;  %1002 = vst.msk [vmem:[%s2280_s14 + $0xf0] sm:$0xff] %vm529_vm1, %v970_v40  ;;  %v1408_v54 = vadd.f32 %v2562_v52, %v1030_v34  ;;  %v1028_v55 = vld [vmem:[%s2280_s14 + $0xc0] sm:$0xff]  ;;  %v971_v43 = vadd.f32 %v1998_v49, %v593_v48  ;;  %v928_v59 = vpop.f32.mrb[47].mxu1  ;;  %v1514_v61 = vadd.f32 %v1513_v45, %v1512_v47  ;;  %v1615_v62 = vadd.f32 %v1614_v53, %v1613_v46 }
 0x142   : > { %v1370_v60 = vpop.f32.mrb[47].mxu0  ;;  %1000 = vst.msk [vmem:[%s2280_s14 + $0xe0] sm:$0xff] %vm529_vm1, %v968_v36  ;;  %v1406_v63 = vadd.f32 %v2566_v57, %v1028_v55  ;;  %v1031_v0 = vld [vmem:[%s2280_s14 + $0xd8] sm:$0xff]  ;;  %v969_v1 = vadd.f32 %v928_v59, %v591_v56  ;;  %v1616_v52 = vsel %vm529_vm1, %v1567_v39, 0.0  ;;  %v1468_v57 = vld [vmem:[%s2280_s14 + $0xb0] sm:$0xff] }
 0x143   : > { %v1466_v3 = vld [vmem:[%s2280_s14 + $0xa0] sm:$0xff]  ;;  %1440 = vst.msk [vmem:[%s2280_s14 + $0xd0] sm:$0xff] %vm529_vm1, %v1408_v54  ;;  %1003 = vst.msk [vmem:[%s2280_s14 + $0xf8] sm:$0xff] %vm529_vm1, %v971_v43  ;;  %v1409_v58 = vadd.f32 %v2571_v2, %v1031_v0  ;;  %v1029_v5 = vld [vmem:[%s2280_s14 + $0xc8] sm:$0xff]  ;;  %v1617_v6 = vadd.f32 %v1616_v52, %v1615_v62  ;;  %v1516_v7 = vadd.f32 %v1515_v50, %v1514_v61  ;;  %v1521_v23 = vsel %vm529_vm1, %v1468_v57, 0.0 }
 0x144   : > { %v1517_v8 = vsel %vm529_vm1, %v1466_v3, 0.0  ;;  %v1569_v11 = vmul.f32 %v1466_v3, %v1466_v3  ;;  %1438 = vst.msk [vmem:[%s2280_s14 + $0xc0] sm:$0xff] %vm529_vm1, %v1406_v63  ;;  %1001 = vst.msk [vmem:[%s2280_s14 + $0xe8] sm:$0xff] %vm529_vm1, %v969_v1  ;;  %v1407_v2 = vadd.f32 %v2579_v9, %v1029_v5  ;;  %v1469_v4 = vld [vmem:[%s2280_s14 + $0xb8] sm:$0xff]  ;;  %v1571_v12 = vmul.f32 %v1468_v57, %v1468_v57 }
 0x145   : > { %1441 = vst.msk [vmem:[%s2280_s14 + $0xd8] sm:$0xff] %vm529_vm1, %v1409_v58  ;;  %v1518_v14 = vadd.f32 %v1517_v8, %v1516_v7  ;;  %v1619_v15 = vadd.f32 %v1618_v13, %v1617_v6  ;;  %v1467_v17 = vld [vmem:[%s2280_s14 + $0xa8] sm:$0xff]  ;;  %v1572_v24 = vmul.f32 %v1469_v4, %v1469_v4  ;;  %v1523_v33 = vsel %vm529_vm1, %v1469_v4, 0.0 }
 0x146   : > { %v1620_v16 = vsel %vm529_vm1, %v1569_v11, 0.0  ;;  %v1519_v20 = vsel %vm529_vm1, %v1467_v17, 0.0  ;;  %v1570_v18 = vmul.f32 %v1467_v17, %v1467_v17  ;;  %1439 = vst.msk [vmem:[%s2280_s14 + $0xc8] sm:$0xff] %vm529_vm1, %v1407_v2  ;;  %v1624_v32 = vsel %vm529_vm1, %v1571_v12, 0.0 }
 0x147   : > { %v1621_v22 = vadd.f32 %v1620_v16, %v1619_v15  ;;  %v1520_v10 = vadd.f32 %v1519_v20, %v1518_v14 }
 0x148   : > { %v1034_v9 = vld [vmem:[%s2280_s14 + $0xf0] sm:$0xff]  ;;  %v1622_v25 = vsel %vm529_vm1, %v1570_v18, 0.0 }
 0x149   : > { %v1412_v28 = vadd.f32 %v2609_v38, %v1034_v9  ;;  %v1032_v29 = vld [vmem:[%s2280_s14 + $0xe0] sm:$0xff]  ;;  %v1522_v19 = vadd.f32 %v1521_v23, %v1520_v10  ;;  %v1623_v30 = vadd.f32 %v1622_v25, %v1621_v22 }
 0x14a   : > { %v1410_v31 = vadd.f32 %v1367_v42, %v1032_v29  ;;  %v1035_v21 = vld [vmem:[%s2280_s14 + $0xf8] sm:$0xff]  ;;  %v1472_v38 = vld [vmem:[%s2280_s14 + $0xd0] sm:$0xff]  ;;  %v1626_v42 = vsel %vm529_vm1, %v1572_v24, 0.0 }
 0x14b   : > { %v1470_v35 = vld [vmem:[%s2280_s14 + $0xc0] sm:$0xff]  ;;  %1444 = vst.msk [vmem:[%s2280_s14 + $0xf0] sm:$0xff] %vm529_vm1, %v1412_v28  ;;  %v1413_v37 = vadd.f32 %v2036_v51, %v1035_v21  ;;  %v1033_v39 = vld [vmem:[%s2280_s14 + $0xe8] sm:$0xff]  ;;  %v1625_v27 = vadd.f32 %v1624_v32, %v1623_v30  ;;  %v1524_v40 = vadd.f32 %v1523_v33, %v1522_v19  ;;  %v1575_v49 = vmul.f32 %v1472_v38, %v1472_v38 }
 0x14c   : > { %v1525_v26 = vsel %vm529_vm1, %v1470_v35, 0.0  ;;  %v1573_v41 = vmul.f32 %v1470_v35, %v1470_v35  ;;  %1442 = vst.msk [vmem:[%s2280_s14 + $0xe0] sm:$0xff] %vm529_vm1, %v1410_v31  ;;  %v1411_v45 = vadd.f32 %v1370_v60, %v1033_v39  ;;  %v1473_v36 = vld [vmem:[%s2280_s14 + $0xd8] sm:$0xff]  ;;  %v1529_v55 = vsel %vm529_vm1, %v1472_v38, 0.0 }
 0x14d   : > { %1445 = vst.msk [vmem:[%s2280_s14 + $0xf8] sm:$0xff] %vm529_vm1, %v1413_v37  ;;  %v1526_v46 = vadd.f32 %v1525_v26, %v1524_v40  ;;  %v1627_v47 = vadd.f32 %v1626_v42, %v1625_v27  ;;  %v1471_v48 = vld [vmem:[%s2280_s14 + $0xc8] sm:$0xff]  ;;  %v1576_v43 = vmul.f32 %v1473_v36, %v1473_v36  ;;  %v1632_v61 = vsel %vm529_vm1, %v1575_v49, 0.0 }
 0x14e   : > { %v1628_v34 = vsel %vm529_vm1, %v1573_v41, 0.0  ;;  %v1527_v51 = vsel %vm529_vm1, %v1471_v48, 0.0  ;;  %v1574_v44 = vmul.f32 %v1471_v48, %v1471_v48  ;;  %1443 = vst.msk [vmem:[%s2280_s14 + $0xe8] sm:$0xff] %vm529_vm1, %v1411_v45  ;;  %v1531_v62 = vsel %vm529_vm1, %v1473_v36, 0.0 }
 0x14f   : > { %v1629_v53 = vadd.f32 %v1628_v34, %v1627_v47  ;;  %v1528_v54 = vadd.f32 %v1527_v51, %v1526_v46  ;;  %v1634_v58 = vsel %vm529_vm1, %v1576_v43, 0.0 }
 0x150   : > { %v1630_v56 = vsel %vm529_vm1, %v1574_v44, 0.0 }
 0x151   : > { %v1530_v59 = vadd.f32 %v1529_v55, %v1528_v54  ;;  %v1631_v60 = vadd.f32 %v1630_v56, %v1629_v53 }
 0x152   : > { %v1476_v1 = vld [vmem:[%s2280_s14 + $0xf0] sm:$0xff] }
 0x153   : > { %v1474_v63 = vld [vmem:[%s2280_s14 + $0xe0] sm:$0xff]  ;;  %v1633_v0 = vadd.f32 %v1632_v61, %v1631_v60  ;;  %v1532_v52 = vadd.f32 %v1531_v62, %v1530_v59  ;;  %v1579_v11 = vmul.f32 %v1476_v1, %v1476_v1  ;;  %v1537_v16 = vsel %vm529_vm1, %v1476_v1, 0.0 }
 0x154   : > { %v1533_v50 = vsel %vm529_vm1, %v1474_v63, 0.0  ;;  %v1577_v3 = vmul.f32 %v1474_v63, %v1474_v63  ;;  %v1477_v7 = vld [vmem:[%s2280_s14 + $0xf8] sm:$0xff] }
 0x155   : > { %v1534_v5 = vadd.f32 %v1533_v50, %v1532_v52  ;;  %v1635_v6 = vadd.f32 %v1634_v58, %v1633_v0  ;;  %v1475_v8 = vld [vmem:[%s2280_s14 + $0xe8] sm:$0xff]  ;;  %v1580_v4 = vmul.f32 %v1477_v7, %v1477_v7  ;;  %v1640_v18 = vsel %vm529_vm1, %v1579_v11, 0.0 }
 0x156   : > { %v1636_v57 = vsel %vm529_vm1, %v1577_v3, 0.0  ;;  %v1535_v13 = vsel %vm529_vm1, %v1475_v8, 0.0  ;;  %v1578_v2 = vmul.f32 %v1475_v8, %v1475_v8  ;;  %v1539_v22 = vsel %vm529_vm1, %v1477_v7, 0.0 }
 0x157   : > { %v1637_v14 = vadd.f32 %v1636_v57, %v1635_v6  ;;  %v1536_v15 = vadd.f32 %v1535_v13, %v1534_v5  ;;  %v1642_v23 = vsel %vm529_vm1, %v1580_v4, 0.0 }
 0x158   : > { %v1638_v17 = vsel %vm529_vm1, %v1578_v2, 0.0 }
 0x159   : > { %v1538_v12 = vadd.f32 %v1537_v16, %v1536_v15  ;;  %v1639_v20 = vadd.f32 %v1638_v17, %v1637_v14 }
 0x15b   : > { %v1540_v10 = vadd.f32 %v1539_v22, %v1538_v12  ;;  %v1641_v9 = vadd.f32 %v1640_v18, %v1639_v20 }
 0x15d   : > { %v1541_v24 = vrot.slane %v1540_v10, 4  ;;  %v1643_v25 = vadd.f32 %v1642_v23, %v1641_v9 }
 0x15f   : > { %v1542_v28 = vadd.f32 %v1541_v24, %v1540_v10  ;;  %v1644_v29 = vrot.slane %v1643_v25, 4 }
 0x161   : > { %v1543_v19 = vrot.slane %v1542_v28, 2  ;;  %v1645_v30 = vadd.f32 %v1644_v29, %v1643_v25 }
 0x163   : > { %v1544_v31 = vadd.f32 %v1543_v19, %v1542_v28  ;;  %v1646_v21 = vrot.slane %v1645_v30, 2 }
 0x165   : > { %v1545_v32 = vrot.slane %v1544_v31, 1  ;;  %v1647_v33 = vadd.f32 %v1646_v21, %v1645_v30 }
 0x167   : > { %v1546_v35 = vadd.f32 %v1545_v32, %v1544_v31  ;;  %v1648_v37 = vrot.slane %v1647_v33, 1 }
 0x169   : > { %1548 = vst.msk [vmem:[%s181_s18] sm:$0x1] %vm1547_vm2, %v1546_v35  ;;  %v1649_v39 = vadd.f32 %v1648_v37, %v1647_v33 }
 0x16b   : > { %1650 = vst.msk [vmem:[%s181_s18 + $0x1] sm:$0x1] %vm1547_vm2, %v1649_v39 }
 0x16c PF: > { %s14_s12 = sadd.s32 1, %s2115_s12  }
 0x16d   : > { %p11_p4 = scmp.ge.s32.totalorder %s14_s12, 4  }
 0x16f   :  { %13 = sbr.rel (!%p11_p4) target bundleno = 1 (0x1), region = 72 }

// kernel: _lambda_.43
= control target key start
LH: loop header
LB: loop body
LE: loop exit
PB: predicated region body
PF: predicated region fallthrough
CT: control target
= control target key end

     0   :  { %s360_s0 = inlined_call_operand.vmem [shape: f32[128,128], index: 0, kind: input, shape index: {}]   ;;  %s361_s1 = inlined_call_operand.vmem [shape: f32[128,128], index: 1, kind: input, shape index: {}]   ;;  %s362_s2 = inlined_call_operand.vmem [shape: f32[1,128], index: 2, kind: input, shape index: {}]   ;;  %s363_s3 = inlined_call_operand.vmem [shape: f32[1,128], index: 3, kind: input, shape index: {}]   ;;  %s364_s4 = inlined_call_operand.vmem [shape: f32[128,128], index: 4, kind: output, shape index: {}]  }
   0x1   :  { %v17_v0 = vld [vmem:[%s360_s0] sm:$0xff]  ;;  %v18_v4 = vld [vmem:[%s360_s0 + $0x8] sm:$0xff]  ;;  %v19_v7 = vld [vmem:[%s360_s0 + $0x10] sm:$0xff] }
   0x2   :  { %v180_v1 = vld [vmem:[%s362_s2] ss:$0 sm:$0xff]  ;;  %v20_v8 = vld [vmem:[%s360_s0 + $0x18] sm:$0xff]  ;;  %v80_v10 = vld [vmem:[%s361_s1 + $0x8] sm:$0xff] }
   0x3   :  { %v185_v2 = vld [vmem:[%s363_s3] ss:$0 sm:$0xff]  ;;  %v40_v3 = vmul.f32 %v180_v1, %v17_v0  ;;  %v41_v6 = vmul.f32 %v180_v1, %v18_v4  ;;  %v42_v11 = vmul.f32 %v180_v1, %v19_v7  ;;  %v81_v12 = vld [vmem:[%s361_s1 + $0x10] sm:$0xff]  ;;  %v43_v13 = vmul.f32 %v180_v1, %v20_v8  ;;  %v82_v16 = vld [vmem:[%s361_s1 + $0x18] sm:$0xff] }
   0x4   :  { %v79_v5 = vld [vmem:[%s361_s1] sm:$0xff]  ;;  %v22_v18 = vld [vmem:[%s360_s0 + $0x28] sm:$0xff]  ;;  %v23_v19 = vld [vmem:[%s360_s0 + $0x30] sm:$0xff] }
   0x5   :  { %v63_v9 = vadd.f32 %v185_v2, %v40_v3  ;;  %v21_v14 = vld [vmem:[%s360_s0 + $0x20] sm:$0xff]  ;;  %v64_v15 = vadd.f32 %v185_v2, %v41_v6  ;;  %v65_v21 = vadd.f32 %v185_v2, %v42_v11  ;;  %v66_v22 = vadd.f32 %v185_v2, %v43_v13  ;;  %v24_v25 = vld [vmem:[%s360_s0 + $0x38] sm:$0xff]  ;;  %v84_v28 = vld [vmem:[%s361_s1 + $0x28] sm:$0xff] }
   0x6   :  { %v44_v17 = vmul.f32 %v180_v1, %v21_v14  ;;  %v83_v23 = vld [vmem:[%s361_s1 + $0x20] sm:$0xff]  ;;  %v45_v24 = vmul.f32 %v180_v1, %v22_v18  ;;  %v46_v29 = vmul.f32 %v180_v1, %v23_v19  ;;  %v47_v30 = vmul.f32 %v180_v1, %v24_v25  ;;  %v85_v36 = vld [vmem:[%s361_s1 + $0x30] sm:$0xff]  ;;  %v86_v37 = vld [vmem:[%s361_s1 + $0x38] sm:$0xff] }
   0x7   :  { %v95_v20 = vadd.f32 %v79_v5, %v63_v9  ;;  %v96_v26 = vadd.f32 %v80_v10, %v64_v15  ;;  %v25_v31 = vld [vmem:[%s360_s0 + $0x40] sm:$0xff]  ;;  %v97_v33 = vadd.f32 %v81_v12, %v65_v21  ;;  %v98_v34 = vadd.f32 %v82_v16, %v66_v22  ;;  %v26_v38 = vld [vmem:[%s360_s0 + $0x48] sm:$0xff]  ;;  %v27_v43 = vld [vmem:[%s360_s0 + $0x50] sm:$0xff] }
   0x8   :  { %v67_v27 = vadd.f32 %v185_v2, %v44_v17  ;;  %v68_v35 = vadd.f32 %v185_v2, %v45_v24  ;;  %v69_v41 = vadd.f32 %v185_v2, %v46_v29  ;;  %v70_v42 = vadd.f32 %v185_v2, %v47_v30  ;;  %v28_v44 = vld [vmem:[%s360_s0 + $0x58] sm:$0xff]  ;;  %v29_v49 = vld [vmem:[%s360_s0 + $0x60] sm:$0xff]  ;;  %v30_v55 = vld [vmem:[%s360_s0 + $0x68] sm:$0xff] }
   0x9   :  { %v111_v32 = vmax.f32 %v95_v20, 0.0  ;;  %v112_v39 = vmax.f32 %v96_v26, 0.0  ;;  %v113_v45 = vmax.f32 %v97_v33, 0.0  ;;  %v114_v46 = vmax.f32 %v98_v34, 0.0  ;;  %v87_v53 = vld [vmem:[%s361_s1 + $0x40] sm:$0xff]  ;;  %v88_v58 = vld [vmem:[%s361_s1 + $0x48] sm:$0xff] }
   0xa   :  { %v99_v40 = vadd.f32 %v83_v23, %v67_v27  ;;  %v100_v47 = vadd.f32 %v84_v28, %v68_v35  ;;  %v48_v48 = vmul.f32 %v180_v1, %v25_v31  ;;  %v101_v51 = vadd.f32 %v85_v36, %v69_v41  ;;  %v31_v61 = vld [vmem:[%s360_s0 + $0x70] sm:$0xff]  ;;  %v32_v62 = vld [vmem:[%s360_s0 + $0x78] sm:$0xff]  ;;  %v91_v10 = vld [vmem:[%s361_s1 + $0x60] sm:$0xff] }
   0xb   :  { %127 = vst [vmem:[%s364_s4] sm:$0xff] %v111_v32  ;;  %128 = vst [vmem:[%s364_s4 + $0x8] sm:$0xff] %v112_v39  ;;  %v102_v52 = vadd.f32 %v86_v37, %v70_v42  ;;  %v49_v54 = vmul.f32 %v180_v1, %v26_v38  ;;  %v50_v59 = vmul.f32 %v180_v1, %v27_v43  ;;  %v89_v4 = vld [vmem:[%s361_s1 + $0x50] sm:$0xff]  ;;  %v90_v5 = vld [vmem:[%s361_s1 + $0x58] sm:$0xff] }
   0xc   :  { %v115_v50 = vmax.f32 %v99_v40, 0.0  ;;  %129 = vst [vmem:[%s364_s4 + $0x10] sm:$0xff] %v113_v45  ;;  %130 = vst [vmem:[%s364_s4 + $0x18] sm:$0xff] %v114_v46  ;;  %v116_v56 = vmax.f32 %v100_v47, 0.0  ;;  %v71_v57 = vadd.f32 %v185_v2, %v48_v48  ;;  %v51_v60 = vmul.f32 %v180_v1, %v28_v44  ;;  %v92_v14 = vld [vmem:[%s361_s1 + $0x68] sm:$0xff]  ;;  %v93_v21 = vld [vmem:[%s361_s1 + $0x70] sm:$0xff] }
   0xd   :  { %v117_v63 = vmax.f32 %v101_v51, 0.0  ;;  %v118_v0 = vmax.f32 %v102_v52, 0.0  ;;  %v72_v3 = vadd.f32 %v185_v2, %v49_v54  ;;  %v52_v6 = vmul.f32 %v180_v1, %v29_v49  ;;  %v94_v22 = vld [vmem:[%s361_s1 + $0x78] sm:$0xff] }
   0xe   :  { %131 = vst [vmem:[%s364_s4 + $0x20] sm:$0xff] %v115_v50  ;;  %132 = vst [vmem:[%s364_s4 + $0x28] sm:$0xff] %v116_v56  ;;  %v103_v7 = vadd.f32 %v87_v53, %v71_v57  ;;  %v73_v8 = vadd.f32 %v185_v2, %v50_v59  ;;  %v74_v9 = vadd.f32 %v185_v2, %v51_v60 }
   0xf   :  { %v53_v11 = vmul.f32 %v180_v1, %v30_v55  ;;  %133 = vst [vmem:[%s364_s4 + $0x30] sm:$0xff] %v117_v63  ;;  %134 = vst [vmem:[%s364_s4 + $0x38] sm:$0xff] %v118_v0  ;;  %v104_v12 = vadd.f32 %v88_v58, %v72_v3  ;;  %v75_v13 = vadd.f32 %v185_v2, %v52_v6 }
  0x10   :  { %v54_v15 = vmul.f32 %v180_v1, %v31_v61  ;;  %v55_v16 = vmul.f32 %v180_v1, %v32_v62  ;;  %v119_v17 = vmax.f32 %v103_v7, 0.0  ;;  %v105_v18 = vadd.f32 %v89_v4, %v73_v8 }
  0x11   :  { %v106_v19 = vadd.f32 %v90_v5, %v74_v9  ;;  %v76_v20 = vadd.f32 %v185_v2, %v53_v11  ;;  %v120_v23 = vmax.f32 %v104_v12, 0.0  ;;  %v107_v24 = vadd.f32 %v91_v10, %v75_v13 }
  0x12   :  { %v77_v25 = vadd.f32 %v185_v2, %v54_v15  ;;  %v78_v26 = vadd.f32 %v185_v2, %v55_v16  ;;  %135 = vst [vmem:[%s364_s4 + $0x40] sm:$0xff] %v119_v17  ;;  %v121_v1 = vmax.f32 %v105_v18, 0.0 }
  0x13   :  { %v122_v27 = vmax.f32 %v106_v19, 0.0  ;;  %v108_v28 = vadd.f32 %v92_v14, %v76_v20  ;;  %136 = vst [vmem:[%s364_s4 + $0x48] sm:$0xff] %v120_v23  ;;  %v123_v29 = vmax.f32 %v107_v24, 0.0 }
  0x14   :  { %v109_v30 = vadd.f32 %v93_v21, %v77_v25  ;;  %v110_v31 = vadd.f32 %v94_v22, %v78_v26  ;;  %137 = vst [vmem:[%s364_s4 + $0x50] sm:$0xff] %v121_v1 }
  0x15   :  { %138 = vst [vmem:[%s364_s4 + $0x58] sm:$0xff] %v122_v27  ;;  %v124_v2 = vmax.f32 %v108_v28, 0.0  ;;  %139 = vst [vmem:[%s364_s4 + $0x60] sm:$0xff] %v123_v29 }
  0x16   :  { %v125_v32 = vmax.f32 %v109_v30, 0.0  ;;  %v126_v33 = vmax.f32 %v110_v31, 0.0 }
  0x17   :  { %140 = vst [vmem:[%s364_s4 + $0x68] sm:$0xff] %v124_v2 }
  0x18   :  { %141 = vst [vmem:[%s364_s4 + $0x70] sm:$0xff] %v125_v32  ;;  %142 = vst [vmem:[%s364_s4 + $0x78] sm:$0xff] %v126_v33 }

// kernel: _lambda_.44
= control target key start
LH: loop header
LB: loop body
LE: loop exit
PB: predicated region body
PF: predicated region fallthrough
CT: control target
= control target key end

     0   :  { %s1037_s18 = smov 0   ;;  %s1401_s0 = inlined_call_operand.vmem [shape: f32[512,8], index: 0, kind: input, shape index: {}]   ;;  %s1402_s1 = inlined_call_operand.vmem [shape: f32[1,8], index: 1, kind: input, shape index: {}]   ;;  %s1403_s2 = inlined_call_operand.vmem [shape: f32[1,8], index: 2, kind: input, shape index: {}]   ;;  %s1404_s3 = inlined_call_operand.vmem [shape: bf16[8,16], index: 3, kind: input, shape index: {}]   ;;  %s1405_s4 = inlined_call_operand.vmem [shape: f32[512,16], index: 4, kind: output, shape index: {0}]   ;;  %s1406_s5 = inlined_call_operand.vmem [shape: f32[16,16], index: 5, kind: output, shape index: {1}]  }
   0x1 LB: > { %s1043_s19 = sadd.s32 4294967295, %s1005_s18   ;;  %p910_p0 = scmp.ge.s32.totalorder %s1005_s18, 1  ;;  %s1005_s18 = sphi %s1037_s18, %s16_s18  }
   0x2   : > { %p191_p1 = scmp.lt.s32.totalorder %s1005_s18, 3 }
   0x4   : > { %p192_p2 = pnand %p910_p0, %p191_p1 }
   0x5   : > { %v398_v0 = vld [vmem:[%s1404_s3] sm:$0xf] (!%p192_p2)  ;;  %vm448_vm0 = vcmask (!%p192_p2), 1043456   ;;  %s911_s22 = sshll.u32 (!%p192_p2), %s1043_s19, 5  ;;  %vm399_vm1 = vcmask (!%p192_p2), 64512   ;;  %vm613_vm2 = vcmask (!%p192_p2), 130048  }
   0x6   : > { %195 = sbr.rel (%p192_p2) target bundleno = 319 (0x13f), region = 36  ;;  %989 = vmatprep.subr.msk.bf16.mxu0 (!%p192_p2), %vm448_vm0, %v398_v0  ;;  %v450_v1 = vsel (!%p192_p2), %vm448_vm0, %v398_v0, 0  ;;  %p224_p3 = scmp.lt.s32.totalorder (!%p192_p2), %s911_s22, 63  ;;  %990 = vmatprep.subr.msk.bf16.mxu1 (!%p192_p2), %vm448_vm0, %v398_v0  ;;  %v1057_v2 = vld [vmem:[%s1402_s1] ss:$0 sm:$0xff] (!%p192_p2)  ;;  %vm715_vm3 = vcmask (!%p192_p2), 122880  }
   0x7   : > { %954 = vmatpush3.bf16.msra.mxu0 (!%p192_p2), %v450_v1  ;;  %988 = vmatpush3.bf16.msra.mxu1 (!%p192_p2), %v450_v1  ;;  %v1069_v3 = vld [vmem:[%s1403_s2] ss:$0 sm:$0xff] (!%p192_p2)  ;;  %p235_p4 = scmp.lt.s32.totalorder (!%p192_p2), %s1043_s19, 1 }
   0xd   : > { %s1408_s22 = smov (!%p224_p3, %s911_s22), 63  ;;  %s1410_s19 = smov (!%p235_p4, %s1043_s19), 1 }
   0xe   : > { %s912_s23 = sshll.u32 %s1408_s22, 3  ;;  %s915_s9 = sshll.u32 %s1410_s19, 3 }
   0xf   : > { %s1064_s28 = scalar_lea.vmem %s1401_s0, %s912_s23  ;;  %s1191_s8 = scalar_lea.vmem %s1405_s4, %s912_s23 }
  0x10   : > { %v240_v4 = vld [vmem:[%s1064_s28] sm:$0xff]  ;;  %v241_v5 = vld [vmem:[%s1064_s28 + $0x8] sm:$0xff]  ;;  %v242_v6 = vld [vmem:[%s1064_s28 + $0x10] sm:$0xff]  ;;  %s238_s12 = scalar_lea.vmem %s1406_s5, %s915_s9 }
  0x11   : > { %v279_v7 = vmul.f32 %v1057_v2, %v240_v4  ;;  %v280_v8 = vmul.f32 %v1057_v2, %v241_v5  ;;  %v243_v9 = vld [vmem:[%s1064_s28 + $0x18] sm:$0xff]  ;;  %v281_v10 = vmul.f32 %v1057_v2, %v242_v6  ;;  %v244_v11 = vld [vmem:[%s1064_s28 + $0x20] sm:$0xff]  ;;  %v245_v12 = vld [vmem:[%s1064_s28 + $0x28] sm:$0xff] }
  0x12   : > { %v282_v13 = vmul.f32 %v1057_v2, %v243_v9  ;;  %v283_v14 = vmul.f32 %v1057_v2, %v244_v11  ;;  %v284_v15 = vmul.f32 %v1057_v2, %v245_v12  ;;  %v246_v16 = vld [vmem:[%s1064_s28 + $0x30] sm:$0xff]  ;;  %v247_v17 = vld [vmem:[%s1064_s28 + $0x38] sm:$0xff]  ;;  %v248_v26 = vld [vmem:[%s1064_s28 + $0x40] sm:$0xff] }
  0x13   : > { %v318_v18 = vadd.f32 %v1069_v3, %v279_v7  ;;  %v319_v19 = vadd.f32 %v1069_v3, %v280_v8  ;;  %v320_v20 = vadd.f32 %v1069_v3, %v281_v10  ;;  %v285_v21 = vmul.f32 %v1057_v2, %v246_v16  ;;  %v249_v27 = vld [vmem:[%s1064_s28 + $0x48] sm:$0xff]  ;;  %v250_v32 = vld [vmem:[%s1064_s28 + $0x50] sm:$0xff]  ;;  %v251_v37 = vld [vmem:[%s1064_s28 + $0x58] sm:$0xff] }
  0x14   : > { %v321_v22 = vadd.f32 %v1069_v3, %v282_v13  ;;  %v322_v23 = vadd.f32 %v1069_v3, %v283_v14  ;;  %v323_v24 = vadd.f32 %v1069_v3, %v284_v15  ;;  %v286_v25 = vmul.f32 %v1057_v2, %v247_v17  ;;  %v252_v38 = vld [vmem:[%s1064_s28 + $0x60] sm:$0xff]  ;;  %v253_v43 = vld [vmem:[%s1064_s28 + $0x68] sm:$0xff]  ;;  %v254_v44 = vld [vmem:[%s1064_s28 + $0x70] sm:$0xff] }
  0x15   : > { %v350_v28 = vmax.f32 %v318_v18, 0.0  ;;  %v351_v29 = vmax.f32 %v319_v19, 0.0  ;;  %v352_v30 = vmax.f32 %v320_v20, 0.0  ;;  %v324_v31 = vadd.f32 %v1069_v3, %v285_v21  ;;  %v255_v53 = vld [vmem:[%s1064_s28 + $0x78] sm:$0xff]  ;;  %v256_v57 = vld [vmem:[%s1064_s28 + $0x80] sm:$0xff]  ;;  %v257_v62 = vld [vmem:[%s1064_s28 + $0x88] sm:$0xff] }
  0x16   : > { %v353_v33 = vmax.f32 %v321_v22, 0.0  ;;  %v354_v34 = vmax.f32 %v322_v23, 0.0  ;;  %v355_v35 = vmax.f32 %v323_v24, 0.0  ;;  %v325_v36 = vadd.f32 %v1069_v3, %v286_v25  ;;  %v258_v1 = vld [vmem:[%s1064_s28 + $0x90] sm:$0xff]  ;;  %v259_v4 = vld [vmem:[%s1064_s28 + $0x98] sm:$0xff]  ;;  %v260_v8 = vld [vmem:[%s1064_s28 + $0xa0] sm:$0xff] }
  0x17   : > { %v382_v39 = vpack.c.bf16 %v351_v29, %v350_v28  ;;  %v356_v40 = vmax.f32 %v324_v31, 0.0  ;;  %v287_v41 = vmul.f32 %v1057_v2, %v248_v26  ;;  %v288_v42 = vmul.f32 %v1057_v2, %v249_v27  ;;  %v261_v13 = vld [vmem:[%s1064_s28 + $0xa8] sm:$0xff]  ;;  %v262_v18 = vld [vmem:[%s1064_s28 + $0xb0] sm:$0xff]  ;;  %v263_v23 = vld [vmem:[%s1064_s28 + $0xb8] sm:$0xff] }
  0x18   : > { %v383_v45 = vpack.c.bf16 %v353_v33, %v352_v30  ;;  %v384_v46 = vpack.c.bf16 %v355_v35, %v354_v34  ;;  %v357_v47 = vmax.f32 %v325_v36, 0.0  ;;  %v289_v48 = vmul.f32 %v1057_v2, %v250_v32  ;;  %v264_v28 = vld [vmem:[%s1064_s28 + $0xc0] sm:$0xff]  ;;  %v265_v33 = vld [vmem:[%s1064_s28 + $0xc8] sm:$0xff] }
  0x19   : > { %955 = vmatprep.mubr.msk.bf16.mxu0 %vm399_vm1, %v382_v39  ;;  %v326_v49 = vadd.f32 %v1069_v3, %v287_v41  ;;  %v327_v50 = vadd.f32 %v1069_v3, %v288_v42  ;;  %v290_v51 = vmul.f32 %v1057_v2, %v251_v37  ;;  %v291_v52 = vmul.f32 %v1057_v2, %v252_v38  ;;  %v266_v38 = vld [vmem:[%s1064_s28 + $0xd0] sm:$0xff] }
  0x1a   : > { %956 = vmatmul.mubr.msk.bf16.vlgmr.msra.gmra.mrb[0].mxu0 %vm399_vm1, %v383_v45  ;;  %v328_v54 = vadd.f32 %v1069_v3, %v289_v48  ;;  %v292_v55 = vmul.f32 %v1057_v2, %v253_v43  ;;  %v293_v56 = vmul.f32 %v1057_v2, %v254_v44  ;;  %v294_v0 = vmul.f32 %v1057_v2, %v255_v53  ;;  %v267_v43 = vld [vmem:[%s1064_s28 + $0xd8] sm:$0xff]  ;;  %v268_v48 = vld [vmem:[%s1064_s28 + $0xe0] sm:$0xff] }
  0x1b   : > { %959 = vmatprep.mubr.msk.bf16.mxu0 %vm399_vm1, %v384_v46  ;;  %v358_v58 = vmax.f32 %v326_v49, 0.0  ;;  %v359_v59 = vmax.f32 %v327_v50, 0.0  ;;  %v329_v60 = vadd.f32 %v1069_v3, %v290_v51  ;;  %v330_v61 = vadd.f32 %v1069_v3, %v291_v52  ;;  %v269_v49 = vld [vmem:[%s1064_s28 + $0xe8] sm:$0xff] }
  0x1c   : > { %v331_v63 = vadd.f32 %v1069_v3, %v292_v55  ;;  %v385_v5 = vpack.c.bf16 %v357_v47, %v356_v40  ;;  %v360_v6 = vmax.f32 %v328_v54, 0.0  ;;  %v295_v7 = vmul.f32 %v1057_v2, %v256_v57 }
  0x1d   : > { %v386_v9 = vpack.c.bf16 %v359_v59, %v358_v58  ;;  %v361_v10 = vmax.f32 %v329_v60, 0.0  ;;  %v1127_v11 = vadd.f32 %v1069_v3, %v293_v56  ;;  %v296_v12 = vmul.f32 %v1057_v2, %v257_v62 }
  0x1e   : > { %v362_v14 = vmax.f32 %v330_v61, 0.0  ;;  %v334_v15 = vadd.f32 %v1069_v3, %v295_v7  ;;  %v297_v16 = vmul.f32 %v1057_v2, %v258_v1  ;;  %v298_v17 = vmul.f32 %v1057_v2, %v259_v4 }
  0x1f   : > { %v363_v19 = vmax.f32 %v331_v63, 0.0  ;;  %v333_v20 = vadd.f32 %v1069_v3, %v294_v0  ;;  %v335_v21 = vadd.f32 %v1069_v3, %v296_v12  ;;  %v299_v22 = vmul.f32 %v1057_v2, %v260_v8  ;;  %v270_v8 = vld [vmem:[%s1064_s28 + $0xf0] sm:$0xff] }
  0x20   : > { %v366_v24 = vmax.f32 %v334_v15, 0.0  ;;  %v336_v25 = vadd.f32 %v1069_v3, %v297_v16  ;;  %v337_v26 = vadd.f32 %v1069_v3, %v298_v17  ;;  %v300_v27 = vmul.f32 %v1057_v2, %v261_v13 }
  0x21   : > { %v387_v29 = vpack.c.bf16 %v361_v10, %v360_v6  ;;  %v367_v30 = vmax.f32 %v335_v21, 0.0  ;;  %v338_v31 = vadd.f32 %v1069_v3, %v299_v22  ;;  %v301_v32 = vmul.f32 %v1057_v2, %v262_v18 }
  0x22   : > { %960 = vmatmul.mubr.msk.bf16.gmra.mrb[4].mxu0 %vm399_vm1, %v385_v5  ;;  %v368_v34 = vmax.f32 %v336_v25, 0.0  ;;  %v369_v35 = vmax.f32 %v337_v26, 0.0  ;;  %v339_v36 = vadd.f32 %v1069_v3, %v300_v27  ;;  %v302_v37 = vmul.f32 %v1057_v2, %v263_v23 }
  0x23   : > { %963 = vmatprep.mubr.msk.bf16.mxu0 %vm399_vm1, %v386_v9  ;;  %v390_v39 = vpack.c.bf16 %v367_v30, %v366_v24  ;;  %v370_v40 = vmax.f32 %v338_v31, 0.0  ;;  %v340_v41 = vadd.f32 %v1069_v3, %v301_v32  ;;  %v303_v42 = vmul.f32 %v1057_v2, %v264_v28  ;;  %v271_v9 = vld [vmem:[%s1064_s28 + $0xf8] sm:$0xff] }
  0x24   : > { %v391_v44 = vpack.c.bf16 %v369_v35, %v368_v34  ;;  %v371_v45 = vmax.f32 %v339_v36, 0.0  ;;  %v341_v46 = vadd.f32 %v1069_v3, %v302_v37  ;;  %v304_v47 = vmul.f32 %v1057_v2, %v265_v33 }
  0x25   : > { %v388_v50 = vpack.c.bf16 %v363_v19, %v362_v14  ;;  %971 = vmatprep.mubr.msk.bf16.mxu1 %vm399_vm1, %v390_v39  ;;  %v372_v51 = vmax.f32 %v340_v41, 0.0  ;;  %v342_v52 = vadd.f32 %v1069_v3, %v303_v42  ;;  %v305_v53 = vmul.f32 %v1057_v2, %v266_v38 }
  0x26   : > { %972 = vmatmul.mubr.msk.bf16.vlgmr.msra.gmra.mrb[0].mxu1 %vm399_vm1, %v391_v44  ;;  %v392_v54 = vpack.c.bf16 %v371_v45, %v370_v40  ;;  %v373_v55 = vmax.f32 %v341_v46, 0.0  ;;  %v343_v56 = vadd.f32 %v1069_v3, %v304_v47  ;;  %v306_v57 = vmul.f32 %v1057_v2, %v267_v43 }
  0x27   : > { %v374_v58 = vmax.f32 %v342_v52, 0.0  ;;  %v307_v59 = vmul.f32 %v1057_v2, %v268_v48  ;;  %v308_v60 = vmul.f32 %v1057_v2, %v269_v49  ;;  %v364_v62 = vmax.f32 %v1127_v11, 0.0 }
  0x28   : > { %975 = vmatprep.mubr.msk.bf16.mxu1 %vm399_vm1, %v392_v54  ;;  %v375_v61 = vmax.f32 %v343_v56, 0.0  ;;  %v365_v63 = vmax.f32 %v333_v20, 0.0  ;;  %v393_v0 = vpack.c.bf16 %v373_v55, %v372_v51  ;;  %v344_v1 = vadd.f32 %v1069_v3, %v305_v53 }
  0x29   : > { %v345_v4 = vadd.f32 %v1069_v3, %v306_v57  ;;  %v346_v6 = vadd.f32 %v1069_v3, %v307_v59  ;;  %v347_v7 = vadd.f32 %v1069_v3, %v308_v60  ;;  %v309_v13 = vmul.f32 %v1057_v2, %v270_v8 }
  0x2a   : > { %964 = vmatmul.mubr.msk.bf16.gmra.mrb[8].mxu0 %vm399_vm1, %v387_v29  ;;  %v394_v5 = vpack.c.bf16 %v375_v61, %v374_v58  ;;  %v389_v10 = vpack.c.bf16 %v365_v63, %v364_v62  ;;  %v376_v12 = vmax.f32 %v344_v1, 0.0  ;;  %v310_v14 = vmul.f32 %v1057_v2, %v271_v9 }
  0x2b   : > { %967 = vmatprep.mubr.msk.bf16.mxu0 %vm399_vm1, %v388_v50  ;;  %v377_v11 = vmax.f32 %v345_v4, 0.0  ;;  %v378_v15 = vmax.f32 %v346_v6, 0.0  ;;  %v379_v16 = vmax.f32 %v347_v7, 0.0  ;;  %v348_v18 = vadd.f32 %v1069_v3, %v309_v13 }
  0x2c   : > { %v349_v19 = vadd.f32 %v1069_v3, %v310_v14 }
  0x2d   : > { %v395_v17 = vpack.c.bf16 %v377_v11, %v376_v12  ;;  %v396_v20 = vpack.c.bf16 %v379_v16, %v378_v15  ;;  %v380_v21 = vmax.f32 %v348_v18, 0.0 }
  0x2e   : > { %976 = vmatmul.mubr.msk.bf16.gmra.mrb[4].mxu1 %vm399_vm1, %v393_v0  ;;  %v381_v22 = vmax.f32 %v349_v19, 0.0 }
  0x2f   : > { %979 = vmatprep.mubr.msk.bf16.mxu1 %vm399_vm1, %v394_v5 }
  0x30   : > { %v397_v23 = vpack.c.bf16 %v381_v22, %v380_v21 }
  0x32   : > { %968 = vmatmul.mubr.msk.bf16.gmra.mrb[12].mxu0 %vm399_vm1, %v389_v10 }
  0x36   : > { %980 = vmatmul.mubr.msk.bf16.gmra.mrb[8].mxu1 %vm399_vm1, %v395_v17 }
  0x37   : > { %983 = vmatprep.mubr.msk.bf16.mxu1 %vm399_vm1, %v396_v20 }
  0x3e   : > { %984 = vmatmul.mubr.msk.bf16.gmra.mrb[12].mxu1 %vm399_vm1, %v397_v23 }
  0xed   : > { %v957_v2 = vpop.f32.mrb[0].mxu0 }
  0xee   : > { %616 = vst.msk [vmem:[%s1191_s8 + $0x10] sm:$0xff] %vm613_vm2, %v957_v2  ;;  %v486_v3 = vpop.f32.mrb[1].mxu0  ;;  %v719_v27 = vmul.f32 %v957_v2, %v957_v2  ;;  %v649_v32 = vsel %vm613_vm2, %v957_v2, 0.0 }
  0xef   : > { %614 = vst.msk [vmem:[%s1191_s8] sm:$0xff] %vm613_vm2, %v486_v3  ;;  %v717_v24 = vmul.f32 %v486_v3, %v486_v3  ;;  %v958_v25 = vpop.f32.mrb[2].mxu0  ;;  %v646_v28 = vsel %vm613_vm2, %v486_v3, 0.0 }
  0xf0   : > { %617 = vst.msk [vmem:[%s1191_s8 + $0x18] sm:$0xff] %vm613_vm2, %v958_v25  ;;  %v489_v26 = vpop.f32.mrb[3].mxu0  ;;  %v720_v34 = vmul.f32 %v958_v25, %v958_v25  ;;  %v752_v38 = vsel %vm613_vm2, %v719_v27, 0.0  ;;  %v651_v39 = vsel %vm613_vm2, %v958_v25, 0.0 }
  0xf1   : > { %615 = vst.msk [vmem:[%s1191_s8 + $0x8] sm:$0xff] %vm613_vm2, %v489_v26  ;;  %v647_v29 = vsel %vm613_vm2, %v489_v26, 0.0  ;;  %v718_v30 = vmul.f32 %v489_v26, %v489_v26  ;;  %v749_v33 = vsel %vm613_vm2, %v717_v24, 0.0 }
  0xf2   : > { %v648_v31 = vadd.f32 %v647_v29, %v646_v28  ;;  %v754_v44 = vsel %vm613_vm2, %v720_v34, 0.0 }
  0xf3   : > { %v750_v35 = vsel %vm613_vm2, %v718_v30, 0.0 }
  0xf4   : > { %v650_v36 = vadd.f32 %v649_v32, %v648_v31  ;;  %v751_v37 = vadd.f32 %v750_v35, %v749_v33 }
  0xf5   : > { %v961_v40 = vpop.f32.mrb[4].mxu0 }
  0xf6   : > { %v753_v41 = vadd.f32 %v752_v38, %v751_v37  ;;  %620 = vst.msk [vmem:[%s1191_s8 + $0x30] sm:$0xff] %vm613_vm2, %v961_v40  ;;  %v502_v42 = vpop.f32.mrb[5].mxu0  ;;  %v652_v43 = vadd.f32 %v651_v39, %v650_v36  ;;  %v723_v51 = vmul.f32 %v961_v40, %v961_v40  ;;  %v657_v58 = vsel %vm613_vm2, %v961_v40, 0.0 }
  0xf7   : > { %618 = vst.msk [vmem:[%s1191_s8 + $0x20] sm:$0xff] %vm613_vm2, %v502_v42  ;;  %v653_v45 = vsel %vm613_vm2, %v502_v42, 0.0  ;;  %v721_v46 = vmul.f32 %v502_v42, %v502_v42  ;;  %v962_v47 = vpop.f32.mrb[6].mxu0 }
  0xf8   : > { %v654_v48 = vadd.f32 %v653_v45, %v652_v43  ;;  %v755_v49 = vadd.f32 %v754_v44, %v753_v41  ;;  %621 = vst.msk [vmem:[%s1191_s8 + $0x38] sm:$0xff] %vm613_vm2, %v962_v47  ;;  %v505_v50 = vpop.f32.mrb[7].mxu0  ;;  %v724_v59 = vmul.f32 %v962_v47, %v962_v47  ;;  %v760_v1 = vsel %vm613_vm2, %v723_v51, 0.0 }
  0xf9   : > { %v756_v52 = vsel %vm613_vm2, %v721_v46, 0.0  ;;  %619 = vst.msk [vmem:[%s1191_s8 + $0x28] sm:$0xff] %vm613_vm2, %v505_v50  ;;  %v655_v53 = vsel %vm613_vm2, %v505_v50, 0.0  ;;  %v722_v54 = vmul.f32 %v505_v50, %v505_v50  ;;  %v1220_v57 = vpop.f32.mrb[0].mxu1  ;;  %v659_v4 = vsel %vm613_vm2, %v962_v47, 0.0 }
  0xfa   : > { %v757_v55 = vadd.f32 %v756_v52, %v755_v49  ;;  %v656_v56 = vadd.f32 %v655_v53, %v654_v48  ;;  %632 = vst.msk [vmem:[%s1191_s8 + $0x90] sm:$0xff] %vm613_vm2, %v1220_v57  ;;  %v1227_v61 = vpop.f32.mrb[1].mxu1  ;;  %v762_v10 = vsel %vm613_vm2, %v724_v59, 0.0 }
  0xfb   : > { %v758_v60 = vsel %vm613_vm2, %v722_v54, 0.0  ;;  %630 = vst.msk [vmem:[%s1191_s8 + $0x80] sm:$0xff] %vm613_vm2, %v1227_v61  ;;  %v1232_v0 = vpop.f32.mrb[2].mxu1  ;;  %v733_v53 = vmul.f32 %v1227_v61, %v1227_v61 }
  0xfc   : > { %v658_v62 = vadd.f32 %v657_v58, %v656_v56  ;;  %v759_v63 = vadd.f32 %v758_v60, %v757_v55  ;;  %633 = vst.msk [vmem:[%s1191_s8 + $0x98] sm:$0xff] %vm613_vm2, %v1232_v0  ;;  %v1239_v6 = vpop.f32.mrb[3].mxu1 }
  0xfd   : > { %v965_v5 = vpop.f32.mrb[8].mxu0  ;;  %631 = vst.msk [vmem:[%s1191_s8 + $0x88] sm:$0xff] %vm613_vm2, %v1239_v6 }
  0xfe   : > { %v761_v7 = vadd.f32 %v760_v1, %v759_v63  ;;  %624 = vst.msk [vmem:[%s1191_s8 + $0x50] sm:$0xff] %vm613_vm2, %v965_v5  ;;  %v518_v8 = vpop.f32.mrb[9].mxu0  ;;  %v660_v9 = vadd.f32 %v659_v4, %v658_v62  ;;  %v727_v17 = vmul.f32 %v965_v5, %v965_v5  ;;  %v665_v2 = vsel %vm613_vm2, %v965_v5, 0.0 }
  0xff   : > { %622 = vst.msk [vmem:[%s1191_s8 + $0x40] sm:$0xff] %vm613_vm2, %v518_v8  ;;  %v661_v12 = vsel %vm613_vm2, %v518_v8, 0.0  ;;  %v725_v11 = vmul.f32 %v518_v8, %v518_v8  ;;  %v966_v13 = vpop.f32.mrb[10].mxu0  ;;  %v677_v62 = vsel %vm613_vm2, %v1227_v61, 0.0  ;;  %v734_v8 = vmul.f32 %v1239_v6, %v1239_v6 }
 0x100   : > { %v662_v14 = vadd.f32 %v661_v12, %v660_v9  ;;  %v763_v15 = vadd.f32 %v762_v10, %v761_v7  ;;  %625 = vst.msk [vmem:[%s1191_s8 + $0x58] sm:$0xff] %vm613_vm2, %v966_v13  ;;  %v521_v16 = vpop.f32.mrb[11].mxu0  ;;  %v728_v3 = vmul.f32 %v966_v13, %v966_v13  ;;  %v768_v29 = vsel %vm613_vm2, %v727_v17, 0.0 }
 0x101   : > { %v764_v18 = vsel %vm613_vm2, %v725_v11, 0.0  ;;  %623 = vst.msk [vmem:[%s1191_s8 + $0x48] sm:$0xff] %vm613_vm2, %v521_v16  ;;  %v663_v19 = vsel %vm613_vm2, %v521_v16, 0.0  ;;  %v726_v20 = vmul.f32 %v521_v16, %v521_v16  ;;  %v1256_v23 = vpop.f32.mrb[4].mxu1  ;;  %v667_v30 = vsel %vm613_vm2, %v966_v13, 0.0 }
 0x102   : > { %v765_v21 = vadd.f32 %v764_v18, %v763_v15  ;;  %v664_v22 = vadd.f32 %v663_v19, %v662_v14  ;;  %636 = vst.msk [vmem:[%s1191_s8 + $0xb0] sm:$0xff] %vm613_vm2, %v1256_v23  ;;  %v1263_v25 = vpop.f32.mrb[5].mxu1  ;;  %v770_v36 = vsel %vm613_vm2, %v728_v3, 0.0  ;;  %v780_v7 = vsel %vm613_vm2, %v733_v53, 0.0 }
 0x103   : > { %v766_v24 = vsel %vm613_vm2, %v726_v20, 0.0  ;;  %634 = vst.msk [vmem:[%s1191_s8 + $0xa0] sm:$0xff] %vm613_vm2, %v1263_v25  ;;  %v1268_v28 = vpop.f32.mrb[6].mxu1  ;;  %v735_v61 = vmul.f32 %v1220_v57, %v1220_v57  ;;  %v679_v12 = vsel %vm613_vm2, %v1239_v6, 0.0  ;;  %v681_v15 = vsel %vm613_vm2, %v1220_v57, 0.0 }
 0x104   : > { %v666_v26 = vadd.f32 %v665_v2, %v664_v22  ;;  %v767_v27 = vadd.f32 %v766_v24, %v765_v21  ;;  %637 = vst.msk [vmem:[%s1191_s8 + $0xb8] sm:$0xff] %vm613_vm2, %v1268_v28  ;;  %v1275_v32 = vpop.f32.mrb[7].mxu1  ;;  %v736_v16 = vmul.f32 %v1232_v0, %v1232_v0  ;;  %v782_v17 = vsel %vm613_vm2, %v734_v8, 0.0 }
 0x105   : > { %v969_v31 = vpop.f32.mrb[12].mxu0  ;;  %635 = vst.msk [vmem:[%s1191_s8 + $0xa8] sm:$0xff] %vm613_vm2, %v1275_v32  ;;  %v737_v18 = vmul.f32 %v1263_v25, %v1263_v25  ;;  %v784_v57 = vsel %vm613_vm2, %v735_v61, 0.0  ;;  %v683_v22 = vsel %vm613_vm2, %v1232_v0, 0.0  ;;  %v685_v2 = vsel %vm613_vm2, %v1263_v25, 0.0 }
 0x106   : > { %v769_v33 = vadd.f32 %v768_v29, %v767_v27  ;;  %628 = vst.msk [vmem:[%s1191_s8 + $0x70] sm:$0xff] %vm613_vm2, %v969_v31  ;;  %v534_v34 = vpop.f32.mrb[13].mxu0  ;;  %v668_v35 = vadd.f32 %v667_v30, %v666_v26  ;;  %v731_v43 = vmul.f32 %v969_v31, %v969_v31  ;;  %v673_v50 = vsel %vm613_vm2, %v969_v31, 0.0 }
 0x107   : > { %626 = vst.msk [vmem:[%s1191_s8 + $0x60] sm:$0xff] %vm613_vm2, %v534_v34  ;;  %v669_v37 = vsel %vm613_vm2, %v534_v34, 0.0  ;;  %v729_v38 = vmul.f32 %v534_v34, %v534_v34  ;;  %v970_v39 = vpop.f32.mrb[14].mxu0  ;;  %v786_v29 = vsel %vm613_vm2, %v736_v16, 0.0  ;;  %v788_v30 = vsel %vm613_vm2, %v737_v18, 0.0 }
 0x108   : > { %v670_v40 = vadd.f32 %v669_v37, %v668_v35  ;;  %v771_v41 = vadd.f32 %v770_v36, %v769_v33  ;;  %629 = vst.msk [vmem:[%s1191_s8 + $0x78] sm:$0xff] %vm613_vm2, %v970_v39  ;;  %v537_v42 = vpop.f32.mrb[15].mxu0  ;;  %v732_v51 = vmul.f32 %v970_v39, %v970_v39  ;;  %v776_v59 = vsel %vm613_vm2, %v731_v43, 0.0 }
 0x109   : > { %v772_v44 = vsel %vm613_vm2, %v729_v38, 0.0  ;;  %627 = vst.msk [vmem:[%s1191_s8 + $0x68] sm:$0xff] %vm613_vm2, %v537_v42  ;;  %v671_v45 = vsel %vm613_vm2, %v537_v42, 0.0  ;;  %v730_v46 = vmul.f32 %v537_v42, %v537_v42  ;;  %v1292_v49 = vpop.f32.mrb[8].mxu1  ;;  %v675_v60 = vsel %vm613_vm2, %v970_v39, 0.0 }
 0x10a   : > { %v773_v47 = vadd.f32 %v772_v44, %v771_v41  ;;  %v672_v48 = vadd.f32 %v671_v45, %v670_v40  ;;  %640 = vst.msk [vmem:[%s1191_s8 + $0xd0] sm:$0xff] %vm613_vm2, %v1292_v49  ;;  %v582_v54 = vpop.f32.mrb[9].mxu1  ;;  %v778_v5 = vsel %vm613_vm2, %v732_v51, 0.0  ;;  %v738_v0 = vmul.f32 %v1275_v32, %v1275_v32 }
 0x10b   : > { %v774_v52 = vsel %vm613_vm2, %v730_v46, 0.0  ;;  %638 = vst.msk [vmem:[%s1191_s8 + $0xc0] sm:$0xff] %vm613_vm2, %v582_v54  ;;  %v1303_v58 = vpop.f32.mrb[10].mxu1  ;;  %v739_v34 = vmul.f32 %v1256_v23, %v1256_v23  ;;  %v687_v35 = vsel %vm613_vm2, %v1275_v32, 0.0  ;;  %v689_v38 = vsel %vm613_vm2, %v1256_v23, 0.0 }
 0x10c   : > { %v674_v55 = vadd.f32 %v673_v50, %v672_v48  ;;  %v775_v56 = vadd.f32 %v774_v52, %v773_v47  ;;  %641 = vst.msk [vmem:[%s1191_s8 + $0xd8] sm:$0xff] %vm613_vm2, %v1303_v58  ;;  %v585_v63 = vpop.f32.mrb[11].mxu1  ;;  %v740_v39 = vmul.f32 %v1268_v28, %v1268_v28  ;;  %v790_v40 = vsel %vm613_vm2, %v738_v0, 0.0 }
 0x10d   : > { %639 = vst.msk [vmem:[%s1191_s8 + $0xc8] sm:$0xff] %vm613_vm2, %v585_v63  ;;  %v741_v41 = vmul.f32 %v582_v54, %v582_v54  ;;  %v792_v44 = vsel %vm613_vm2, %v739_v34, 0.0  ;;  %v691_v45 = vsel %vm613_vm2, %v1268_v28, 0.0  ;;  %v693_v32 = vsel %vm613_vm2, %v582_v54, 0.0 }
 0x10e   : > { %v777_v1 = vadd.f32 %v776_v59, %v775_v56  ;;  %v676_v4 = vadd.f32 %v675_v60, %v674_v55  ;;  %v794_v48 = vsel %vm613_vm2, %v740_v39, 0.0  ;;  %v742_v50 = vmul.f32 %v585_v63, %v585_v63 }
 0x10f   : > { %v796_v23 = vsel %vm613_vm2, %v741_v41, 0.0  ;;  %v743_v53 = vmul.f32 %v1292_v49, %v1292_v49  ;;  %v695_v55 = vsel %vm613_vm2, %v585_v63, 0.0  ;;  %v697_v28 = vsel %vm613_vm2, %v1292_v49, 0.0 }
 0x110   : > { %v678_v9 = vadd.f32 %v677_v62, %v676_v4  ;;  %v779_v10 = vadd.f32 %v778_v5, %v777_v1  ;;  %v744_v54 = vmul.f32 %v1303_v58, %v1303_v58  ;;  %v798_v60 = vsel %vm613_vm2, %v742_v50, 0.0 }
 0x111   : > { %v1322_v14 = vpop.f32.mrb[12].mxu1  ;;  %v800_v5 = vsel %vm613_vm2, %v743_v53, 0.0 }
 0x112   : > { %v781_v11 = vadd.f32 %v780_v7, %v779_v10  ;;  %v680_v13 = vadd.f32 %v679_v12, %v678_v9  ;;  %644 = vst.msk [vmem:[%s1191_s8 + $0xf0] sm:$0xff] %vm613_vm2, %v1322_v14  ;;  %v598_v6 = vpop.f32.mrb[13].mxu1  ;;  %v699_v7 = vsel %vm613_vm2, %v1303_v58, 0.0  ;;  %v802_v49 = vsel %vm613_vm2, %v744_v54, 0.0 }
 0x113   : > { %642 = vst.msk [vmem:[%s1191_s8 + $0xe0] sm:$0xff] %vm613_vm2, %v598_v6  ;;  %v1336_v21 = vpop.f32.mrb[14].mxu1  ;;  %v745_v62 = vmul.f32 %v598_v6, %v598_v6  ;;  %v701_v63 = vsel %vm613_vm2, %v598_v6, 0.0 }
 0x114   : > { %v682_v19 = vadd.f32 %v681_v15, %v680_v13  ;;  %v783_v20 = vadd.f32 %v782_v17, %v781_v11  ;;  %645 = vst.msk [vmem:[%s1191_s8 + $0xf8] sm:$0xff] %vm613_vm2, %v1336_v21  ;;  %v748_v3 = vmul.f32 %v1336_v21, %v1336_v21  ;;  %v601_v24 = vpop.f32.mrb[15].mxu1  ;;  %v747_v13 = vmul.f32 %v1322_v14, %v1322_v14 }
 0x115   : > { %643 = vst.msk [vmem:[%s1191_s8 + $0xe8] sm:$0xff] %vm613_vm2, %v601_v24  ;;  %v804_v10 = vsel %vm613_vm2, %v745_v62, 0.0  ;;  %v746_v61 = vmul.f32 %v601_v24, %v601_v24  ;;  %v703_v15 = vsel %vm613_vm2, %v601_v24, 0.0  ;;  %v705_v17 = vsel %vm613_vm2, %v1322_v14, 0.0 }
 0x116   : > { %v785_v26 = vadd.f32 %v784_v57, %v783_v20  ;;  %v684_v27 = vadd.f32 %v683_v22, %v682_v19  ;;  %v810_v25 = vsel %vm613_vm2, %v748_v3, 0.0  ;;  %v808_v20 = vsel %vm613_vm2, %v747_v13, 0.0 }
 0x117   : > { %v806_v18 = vsel %vm613_vm2, %v746_v61, 0.0  ;;  %v707_v57 = vsel %vm613_vm2, %v1336_v21, 0.0 }
 0x118   : > { %v686_v31 = vadd.f32 %v685_v2, %v684_v27  ;;  %v787_v33 = vadd.f32 %v786_v29, %v785_v26 }
 0x11a   : > { %v789_v36 = vadd.f32 %v788_v30, %v787_v33  ;;  %v688_v37 = vadd.f32 %v687_v35, %v686_v31 }
 0x11c   : > { %v690_v42 = vadd.f32 %v689_v38, %v688_v37  ;;  %v791_v43 = vadd.f32 %v790_v40, %v789_v36 }
 0x11e   : > { %v793_v46 = vadd.f32 %v792_v44, %v791_v43  ;;  %v692_v47 = vadd.f32 %v691_v45, %v690_v42 }
 0x120   : > { %v694_v51 = vadd.f32 %v693_v32, %v692_v47  ;;  %v795_v52 = vadd.f32 %v794_v48, %v793_v46 }
 0x122   : > { %v797_v56 = vadd.f32 %v796_v23, %v795_v52  ;;  %v696_v59 = vadd.f32 %v695_v55, %v694_v51 }
 0x124   : > { %v698_v1 = vadd.f32 %v697_v28, %v696_v59  ;;  %v799_v4 = vadd.f32 %v798_v60, %v797_v56 }
 0x126   : > { %v801_v8 = vadd.f32 %v800_v5, %v799_v4  ;;  %v700_v9 = vadd.f32 %v699_v7, %v698_v1 }
 0x128   : > { %v702_v12 = vadd.f32 %v701_v63, %v700_v9  ;;  %v803_v11 = vadd.f32 %v802_v49, %v801_v8 }
 0x12a   : > { %v805_v16 = vadd.f32 %v804_v10, %v803_v11  ;;  %v704_v58 = vadd.f32 %v703_v15, %v702_v12 }
 0x12c   : > { %v706_v6 = vadd.f32 %v705_v17, %v704_v58  ;;  %v807_v19 = vadd.f32 %v806_v18, %v805_v16 }
 0x12e   : > { %v708_v22 = vadd.f32 %v707_v57, %v706_v6  ;;  %v809_v2 = vadd.f32 %v808_v20, %v807_v19 }
 0x130   : > { %v709_v3 = vrot.slane %v708_v22, 4  ;;  %v811_v26 = vadd.f32 %v810_v25, %v809_v2 }
 0x132   : > { %v710_v24 = vadd.f32 %v709_v3, %v708_v22  ;;  %v812_v27 = vrot.slane %v811_v26, 4 }
 0x134   : > { %v711_v29 = vrot.slane %v710_v24, 2  ;;  %v813_v30 = vadd.f32 %v812_v27, %v811_v26 }
 0x136   : > { %v712_v14 = vadd.f32 %v711_v29, %v710_v24  ;;  %v814_v0 = vrot.slane %v813_v30, 2 }
 0x138   : > { %v713_v31 = vrot.slane %v712_v14, 1  ;;  %v815_v33 = vadd.f32 %v814_v0, %v813_v30 }
 0x13a   : > { %v714_v21 = vadd.f32 %v713_v31, %v712_v14  ;;  %v816_v34 = vrot.slane %v815_v33, 1 }
 0x13c   : > { %716 = vst.msk [vmem:[%s238_s12] sm:$0x1] %vm715_vm3, %v714_v21  ;;  %v817_v35 = vadd.f32 %v816_v34, %v815_v33 }
 0x13e   : > { %818 = vst.msk [vmem:[%s238_s12 + $0x1] sm:$0x1] %vm715_vm3, %v817_v35 }
 0x13f PF: > { %s16_s18 = sadd.s32 1, %s1005_s18  }
 0x140   : > { %p13_p5 = scmp.ge.s32.totalorder %s16_s18, 4  }
 0x142   :  { %15 = sbr.rel (!%p13_p5) target bundleno = 1 (0x1), region = 78 }

// kernel: _lambda_.45
= control target key start
LH: loop header
LB: loop body
LE: loop exit
PB: predicated region body
PF: predicated region fallthrough
CT: control target
= control target key end

     0   :  { %s148_s0 = inlined_call_operand.vmem [shape: f32[64,128], index: 0, kind: input, shape index: {}]   ;;  %s149_s1 = inlined_call_operand.vmem [shape: f32[1,128], index: 1, kind: input, shape index: {}]   ;;  %s150_s2 = inlined_call_operand.vmem [shape: f32[1,128], index: 2, kind: input, shape index: {}]   ;;  %s151_s3 = inlined_call_operand.vmem [shape: f32[64,128], index: 3, kind: output, shape index: {}]  }
   0x1   :  { %v14_v0 = vld [vmem:[%s148_s0] sm:$0xff]  ;;  %v15_v4 = vld [vmem:[%s148_s0 + $0x8] sm:$0xff]  ;;  %v16_v5 = vld [vmem:[%s148_s0 + $0x10] sm:$0xff] }
   0x2   :  { %v72_v1 = vld [vmem:[%s149_s1] ss:$0 sm:$0xff]  ;;  %v17_v6 = vld [vmem:[%s148_s0 + $0x18] sm:$0xff]  ;;  %v19_v11 = vld [vmem:[%s148_s0 + $0x28] sm:$0xff] }
   0x3   :  { %v73_v2 = vld [vmem:[%s150_s2] ss:$0 sm:$0xff]  ;;  %v29_v3 = vmul.f32 %v72_v1, %v14_v0  ;;  %v30_v7 = vmul.f32 %v72_v1, %v15_v4  ;;  %v31_v8 = vmul.f32 %v72_v1, %v16_v5  ;;  %v32_v9 = vmul.f32 %v72_v1, %v17_v6  ;;  %v20_v12 = vld [vmem:[%s148_s0 + $0x30] sm:$0xff]  ;;  %v21_v17 = vld [vmem:[%s148_s0 + $0x38] sm:$0xff] }
   0x4   :  { %v18_v10 = vld [vmem:[%s148_s0 + $0x20] sm:$0xff]  ;;  %v34_v15 = vmul.f32 %v72_v1, %v19_v11  ;;  %v35_v16 = vmul.f32 %v72_v1, %v20_v12  ;;  %v36_v21 = vmul.f32 %v72_v1, %v21_v17 }
   0x5   :  { %v44_v13 = vadd.f32 %v73_v2, %v29_v3  ;;  %v33_v14 = vmul.f32 %v72_v1, %v18_v10  ;;  %v45_v18 = vadd.f32 %v73_v2, %v30_v7  ;;  %v46_v19 = vadd.f32 %v73_v2, %v31_v8 }
   0x6   :  { %v47_v20 = vadd.f32 %v73_v2, %v32_v9  ;;  %v49_v24 = vadd.f32 %v73_v2, %v34_v15  ;;  %v50_v25 = vadd.f32 %v73_v2, %v35_v16  ;;  %v51_v29 = vadd.f32 %v73_v2, %v36_v21 }
   0x7   :  { %v52_v22 = vmax.f32 %v44_v13, 0.0  ;;  %v48_v23 = vadd.f32 %v73_v2, %v33_v14  ;;  %v53_v26 = vmax.f32 %v45_v18, 0.0  ;;  %v54_v27 = vmax.f32 %v46_v19, 0.0 }
   0x8   :  { %v55_v28 = vmax.f32 %v47_v20, 0.0  ;;  %v57_v31 = vmax.f32 %v49_v24, 0.0  ;;  %v58_v32 = vmax.f32 %v50_v25, 0.0  ;;  %v59_v33 = vmax.f32 %v51_v29, 0.0 }
   0x9   :  { %60 = vst [vmem:[%s151_s3] sm:$0xff] %v52_v22  ;;  %v56_v30 = vmax.f32 %v48_v23, 0.0  ;;  %61 = vst [vmem:[%s151_s3 + $0x8] sm:$0xff] %v53_v26 }
   0xa   :  { %62 = vst [vmem:[%s151_s3 + $0x10] sm:$0xff] %v54_v27  ;;  %63 = vst [vmem:[%s151_s3 + $0x18] sm:$0xff] %v55_v28 }
   0xb   :  { %64 = vst [vmem:[%s151_s3 + $0x20] sm:$0xff] %v56_v30  ;;  %65 = vst [vmem:[%s151_s3 + $0x28] sm:$0xff] %v57_v31 }
   0xc   :  { %66 = vst [vmem:[%s151_s3 + $0x30] sm:$0xff] %v58_v32  ;;  %67 = vst [vmem:[%s151_s3 + $0x38] sm:$0xff] %v59_v33 }

// kernel: _lambda_.48
= control target key start
LH: loop header
LB: loop body
LE: loop exit
PB: predicated region body
PF: predicated region fallthrough
CT: control target
= control target key end

     0   :  { %v261_v0 = vmov 0.0   ;;  %vm262_vm0 = vmmov 0   ;;  %vm45_vm1 = vcmask 261120   ;;  %vm169_vm2 = vcmask 253952   ;;  %s395_s1 = inlined_call_operand.vmem [shape: bf16[32,32], index: 1, kind: input, shape index: {}]   ;;  %s396_s0 = inlined_call_operand.vmem [shape: f32[80,32], index: 0, kind: input, shape index: {}]   ;;  %s397_s2 = inlined_call_operand.vmem [shape: f32[80,32], index: 2, kind: output, shape index: {0}]   ;;  %s398_s3 = inlined_call_operand.vmem [shape: f32[8,32], index: 3, kind: output, shape index: {1}]  }
   0x1   :  { %229 = vmatprep.subr.bf16.mxu0 %v261_v0  ;;  %v259_v1 = vld [vmem:[%s395_s1] sm:$0xff]   ;;  %233 = vmatprep.mubr.msk.bf16.mxu0 %vm262_vm0, %v261_v0  ;;  %v260_v2 = vld [vmem:[%s395_s1 + $0x8] sm:$0xff]   ;;  %v20_v5 = vld [vmem:[%s396_s0 + $0x30] sm:$0xff] }
   0x2   :  { %253 = vmatprep.subr.bf16.mxu1 %v261_v0  ;;  %245 = vmatprep.mubr.msk.bf16.mxu1 %vm262_vm0, %v261_v0  ;;  %v14_v3 = vld [vmem:[%s396_s0] sm:$0xff]  ;;  %v15_v4 = vld [vmem:[%s396_s0 + $0x8] sm:$0xff]  ;;  %v21_v6 = vld [vmem:[%s396_s0 + $0x38] sm:$0xff] }
   0x3   :  { %230 = vmatpush3.bf16.msra.mxu0 %v259_v1  ;;  %255 = vmatpush3.bf16.msra.mxu1 %v259_v1  ;;  %v24_v7 = vpack.c.bf16 %v15_v4, %v14_v3  ;;  %v27_v8 = vpack.c.bf16 %v21_v6, %v20_v5  ;;  %v16_v9 = vld [vmem:[%s396_s0 + $0x10] sm:$0xff]  ;;  %v17_v10 = vld [vmem:[%s396_s0 + $0x18] sm:$0xff]  ;;  %v22_v11 = vld [vmem:[%s396_s0 + $0x40] sm:$0xff] }
   0x4   :  { %231 = vmatprep.subr.bf16.mxu0 %v261_v0  ;;  %254 = vmatprep.subr.bf16.mxu1 %v261_v0  ;;  %v23_v12 = vld [vmem:[%s396_s0 + $0x48] sm:$0xff]  ;;  %v25_v13 = vpack.c.bf16 %v17_v10, %v16_v9  ;;  %v18_v15 = vld [vmem:[%s396_s0 + $0x20] sm:$0xff] }
   0x5   :  { %v28_v14 = vpack.c.bf16 %v23_v12, %v22_v11  ;;  %v19_v16 = vld [vmem:[%s396_s0 + $0x28] sm:$0xff] }
   0x6   :  { %v26_v17 = vpack.c.bf16 %v19_v16, %v18_v15 }
   0x7   :  { %232 = vmatpush3.bf16.msra.mxu0 %v260_v2  ;;  %256 = vmatpush3.bf16.msra.mxu1 %v260_v2 }
   0xa   :  { %234 = vmatmul.mubr.msk.bf16.vlgmr.msra.gmra.mrb[0].mxu0 %vm45_vm1, %v24_v7  ;;  %246 = vmatmul.mubr.msk.bf16.vlgmr.msra.gmra.mrb[0].mxu1 %vm45_vm1, %v27_v8 }
   0xb   :  { %237 = vmatprep.mubr.msk.bf16.mxu0 %vm262_vm0, %v261_v0  ;;  %249 = vmatprep.mubr.msk.bf16.mxu1 %vm262_vm0, %v261_v0 }
  0x12   :  { %238 = vmatmul.mubr.msk.bf16.gmra.mrb[4].mxu0 %vm45_vm1, %v25_v13  ;;  %250 = vmatmul.mubr.msk.bf16.gmra.mrb[4].mxu1 %vm45_vm1, %v28_v14 }
  0x13   :  { %241 = vmatprep.mubr.msk.bf16.mxu0 %vm262_vm0, %v261_v0 }
  0x1a   :  { %242 = vmatmul.mubr.msk.bf16.gmra.mrb[8].mxu0 %vm45_vm1, %v26_v17 }
  0xdd   :  { %v95_v18 = vpop.f32.mrb[0].mxu0  ;;  %v119_v19 = vpop.f32.mrb[0].mxu1 }
  0xde   :  { %134 = vst.msk [vmem:[%s397_s2] sm:$0xff] %vm45_vm1, %v95_v18  ;;  %v171_v20 = vmul.f32 %v95_v18, %v95_v18  ;;  %v235_v21 = vpop.f32.mrb[1].mxu0  ;;  %140 = vst.msk [vmem:[%s397_s2 + $0x30] sm:$0xff] %vm45_vm1, %v119_v19  ;;  %v247_v22 = vpop.f32.mrb[1].mxu1  ;;  %v144_v25 = vsel %vm45_vm1, %v95_v18, 0.0  ;;  %v177_v58 = vmul.f32 %v119_v19, %v119_v19  ;;  %v155_v1 = vsel %vm45_vm1, %v119_v19, 0.0 }
  0xdf   :  { %v98_v23 = vpop.f32.mrb[2].mxu0  ;;  %v122_v24 = vpop.f32.mrb[2].mxu1 }
  0xe0   :  { %135 = vst.msk [vmem:[%s397_s2 + $0x8] sm:$0xff] %vm45_vm1, %v98_v23  ;;  %v145_v26 = vsel %vm45_vm1, %v98_v23, 0.0  ;;  %v172_v27 = vmul.f32 %v98_v23, %v98_v23  ;;  %v236_v28 = vpop.f32.mrb[3].mxu0  ;;  %141 = vst.msk [vmem:[%s397_s2 + $0x38] sm:$0xff] %vm45_vm1, %v122_v24  ;;  %v248_v29 = vpop.f32.mrb[3].mxu1  ;;  %v181_v31 = vsel %vm45_vm1, %v171_v20, 0.0  ;;  %v178_v2 = vmul.f32 %v122_v24, %v122_v24 }
  0xe1   :  { %v146_v30 = vadd.f32 %v145_v26, %v144_v25  ;;  %v192_v7 = vsel %vm45_vm1, %v177_v58, 0.0  ;;  %v157_v8 = vsel %vm45_vm1, %v122_v24, 0.0 }
  0xe2   :  { %v182_v32 = vsel %vm45_vm1, %v172_v27, 0.0  ;;  %v194_v12 = vsel %vm45_vm1, %v178_v2, 0.0 }
  0xe3   :  { %v183_v33 = vadd.f32 %v182_v32, %v181_v31 }
  0xe5   :  { %v103_v34 = vpop.f32.mrb[4].mxu0  ;;  %v127_v35 = vpop.f32.mrb[4].mxu1 }
  0xe6   :  { %136 = vst.msk [vmem:[%s397_s2 + $0x10] sm:$0xff] %vm45_vm1, %v103_v34  ;;  %v147_v36 = vsel %vm45_vm1, %v103_v34, 0.0  ;;  %v173_v37 = vmul.f32 %v103_v34, %v103_v34  ;;  %v239_v38 = vpop.f32.mrb[5].mxu0  ;;  %142 = vst.msk [vmem:[%s397_s2 + $0x40] sm:$0xff] %vm45_vm1, %v127_v35  ;;  %v251_v39 = vpop.f32.mrb[5].mxu1  ;;  %v179_v4 = vmul.f32 %v127_v35, %v127_v35  ;;  %v159_v9 = vsel %vm45_vm1, %v127_v35, 0.0 }
  0xe7   :  { %v148_v40 = vadd.f32 %v147_v36, %v146_v30  ;;  %v106_v41 = vpop.f32.mrb[6].mxu0  ;;  %v130_v42 = vpop.f32.mrb[6].mxu1 }
  0xe8   :  { %v184_v43 = vsel %vm45_vm1, %v173_v37, 0.0  ;;  %137 = vst.msk [vmem:[%s397_s2 + $0x18] sm:$0xff] %vm45_vm1, %v106_v41  ;;  %v149_v44 = vsel %vm45_vm1, %v106_v41, 0.0  ;;  %v174_v45 = vmul.f32 %v106_v41, %v106_v41  ;;  %v240_v46 = vpop.f32.mrb[7].mxu0  ;;  %143 = vst.msk [vmem:[%s397_s2 + $0x48] sm:$0xff] %vm45_vm1, %v130_v42  ;;  %v252_v47 = vpop.f32.mrb[7].mxu1  ;;  %v180_v14 = vmul.f32 %v130_v42, %v130_v42 }
  0xe9   :  { %v185_v48 = vadd.f32 %v184_v43, %v183_v33  ;;  %v150_v49 = vadd.f32 %v149_v44, %v148_v40  ;;  %v196_v13 = vsel %vm45_vm1, %v179_v4, 0.0  ;;  %v161_v17 = vsel %vm45_vm1, %v130_v42, 0.0 }
  0xea   :  { %v186_v50 = vsel %vm45_vm1, %v174_v45, 0.0  ;;  %v198_v20 = vsel %vm45_vm1, %v180_v14, 0.0 }
  0xeb   :  { %v187_v51 = vadd.f32 %v186_v50, %v185_v48 }
  0xed   :  { %v111_v52 = vpop.f32.mrb[8].mxu0 }
  0xee   :  { %138 = vst.msk [vmem:[%s397_s2 + $0x20] sm:$0xff] %vm45_vm1, %v111_v52  ;;  %v151_v53 = vsel %vm45_vm1, %v111_v52, 0.0  ;;  %v175_v54 = vmul.f32 %v111_v52, %v111_v52  ;;  %v243_v55 = vpop.f32.mrb[9].mxu0 }
  0xef   :  { %v152_v56 = vadd.f32 %v151_v53, %v150_v49  ;;  %v114_v57 = vpop.f32.mrb[10].mxu0 }
  0xf0   :  { %v188_v59 = vsel %vm45_vm1, %v175_v54, 0.0  ;;  %139 = vst.msk [vmem:[%s397_s2 + $0x28] sm:$0xff] %vm45_vm1, %v114_v57  ;;  %v153_v60 = vsel %vm45_vm1, %v114_v57, 0.0  ;;  %v176_v61 = vmul.f32 %v114_v57, %v114_v57  ;;  %v244_v62 = vpop.f32.mrb[11].mxu0 }
  0xf1   :  { %v189_v63 = vadd.f32 %v188_v59, %v187_v51  ;;  %v154_v0 = vadd.f32 %v153_v60, %v152_v56 }
  0xf2   :  { %v190_v3 = vsel %vm45_vm1, %v176_v61, 0.0 }
  0xf3   :  { %v156_v5 = vadd.f32 %v155_v1, %v154_v0  ;;  %v191_v6 = vadd.f32 %v190_v3, %v189_v63 }
  0xf5   :  { %v193_v10 = vadd.f32 %v192_v7, %v191_v6  ;;  %v158_v11 = vadd.f32 %v157_v8, %v156_v5 }
  0xf7   :  { %v160_v15 = vadd.f32 %v159_v9, %v158_v11  ;;  %v195_v16 = vadd.f32 %v194_v12, %v193_v10 }
  0xf9   :  { %v197_v18 = vadd.f32 %v196_v13, %v195_v16  ;;  %v162_v19 = vadd.f32 %v161_v17, %v160_v15 }
  0xfb   :  { %v163_v21 = vrot.slane %v162_v19, 4  ;;  %v199_v22 = vadd.f32 %v198_v20, %v197_v18 }
  0xfd   :  { %v164_v23 = vadd.f32 %v163_v21, %v162_v19  ;;  %v200_v24 = vrot.slane %v199_v22, 4 }
  0xff   :  { %v165_v25 = vrot.slane %v164_v23, 2  ;;  %v201_v26 = vadd.f32 %v200_v24, %v199_v22 }
 0x101   :  { %v166_v27 = vadd.f32 %v165_v25, %v164_v23  ;;  %v202_v28 = vrot.slane %v201_v26, 2 }
 0x103   :  { %v167_v29 = vrot.slane %v166_v27, 1  ;;  %v203_v30 = vadd.f32 %v202_v28, %v201_v26 }
 0x105   :  { %v168_v31 = vadd.f32 %v167_v29, %v166_v27  ;;  %v204_v32 = vrot.slane %v203_v30, 1 }
 0x107   :  { %170 = vst.msk [vmem:[%s398_s3] sm:$0x1] %vm169_vm2, %v168_v31  ;;  %v205_v33 = vadd.f32 %v204_v32, %v203_v30 }
 0x109   :  { %206 = vst.msk [vmem:[%s398_s3 + $0x1] sm:$0x1] %vm169_vm2, %v205_v33 }

// kernel: reverse.6
= control target key start
LH: loop header
LB: loop body
LE: loop exit
PB: predicated region body
PF: predicated region fallthrough
CT: control target
= control target key end

     0   :  { %s80_s0 = inlined_call_operand.vmem [shape: f32[2,16,8,3], index: 0, kind: input, shape index: {}]   ;;  %s81_s1 = inlined_call_operand.vmem [shape: f32[2,16,8,3], index: 1, kind: output, shape index: {}]  }
   0x1   :  { %v24_v0 = vld [vmem:[%s80_s0 + $0x10] sm:$0xff]  ;;  %v25_v1 = vld [vmem:[%s80_s0 + $0x28] sm:$0xff]  ;;  %v29_v3 = vld [vmem:[%s80_s0 + $0x20] sm:$0xff] }
   0x2   :  { %v27_v2 = vld [vmem:[%s80_s0 + $0x8] sm:$0xff]  ;;  %4 = vst [vmem:[%s81_s1] sm:$0xff] %v24_v0  ;;  %26 = vst [vmem:[%s81_s1 + $0x18] sm:$0xff] %v25_v1  ;;  %v17_v4 = vld [vmem:[%s80_s0] sm:$0xff] }
   0x3   :  { %28 = vst [vmem:[%s81_s1 + $0x8] sm:$0xff] %v27_v2  ;;  %v32_v5 = vld [vmem:[%s80_s0 + $0x18] sm:$0xff]  ;;  %30 = vst [vmem:[%s81_s1 + $0x20] sm:$0xff] %v29_v3 }
   0x4   :  { %31 = vst [vmem:[%s81_s1 + $0x10] sm:$0xff] %v17_v4  ;;  %33 = vst [vmem:[%s81_s1 + $0x28] sm:$0xff] %v32_v5 }

// kernel: _lambda_.46
= control target key start
LH: loop header
LB: loop body
LE: loop exit
PB: predicated region body
PF: predicated region fallthrough
CT: control target
= control target key end

     0   :  { %s688_s12 = smov 0   ;;  %s874_s0 = inlined_call_operand.vmem [shape: f32[288,32], index: 0, kind: input, shape index: {}]   ;;  %s875_s1 = inlined_call_operand.vmem [shape: bf16[32,32], index: 1, kind: input, shape index: {}]   ;;  %s876_s2 = inlined_call_operand.vmem [shape: f32[288,32], index: 2, kind: output, shape index: {0}]   ;;  %s877_s3 = inlined_call_operand.vmem [shape: f32[16,32], index: 3, kind: output, shape index: {1}]  }
   0x1 LB: > { %s694_s13 = sadd.s32 4294967295, %s664_s12   ;;  %p574_p0 = scmp.ge.s32.totalorder %s664_s12, 1  ;;  %s664_s12 = sphi %s688_s12, %s14_s12  }
   0x2   : > { %p141_p1 = scmp.lt.s32.totalorder %s664_s12, 3 }
   0x4   : > { %p142_p2 = pnand %p574_p0, %p141_p1 }
   0x5   : > { %v656_v0 = vld [vmem:[%s875_s1] sm:$0xff] (!%p142_p2)   ;;  %v666_v1 = vmov (!%p142_p2), 0.0   ;;  %v657_v2 = vld [vmem:[%s875_s1 + $0x8] sm:$0xff] (!%p142_p2)   ;;  %vm667_vm0 = vmmov (!%p142_p2), 0   ;;  %s169_s18 = smul.u32 (!%p142_p2), 18, %s694_s13  ;;  %vm229_vm1 = vcmask (!%p142_p2), 261120  }
   0x6   : > { %145 = sbr.rel (%p142_p2) target bundleno = 299 (0x12b), region = 28  ;;  %602 = vmatprep.subr.bf16.mxu0 (!%p142_p2), %v666_v1  ;;  %642 = vmatprep.subr.bf16.mxu1 (!%p142_p2), %v666_v1  ;;  %p181_p4 = scmp.lt.s32.totalorder (!%p142_p2), %s694_s13, 1  ;;  %vm421_vm2 = vcmask (!%p142_p2), 253952  }
   0x7   : > { %603 = vmatpush3.bf16.msra.mxu0 (!%p142_p2), %v656_v0  ;;  %606 = vmatprep.mubr.msk.bf16.mxu0 (!%p142_p2), %vm667_vm0, %v666_v1  ;;  %p170_p3 = scmp.lt.s32.totalorder (!%p142_p2), %s169_s18, 35 }
   0x8   : > { %604 = vmatprep.subr.bf16.mxu0 (!%p142_p2), %v666_v1  ;;  %644 = vmatpush3.bf16.msra.mxu1 (!%p142_p2), %v656_v0 }
   0x9   : > { %643 = vmatprep.subr.bf16.mxu1 (!%p142_p2), %v666_v1  ;;  %626 = vmatprep.mubr.msk.bf16.mxu1 (!%p142_p2), %vm667_vm0, %v666_v1 }
   0xb   : > { %605 = vmatpush3.bf16.msra.mxu0 (!%p142_p2), %v657_v2 }
   0xc   : > { %645 = vmatpush3.bf16.msra.mxu1 (!%p142_p2), %v657_v2 }
   0xd   : > { %s879_s18 = smov (!%p170_p3, %s169_s18), 35  ;;  %s881_s13 = smov (!%p181_p4, %s694_s13), 1 }
   0xe   : > { %s575_s19 = sshll.u32 %s879_s18, 3  ;;  %s577_s26 = sshll.u32 %s881_s13, 3 }
   0xf   : > { %s715_s22 = scalar_lea.vmem %s874_s0, %s575_s19  ;;  %s756_s25 = scalar_lea.vmem %s876_s2, %s575_s19 }
  0x10   : > { %v186_v3 = vld [vmem:[%s715_s22] sm:$0xff]  ;;  %v187_v4 = vld [vmem:[%s715_s22 + $0x8] sm:$0xff]  ;;  %v196_v6 = vld [vmem:[%s715_s22 + $0x50] sm:$0xff]  ;;  %s184_s29 = scalar_lea.vmem %s877_s3, %s577_s26 }
  0x11   : > { %v204_v5 = vpack.c.bf16 %v187_v4, %v186_v3  ;;  %v197_v7 = vld [vmem:[%s715_s22 + $0x58] sm:$0xff]  ;;  %v188_v9 = vld [vmem:[%s715_s22 + $0x10] sm:$0xff]  ;;  %v198_v11 = vld [vmem:[%s715_s22 + $0x60] sm:$0xff] }
  0x12   : > { %v209_v8 = vpack.c.bf16 %v197_v7, %v196_v6  ;;  %v189_v10 = vld [vmem:[%s715_s22 + $0x18] sm:$0xff]  ;;  %v199_v12 = vld [vmem:[%s715_s22 + $0x68] sm:$0xff]  ;;  %v190_v15 = vld [vmem:[%s715_s22 + $0x20] sm:$0xff] }
  0x13   : > { %607 = vmatmul.mubr.msk.bf16.vlgmr.msra.gmra.mrb[0].mxu0 %vm229_vm1, %v204_v5  ;;  %v205_v13 = vpack.c.bf16 %v189_v10, %v188_v9  ;;  %v210_v14 = vpack.c.bf16 %v199_v12, %v198_v11  ;;  %v191_v16 = vld [vmem:[%s715_s22 + $0x28] sm:$0xff]  ;;  %v200_v17 = vld [vmem:[%s715_s22 + $0x70] sm:$0xff]  ;;  %v201_v18 = vld [vmem:[%s715_s22 + $0x78] sm:$0xff] }
  0x14   : > { %610 = vmatprep.mubr.msk.bf16.mxu0 %vm667_vm0, %v666_v1  ;;  %627 = vmatmul.mubr.msk.bf16.vlgmr.msra.gmra.mrb[0].mxu1 %vm229_vm1, %v209_v8  ;;  %v206_v19 = vpack.c.bf16 %v191_v16, %v190_v15  ;;  %v211_v20 = vpack.c.bf16 %v201_v18, %v200_v17  ;;  %v192_v21 = vld [vmem:[%s715_s22 + $0x30] sm:$0xff]  ;;  %v193_v22 = vld [vmem:[%s715_s22 + $0x38] sm:$0xff]  ;;  %v202_v23 = vld [vmem:[%s715_s22 + $0x80] sm:$0xff] }
  0x15   : > { %630 = vmatprep.mubr.msk.bf16.mxu1 %vm667_vm0, %v666_v1  ;;  %v203_v24 = vld [vmem:[%s715_s22 + $0x88] sm:$0xff]  ;;  %v207_v25 = vpack.c.bf16 %v193_v22, %v192_v21  ;;  %v194_v27 = vld [vmem:[%s715_s22 + $0x40] sm:$0xff] }
  0x16   : > { %v212_v26 = vpack.c.bf16 %v203_v24, %v202_v23  ;;  %v195_v28 = vld [vmem:[%s715_s22 + $0x48] sm:$0xff] }
  0x17   : > { %v208_v29 = vpack.c.bf16 %v195_v28, %v194_v27 }
  0x1b   : > { %611 = vmatmul.mubr.msk.bf16.gmra.mrb[4].mxu0 %vm229_vm1, %v205_v13 }
  0x1c   : > { %614 = vmatprep.mubr.msk.bf16.mxu0 %vm667_vm0, %v666_v1  ;;  %631 = vmatmul.mubr.msk.bf16.gmra.mrb[4].mxu1 %vm229_vm1, %v210_v14 }
  0x1d   : > { %634 = vmatprep.mubr.msk.bf16.mxu1 %vm667_vm0, %v666_v1 }
  0x23   : > { %615 = vmatmul.mubr.msk.bf16.gmra.mrb[8].mxu0 %vm229_vm1, %v206_v19 }
  0x24   : > { %618 = vmatprep.mubr.msk.bf16.mxu0 %vm667_vm0, %v666_v1  ;;  %635 = vmatmul.mubr.msk.bf16.gmra.mrb[8].mxu1 %vm229_vm1, %v211_v20 }
  0x25   : > { %638 = vmatprep.mubr.msk.bf16.mxu1 %vm667_vm0, %v666_v1 }
  0x2b   : > { %619 = vmatmul.mubr.msk.bf16.gmra.mrb[12].mxu0 %vm229_vm1, %v207_v25 }
  0x2c   : > { %622 = vmatprep.mubr.msk.bf16.mxu0 %vm667_vm0, %v666_v1  ;;  %639 = vmatmul.mubr.msk.bf16.gmra.mrb[12].mxu1 %vm229_vm1, %v212_v26 }
  0x33   : > { %623 = vmatmul.mubr.msk.bf16.gmra.mrb[16].mxu0 %vm229_vm1, %v208_v29 }
  0xe6   : > { %v291_v30 = vpop.f32.mrb[0].mxu0 }
  0xe7   : > { %362 = vst.msk [vmem:[%s756_s25] sm:$0xff] %vm229_vm1, %v291_v30  ;;  %v423_v31 = vmul.f32 %v291_v30, %v291_v30  ;;  %v608_v32 = vpop.f32.mrb[1].mxu0  ;;  %v760_v34 = vpop.f32.mrb[0].mxu1  ;;  %v380_v35 = vsel %vm229_vm1, %v291_v30, 0.0 }
  0xe8   : > { %v294_v33 = vpop.f32.mrb[2].mxu0  ;;  %372 = vst.msk [vmem:[%s756_s25 + $0x50] sm:$0xff] %vm229_vm1, %v760_v34  ;;  %v628_v39 = vpop.f32.mrb[1].mxu1 }
  0xe9   : > { %363 = vst.msk [vmem:[%s756_s25 + $0x8] sm:$0xff] %vm229_vm1, %v294_v33  ;;  %v381_v36 = vsel %vm229_vm1, %v294_v33, 0.0  ;;  %v424_v37 = vmul.f32 %v294_v33, %v294_v33  ;;  %v609_v38 = vpop.f32.mrb[3].mxu0  ;;  %v769_v41 = vpop.f32.mrb[2].mxu1  ;;  %v441_v42 = vsel %vm229_vm1, %v423_v31, 0.0 }
  0xea   : > { %v382_v40 = vadd.f32 %v381_v36, %v380_v35  ;;  %373 = vst.msk [vmem:[%s756_s25 + $0x58] sm:$0xff] %vm229_vm1, %v769_v41  ;;  %v629_v44 = vpop.f32.mrb[3].mxu1 }
  0xeb   : > { %v442_v43 = vsel %vm229_vm1, %v424_v37, 0.0  ;;  %v433_v44 = vmul.f32 %v760_v34, %v760_v34 }
  0xec   : > { %v443_v45 = vadd.f32 %v442_v43, %v441_v42 }
  0xee   : > { %v299_v46 = vpop.f32.mrb[4].mxu0 }
  0xef   : > { %364 = vst.msk [vmem:[%s756_s25 + $0x10] sm:$0xff] %vm229_vm1, %v299_v46  ;;  %v383_v47 = vsel %vm229_vm1, %v299_v46, 0.0  ;;  %v425_v48 = vmul.f32 %v299_v46, %v299_v46  ;;  %v612_v49 = vpop.f32.mrb[5].mxu0  ;;  %v779_v52 = vpop.f32.mrb[4].mxu1 }
  0xf0   : > { %v384_v50 = vadd.f32 %v383_v47, %v382_v40  ;;  %v302_v51 = vpop.f32.mrb[6].mxu0  ;;  %374 = vst.msk [vmem:[%s756_s25 + $0x60] sm:$0xff] %vm229_vm1, %v779_v52  ;;  %v632_v57 = vpop.f32.mrb[5].mxu1 }
  0xf1   : > { %v444_v53 = vsel %vm229_vm1, %v425_v48, 0.0  ;;  %365 = vst.msk [vmem:[%s756_s25 + $0x18] sm:$0xff] %vm229_vm1, %v302_v51  ;;  %v385_v54 = vsel %vm229_vm1, %v302_v51, 0.0  ;;  %v426_v55 = vmul.f32 %v302_v51, %v302_v51  ;;  %v613_v56 = vpop.f32.mrb[7].mxu0  ;;  %v788_v60 = vpop.f32.mrb[6].mxu1  ;;  %v399_v51 = vsel %vm229_vm1, %v760_v34, 0.0 }
  0xf2   : > { %v445_v58 = vadd.f32 %v444_v53, %v443_v45  ;;  %v386_v59 = vadd.f32 %v385_v54, %v384_v50  ;;  %375 = vst.msk [vmem:[%s756_s25 + $0x68] sm:$0xff] %vm229_vm1, %v788_v60  ;;  %v633_v62 = vpop.f32.mrb[7].mxu1  ;;  %v434_v53 = vmul.f32 %v769_v41, %v769_v41  ;;  %v460_v57 = vsel %vm229_vm1, %v433_v44, 0.0 }
  0xf3   : > { %v446_v61 = vsel %vm229_vm1, %v426_v55, 0.0  ;;  %v403_v34 = vsel %vm229_vm1, %v779_v52, 0.0 }
  0xf4   : > { %v447_v63 = vadd.f32 %v446_v61, %v445_v58  ;;  %v401_v58 = vsel %vm229_vm1, %v769_v41, 0.0  ;;  %v405_v41 = vsel %vm229_vm1, %v788_v60, 0.0 }
  0xf6   : > { %v307_v0 = vpop.f32.mrb[8].mxu0 }
  0xf7   : > { %366 = vst.msk [vmem:[%s756_s25 + $0x20] sm:$0xff] %vm229_vm1, %v307_v0  ;;  %v387_v1 = vsel %vm229_vm1, %v307_v0, 0.0  ;;  %v427_v2 = vmul.f32 %v307_v0, %v307_v0  ;;  %v616_v3 = vpop.f32.mrb[9].mxu0  ;;  %v797_v6 = vpop.f32.mrb[8].mxu1  ;;  %v436_v0 = vmul.f32 %v788_v60, %v788_v60 }
  0xf8   : > { %v388_v4 = vadd.f32 %v387_v1, %v386_v59  ;;  %v310_v5 = vpop.f32.mrb[10].mxu0  ;;  %376 = vst.msk [vmem:[%s756_s25 + $0x70] sm:$0xff] %vm229_vm1, %v797_v6  ;;  %v636_v11 = vpop.f32.mrb[9].mxu1  ;;  %v435_v59 = vmul.f32 %v779_v52, %v779_v52  ;;  %v407_v52 = vsel %vm229_vm1, %v797_v6, 0.0 }
  0xf9   : > { %v448_v7 = vsel %vm229_vm1, %v427_v2, 0.0  ;;  %367 = vst.msk [vmem:[%s756_s25 + $0x28] sm:$0xff] %vm229_vm1, %v310_v5  ;;  %v389_v8 = vsel %vm229_vm1, %v310_v5, 0.0  ;;  %v428_v9 = vmul.f32 %v310_v5, %v310_v5  ;;  %v617_v10 = vpop.f32.mrb[11].mxu0  ;;  %v806_v14 = vpop.f32.mrb[10].mxu1 }
  0xfa   : > { %v449_v12 = vadd.f32 %v448_v7, %v447_v63  ;;  %v390_v13 = vadd.f32 %v389_v8, %v388_v4  ;;  %377 = vst.msk [vmem:[%s756_s25 + $0x78] sm:$0xff] %vm229_vm1, %v806_v14  ;;  %v637_v16 = vpop.f32.mrb[11].mxu1  ;;  %v462_v63 = vsel %vm229_vm1, %v434_v53, 0.0  ;;  %v464_v3 = vsel %vm229_vm1, %v435_v59, 0.0 }
  0xfb   : > { %v450_v15 = vsel %vm229_vm1, %v428_v9, 0.0  ;;  %v437_v4 = vmul.f32 %v797_v6, %v797_v6  ;;  %v466_v8 = vsel %vm229_vm1, %v436_v0, 0.0  ;;  %v438_v9 = vmul.f32 %v806_v14, %v806_v14 }
  0xfc   : > { %v451_v17 = vadd.f32 %v450_v15, %v449_v12  ;;  %v409_v60 = vsel %vm229_vm1, %v806_v14, 0.0 }
  0xfe   : > { %v315_v18 = vpop.f32.mrb[12].mxu0 }
  0xff   : > { %368 = vst.msk [vmem:[%s756_s25 + $0x30] sm:$0xff] %vm229_vm1, %v315_v18  ;;  %v391_v19 = vsel %vm229_vm1, %v315_v18, 0.0  ;;  %v429_v20 = vmul.f32 %v315_v18, %v315_v18  ;;  %v620_v21 = vpop.f32.mrb[13].mxu0  ;;  %v355_v24 = vpop.f32.mrb[12].mxu1  ;;  %v470_v18 = vsel %vm229_vm1, %v438_v9, 0.0 }
 0x100   : > { %v392_v22 = vadd.f32 %v391_v19, %v390_v13  ;;  %v318_v23 = vpop.f32.mrb[14].mxu0  ;;  %378 = vst.msk [vmem:[%s756_s25 + $0x80] sm:$0xff] %vm229_vm1, %v355_v24  ;;  %v640_v29 = vpop.f32.mrb[13].mxu1  ;;  %v439_v10 = vmul.f32 %v355_v24, %v355_v24  ;;  %v468_v13 = vsel %vm229_vm1, %v437_v4, 0.0  ;;  %v411_v15 = vsel %vm229_vm1, %v355_v24, 0.0 }
 0x101   : > { %v452_v25 = vsel %vm229_vm1, %v429_v20, 0.0  ;;  %369 = vst.msk [vmem:[%s756_s25 + $0x38] sm:$0xff] %vm229_vm1, %v318_v23  ;;  %v393_v26 = vsel %vm229_vm1, %v318_v23, 0.0  ;;  %v430_v27 = vmul.f32 %v318_v23, %v318_v23  ;;  %v621_v28 = vpop.f32.mrb[15].mxu0  ;;  %v358_v32 = vpop.f32.mrb[14].mxu1 }
 0x102   : > { %v453_v30 = vadd.f32 %v452_v25, %v451_v17  ;;  %v394_v31 = vadd.f32 %v393_v26, %v392_v22  ;;  %379 = vst.msk [vmem:[%s756_s25 + $0x88] sm:$0xff] %vm229_vm1, %v358_v32  ;;  %v641_v35 = vpop.f32.mrb[15].mxu1  ;;  %v472_v6 = vsel %vm229_vm1, %v439_v10, 0.0  ;;  %v440_v19 = vmul.f32 %v358_v32, %v358_v32 }
 0x103   : > { %v454_v33 = vsel %vm229_vm1, %v430_v27, 0.0  ;;  %v413_v22 = vsel %vm229_vm1, %v358_v32, 0.0 }
 0x104   : > { %v455_v36 = vadd.f32 %v454_v33, %v453_v30  ;;  %v474_v26 = vsel %vm229_vm1, %v440_v19, 0.0 }
 0x106   : > { %v323_v37 = vpop.f32.mrb[16].mxu0 }
 0x107   : > { %370 = vst.msk [vmem:[%s756_s25 + $0x40] sm:$0xff] %vm229_vm1, %v323_v37  ;;  %v395_v38 = vsel %vm229_vm1, %v323_v37, 0.0  ;;  %v431_v39 = vmul.f32 %v323_v37, %v323_v37  ;;  %v624_v40 = vpop.f32.mrb[17].mxu0 }
 0x108   : > { %v396_v42 = vadd.f32 %v395_v38, %v394_v31  ;;  %v326_v43 = vpop.f32.mrb[18].mxu0 }
 0x109   : > { %v456_v45 = vsel %vm229_vm1, %v431_v39, 0.0  ;;  %371 = vst.msk [vmem:[%s756_s25 + $0x48] sm:$0xff] %vm229_vm1, %v326_v43  ;;  %v397_v46 = vsel %vm229_vm1, %v326_v43, 0.0  ;;  %v432_v47 = vmul.f32 %v326_v43, %v326_v43  ;;  %v625_v48 = vpop.f32.mrb[19].mxu0 }
 0x10a   : > { %v457_v49 = vadd.f32 %v456_v45, %v455_v36  ;;  %v398_v50 = vadd.f32 %v397_v46, %v396_v42 }
 0x10b   : > { %v458_v54 = vsel %vm229_vm1, %v432_v47, 0.0 }
 0x10c   : > { %v400_v55 = vadd.f32 %v399_v51, %v398_v50  ;;  %v459_v56 = vadd.f32 %v458_v54, %v457_v49 }
 0x10e   : > { %v402_v61 = vadd.f32 %v401_v58, %v400_v55  ;;  %v461_v62 = vadd.f32 %v460_v57, %v459_v56 }
 0x110   : > { %v463_v1 = vadd.f32 %v462_v63, %v461_v62  ;;  %v404_v2 = vadd.f32 %v403_v34, %v402_v61 }
 0x112   : > { %v406_v5 = vadd.f32 %v405_v41, %v404_v2  ;;  %v465_v7 = vadd.f32 %v464_v3, %v463_v1 }
 0x114   : > { %v408_v11 = vadd.f32 %v407_v52, %v406_v5  ;;  %v467_v12 = vadd.f32 %v466_v8, %v465_v7 }
 0x116   : > { %v469_v16 = vadd.f32 %v468_v13, %v467_v12  ;;  %v410_v17 = vadd.f32 %v409_v60, %v408_v11 }
 0x118   : > { %v471_v20 = vadd.f32 %v470_v18, %v469_v16  ;;  %v412_v21 = vadd.f32 %v411_v15, %v410_v17 }
 0x11a   : > { %v473_v23 = vadd.f32 %v472_v6, %v471_v20  ;;  %v414_v25 = vadd.f32 %v413_v22, %v412_v21 }
 0x11c   : > { %v415_v14 = vrot.slane %v414_v25, 4  ;;  %v475_v27 = vadd.f32 %v474_v26, %v473_v23 }
 0x11e   : > { %v416_v24 = vadd.f32 %v415_v14, %v414_v25  ;;  %v476_v28 = vrot.slane %v475_v27, 4 }
 0x120   : > { %v417_v29 = vrot.slane %v416_v24, 2  ;;  %v477_v30 = vadd.f32 %v476_v28, %v475_v27 }
 0x122   : > { %v418_v31 = vadd.f32 %v417_v29, %v416_v24  ;;  %v478_v33 = vrot.slane %v477_v30, 2 }
 0x124   : > { %v419_v35 = vrot.slane %v418_v31, 1  ;;  %v479_v36 = vadd.f32 %v478_v33, %v477_v30 }
 0x126   : > { %v420_v32 = vadd.f32 %v419_v35, %v418_v31  ;;  %v480_v37 = vrot.slane %v479_v36, 1 }
 0x128   : > { %422 = vst.msk [vmem:[%s184_s29] sm:$0x1] %vm421_vm2, %v420_v32  ;;  %v481_v38 = vadd.f32 %v480_v37, %v479_v36 }
 0x12a   : > { %482 = vst.msk [vmem:[%s184_s29 + $0x1] sm:$0x1] %vm421_vm2, %v481_v38 }
 0x12b PF: > { %s14_s12 = sadd.s32 1, %s664_s12  }
 0x12c   : > { %p11_p5 = scmp.ge.s32.totalorder %s14_s12, 4  }
 0x12e   :  { %13 = sbr.rel (!%p11_p5) target bundleno = 1 (0x1), region = 70 }

// kernel: _lambda_.47
= control target key start
LH: loop header
LB: loop body
LE: loop exit
PB: predicated region body
PF: predicated region fallthrough
CT: control target
= control target key end

     0   :  { %s159_s0 = inlined_call_operand.vmem [shape: f32[72,128], index: 0, kind: input, shape index: {}]   ;;  %s160_s1 = inlined_call_operand.vmem [shape: f32[1,128], index: 1, kind: input, shape index: {}]   ;;  %s161_s2 = inlined_call_operand.vmem [shape: f32[1,128], index: 2, kind: input, shape index: {}]   ;;  %s162_s3 = inlined_call_operand.vmem [shape: f32[72,128], index: 3, kind: output, shape index: {}]  }
   0x1   :  { %v14_v0 = vld [vmem:[%s159_s0] sm:$0xff]  ;;  %v15_v4 = vld [vmem:[%s159_s0 + $0x8] sm:$0xff]  ;;  %v16_v5 = vld [vmem:[%s159_s0 + $0x10] sm:$0xff] }
   0x2   :  { %v77_v1 = vld [vmem:[%s160_s1] ss:$0 sm:$0xff]  ;;  %v17_v6 = vld [vmem:[%s159_s0 + $0x18] sm:$0xff]  ;;  %v19_v11 = vld [vmem:[%s159_s0 + $0x28] sm:$0xff] }
   0x3   :  { %v78_v2 = vld [vmem:[%s161_s2] ss:$0 sm:$0xff]  ;;  %v30_v3 = vmul.f32 %v77_v1, %v14_v0  ;;  %v31_v7 = vmul.f32 %v77_v1, %v15_v4  ;;  %v32_v8 = vmul.f32 %v77_v1, %v16_v5  ;;  %v33_v9 = vmul.f32 %v77_v1, %v17_v6  ;;  %v20_v12 = vld [vmem:[%s159_s0 + $0x30] sm:$0xff]  ;;  %v21_v17 = vld [vmem:[%s159_s0 + $0x38] sm:$0xff] }
   0x4   :  { %v18_v10 = vld [vmem:[%s159_s0 + $0x20] sm:$0xff]  ;;  %v35_v15 = vmul.f32 %v77_v1, %v19_v11  ;;  %v36_v16 = vmul.f32 %v77_v1, %v20_v12  ;;  %v37_v21 = vmul.f32 %v77_v1, %v21_v17 }
   0x5   :  { %v46_v13 = vadd.f32 %v78_v2, %v30_v3  ;;  %v34_v14 = vmul.f32 %v77_v1, %v18_v10  ;;  %v47_v18 = vadd.f32 %v78_v2, %v31_v7  ;;  %v48_v19 = vadd.f32 %v78_v2, %v32_v8  ;;  %v22_v22 = vld [vmem:[%s159_s0 + $0x40] sm:$0xff] }
   0x6   :  { %v49_v20 = vadd.f32 %v78_v2, %v33_v9  ;;  %v51_v25 = vadd.f32 %v78_v2, %v35_v15  ;;  %v52_v26 = vadd.f32 %v78_v2, %v36_v16  ;;  %v53_v30 = vadd.f32 %v78_v2, %v37_v21 }
   0x7   :  { %v55_v23 = vmax.f32 %v46_v13, 0.0  ;;  %v50_v24 = vadd.f32 %v78_v2, %v34_v14  ;;  %v56_v27 = vmax.f32 %v47_v18, 0.0  ;;  %v57_v28 = vmax.f32 %v48_v19, 0.0 }
   0x8   :  { %v58_v29 = vmax.f32 %v49_v20, 0.0  ;;  %v60_v32 = vmax.f32 %v51_v25, 0.0  ;;  %v61_v33 = vmax.f32 %v52_v26, 0.0  ;;  %v38_v34 = vmul.f32 %v77_v1, %v22_v22 }
   0x9   :  { %64 = vst [vmem:[%s162_s3] sm:$0xff] %v55_v23  ;;  %v59_v31 = vmax.f32 %v50_v24, 0.0  ;;  %65 = vst [vmem:[%s162_s3 + $0x8] sm:$0xff] %v56_v27  ;;  %v62_v35 = vmax.f32 %v53_v30, 0.0 }
   0xa   :  { %66 = vst [vmem:[%s162_s3 + $0x10] sm:$0xff] %v57_v28  ;;  %67 = vst [vmem:[%s162_s3 + $0x18] sm:$0xff] %v58_v29  ;;  %v54_v36 = vadd.f32 %v78_v2, %v38_v34 }
   0xb   :  { %68 = vst [vmem:[%s162_s3 + $0x20] sm:$0xff] %v59_v31  ;;  %69 = vst [vmem:[%s162_s3 + $0x28] sm:$0xff] %v60_v32 }
   0xc   :  { %70 = vst [vmem:[%s162_s3 + $0x30] sm:$0xff] %v61_v33  ;;  %71 = vst [vmem:[%s162_s3 + $0x38] sm:$0xff] %v62_v35  ;;  %v63_v37 = vmax.f32 %v54_v36, 0.0 }
   0xe   :  { %72 = vst [vmem:[%s162_s3 + $0x40] sm:$0xff] %v63_v37 }

// kernel: reverse.4
= control target key start
LH: loop header
LB: loop body
LE: loop exit
PB: predicated region body
PF: predicated region fallthrough
CT: control target
= control target key end

     0   :  { %s344_s0 = inlined_call_operand.vmem [shape: f32[2,16,16,7], index: 0, kind: input, shape index: {}]   ;;  %s345_s1 = inlined_call_operand.vmem [shape: f32[2,16,16,7], index: 1, kind: output, shape index: {}]  }
   0x1   :  { %v112_v0 = vld [vmem:[%s344_s0 + $0x60] sm:$0xff]  ;;  %v113_v1 = vld [vmem:[%s344_s0 + $0xd0] sm:$0xff]  ;;  %v138_v14 = vld [vmem:[%s344_s0 + $0x68] sm:$0xff] }
   0x2   :  { %v115_v2 = vld [vmem:[%s344_s0 + $0x50] sm:$0xff]  ;;  %4 = vst [vmem:[%s345_s1] sm:$0xff] %v112_v0  ;;  %114 = vst [vmem:[%s345_s1 + $0x70] sm:$0xff] %v113_v1  ;;  %v117_v3 = vld [vmem:[%s344_s0 + $0xc0] sm:$0xff] }
   0x3   :  { %116 = vst [vmem:[%s345_s1 + $0x10] sm:$0xff] %v115_v2  ;;  %v119_v4 = vld [vmem:[%s344_s0 + $0x40] sm:$0xff]  ;;  %v121_v5 = vld [vmem:[%s344_s0 + $0xb0] sm:$0xff]  ;;  %118 = vst [vmem:[%s345_s1 + $0x80] sm:$0xff] %v117_v3 }
   0x4   :  { %120 = vst [vmem:[%s345_s1 + $0x20] sm:$0xff] %v119_v4  ;;  %122 = vst [vmem:[%s345_s1 + $0x90] sm:$0xff] %v121_v5  ;;  %v123_v6 = vld [vmem:[%s344_s0 + $0x30] sm:$0xff]  ;;  %v125_v7 = vld [vmem:[%s344_s0 + $0xa0] sm:$0xff] }
   0x5   :  { %v127_v8 = vld [vmem:[%s344_s0 + $0x20] sm:$0xff]  ;;  %124 = vst [vmem:[%s345_s1 + $0x30] sm:$0xff] %v123_v6  ;;  %126 = vst [vmem:[%s345_s1 + $0xa0] sm:$0xff] %v125_v7  ;;  %v129_v9 = vld [vmem:[%s344_s0 + $0x90] sm:$0xff] }
   0x6   :  { %128 = vst [vmem:[%s345_s1 + $0x40] sm:$0xff] %v127_v8  ;;  %v131_v10 = vld [vmem:[%s344_s0 + $0x10] sm:$0xff]  ;;  %v133_v11 = vld [vmem:[%s344_s0 + $0x80] sm:$0xff]  ;;  %130 = vst [vmem:[%s345_s1 + $0xb0] sm:$0xff] %v129_v9 }
   0x7   :  { %132 = vst [vmem:[%s345_s1 + $0x50] sm:$0xff] %v131_v10  ;;  %134 = vst [vmem:[%s345_s1 + $0xc0] sm:$0xff] %v133_v11  ;;  %v49_v12 = vld [vmem:[%s344_s0] sm:$0xff]  ;;  %v136_v13 = vld [vmem:[%s344_s0 + $0x70] sm:$0xff] }
   0x8   :  { %135 = vst [vmem:[%s345_s1 + $0x60] sm:$0xff] %v49_v12  ;;  %137 = vst [vmem:[%s345_s1 + $0xd0] sm:$0xff] %v136_v13  ;;  %v140_v15 = vld [vmem:[%s344_s0 + $0xd8] sm:$0xff]  ;;  %v144_v17 = vld [vmem:[%s344_s0 + $0xc8] sm:$0xff] }
   0x9   :  { %139 = vst [vmem:[%s345_s1 + $0x8] sm:$0xff] %v138_v14  ;;  %v142_v16 = vld [vmem:[%s344_s0 + $0x58] sm:$0xff]  ;;  %141 = vst [vmem:[%s345_s1 + $0x78] sm:$0xff] %v140_v15  ;;  %v146_v18 = vld [vmem:[%s344_s0 + $0x48] sm:$0xff] }
   0xa   :  { %143 = vst [vmem:[%s345_s1 + $0x18] sm:$0xff] %v142_v16  ;;  %145 = vst [vmem:[%s345_s1 + $0x88] sm:$0xff] %v144_v17  ;;  %v148_v19 = vld [vmem:[%s344_s0 + $0xb8] sm:$0xff]  ;;  %v152_v21 = vld [vmem:[%s344_s0 + $0xa8] sm:$0xff] }
   0xb   :  { %v150_v20 = vld [vmem:[%s344_s0 + $0x38] sm:$0xff]  ;;  %147 = vst [vmem:[%s345_s1 + $0x28] sm:$0xff] %v146_v18  ;;  %149 = vst [vmem:[%s345_s1 + $0x98] sm:$0xff] %v148_v19  ;;  %v154_v22 = vld [vmem:[%s344_s0 + $0x28] sm:$0xff] }
   0xc   :  { %151 = vst [vmem:[%s345_s1 + $0x38] sm:$0xff] %v150_v20  ;;  %v156_v23 = vld [vmem:[%s344_s0 + $0x98] sm:$0xff]  ;;  %153 = vst [vmem:[%s345_s1 + $0xa8] sm:$0xff] %v152_v21  ;;  %v160_v25 = vld [vmem:[%s344_s0 + $0x88] sm:$0xff] }
   0xd   :  { %155 = vst [vmem:[%s345_s1 + $0x48] sm:$0xff] %v154_v22  ;;  %157 = vst [vmem:[%s345_s1 + $0xb8] sm:$0xff] %v156_v23  ;;  %v158_v24 = vld [vmem:[%s344_s0 + $0x18] sm:$0xff]  ;;  %v162_v26 = vld [vmem:[%s344_s0 + $0x8] sm:$0xff] }
   0xe   :  { %159 = vst [vmem:[%s345_s1 + $0x58] sm:$0xff] %v158_v24  ;;  %161 = vst [vmem:[%s345_s1 + $0xc8] sm:$0xff] %v160_v25  ;;  %v164_v27 = vld [vmem:[%s344_s0 + $0x78] sm:$0xff] }
   0xf   :  { %163 = vst [vmem:[%s345_s1 + $0x68] sm:$0xff] %v162_v26  ;;  %165 = vst [vmem:[%s345_s1 + $0xd8] sm:$0xff] %v164_v27 }

// kernel: _lambda_.50
= control target key start
LH: loop header
LB: loop body
LE: loop exit
PB: predicated region body
PF: predicated region fallthrough
CT: control target
= control target key end

     0   :  { %s994_s15 = smov 0   ;;  %s1349_s0 = inlined_call_operand.vmem [shape: f32[512,48], index: 0, kind: input, shape index: {}]   ;;  %s1350_s1 = inlined_call_operand.vmem [shape: f32[512,32], index: 1, kind: input, shape index: {}]   ;;  %s1351_s2 = inlined_call_operand.vmem [shape: bf16[48,32], index: 2, kind: input, shape index: {}]   ;;  %s1352_s3 = inlined_call_operand.vmem [shape: f32[512,32], index: 3, kind: output, shape index: {0}]   ;;  %s1353_s4 = inlined_call_operand.vmem [shape: f32[16,32], index: 4, kind: output, shape index: {1}]  }
   0x1 LB: > { %s1000_s16 = sadd.s32 4294967295, %s967_s15   ;;  %p858_p0 = scmp.ge.s32.totalorder %s967_s15, 1  ;;  %s967_s15 = sphi %s994_s15, %s15_s15  }
   0x2   : > { %p177_p1 = scmp.lt.s32.totalorder %s967_s15, 3 }
   0x4   : > { %p178_p2 = pnand %p858_p0, %p177_p1 }
   0x5   : > { %v958_v0 = vld [vmem:[%s1351_s2] sm:$0xff] (!%p178_p2)   ;;  %s859_s19 = sshll.u32 (!%p178_p2), %s1000_s16, 5  ;;  %v959_v1 = vld [vmem:[%s1351_s2 + $0x8] sm:$0xff] (!%p178_p2)   ;;  %v960_v2 = vld [vmem:[%s1351_s2 + $0x10] sm:$0xff] (!%p178_p2)   ;;  %vm339_vm0 = vcmask (!%p178_p2), 392192   ;;  %vm549_vm1 = vcmask (!%p178_p2), 261120  }
   0x6   : > { %181 = sbr.rel (%p178_p2) target bundleno = 315 (0x13b), region = 32  ;;  %p213_p3 = scmp.lt.s32.totalorder (!%p178_p2), %s859_s19, 63  ;;  %906 = vmatprep.subr.bf16.mxu0 (!%p178_p2), %v958_v0  ;;  %944 = vmatprep.subr.bf16.mxu1 (!%p178_p2), %v958_v0  ;;  %vm651_vm2 = vcmask (!%p178_p2), 253952  }
   0x7   : > { %907 = vmatpush3.bf16.msra.mxu0 (!%p178_p2), %v958_v0  ;;  %947 = vmatpush3.bf16.msra.mxu1 (!%p178_p2), %v958_v0  ;;  %p230_p4 = scmp.lt.s32.totalorder (!%p178_p2), %s1000_s16, 1 }
   0x8   : > { %908 = vmatprep.subr.bf16.mxu0 (!%p178_p2), %v959_v1  ;;  %945 = vmatprep.subr.bf16.mxu1 (!%p178_p2), %v959_v1 }
   0xb   : > { %909 = vmatpush3.bf16.msra.mxu0 (!%p178_p2), %v959_v1  ;;  %948 = vmatpush3.bf16.msra.mxu1 (!%p178_p2), %v959_v1 }
   0xc   : > { %910 = vmatprep.subr.bf16.mxu0 (!%p178_p2), %v960_v2  ;;  %946 = vmatprep.subr.bf16.mxu1 (!%p178_p2), %v960_v2 }
   0xd   : > { %s1355_s19 = smov (!%p213_p3, %s859_s19), 63  ;;  %s1357_s16 = smov (!%p230_p4, %s1000_s16), 1 }
   0xe   : > { %s1014_s24 = sshll.u32 %s1355_s19, 3  ;;  %s865_s8 = sshll.u32 %s1357_s16, 3 }
   0xf   : > { %s1020_s27 = scalar_lea.vmem %s1349_s0, %s1014_s24  ;;  %911 = vmatpush3.bf16.msra.mxu0 %v960_v2  ;;  %949 = vmatpush3.bf16.msra.mxu1 %v960_v2  ;;  %s1074_s30 = scalar_lea.vmem %s1350_s1, %s1014_s24 }
  0x10   : > { %v235_v3 = vld [vmem:[%s1020_s27] sm:$0xff]  ;;  %v236_v4 = vld [vmem:[%s1020_s27 + $0x8] sm:$0xff]  ;;  %v237_v5 = vld [vmem:[%s1020_s27 + $0x10] sm:$0xff]  ;;  %s1082_s7 = scalar_lea.vmem %s1352_s3, %s1014_s24  ;;  %s233_s11 = scalar_lea.vmem %s1353_s4, %s865_s8 }
  0x11   : > { %v267_v6 = vpack.c.bf16 %v236_v4, %v235_v3  ;;  %v238_v7 = vld [vmem:[%s1020_s27 + $0x18] sm:$0xff]  ;;  %v239_v8 = vld [vmem:[%s1020_s27 + $0x20] sm:$0xff]  ;;  %v240_v9 = vld [vmem:[%s1020_s27 + $0x28] sm:$0xff] }
  0x12   : > { %v268_v10 = vpack.c.bf16 %v238_v7, %v237_v5  ;;  %v269_v11 = vpack.c.bf16 %v240_v9, %v239_v8  ;;  %v251_v12 = vld [vmem:[%s1020_s27 + $0x80] sm:$0xff]  ;;  %v252_v13 = vld [vmem:[%s1020_s27 + $0x88] sm:$0xff]  ;;  %v253_v15 = vld [vmem:[%s1020_s27 + $0x90] sm:$0xff] }
  0x13   : > { %912 = vmatprep.mubr.msk.bf16.mxu0 %vm339_vm0, %v267_v6  ;;  %v275_v14 = vpack.c.bf16 %v252_v13, %v251_v12  ;;  %v254_v16 = vld [vmem:[%s1020_s27 + $0x98] sm:$0xff]  ;;  %v255_v17 = vld [vmem:[%s1020_s27 + $0xa0] sm:$0xff]  ;;  %v256_v19 = vld [vmem:[%s1020_s27 + $0xa8] sm:$0xff] }
  0x14   : > { %913 = vmatmul.mubr.msk.bf16.vlgmr.msra.gmra.mrb[0].mxu0 %vm339_vm0, %v268_v10  ;;  %v276_v18 = vpack.c.bf16 %v254_v16, %v253_v15  ;;  %v241_v20 = vld [vmem:[%s1020_s27 + $0x30] sm:$0xff]  ;;  %v242_v21 = vld [vmem:[%s1020_s27 + $0x38] sm:$0xff]  ;;  %v277_v22 = vpack.c.bf16 %v256_v19, %v255_v17  ;;  %v243_v23 = vld [vmem:[%s1020_s27 + $0x40] sm:$0xff] }
  0x15   : > { %916 = vmatprep.mubr.msk.bf16.mxu0 %vm339_vm0, %v269_v11  ;;  %928 = vmatprep.mubr.msk.bf16.mxu1 %vm339_vm0, %v275_v14  ;;  %v244_v24 = vld [vmem:[%s1020_s27 + $0x48] sm:$0xff]  ;;  %v257_v25 = vld [vmem:[%s1020_s27 + $0xb0] sm:$0xff]  ;;  %v258_v26 = vld [vmem:[%s1020_s27 + $0xb8] sm:$0xff]  ;;  %v270_v27 = vpack.c.bf16 %v242_v21, %v241_v20 }
  0x16   : > { %929 = vmatmul.mubr.msk.bf16.vlgmr.msra.gmra.mrb[0].mxu1 %vm339_vm0, %v276_v18  ;;  %v259_v28 = vld [vmem:[%s1020_s27 + $0xc0] sm:$0xff]  ;;  %v260_v29 = vld [vmem:[%s1020_s27 + $0xc8] sm:$0xff]  ;;  %v271_v30 = vpack.c.bf16 %v244_v24, %v243_v23  ;;  %v278_v31 = vpack.c.bf16 %v258_v26, %v257_v25  ;;  %v245_v33 = vld [vmem:[%s1020_s27 + $0x50] sm:$0xff] }
  0x17   : > { %932 = vmatprep.mubr.msk.bf16.mxu1 %vm339_vm0, %v277_v22  ;;  %v279_v32 = vpack.c.bf16 %v260_v29, %v259_v28  ;;  %v246_v34 = vld [vmem:[%s1020_s27 + $0x58] sm:$0xff]  ;;  %v247_v35 = vld [vmem:[%s1020_s27 + $0x60] sm:$0xff]  ;;  %v248_v36 = vld [vmem:[%s1020_s27 + $0x68] sm:$0xff] }
  0x18   : > { %v261_v37 = vld [vmem:[%s1020_s27 + $0xd0] sm:$0xff]  ;;  %v262_v38 = vld [vmem:[%s1020_s27 + $0xd8] sm:$0xff]  ;;  %v272_v39 = vpack.c.bf16 %v246_v34, %v245_v33  ;;  %v263_v40 = vld [vmem:[%s1020_s27 + $0xe0] sm:$0xff]  ;;  %v273_v42 = vpack.c.bf16 %v248_v36, %v247_v35 }
  0x19   : > { %v264_v41 = vld [vmem:[%s1020_s27 + $0xe8] sm:$0xff]  ;;  %v280_v43 = vpack.c.bf16 %v262_v38, %v261_v37  ;;  %v249_v45 = vld [vmem:[%s1020_s27 + $0x70] sm:$0xff]  ;;  %v250_v46 = vld [vmem:[%s1020_s27 + $0x78] sm:$0xff] }
  0x1a   : > { %v281_v44 = vpack.c.bf16 %v264_v41, %v263_v40  ;;  %v265_v47 = vld [vmem:[%s1020_s27 + $0xf0] sm:$0xff]  ;;  %v266_v48 = vld [vmem:[%s1020_s27 + $0xf8] sm:$0xff]  ;;  %v274_v49 = vpack.c.bf16 %v250_v46, %v249_v45  ;;  %v289_v52 = vld [vmem:[%s1074_s30] sm:$0xff] }
  0x1b   : > { %v282_v50 = vpack.c.bf16 %v266_v48, %v265_v47  ;;  %v291_v51 = vld [vmem:[%s1074_s30 + $0x10] sm:$0xff]  ;;  %v292_v54 = vld [vmem:[%s1074_s30 + $0x18] sm:$0xff]  ;;  %v290_v58 = vld [vmem:[%s1074_s30 + $0x8] sm:$0xff] }
  0x1c   : > { %917 = vmatmul.mubr.msk.bf16.gmra.mrb[4].mxu0 %vm339_vm0, %v270_v27  ;;  %v307_v55 = vld [vmem:[%s1074_s30 + $0x90] sm:$0xff]  ;;  %v305_v59 = vld [vmem:[%s1074_s30 + $0x80] sm:$0xff]  ;;  %v308_v7 = vld [vmem:[%s1074_s30 + $0x98] sm:$0xff] }
  0x1d   : > { %920 = vmatprep.mubr.msk.bf16.mxu0 %vm339_vm0, %v271_v30  ;;  %v306_v9 = vld [vmem:[%s1074_s30 + $0x88] sm:$0xff]  ;;  %v295_v14 = vld [vmem:[%s1074_s30 + $0x30] sm:$0xff]  ;;  %v293_v18 = vld [vmem:[%s1074_s30 + $0x20] sm:$0xff] }
  0x1e   : > { %933 = vmatmul.mubr.msk.bf16.gmra.mrb[4].mxu1 %vm339_vm0, %v278_v31  ;;  %v296_v28 = vld [vmem:[%s1074_s30 + $0x38] sm:$0xff]  ;;  %v294_v29 = vld [vmem:[%s1074_s30 + $0x28] sm:$0xff]  ;;  %v311_v47 = vld [vmem:[%s1074_s30 + $0xb0] sm:$0xff] }
  0x1f   : > { %936 = vmatprep.mubr.msk.bf16.mxu1 %vm339_vm0, %v279_v32  ;;  %v309_v48 = vld [vmem:[%s1074_s30 + $0xa0] sm:$0xff] }
  0x24   : > { %921 = vmatmul.mubr.msk.bf16.gmra.mrb[8].mxu0 %vm339_vm0, %v272_v39 }
  0x25   : > { %924 = vmatprep.mubr.msk.bf16.mxu0 %vm339_vm0, %v273_v42 }
  0x26   : > { %937 = vmatmul.mubr.msk.bf16.gmra.mrb[8].mxu1 %vm339_vm0, %v280_v43 }
  0x27   : > { %940 = vmatprep.mubr.msk.bf16.mxu1 %vm339_vm0, %v281_v44 }
  0x2c   : > { %925 = vmatmul.mubr.msk.bf16.gmra.mrb[12].mxu0 %vm339_vm0, %v274_v49  ;;  %v312_v49 = vld [vmem:[%s1074_s30 + $0xb8] sm:$0xff] }
  0x2e   : > { %941 = vmatmul.mubr.msk.bf16.gmra.mrb[12].mxu1 %vm339_vm0, %v282_v50 }
  0xe7   : > { %v914_v53 = vpop.f32.mrb[0].mxu0 }
  0xe8   : > { %v431_v56 = vadd.f32 %v914_v53, %v291_v51  ;;  %v422_v57 = vpop.f32.mrb[1].mxu0  ;;  %v299_v53 = vld [vmem:[%s1074_s30 + $0x50] sm:$0xff] }
  0xe9   : > { %v423_v60 = vadd.f32 %v422_v57, %v289_v52  ;;  %v915_v61 = vpop.f32.mrb[2].mxu0  ;;  %v930_v62 = vpop.f32.mrb[0].mxu1 }
  0xea   : > { %552 = vst.msk [vmem:[%s1082_s7 + $0x10] sm:$0xff] %vm549_vm1, %v431_v56  ;;  %v434_v63 = vadd.f32 %v915_v61, %v292_v54  ;;  %v425_v0 = vpop.f32.mrb[3].mxu0  ;;  %v1090_v1 = vadd.f32 %v930_v62, %v307_v55  ;;  %v486_v2 = vpop.f32.mrb[1].mxu1  ;;  %v655_v10 = vmul.f32 %v431_v56, %v431_v56  ;;  %v585_v15 = vsel %vm549_vm1, %v431_v56, 0.0  ;;  %v300_v61 = vld [vmem:[%s1074_s30 + $0x58] sm:$0xff] }
  0xeb   : > { %550 = vst.msk [vmem:[%s1082_s7] sm:$0xff] %vm549_vm1, %v423_v60  ;;  %v653_v3 = vmul.f32 %v423_v60, %v423_v60  ;;  %v426_v4 = vadd.f32 %v425_v0, %v290_v58  ;;  %v1094_v5 = vadd.f32 %v486_v2, %v305_v59  ;;  %v931_v6 = vpop.f32.mrb[2].mxu1  ;;  %v582_v11 = vsel %vm549_vm1, %v423_v60, 0.0  ;;  %v297_v58 = vld [vmem:[%s1074_s30 + $0x40] sm:$0xff] }
  0xec   : > { %553 = vst.msk [vmem:[%s1082_s7 + $0x18] sm:$0xff] %vm549_vm1, %v434_v63  ;;  %568 = vst.msk [vmem:[%s1082_s7 + $0x90] sm:$0xff] %vm549_vm1, %v1090_v1  ;;  %v489_v8 = vpop.f32.mrb[3].mxu1  ;;  %v656_v16 = vmul.f32 %v434_v63, %v434_v63  ;;  %v1115_v22 = vadd.f32 %v931_v6, %v308_v7  ;;  %v688_v30 = vsel %vm549_vm1, %v655_v10, 0.0  ;;  %v587_v31 = vsel %vm549_vm1, %v434_v63, 0.0 }
  0xed   : > { %551 = vst.msk [vmem:[%s1082_s7 + $0x8] sm:$0xff] %vm549_vm1, %v426_v4  ;;  %v583_v12 = vsel %vm549_vm1, %v426_v4, 0.0  ;;  %v654_v13 = vmul.f32 %v426_v4, %v426_v4  ;;  %566 = vst.msk [vmem:[%s1082_s7 + $0x80] sm:$0xff] %vm549_vm1, %v1094_v5  ;;  %v685_v19 = vsel %vm549_vm1, %v653_v3, 0.0  ;;  %v1117_v23 = vadd.f32 %v489_v8, %v306_v9  ;;  %v298_v8 = vld [vmem:[%s1074_s30 + $0x48] sm:$0xff] }
  0xee   : > { %v584_v17 = vadd.f32 %v583_v12, %v582_v11  ;;  %569 = vst.msk [vmem:[%s1082_s7 + $0x98] sm:$0xff] %vm549_vm1, %v1115_v22  ;;  %v690_v35 = vsel %vm549_vm1, %v656_v16, 0.0 }
  0xef   : > { %v686_v20 = vsel %vm549_vm1, %v654_v13, 0.0  ;;  %v918_v21 = vpop.f32.mrb[4].mxu0  ;;  %567 = vst.msk [vmem:[%s1082_s7 + $0x88] sm:$0xff] %vm549_vm1, %v1117_v23 }
  0xf0   : > { %v586_v24 = vadd.f32 %v585_v15, %v584_v17  ;;  %v687_v25 = vadd.f32 %v686_v20, %v685_v19  ;;  %v447_v26 = vadd.f32 %v918_v21, %v295_v14  ;;  %v438_v27 = vpop.f32.mrb[5].mxu0 }
  0xf1   : > { %v439_v32 = vadd.f32 %v438_v27, %v293_v18  ;;  %v919_v33 = vpop.f32.mrb[6].mxu0  ;;  %v934_v34 = vpop.f32.mrb[4].mxu1 }
  0xf2   : > { %v689_v36 = vadd.f32 %v688_v30, %v687_v25  ;;  %556 = vst.msk [vmem:[%s1082_s7 + $0x30] sm:$0xff] %vm549_vm1, %v447_v26  ;;  %v588_v37 = vadd.f32 %v587_v31, %v586_v24  ;;  %v441_v38 = vpop.f32.mrb[7].mxu0  ;;  %v502_v39 = vpop.f32.mrb[5].mxu1  ;;  %v450_v42 = vadd.f32 %v919_v33, %v296_v28  ;;  %v659_v54 = vmul.f32 %v447_v26, %v447_v26  ;;  %v303_v33 = vld [vmem:[%s1074_s30 + $0x70] sm:$0xff] }
  0xf3   : > { %554 = vst.msk [vmem:[%s1082_s7 + $0x20] sm:$0xff] %vm549_vm1, %v439_v32  ;;  %v589_v40 = vsel %vm549_vm1, %v439_v32, 0.0  ;;  %v657_v41 = vmul.f32 %v439_v32, %v439_v32  ;;  %v442_v43 = vadd.f32 %v441_v38, %v294_v29  ;;  %v935_v44 = vpop.f32.mrb[6].mxu1  ;;  %v593_v59 = vsel %vm549_vm1, %v447_v26, 0.0  ;;  %v315_v38 = vld [vmem:[%s1074_s30 + $0xd0] sm:$0xff] }
  0xf4   : > { %v590_v45 = vadd.f32 %v589_v40, %v588_v37  ;;  %v691_v46 = vadd.f32 %v690_v35, %v689_v36  ;;  %v1138_v50 = vpop.f32.mrb[7].mxu1  ;;  %557 = vst.msk [vmem:[%s1082_s7 + $0x38] sm:$0xff] %vm549_vm1, %v450_v42  ;;  %v1150_v62 = vadd.f32 %v934_v34, %v311_v47  ;;  %v1152_v63 = vadd.f32 %v502_v39, %v309_v48  ;;  %v310_v34 = vld [vmem:[%s1074_s30 + $0xa8] sm:$0xff]  ;;  %v301_v37 = vld [vmem:[%s1074_s30 + $0x60] sm:$0xff] }
  0xf5   : > { %v692_v51 = vsel %vm549_vm1, %v657_v41, 0.0  ;;  %555 = vst.msk [vmem:[%s1082_s7 + $0x28] sm:$0xff] %vm549_vm1, %v442_v43  ;;  %v591_v52 = vsel %vm549_vm1, %v442_v43, 0.0  ;;  %v658_v57 = vmul.f32 %v442_v43, %v442_v43  ;;  %v1154_v0 = vadd.f32 %v935_v44, %v312_v49  ;;  %v304_v43 = vld [vmem:[%s1074_s30 + $0x78] sm:$0xff]  ;;  %v302_v48 = vld [vmem:[%s1074_s30 + $0x68] sm:$0xff] }
  0xf6   : > { %v693_v55 = vadd.f32 %v692_v51, %v691_v46  ;;  %v592_v56 = vadd.f32 %v591_v52, %v590_v45  ;;  %v660_v2 = vmul.f32 %v450_v42, %v450_v42  ;;  %v595_v9 = vsel %vm549_vm1, %v450_v42, 0.0  ;;  %572 = vst.msk [vmem:[%s1082_s7 + $0xb0] sm:$0xff] %vm549_vm1, %v1150_v62  ;;  %570 = vst.msk [vmem:[%s1082_s7 + $0xa0] sm:$0xff] %vm549_vm1, %v1152_v63 }
  0xf7   : > { %v922_v60 = vpop.f32.mrb[8].mxu0  ;;  %v694_v4 = vsel %vm549_vm1, %v658_v57, 0.0  ;;  %573 = vst.msk [vmem:[%s1082_s7 + $0xb8] sm:$0xff] %vm549_vm1, %v1154_v0  ;;  %v696_v14 = vsel %vm549_vm1, %v659_v54, 0.0  ;;  %v1196_v49 = vadd.f32 %v1138_v50, %v310_v34 }
  0xf8   : > { %v594_v3 = vadd.f32 %v593_v59, %v592_v56  ;;  %v463_v6 = vadd.f32 %v922_v60, %v299_v53  ;;  %v454_v7 = vpop.f32.mrb[9].mxu0  ;;  %v695_v10 = vadd.f32 %v694_v4, %v693_v55  ;;  %v698_v26 = vsel %vm549_vm1, %v660_v2, 0.0 }
  0xf9   : > { %v455_v11 = vadd.f32 %v454_v7, %v297_v58  ;;  %v923_v12 = vpop.f32.mrb[10].mxu0  ;;  %v938_v13 = vpop.f32.mrb[8].mxu1  ;;  %571 = vst.msk [vmem:[%s1082_s7 + $0xa8] sm:$0xff] %vm549_vm1, %v1196_v49 }
  0xfa   : > { %560 = vst.msk [vmem:[%s1082_s7 + $0x50] sm:$0xff] %vm549_vm1, %v463_v6  ;;  %v596_v15 = vadd.f32 %v595_v9, %v594_v3  ;;  %v466_v16 = vadd.f32 %v923_v12, %v300_v61  ;;  %v457_v17 = vpop.f32.mrb[11].mxu0  ;;  %v1171_v18 = vpop.f32.mrb[9].mxu1  ;;  %v697_v19 = vadd.f32 %v696_v14, %v695_v10  ;;  %v663_v35 = vmul.f32 %v463_v6, %v463_v6  ;;  %v313_v14 = vld [vmem:[%s1074_s30 + $0xc0] sm:$0xff] }
  0xfb   : > { %558 = vst.msk [vmem:[%s1082_s7 + $0x40] sm:$0xff] %vm549_vm1, %v455_v11  ;;  %v597_v20 = vsel %vm549_vm1, %v455_v11, 0.0  ;;  %v661_v21 = vmul.f32 %v455_v11, %v455_v11  ;;  %v458_v24 = vadd.f32 %v457_v17, %v298_v8  ;;  %v1176_v25 = vpop.f32.mrb[10].mxu1  ;;  %v601_v39 = vsel %vm549_vm1, %v463_v6, 0.0 }
  0xfc   : > { %v598_v27 = vadd.f32 %v597_v20, %v596_v15  ;;  %561 = vst.msk [vmem:[%s1082_s7 + $0x58] sm:$0xff] %vm549_vm1, %v466_v16  ;;  %v1181_v28 = vpop.f32.mrb[11].mxu1  ;;  %v699_v29 = vadd.f32 %v698_v26, %v697_v19  ;;  %v664_v44 = vmul.f32 %v466_v16, %v466_v16  ;;  %v603_v51 = vsel %vm549_vm1, %v466_v16, 0.0  ;;  %v316_v15 = vld [vmem:[%s1074_s30 + $0xd8] sm:$0xff]  ;;  %v314_v20 = vld [vmem:[%s1074_s30 + $0xc8] sm:$0xff] }
  0xfd   : > { %v700_v30 = vsel %vm549_vm1, %v661_v21, 0.0  ;;  %559 = vst.msk [vmem:[%s1082_s7 + $0x48] sm:$0xff] %vm549_vm1, %v458_v24  ;;  %v599_v31 = vsel %vm549_vm1, %v458_v24, 0.0  ;;  %v662_v32 = vmul.f32 %v458_v24, %v458_v24  ;;  %v1199_v55 = vadd.f32 %v938_v13, %v315_v38  ;;  %v319_v21 = vld [vmem:[%s1074_s30 + $0xf0] sm:$0xff] }
  0xfe   : > { %v600_v36 = vadd.f32 %v599_v31, %v598_v27  ;;  %v701_v40 = vadd.f32 %v700_v30, %v699_v29  ;;  %v704_v57 = vsel %vm549_vm1, %v663_v35, 0.0  ;;  %v706_v7 = vsel %vm549_vm1, %v664_v44, 0.0 }
  0xff   : > { %v702_v41 = vsel %vm549_vm1, %v662_v32, 0.0  ;;  %v926_v42 = vpop.f32.mrb[12].mxu0  ;;  %576 = vst.msk [vmem:[%s1082_s7 + $0xd0] sm:$0xff] %vm549_vm1, %v1199_v55  ;;  %v613_v19 = vsel %vm549_vm1, %v1094_v5, 0.0  ;;  %v669_v29 = vmul.f32 %v1094_v5, %v1094_v5  ;;  %v519_v32 = vadd.f32 %v1171_v18, %v313_v14  ;;  %v317_v18 = vld [vmem:[%s1074_s30 + $0xe0] sm:$0xff] }
 0x100   : > { %v602_v45 = vadd.f32 %v601_v39, %v600_v36  ;;  %v479_v46 = vadd.f32 %v926_v42, %v303_v33  ;;  %v470_v47 = vpop.f32.mrb[13].mxu0  ;;  %v703_v52 = vadd.f32 %v702_v41, %v701_v40  ;;  %v1232_v33 = vadd.f32 %v1176_v25, %v316_v15  ;;  %v320_v25 = vld [vmem:[%s1074_s30 + $0xf8] sm:$0xff] }
 0x101   : > { %v471_v53 = vadd.f32 %v470_v47, %v301_v37  ;;  %v927_v54 = vpop.f32.mrb[14].mxu0  ;;  %v942_v56 = vpop.f32.mrb[12].mxu1  ;;  %v1236_v36 = vadd.f32 %v1181_v28, %v314_v20  ;;  %574 = vst.msk [vmem:[%s1082_s7 + $0xc0] sm:$0xff] %vm549_vm1, %v519_v32  ;;  %v318_v28 = vld [vmem:[%s1074_s30 + $0xe8] sm:$0xff]  ;;  %v716_v42 = vsel %vm549_vm1, %v669_v29, 0.0  ;;  %v625_v14 = vsel %vm549_vm1, %v1150_v62, 0.0 }
 0x102   : > { %564 = vst.msk [vmem:[%s1082_s7 + $0x70] sm:$0xff] %vm549_vm1, %v479_v46  ;;  %v604_v58 = vadd.f32 %v603_v51, %v602_v45  ;;  %v482_v59 = vadd.f32 %v927_v54, %v304_v43  ;;  %v473_v60 = vpop.f32.mrb[15].mxu0  ;;  %v534_v50 = vpop.f32.mrb[13].mxu1  ;;  %v705_v61 = vadd.f32 %v704_v57, %v703_v52  ;;  %v667_v16 = vmul.f32 %v479_v46, %v479_v46 }
 0x103   : > { %562 = vst.msk [vmem:[%s1082_s7 + $0x60] sm:$0xff] %vm549_vm1, %v471_v53  ;;  %v605_v2 = vsel %vm549_vm1, %v471_v53, 0.0  ;;  %v665_v3 = vmul.f32 %v471_v53, %v471_v53  ;;  %v474_v4 = vadd.f32 %v473_v60, %v302_v48  ;;  %v943_v6 = vpop.f32.mrb[14].mxu1  ;;  %v609_v24 = vsel %vm549_vm1, %v479_v46, 0.0  ;;  %577 = vst.msk [vmem:[%s1082_s7 + $0xd8] sm:$0xff] %vm549_vm1, %v1232_v33 }
 0x104   : > { %v606_v8 = vadd.f32 %v605_v2, %v604_v58  ;;  %565 = vst.msk [vmem:[%s1082_s7 + $0x78] sm:$0xff] %vm549_vm1, %v482_v59  ;;  %v537_v9 = vpop.f32.mrb[15].mxu1  ;;  %v707_v10 = vadd.f32 %v706_v7, %v705_v61  ;;  %v668_v30 = vmul.f32 %v482_v59, %v482_v59  ;;  %v611_v34 = vsel %vm549_vm1, %v482_v59, 0.0  ;;  %575 = vst.msk [vmem:[%s1082_s7 + $0xc8] sm:$0xff] %vm549_vm1, %v1236_v36 }
 0x105   : > { %v708_v11 = vsel %vm549_vm1, %v665_v3, 0.0  ;;  %563 = vst.msk [vmem:[%s1082_s7 + $0x68] sm:$0xff] %vm549_vm1, %v474_v4  ;;  %v607_v12 = vsel %vm549_vm1, %v474_v4, 0.0  ;;  %v666_v13 = vmul.f32 %v474_v4, %v474_v4  ;;  %v1238_v37 = vadd.f32 %v942_v56, %v319_v21 }
 0x106   : > { %v608_v17 = vadd.f32 %v607_v12, %v606_v8  ;;  %v709_v26 = vadd.f32 %v708_v11, %v707_v10  ;;  %v712_v5 = vsel %vm549_vm1, %v667_v16, 0.0  ;;  %v714_v40 = vsel %vm549_vm1, %v668_v30, 0.0 }
 0x107   : > { %v710_v27 = vsel %vm549_vm1, %v666_v13, 0.0  ;;  %580 = vst.msk [vmem:[%s1082_s7 + $0xf0] sm:$0xff] %vm549_vm1, %v1238_v37  ;;  %v670_v43 = vmul.f32 %v1117_v23, %v1117_v23  ;;  %v615_v45 = vsel %vm549_vm1, %v1117_v23, 0.0  ;;  %v683_v46 = vmul.f32 %v1238_v37, %v1238_v37 }
 0x108   : > { %v610_v31 = vadd.f32 %v609_v24, %v608_v17  ;;  %v711_v35 = vadd.f32 %v710_v27, %v709_v26  ;;  %v535_v47 = vadd.f32 %v534_v50, %v317_v18  ;;  %v671_v48 = vmul.f32 %v1090_v1, %v1090_v1 }
 0x109   : > { %v1265_v52 = vadd.f32 %v943_v6, %v320_v25  ;;  %v1267_v53 = vadd.f32 %v537_v9, %v318_v28  ;;  %v617_v54 = vsel %vm549_vm1, %v1090_v1, 0.0  ;;  %v672_v23 = vmul.f32 %v1115_v22, %v1115_v22 }
 0x10a   : > { %v612_v38 = vadd.f32 %v611_v34, %v610_v31  ;;  %v713_v39 = vadd.f32 %v712_v5, %v711_v35  ;;  %v1274_v57 = vsel %vm549_vm1, %v683_v46, 0.0  ;;  %578 = vst.msk [vmem:[%s1082_s7 + $0xe0] sm:$0xff] %vm549_vm1, %v535_v47  ;;  %v718_v59 = vsel %vm549_vm1, %v670_v43, 0.0 }
 0x10b   : > { %v673_v60 = vmul.f32 %v1152_v63, %v1152_v63  ;;  %581 = vst.msk [vmem:[%s1082_s7 + $0xf8] sm:$0xff] %vm549_vm1, %v1265_v52  ;;  %v684_v1 = vmul.f32 %v1265_v52, %v1265_v52  ;;  %579 = vst.msk [vmem:[%s1082_s7 + $0xe8] sm:$0xff] %vm549_vm1, %v1267_v53  ;;  %v619_v50 = vsel %vm549_vm1, %v1115_v22, 0.0  ;;  %v621_v2 = vsel %vm549_vm1, %v1152_v63, 0.0 }
 0x10c   : > { %v614_v41 = vadd.f32 %v613_v19, %v612_v38  ;;  %v715_v44 = vadd.f32 %v714_v40, %v713_v39  ;;  %v720_v3 = vsel %vm549_vm1, %v671_v48, 0.0  ;;  %v722_v8 = vsel %vm549_vm1, %v672_v23, 0.0 }
 0x10d   : > { %v746_v6 = vsel %vm549_vm1, %v684_v1, 0.0  ;;  %v724_v10 = vsel %vm549_vm1, %v673_v60, 0.0  ;;  %v674_v11 = vmul.f32 %v1196_v49, %v1196_v49  ;;  %v623_v22 = vsel %vm549_vm1, %v1196_v49, 0.0 }
 0x10e   : > { %v616_v51 = vadd.f32 %v615_v45, %v614_v41  ;;  %v717_v56 = vadd.f32 %v716_v42, %v715_v44  ;;  %v675_v63 = vmul.f32 %v1150_v62, %v1150_v62  ;;  %v676_v16 = vmul.f32 %v1154_v0, %v1154_v0 }
 0x10f   : > { %v726_v19 = vsel %vm549_vm1, %v674_v11, 0.0  ;;  %v677_v20 = vmul.f32 %v519_v32, %v519_v32  ;;  %v627_v21 = vsel %vm549_vm1, %v1154_v0, 0.0  ;;  %v629_v49 = vsel %vm549_vm1, %v519_v32, 0.0 }
 0x110   : > { %v618_v58 = vadd.f32 %v617_v54, %v616_v51  ;;  %v719_v61 = vadd.f32 %v718_v59, %v717_v56  ;;  %v728_v26 = vsel %vm549_vm1, %v675_v63, 0.0  ;;  %v730_v62 = vsel %vm549_vm1, %v676_v16, 0.0 }
 0x111   : > { %v732_v31 = vsel %vm549_vm1, %v677_v20, 0.0  ;;  %v678_v34 = vmul.f32 %v1236_v36, %v1236_v36  ;;  %v631_v5 = vsel %vm549_vm1, %v1236_v36, 0.0  ;;  %v679_v0 = vmul.f32 %v1199_v55, %v1199_v55 }
 0x112   : > { %v620_v4 = vadd.f32 %v619_v50, %v618_v58  ;;  %v721_v7 = vadd.f32 %v720_v3, %v719_v61  ;;  %v633_v38 = vsel %vm549_vm1, %v1199_v55, 0.0  ;;  %v680_v39 = vmul.f32 %v1232_v33, %v1232_v33 }
 0x113   : > { %v734_v28 = vsel %vm549_vm1, %v678_v34, 0.0  ;;  %v681_v40 = vmul.f32 %v535_v47, %v535_v47  ;;  %v635_v41 = vsel %vm549_vm1, %v1232_v33, 0.0  ;;  %v637_v36 = vsel %vm549_vm1, %v535_v47, 0.0 }
 0x114   : > { %v622_v9 = vadd.f32 %v621_v2, %v620_v4  ;;  %v723_v12 = vadd.f32 %v722_v8, %v721_v7  ;;  %v736_v43 = vsel %vm549_vm1, %v679_v0, 0.0  ;;  %v738_v55 = vsel %vm549_vm1, %v680_v39, 0.0 }
 0x115   : > { %v740_v48 = vsel %vm549_vm1, %v681_v40, 0.0  ;;  %v682_v51 = vmul.f32 %v1267_v53, %v1267_v53  ;;  %v639_v33 = vsel %vm549_vm1, %v1267_v53, 0.0  ;;  %v641_v47 = vsel %vm549_vm1, %v1238_v37, 0.0 }
 0x116   : > { %v624_v13 = vadd.f32 %v623_v22, %v622_v9  ;;  %v725_v15 = vadd.f32 %v724_v10, %v723_v12  ;;  %v643_v60 = vsel %vm549_vm1, %v1265_v52, 0.0 }
 0x117   : > { %v742_v59 = vsel %vm549_vm1, %v682_v51, 0.0 }
 0x118   : > { %v626_v17 = vadd.f32 %v625_v14, %v624_v13  ;;  %v727_v24 = vadd.f32 %v726_v19, %v725_v15 }
 0x11a   : > { %v628_v27 = vadd.f32 %v627_v21, %v626_v17  ;;  %v729_v29 = vadd.f32 %v728_v26, %v727_v24 }
 0x11c   : > { %v630_v30 = vadd.f32 %v629_v49, %v628_v27  ;;  %v731_v35 = vadd.f32 %v730_v62, %v729_v29 }
 0x11e   : > { %v632_v32 = vadd.f32 %v631_v5, %v630_v30  ;;  %v733_v18 = vadd.f32 %v732_v31, %v731_v35 }
 0x120   : > { %v634_v25 = vadd.f32 %v633_v38, %v632_v32  ;;  %v735_v42 = vadd.f32 %v734_v28, %v733_v18 }
 0x122   : > { %v636_v44 = vadd.f32 %v635_v41, %v634_v25  ;;  %v737_v45 = vadd.f32 %v736_v43, %v735_v42 }
 0x124   : > { %v638_v46 = vadd.f32 %v637_v36, %v636_v44  ;;  %v739_v54 = vadd.f32 %v738_v55, %v737_v45 }
 0x126   : > { %v640_v56 = vadd.f32 %v639_v33, %v638_v46  ;;  %v741_v23 = vadd.f32 %v740_v48, %v739_v54 }
 0x128   : > { %v642_v58 = vadd.f32 %v641_v47, %v640_v56  ;;  %v743_v1 = vadd.f32 %v742_v59, %v741_v23 }
 0x12a   : > { %v644_v50 = vadd.f32 %v643_v60, %v642_v58  ;;  %v745_v61 = vadd.f32 %v1274_v57, %v743_v1 }
 0x12c   : > { %v645_v2 = vrot.slane %v644_v50, 4  ;;  %v747_v3 = vadd.f32 %v746_v6, %v745_v61 }
 0x12e   : > { %v646_v53 = vadd.f32 %v645_v2, %v644_v50  ;;  %v748_v4 = vrot.slane %v747_v3, 4 }
 0x130   : > { %v647_v7 = vrot.slane %v646_v53, 2  ;;  %v749_v8 = vadd.f32 %v748_v4, %v747_v3 }
 0x132   : > { %v648_v37 = vadd.f32 %v647_v7, %v646_v53  ;;  %v750_v9 = vrot.slane %v749_v8, 2 }
 0x134   : > { %v649_v10 = vrot.slane %v648_v37, 1  ;;  %v751_v52 = vadd.f32 %v750_v9, %v749_v8 }
 0x136   : > { %v650_v11 = vadd.f32 %v649_v10, %v648_v37  ;;  %v752_v12 = vrot.slane %v751_v52, 1 }
 0x138   : > { %652 = vst.msk [vmem:[%s233_s11] sm:$0x1] %vm651_vm2, %v650_v11  ;;  %v753_v57 = vadd.f32 %v752_v12, %v751_v52 }
 0x13a   : > { %754 = vst.msk [vmem:[%s233_s11 + $0x1] sm:$0x1] %vm651_vm2, %v753_v57 }
 0x13b PF: > { %s15_s15 = sadd.s32 1, %s967_s15  }
 0x13c   : > { %p12_p5 = scmp.ge.s32.totalorder %s15_s15, 4  }
 0x13e   :  { %14 = sbr.rel (!%p12_p5) target bundleno = 1 (0x1), region = 77 }

</bundles_post_ra>
